<compile_context>
chip_gen: v6e
topology: v6e:2x2x1
jax: 0.10.0
libtpu: 0.0.40
codegen_flags: <defaults>
</compile_context>

<pallas_src>
import math
import functools

import jax
import jax.numpy as jnp
from jax import lax
from jax.experimental import pallas as pl
from jax.experimental.pallas import tpu as pltpu


def _round_up(v, m):
    return ((v + m - 1) // m) * m


def gru_kernel(x_ref, w_ih_ref, w_hh_ref, b_gi_ref, b_hhn_ref, w_fc_ref, b_fc_ref,
               out_ref, *, Hp, t_chunk, static_chunk_limit=8):
    # x_ref:   (tile_n, T, C)   window of the original (N, T, C) layout
    # w_ih_ref:(C, 3Hp) matmul dtype   w_hh_ref:(Hp, 3Hp) f32 (recurrent dot stays f32)
    # b_gi_ref:(1, 3Hp) f32            b_hhn_ref:(1, Hp) f32
    # w_fc_ref:(Hp, Op) matmul dtype   b_fc_ref:(1, Op) f32
    # out_ref: (tile_n, Op) f32
    tile_n, T, C = x_ref.shape

    w_ih = w_ih_ref[...]                                             # hoisted weight loads
    w_hh = w_hh_ref[...]
    b_gi = b_gi_ref[...]
    b_hhn = jnp.broadcast_to(b_hhn_ref[...], (tile_n, Hp))           # hoisted broadcast

    def run_chunk(h, t0, tlen):
        # Hoisted input projection for `tlen` steps: one (tile_n*tlen, C) x (C, 3Hp) matmul.
        x_chunk = x_ref[:, pl.ds(t0, tlen), :]                       # (tile_n, tlen, C)
        x_flat = x_chunk.reshape(tile_n * tlen, C)
        gi = jnp.dot(x_flat, w_ih, preferred_element_type=jnp.float32) + b_gi
        gi = gi.reshape(tile_n, tlen, 3 * Hp)
        # Recurrence: only h @ W_hh sits on the serial chain; tlen is small & static.
        for t in range(tlen):
            g = gi[:, t, :]                                          # off the h-chain
            gh = jnp.dot(h, w_hh, preferred_element_type=jnp.float32)
            r = jax.nn.sigmoid(g[:, :Hp] + gh[:, :Hp])               # lane-aligned slices
            z = jax.nn.sigmoid(g[:, Hp:2 * Hp] + gh[:, Hp:2 * Hp])
            n = jnp.tanh(g[:, 2 * Hp:] + r * (gh[:, 2 * Hp:] + b_hhn))
            h = n + z * (h - n)                                      # == (1-z)*n + z*h
        return h

    h = jnp.zeros((tile_n, Hp), jnp.float32)
    tc = max(1, min(int(t_chunk), T))
    num_full = T // tc
    rem = T - num_full * tc

    if num_full <= static_chunk_limit:
        # Few chunks: full static unroll (scheduler interleaves adjacent chunks/steps).
        for c in range(num_full):
            h = run_chunk(h, c * tc, tc)
    else:
        # Long sequences: grouped unroll — fori over chunks, tc-step unrolled chunk body.
        def fori_body(c, h):
            return run_chunk(h, pl.multiple_of(c * tc, tc), tc)
        h = lax.fori_loop(0, num_full, fori_body, h)
    if rem:
        h = run_chunk(h, num_full * tc, rem)

    # Output projection (lane-dense Op-wide store).
    out = jnp.dot(h.astype(w_fc_ref.dtype), w_fc_ref[...],
                  preferred_element_type=jnp.float32) + b_fc_ref[...]
    out_ref[...] = out.astype(out_ref.dtype)


def _pad_gates_last(a, H, Hp):
    """a: (..., 3H), gate-blocked along the last dim -> (..., 3Hp), each gate zero-padded."""
    out = jnp.zeros(a.shape[:-1] + (3 * Hp,), a.dtype)
    for g in range(3):
        out = out.at[..., g * Hp: g * Hp + H].set(a[..., g * H:(g + 1) * H])
    return out


def gru_forward(x, params, *, tile_n=256, t_chunk=8, matmul_dtype=jnp.bfloat16,
                vmem_budget_bytes=20 * 1024 * 1024):
    """x: (B, V, T, C) float32 -> (B*V, output_size) float32."""
    w_ih, w_hh, b_ih, b_hh, w_fc, b_fc = params
    B, V, T, C = x.shape
    N = B * V
    H = w_hh.shape[1]
    O = w_fc.shape[0]
    Hp = _round_up(H, 128)       # lane-aligned per-gate width
    Op = _round_up(O, 128)       # lane-dense output block

    x_itemsize = jnp.dtype(matmul_dtype).itemsize
    tc = max(1, min(int(t_chunk), T))

    # --- tile_n: multiple of 8 (sublane), >= 2 grid steps when N allows (v7x: 2 TCs share
    # the parallel axis), and bounded so per-tile VMEM fits the budget on all chips. ---
    tile = min(int(tile_n), max(8, pl.cdiv(N, 2)))
    tile = _round_up(tile, 8)
    per_row = (2 * T * C * x_itemsize          # double-buffered x block
               + tc * 3 * Hp * 4               # gi chunk (f32)
               + 2 * Op * 4                    # double-buffered output block
               + 8 * Hp * 4)                   # h/gh/r/z/n temps + headroom
    fixed = 2 * 4 * (C * 3 * Hp + Hp * 3 * Hp + Hp * Op + 4 * Hp + Op)   # weights/biases
    max_tile = max(8, ((max(vmem_budget_bytes - fixed, 8 * per_row)) // per_row) // 8 * 8)
    tile = max(8, min(tile, max_tile))

    # Flatten (B, V); NO transpose — the kernel windows the (N, T, C) layout directly.
    x2 = x.reshape(N, T, C)
    n_pad = pl.cdiv(N, tile) * tile
    if n_pad != N:
        x2 = jnp.pad(x2, ((0, n_pad - N), (0, 0), (0, 0)))
    x2 = x2.astype(matmul_dtype)             # cast once here: halves x HBM/VMEM traffic

    # --- weights: pre-transposed, per-gate lane-padded; bf16 where the MXU consumes bf16 ---
    w_ih_p = _pad_gates_last(jnp.transpose(w_ih), H, Hp).astype(matmul_dtype)   # (C, 3Hp)
    w_hh_p = _pad_gates_last(jnp.transpose(w_hh), H, Hp)                        # (H, 3Hp) f32
    w_hh_p = jnp.pad(w_hh_p, ((0, Hp - H), (0, 0)))                             # (Hp, 3Hp)
    # PyTorch GRU: b_ih (all gates) + b_hh (r,z) fold into the input projection bias;
    # b_hh_n stays inside the r*(...) term.
    b_gi = jnp.concatenate([b_ih[:2 * H] + b_hh[:2 * H], b_ih[2 * H:]])
    b_gi_p = _pad_gates_last(b_gi.reshape(1, 3 * H), H, Hp)                     # (1, 3Hp) f32
    b_hhn_p = jnp.zeros((1, Hp), jnp.float32).at[:, :H].set(b_hh[2 * H:])
    w_fc_p = jnp.zeros((Hp, Op), jnp.float32).at[:H, :O].set(jnp.transpose(w_fc))
    w_fc_p = w_fc_p.astype(matmul_dtype)
    b_fc_p = jnp.zeros((1, Op), jnp.float32).at[:, :O].set(b_fc)

    grid = (n_pad // tile,)
    kernel = functools.partial(gru_kernel, Hp=Hp, t_chunk=tc)
    out = pl.pallas_call(
        kernel,
        out_shape=jax.ShapeDtypeStruct((n_pad, Op), jnp.float32),
        grid_spec=pltpu.PrefetchScalarGridSpec(
            num_scalar_prefetch=0,
            grid=grid,
            in_specs=[
                pl.BlockSpec((tile, T, C), lambda i: (i, 0, 0)),
                pl.BlockSpec((C, 3 * Hp), lambda i: (0, 0)),
                pl.BlockSpec((Hp, 3 * Hp), lambda i: (0, 0)),
                pl.BlockSpec((1, 3 * Hp), lambda i: (0, 0)),
                pl.BlockSpec((1, Hp), lambda i: (0, 0)),
                pl.BlockSpec((Hp, Op), lambda i: (0, 0)),
                pl.BlockSpec((1, Op), lambda i: (0, 0)),
            ],
            out_specs=pl.BlockSpec((tile, Op), lambda i: (i, 0)),
        ),
        compiler_params=pltpu.CompilerParams(
            dimension_semantics=("parallel",),
            vmem_limit_bytes=32 * 1024 * 1024,   # > budget above; valid on v5e/v6e/v7x
        ),
    )(x2, w_ih_p, w_hh_p, b_gi_p, b_hhn_p, w_fc_p, b_fc_p)

    return out[:N, :O]


def make_params(key, in_channels, hidden_size, output_size):
    """Deterministic init mirroring PyTorch's uniform(-1/sqrt(H), 1/sqrt(H))."""
    ks = jax.random.split(key, 6)
    bound = 1.0 / math.sqrt(hidden_size)
    w_ih = jax.random.uniform(ks[0], (3 * hidden_size, in_channels),
                              minval=-bound, maxval=bound, dtype=jnp.float32)
    w_hh = jax.random.uniform(ks[1], (3 * hidden_size, hidden_size),
                              minval=-bound, maxval=bound, dtype=jnp.float32)
    b_ih = jax.random.uniform(ks[2], (3 * hidden_size,),
                              minval=-bound, maxval=bound, dtype=jnp.float32)
    b_hh = jax.random.uniform(ks[3], (3 * hidden_size,),
                              minval=-bound, maxval=bound, dtype=jnp.float32)
    w_fc = jax.random.uniform(ks[4], (output_size, hidden_size),
                              minval=-bound, maxval=bound, dtype=jnp.float32)
    b_fc = jax.random.uniform(ks[5], (output_size,),
                              minval=-bound, maxval=bound, dtype=jnp.float32)
    return (w_ih, w_hh, b_ih, b_hh, w_fc, b_fc)


def ref_forward(x, params):
    """Pure-JAX reference with PyTorch GRU semantics (gate order r, z, n)."""
    w_ih, w_hh, b_ih, b_hh, w_fc, b_fc = params
    B, V, T, C = x.shape
    H = w_hh.shape[1]
    xs = x.reshape(B * V, T, C)
    h = jnp.zeros((B * V, H), jnp.float32)

    def step(h, xt):
        gi = xt @ w_ih.T + b_ih
        gh = h @ w_hh.T + b_hh
        r = jax.nn.sigmoid(gi[:, :H] + gh[:, :H])
        z = jax.nn.sigmoid(gi[:, H:2 * H] + gh[:, H:2 * H])
        n = jnp.tanh(gi[:, 2 * H:] + r * gh[:, 2 * H:])
        return (1.0 - z) * n + z * h, None

    h_last, _ = lax.scan(step, h, jnp.swapaxes(xs, 0, 1))
    return h_last @ w_fc.T + b_fc


if __name__ == "__main__":
    # Small shapes consistent with the module's forward.
    batch, vertices, in_channels = 2, 16, 4
    hidden_size, output_size = 32, 16

    key = jax.random.PRNGKey(0)
    k_x1, k_x2, k_p = jax.random.split(key, 3)
    params = make_params(k_p, in_channels, hidden_size, output_size)

    # --- T = 8: single time-chunk, fully unrolled recurrence ---
    T1 = 8
    x1 = jax.random.normal(k_x1, (batch, vertices, T1, in_channels), dtype=jnp.float32)
    ref1 = jax.block_until_ready(ref_forward(x1, params))

    out_f32 = jax.block_until_ready(gru_forward(x1, params, matmul_dtype=jnp.float32))
    assert out_f32.shape == (batch * vertices, output_size), out_f32.shape
    assert jnp.allclose(out_f32, ref1, atol=1e-4, rtol=1e-4), \
        float(jnp.abs(out_f32 - ref1).max())

    out_bf16 = jax.block_until_ready(gru_forward(x1, params))    # default: bf16 MXU operands
    assert jnp.allclose(out_bf16, ref1, atol=5e-2, rtol=5e-2), \
        float(jnp.abs(out_bf16 - ref1).max())

    # --- T = 24: multi-chunk path (3 x 8-step chunks; gi footprint bounded per chunk) ---
    T2 = 24
    x2 = jax.random.normal(k_x2, (batch, vertices, T2, in_channels), dtype=jnp.float32)
    ref2 = jax.block_until_ready(ref_forward(x2, params))

    out2_f32 = jax.block_until_ready(gru_forward(x2, params, matmul_dtype=jnp.float32))
    assert jnp.allclose(out2_f32, ref2, atol=1e-4, rtol=1e-4), \
        float(jnp.abs(out2_f32 - ref2).max())

    out2_bf16 = jax.block_until_ready(gru_forward(x2, params))
    assert jnp.allclose(out2_bf16, ref2, atol=5e-2, rtol=5e-2), \
        float(jnp.abs(out2_bf16 - ref2).max())

    print("KERNEL_OK")
</pallas_src>

<mosaic_0001>
module attributes {stable_mosaic.version = 11 : i64} {
  func.func @gru_kernel(%arg0: i32, %arg1: memref<16x8x4xf32, #tpu.memory_space<vmem>>, %arg2: memref<4x384xf32, #tpu.memory_space<vmem>>, %arg3: memref<128x384xf32, #tpu.memory_space<vmem>>, %arg4: memref<1x384xf32, #tpu.memory_space<vmem>>, %arg5: memref<1x128xf32, #tpu.memory_space<vmem>>, %arg6: memref<128x128xf32, #tpu.memory_space<vmem>>, %arg7: memref<1x128xf32, #tpu.memory_space<vmem>>, %arg8: memref<16x128xf32, #tpu.memory_space<vmem>>) attributes {dimension_semantics = [#tpu.dimension_semantics<parallel>], iteration_bounds = array<i64: 2>, scalar_prefetch = 0 : i64, scratch_operands = 0 : i64, tpu.core_type = #tpu.core_type<tc>, window_params = [{transform_indices = @transform_0, window_bounds = array<i64: 16, 8, 4>}, {pipeline_mode = #tpu.pipeline_mode<synchronous>, transform_indices = @transform_1, window_bounds = array<i64: 4, 384>}, {pipeline_mode = #tpu.pipeline_mode<synchronous>, transform_indices = @transform_2, window_bounds = array<i64: 128, 384>}, {pipeline_mode = #tpu.pipeline_mode<synchronous>, transform_indices = @transform_3, window_bounds = array<i64: 1, 384>}, {pipeline_mode = #tpu.pipeline_mode<synchronous>, transform_indices = @transform_4, window_bounds = array<i64: 1, 128>}, {pipeline_mode = #tpu.pipeline_mode<synchronous>, transform_indices = @transform_5, window_bounds = array<i64: 128, 128>}, {pipeline_mode = #tpu.pipeline_mode<synchronous>, transform_indices = @transform_6, window_bounds = array<i64: 1, 128>}, {transform_indices = @transform_7, window_bounds = array<i64: 16, 128>}]} {
    %c0 = arith.constant 0 : index
    %c0_0 = arith.constant 0 : index
    %0 = vector.load %arg2[%c0, %c0_0] : memref<4x384xf32, #tpu.memory_space<vmem>>, vector<4x384xf32>
    %c0_1 = arith.constant 0 : index
    %c0_2 = arith.constant 0 : index
    %1 = vector.load %arg3[%c0_1, %c0_2] : memref<128x384xf32, #tpu.memory_space<vmem>>, vector<128x384xf32>
    %c0_3 = arith.constant 0 : index
    %c0_4 = arith.constant 0 : index
    %2 = vector.load %arg4[%c0_3, %c0_4] : memref<1x384xf32, #tpu.memory_space<vmem>>, vector<1x384xf32>
    %c0_5 = arith.constant 0 : index
    %c0_6 = arith.constant 0 : index
    %3 = vector.load %arg5[%c0_5, %c0_6] : memref<1x128xf32, #tpu.memory_space<vmem>>, vector<1x128xf32>
    %4 = vector.shape_cast %3 : vector<1x128xf32> to vector<1x128xf32>
    %5 = vector.broadcast %4 : vector<1x128xf32> to vector<16x128xf32>
    %cst = arith.constant 0.000000e+00 : f32
    %6 = vector.broadcast %cst : f32 to vector<16x128xf32>
    %c0_7 = arith.constant 0 : index
    %c0_8 = arith.constant 0 : index
    %c0_9 = arith.constant 0 : index
    %7 = vector.load %arg1[%c0_7, %c0_8, %c0_9] : memref<16x8x4xf32, #tpu.memory_space<vmem>>, vector<16x8x4xf32>
    %8 = vector.shape_cast %7 : vector<16x8x4xf32> to vector<128x4xf32>
    %cst_10 = arith.constant dense<0.000000e+00> : vector<128x384xf32>
    %9 = tpu.matmul %8, %0, %cst_10 {dimension_numbers = #tpu.dot_dimension_numbers<[1], [0], [0], [1], [0, 0, 1, 1], [], []>} : vector<128x4xf32>, vector<4x384xf32>, vector<128x384xf32> -> vector<128x384xf32>
    %10 = vector.broadcast %2 : vector<1x384xf32> to vector<128x384xf32>
    %11 = arith.addf %9, %10 : vector<128x384xf32>
    %12 = vector.shape_cast %11 : vector<128x384xf32> to vector<16x8x384xf32>
    %13 = vector.extract_strided_slice %12 {offsets = [0, 0, 0], sizes = [16, 1, 384], strides = [1, 1, 1]} : vector<16x8x384xf32> to vector<16x1x384xf32>
    %14 = vector.shape_cast %13 : vector<16x1x384xf32> to vector<16x384xf32>
    %cst_11 = arith.constant dense<0.000000e+00> : vector<16x384xf32>
    %15 = tpu.matmul %6, %1, %cst_11 {dimension_numbers = #tpu.dot_dimension_numbers<[1], [0], [0], [1], [0, 0, 1, 1], [], []>} : vector<16x128xf32>, vector<128x384xf32>, vector<16x384xf32> -> vector<16x384xf32>
    %16 = vector.extract_strided_slice %14 {offsets = [0, 0], sizes = [16, 128], strides = [1, 1]} : vector<16x384xf32> to vector<16x128xf32>
    %17 = vector.extract_strided_slice %15 {offsets = [0, 0], sizes = [16, 128], strides = [1, 1]} : vector<16x384xf32> to vector<16x128xf32>
    %18 = arith.addf %16, %17 : vector<16x128xf32>
    %19 = arith.negf %18 : vector<16x128xf32>
    %20 = math.exp %19 : vector<16x128xf32>
    %cst_12 = arith.constant 1.000000e+00 : f32
    %21 = vector.broadcast %cst_12 : f32 to vector<16x128xf32>
    %22 = arith.addf %21, %20 : vector<16x128xf32>
    %23 = arith.divf %21, %22 : vector<16x128xf32>
    %24 = vector.extract_strided_slice %14 {offsets = [0, 128], sizes = [16, 128], strides = [1, 1]} : vector<16x384xf32> to vector<16x128xf32>
    %25 = vector.extract_strided_slice %15 {offsets = [0, 128], sizes = [16, 128], strides = [1, 1]} : vector<16x384xf32> to vector<16x128xf32>
    %26 = arith.addf %24, %25 : vector<16x128xf32>
    %27 = arith.negf %26 : vector<16x128xf32>
    %28 = math.exp %27 : vector<16x128xf32>
    %cst_13 = arith.constant 1.000000e+00 : f32
    %29 = vector.broadcast %cst_13 : f32 to vector<16x128xf32>
    %30 = arith.addf %29, %28 : vector<16x128xf32>
    %31 = arith.divf %29, %30 : vector<16x128xf32>
    %32 = vector.extract_strided_slice %14 {offsets = [0, 256], sizes = [16, 128], strides = [1, 1]} : vector<16x384xf32> to vector<16x128xf32>
    %33 = vector.extract_strided_slice %15 {offsets = [0, 256], sizes = [16, 128], strides = [1, 1]} : vector<16x384xf32> to vector<16x128xf32>
    %34 = arith.addf %33, %5 : vector<16x128xf32>
    %35 = arith.mulf %23, %34 : vector<16x128xf32>
    %36 = arith.addf %32, %35 : vector<16x128xf32>
    %37 = math.tanh %36 : vector<16x128xf32>
    %38 = arith.subf %6, %37 : vector<16x128xf32>
    %39 = arith.mulf %31, %38 : vector<16x128xf32>
    %40 = arith.addf %37, %39 : vector<16x128xf32>
    %41 = vector.extract_strided_slice %12 {offsets = [0, 1, 0], sizes = [16, 1, 384], strides = [1, 1, 1]} : vector<16x8x384xf32> to vector<16x1x384xf32>
    %42 = vector.shape_cast %41 : vector<16x1x384xf32> to vector<16x384xf32>
    %cst_14 = arith.constant dense<0.000000e+00> : vector<16x384xf32>
    %43 = tpu.matmul %40, %1, %cst_14 {dimension_numbers = #tpu.dot_dimension_numbers<[1], [0], [0], [1], [0, 0, 1, 1], [], []>} : vector<16x128xf32>, vector<128x384xf32>, vector<16x384xf32> -> vector<16x384xf32>
    %44 = vector.extract_strided_slice %42 {offsets = [0, 0], sizes = [16, 128], strides = [1, 1]} : vector<16x384xf32> to vector<16x128xf32>
    %45 = vector.extract_strided_slice %43 {offsets = [0, 0], sizes = [16, 128], strides = [1, 1]} : vector<16x384xf32> to vector<16x128xf32>
    %46 = arith.addf %44, %45 : vector<16x128xf32>
    %47 = arith.negf %46 : vector<16x128xf32>
    %48 = math.exp %47 : vector<16x128xf32>
    %cst_15 = arith.constant 1.000000e+00 : f32
    %49 = vector.broadcast %cst_15 : f32 to vector<16x128xf32>
    %50 = arith.addf %49, %48 : vector<16x128xf32>
    %51 = arith.divf %49, %50 : vector<16x128xf32>
    %52 = vector.extract_strided_slice %42 {offsets = [0, 128], sizes = [16, 128], strides = [1, 1]} : vector<16x384xf32> to vector<16x128xf32>
    %53 = vector.extract_strided_slice %43 {offsets = [0, 128], sizes = [16, 128], strides = [1, 1]} : vector<16x384xf32> to vector<16x128xf32>
    %54 = arith.addf %52, %53 : vector<16x128xf32>
    %55 = arith.negf %54 : vector<16x128xf32>
    %56 = math.exp %55 : vector<16x128xf32>
    %cst_16 = arith.constant 1.000000e+00 : f32
    %57 = vector.broadcast %cst_16 : f32 to vector<16x128xf32>
    %58 = arith.addf %57, %56 : vector<16x128xf32>
    %59 = arith.divf %57, %58 : vector<16x128xf32>
    %60 = vector.extract_strided_slice %42 {offsets = [0, 256], sizes = [16, 128], strides = [1, 1]} : vector<16x384xf32> to vector<16x128xf32>
    %61 = vector.extract_strided_slice %43 {offsets = [0, 256], sizes = [16, 128], strides = [1, 1]} : vector<16x384xf32> to vector<16x128xf32>
    %62 = arith.addf %61, %5 : vector<16x128xf32>
    %63 = arith.mulf %51, %62 : vector<16x128xf32>
    %64 = arith.addf %60, %63 : vector<16x128xf32>
    %65 = math.tanh %64 : vector<16x128xf32>
    %66 = arith.subf %40, %65 : vector<16x128xf32>
    %67 = arith.mulf %59, %66 : vector<16x128xf32>
    %68 = arith.addf %65, %67 : vector<16x128xf32>
    %69 = vector.extract_strided_slice %12 {offsets = [0, 2, 0], sizes = [16, 1, 384], strides = [1, 1, 1]} : vector<16x8x384xf32> to vector<16x1x384xf32>
    %70 = vector.shape_cast %69 : vector<16x1x384xf32> to vector<16x384xf32>
    %cst_17 = arith.constant dense<0.000000e+00> : vector<16x384xf32>
    %71 = tpu.matmul %68, %1, %cst_17 {dimension_numbers = #tpu.dot_dimension_numbers<[1], [0], [0], [1], [0, 0, 1, 1], [], []>} : vector<16x128xf32>, vector<128x384xf32>, vector<16x384xf32> -> vector<16x384xf32>
    %72 = vector.extract_strided_slice %70 {offsets = [0, 0], sizes = [16, 128], strides = [1, 1]} : vector<16x384xf32> to vector<16x128xf32>
    %73 = vector.extract_strided_slice %71 {offsets = [0, 0], sizes = [16, 128], strides = [1, 1]} : vector<16x384xf32> to vector<16x128xf32>
    %74 = arith.addf %72, %73 : vector<16x128xf32>
    %75 = arith.negf %74 : vector<16x128xf32>
    %76 = math.exp %75 : vector<16x128xf32>
    %cst_18 = arith.constant 1.000000e+00 : f32
    %77 = vector.broadcast %cst_18 : f32 to vector<16x128xf32>
    %78 = arith.addf %77, %76 : vector<16x128xf32>
    %79 = arith.divf %77, %78 : vector<16x128xf32>
    %80 = vector.extract_strided_slice %70 {offsets = [0, 128], sizes = [16, 128], strides = [1, 1]} : vector<16x384xf32> to vector<16x128xf32>
    %81 = vector.extract_strided_slice %71 {offsets = [0, 128], sizes = [16, 128], strides = [1, 1]} : vector<16x384xf32> to vector<16x128xf32>
    %82 = arith.addf %80, %81 : vector<16x128xf32>
    %83 = arith.negf %82 : vector<16x128xf32>
    %84 = math.exp %83 : vector<16x128xf32>
    %cst_19 = arith.constant 1.000000e+00 : f32
    %85 = vector.broadcast %cst_19 : f32 to vector<16x128xf32>
    %86 = arith.addf %85, %84 : vector<16x128xf32>
    %87 = arith.divf %85, %86 : vector<16x128xf32>
    %88 = vector.extract_strided_slice %70 {offsets = [0, 256], sizes = [16, 128], strides = [1, 1]} : vector<16x384xf32> to vector<16x128xf32>
    %89 = vector.extract_strided_slice %71 {offsets = [0, 256], sizes = [16, 128], strides = [1, 1]} : vector<16x384xf32> to vector<16x128xf32>
    %90 = arith.addf %89, %5 : vector<16x128xf32>
    %91 = arith.mulf %79, %90 : vector<16x128xf32>
    %92 = arith.addf %88, %91 : vector<16x128xf32>
    %93 = math.tanh %92 : vector<16x128xf32>
    %94 = arith.subf %68, %93 : vector<16x128xf32>
    %95 = arith.mulf %87, %94 : vector<16x128xf32>
    %96 = arith.addf %93, %95 : vector<16x128xf32>
    %97 = vector.extract_strided_slice %12 {offsets = [0, 3, 0], sizes = [16, 1, 384], strides = [1, 1, 1]} : vector<16x8x384xf32> to vector<16x1x384xf32>
    %98 = vector.shape_cast %97 : vector<16x1x384xf32> to vector<16x384xf32>
    %cst_20 = arith.constant dense<0.000000e+00> : vector<16x384xf32>
    %99 = tpu.matmul %96, %1, %cst_20 {dimension_numbers = #tpu.dot_dimension_numbers<[1], [0], [0], [1], [0, 0, 1, 1], [], []>} : vector<16x128xf32>, vector<128x384xf32>, vector<16x384xf32> -> vector<16x384xf32>
    %100 = vector.extract_strided_slice %98 {offsets = [0, 0], sizes = [16, 128], strides = [1, 1]} : vector<16x384xf32> to vector<16x128xf32>
    %101 = vector.extract_strided_slice %99 {offsets = [0, 0], sizes = [16, 128], strides = [1, 1]} : vector<16x384xf32> to vector<16x128xf32>
    %102 = arith.addf %100, %101 : vector<16x128xf32>
    %103 = arith.negf %102 : vector<16x128xf32>
    %104 = math.exp %103 : vector<16x128xf32>
    %cst_21 = arith.constant 1.000000e+00 : f32
    %105 = vector.broadcast %cst_21 : f32 to vector<16x128xf32>
    %106 = arith.addf %105, %104 : vector<16x128xf32>
    %107 = arith.divf %105, %106 : vector<16x128xf32>
    %108 = vector.extract_strided_slice %98 {offsets = [0, 128], sizes = [16, 128], strides = [1, 1]} : vector<16x384xf32> to vector<16x128xf32>
    %109 = vector.extract_strided_slice %99 {offsets = [0, 128], sizes = [16, 128], strides = [1, 1]} : vector<16x384xf32> to vector<16x128xf32>
    %110 = arith.addf %108, %109 : vector<16x128xf32>
    %111 = arith.negf %110 : vector<16x128xf32>
    %112 = math.exp %111 : vector<16x128xf32>
    %cst_22 = arith.constant 1.000000e+00 : f32
    %113 = vector.broadcast %cst_22 : f32 to vector<16x128xf32>
    %114 = arith.addf %113, %112 : vector<16x128xf32>
    %115 = arith.divf %113, %114 : vector<16x128xf32>
    %116 = vector.extract_strided_slice %98 {offsets = [0, 256], sizes = [16, 128], strides = [1, 1]} : vector<16x384xf32> to vector<16x128xf32>
    %117 = vector.extract_strided_slice %99 {offsets = [0, 256], sizes = [16, 128], strides = [1, 1]} : vector<16x384xf32> to vector<16x128xf32>
    %118 = arith.addf %117, %5 : vector<16x128xf32>
    %119 = arith.mulf %107, %118 : vector<16x128xf32>
    %120 = arith.addf %116, %119 : vector<16x128xf32>
    %121 = math.tanh %120 : vector<16x128xf32>
    %122 = arith.subf %96, %121 : vector<16x128xf32>
    %123 = arith.mulf %115, %122 : vector<16x128xf32>
    %124 = arith.addf %121, %123 : vector<16x128xf32>
    %125 = vector.extract_strided_slice %12 {offsets = [0, 4, 0], sizes = [16, 1, 384], strides = [1, 1, 1]} : vector<16x8x384xf32> to vector<16x1x384xf32>
    %126 = vector.shape_cast %125 : vector<16x1x384xf32> to vector<16x384xf32>
    %cst_23 = arith.constant dense<0.000000e+00> : vector<16x384xf32>
    %127 = tpu.matmul %124, %1, %cst_23 {dimension_numbers = #tpu.dot_dimension_numbers<[1], [0], [0], [1], [0, 0, 1, 1], [], []>} : vector<16x128xf32>, vector<128x384xf32>, vector<16x384xf32> -> vector<16x384xf32>
    %128 = vector.extract_strided_slice %126 {offsets = [0, 0], sizes = [16, 128], strides = [1, 1]} : vector<16x384xf32> to vector<16x128xf32>
    %129 = vector.extract_strided_slice %127 {offsets = [0, 0], sizes = [16, 128], strides = [1, 1]} : vector<16x384xf32> to vector<16x128xf32>
    %130 = arith.addf %128, %129 : vector<16x128xf32>
    %131 = arith.negf %130 : vector<16x128xf32>
    %132 = math.exp %131 : vector<16x128xf32>
    %cst_24 = arith.constant 1.000000e+00 : f32
    %133 = vector.broadcast %cst_24 : f32 to vector<16x128xf32>
    %134 = arith.addf %133, %132 : vector<16x128xf32>
    %135 = arith.divf %133, %134 : vector<16x128xf32>
    %136 = vector.extract_strided_slice %126 {offsets = [0, 128], sizes = [16, 128], strides = [1, 1]} : vector<16x384xf32> to vector<16x128xf32>
    %137 = vector.extract_strided_slice %127 {offsets = [0, 128], sizes = [16, 128], strides = [1, 1]} : vector<16x384xf32> to vector<16x128xf32>
    %138 = arith.addf %136, %137 : vector<16x128xf32>
    %139 = arith.negf %138 : vector<16x128xf32>
    %140 = math.exp %139 : vector<16x128xf32>
    %cst_25 = arith.constant 1.000000e+00 : f32
    %141 = vector.broadcast %cst_25 : f32 to vector<16x128xf32>
    %142 = arith.addf %141, %140 : vector<16x128xf32>
    %143 = arith.divf %141, %142 : vector<16x128xf32>
    %144 = vector.extract_strided_slice %126 {offsets = [0, 256], sizes = [16, 128], strides = [1, 1]} : vector<16x384xf32> to vector<16x128xf32>
    %145 = vector.extract_strided_slice %127 {offsets = [0, 256], sizes = [16, 128], strides = [1, 1]} : vector<16x384xf32> to vector<16x128xf32>
    %146 = arith.addf %145, %5 : vector<16x128xf32>
    %147 = arith.mulf %135, %146 : vector<16x128xf32>
    %148 = arith.addf %144, %147 : vector<16x128xf32>
    %149 = math.tanh %148 : vector<16x128xf32>
    %150 = arith.subf %124, %149 : vector<16x128xf32>
    %151 = arith.mulf %143, %150 : vector<16x128xf32>
    %152 = arith.addf %149, %151 : vector<16x128xf32>
    %153 = vector.extract_strided_slice %12 {offsets = [0, 5, 0], sizes = [16, 1, 384], strides = [1, 1, 1]} : vector<16x8x384xf32> to vector<16x1x384xf32>
    %154 = vector.shape_cast %153 : vector<16x1x384xf32> to vector<16x384xf32>
    %cst_26 = arith.constant dense<0.000000e+00> : vector<16x384xf32>
    %155 = tpu.matmul %152, %1, %cst_26 {dimension_numbers = #tpu.dot_dimension_numbers<[1], [0], [0], [1], [0, 0, 1, 1], [], []>} : vector<16x128xf32>, vector<128x384xf32>, vector<16x384xf32> -> vector<16x384xf32>
    %156 = vector.extract_strided_slice %154 {offsets = [0, 0], sizes = [16, 128], strides = [1, 1]} : vector<16x384xf32> to vector<16x128xf32>
    %157 = vector.extract_strided_slice %155 {offsets = [0, 0], sizes = [16, 128], strides = [1, 1]} : vector<16x384xf32> to vector<16x128xf32>
    %158 = arith.addf %156, %157 : vector<16x128xf32>
    %159 = arith.negf %158 : vector<16x128xf32>
    %160 = math.exp %159 : vector<16x128xf32>
    %cst_27 = arith.constant 1.000000e+00 : f32
    %161 = vector.broadcast %cst_27 : f32 to vector<16x128xf32>
    %162 = arith.addf %161, %160 : vector<16x128xf32>
    %163 = arith.divf %161, %162 : vector<16x128xf32>
    %164 = vector.extract_strided_slice %154 {offsets = [0, 128], sizes = [16, 128], strides = [1, 1]} : vector<16x384xf32> to vector<16x128xf32>
    %165 = vector.extract_strided_slice %155 {offsets = [0, 128], sizes = [16, 128], strides = [1, 1]} : vector<16x384xf32> to vector<16x128xf32>
    %166 = arith.addf %164, %165 : vector<16x128xf32>
    %167 = arith.negf %166 : vector<16x128xf32>
    %168 = math.exp %167 : vector<16x128xf32>
    %cst_28 = arith.constant 1.000000e+00 : f32
    %169 = vector.broadcast %cst_28 : f32 to vector<16x128xf32>
    %170 = arith.addf %169, %168 : vector<16x128xf32>
    %171 = arith.divf %169, %170 : vector<16x128xf32>
    %172 = vector.extract_strided_slice %154 {offsets = [0, 256], sizes = [16, 128], strides = [1, 1]} : vector<16x384xf32> to vector<16x128xf32>
    %173 = vector.extract_strided_slice %155 {offsets = [0, 256], sizes = [16, 128], strides = [1, 1]} : vector<16x384xf32> to vector<16x128xf32>
    %174 = arith.addf %173, %5 : vector<16x128xf32>
    %175 = arith.mulf %163, %174 : vector<16x128xf32>
    %176 = arith.addf %172, %175 : vector<16x128xf32>
    %177 = math.tanh %176 : vector<16x128xf32>
    %178 = arith.subf %152, %177 : vector<16x128xf32>
    %179 = arith.mulf %171, %178 : vector<16x128xf32>
    %180 = arith.addf %177, %179 : vector<16x128xf32>
    %181 = vector.extract_strided_slice %12 {offsets = [0, 6, 0], sizes = [16, 1, 384], strides = [1, 1, 1]} : vector<16x8x384xf32> to vector<16x1x384xf32>
    %182 = vector.shape_cast %181 : vector<16x1x384xf32> to vector<16x384xf32>
    %cst_29 = arith.constant dense<0.000000e+00> : vector<16x384xf32>
    %183 = tpu.matmul %180, %1, %cst_29 {dimension_numbers = #tpu.dot_dimension_numbers<[1], [0], [0], [1], [0, 0, 1, 1], [], []>} : vector<16x128xf32>, vector<128x384xf32>, vector<16x384xf32> -> vector<16x384xf32>
    %184 = vector.extract_strided_slice %182 {offsets = [0, 0], sizes = [16, 128], strides = [1, 1]} : vector<16x384xf32> to vector<16x128xf32>
    %185 = vector.extract_strided_slice %183 {offsets = [0, 0], sizes = [16, 128], strides = [1, 1]} : vector<16x384xf32> to vector<16x128xf32>
    %186 = arith.addf %184, %185 : vector<16x128xf32>
    %187 = arith.negf %186 : vector<16x128xf32>
    %188 = math.exp %187 : vector<16x128xf32>
    %cst_30 = arith.constant 1.000000e+00 : f32
    %189 = vector.broadcast %cst_30 : f32 to vector<16x128xf32>
    %190 = arith.addf %189, %188 : vector<16x128xf32>
    %191 = arith.divf %189, %190 : vector<16x128xf32>
    %192 = vector.extract_strided_slice %182 {offsets = [0, 128], sizes = [16, 128], strides = [1, 1]} : vector<16x384xf32> to vector<16x128xf32>
    %193 = vector.extract_strided_slice %183 {offsets = [0, 128], sizes = [16, 128], strides = [1, 1]} : vector<16x384xf32> to vector<16x128xf32>
    %194 = arith.addf %192, %193 : vector<16x128xf32>
    %195 = arith.negf %194 : vector<16x128xf32>
    %196 = math.exp %195 : vector<16x128xf32>
    %cst_31 = arith.constant 1.000000e+00 : f32
    %197 = vector.broadcast %cst_31 : f32 to vector<16x128xf32>
    %198 = arith.addf %197, %196 : vector<16x128xf32>
    %199 = arith.divf %197, %198 : vector<16x128xf32>
    %200 = vector.extract_strided_slice %182 {offsets = [0, 256], sizes = [16, 128], strides = [1, 1]} : vector<16x384xf32> to vector<16x128xf32>
    %201 = vector.extract_strided_slice %183 {offsets = [0, 256], sizes = [16, 128], strides = [1, 1]} : vector<16x384xf32> to vector<16x128xf32>
    %202 = arith.addf %201, %5 : vector<16x128xf32>
    %203 = arith.mulf %191, %202 : vector<16x128xf32>
    %204 = arith.addf %200, %203 : vector<16x128xf32>
    %205 = math.tanh %204 : vector<16x128xf32>
    %206 = arith.subf %180, %205 : vector<16x128xf32>
    %207 = arith.mulf %199, %206 : vector<16x128xf32>
    %208 = arith.addf %205, %207 : vector<16x128xf32>
    %209 = vector.extract_strided_slice %12 {offsets = [0, 7, 0], sizes = [16, 1, 384], strides = [1, 1, 1]} : vector<16x8x384xf32> to vector<16x1x384xf32>
    %210 = vector.shape_cast %209 : vector<16x1x384xf32> to vector<16x384xf32>
    %cst_32 = arith.constant dense<0.000000e+00> : vector<16x384xf32>
    %211 = tpu.matmul %208, %1, %cst_32 {dimension_numbers = #tpu.dot_dimension_numbers<[1], [0], [0], [1], [0, 0, 1, 1], [], []>} : vector<16x128xf32>, vector<128x384xf32>, vector<16x384xf32> -> vector<16x384xf32>
    %212 = vector.extract_strided_slice %210 {offsets = [0, 0], sizes = [16, 128], strides = [1, 1]} : vector<16x384xf32> to vector<16x128xf32>
    %213 = vector.extract_strided_slice %211 {offsets = [0, 0], sizes = [16, 128], strides = [1, 1]} : vector<16x384xf32> to vector<16x128xf32>
    %214 = arith.addf %212, %213 : vector<16x128xf32>
    %215 = arith.negf %214 : vector<16x128xf32>
    %216 = math.exp %215 : vector<16x128xf32>
    %cst_33 = arith.constant 1.000000e+00 : f32
    %217 = vector.broadcast %cst_33 : f32 to vector<16x128xf32>
    %218 = arith.addf %217, %216 : vector<16x128xf32>
    %219 = arith.divf %217, %218 : vector<16x128xf32>
    %220 = vector.extract_strided_slice %210 {offsets = [0, 128], sizes = [16, 128], strides = [1, 1]} : vector<16x384xf32> to vector<16x128xf32>
    %221 = vector.extract_strided_slice %211 {offsets = [0, 128], sizes = [16, 128], strides = [1, 1]} : vector<16x384xf32> to vector<16x128xf32>
    %222 = arith.addf %220, %221 : vector<16x128xf32>
    %223 = arith.negf %222 : vector<16x128xf32>
    %224 = math.exp %223 : vector<16x128xf32>
    %cst_34 = arith.constant 1.000000e+00 : f32
    %225 = vector.broadcast %cst_34 : f32 to vector<16x128xf32>
    %226 = arith.addf %225, %224 : vector<16x128xf32>
    %227 = arith.divf %225, %226 : vector<16x128xf32>
    %228 = vector.extract_strided_slice %210 {offsets = [0, 256], sizes = [16, 128], strides = [1, 1]} : vector<16x384xf32> to vector<16x128xf32>
    %229 = vector.extract_strided_slice %211 {offsets = [0, 256], sizes = [16, 128], strides = [1, 1]} : vector<16x384xf32> to vector<16x128xf32>
    %230 = arith.addf %229, %5 : vector<16x128xf32>
    %231 = arith.mulf %219, %230 : vector<16x128xf32>
    %232 = arith.addf %228, %231 : vector<16x128xf32>
    %233 = math.tanh %232 : vector<16x128xf32>
    %234 = arith.subf %208, %233 : vector<16x128xf32>
    %235 = arith.mulf %227, %234 : vector<16x128xf32>
    %236 = arith.addf %233, %235 : vector<16x128xf32>
    %c0_35 = arith.constant 0 : index
    %c0_36 = arith.constant 0 : index
    %237 = vector.load %arg6[%c0_35, %c0_36] : memref<128x128xf32, #tpu.memory_space<vmem>>, vector<128x128xf32>
    %cst_37 = arith.constant dense<0.000000e+00> : vector<16x128xf32>
    %238 = tpu.matmul %236, %237, %cst_37 {dimension_numbers = #tpu.dot_dimension_numbers<[1], [0], [0], [1], [0, 0, 1, 1], [], []>} : vector<16x128xf32>, vector<128x128xf32>, vector<16x128xf32> -> vector<16x128xf32>
    %c0_38 = arith.constant 0 : index
    %c0_39 = arith.constant 0 : index
    %239 = vector.load %arg7[%c0_38, %c0_39] : memref<1x128xf32, #tpu.memory_space<vmem>>, vector<1x128xf32>
    %240 = vector.broadcast %239 : vector<1x128xf32> to vector<16x128xf32>
    %241 = arith.addf %238, %240 : vector<16x128xf32>
    %c0_40 = arith.constant 0 : index
    %c0_41 = arith.constant 0 : index
    %242 = vector.load %arg8[%c0_40, %c0_41] : memref<16x128xf32, #tpu.memory_space<vmem>>, vector<16x128xf32>
    tpu.vector_store %arg8[%c0_40, %c0_41], %241 {strides = array<i32>} : memref<16x128xf32, #tpu.memory_space<vmem>>, vector<16x128xf32>,
    return
  }
  func.func @transform_0(%arg0: i32) -> (i32, i32, i32) {
    %c0_i32 = arith.constant 0 : i32
    %c0_i32_0 = arith.constant 0 : i32
    %c0_i32_1 = arith.constant 0 : i32
    return %arg0, %c0_i32, %c0_i32_0 : i32, i32, i32
  }
  func.func @transform_1(%arg0: i32) -> (i32, i32) {
    %c0_i32 = arith.constant 0 : i32
    %c0_i32_0 = arith.constant 0 : i32
    %c0_i32_1 = arith.constant 0 : i32
    return %c0_i32, %c0_i32_0 : i32, i32
  }
  func.func @transform_2(%arg0: i32) -> (i32, i32) {
    %c0_i32 = arith.constant 0 : i32
    %c0_i32_0 = arith.constant 0 : i32
    %c0_i32_1 = arith.constant 0 : i32
    return %c0_i32, %c0_i32_0 : i32, i32
  }
  func.func @transform_3(%arg0: i32) -> (i32, i32) {
    %c0_i32 = arith.constant 0 : i32
    %c0_i32_0 = arith.constant 0 : i32
    %c0_i32_1 = arith.constant 0 : i32
    return %c0_i32, %c0_i32_0 : i32, i32
  }
  func.func @transform_4(%arg0: i32) -> (i32, i32) {
    %c0_i32 = arith.constant 0 : i32
    %c0_i32_0 = arith.constant 0 : i32
    %c0_i32_1 = arith.constant 0 : i32
    return %c0_i32, %c0_i32_0 : i32, i32
  }
  func.func @transform_5(%arg0: i32) -> (i32, i32) {
    %c0_i32 = arith.constant 0 : i32
    %c0_i32_0 = arith.constant 0 : i32
    %c0_i32_1 = arith.constant 0 : i32
    return %c0_i32, %c0_i32_0 : i32, i32
  }
  func.func @transform_6(%arg0: i32) -> (i32, i32) {
    %c0_i32 = arith.constant 0 : i32
    %c0_i32_0 = arith.constant 0 : i32
    %c0_i32_1 = arith.constant 0 : i32
    return %c0_i32, %c0_i32_0 : i32, i32
  }
  func.func @transform_7(%arg0: i32) -> (i32, i32) {
    %c0_i32 = arith.constant 0 : i32
    %c0_i32_0 = arith.constant 0 : i32
    return %arg0, %c0_i32 : i32, i32
  }
}

</mosaic_0001>

<bundles_post_ra>
// kernel: tpu_custom_call.1
= control target key start
LH: loop header
LB: loop body
LE: loop exit
PB: predicated region body
PF: predicated region fallthrough
CT: control target
= control target key end

     0   :  { %12 = vsyncpa [#allocation3], 0  ;;  %s11825_s0 = inlined_call_operand.vmem [shape: f32[32,8,4], index: 0, kind: input, shape index: {}]   ;;  %s11826_s1 = inlined_call_operand.vmem [shape: f32[4,384], index: 1, kind: input, shape index: {}]   ;;  %s11827_s2 = inlined_call_operand.hbm [shape: f32[128,384], index: 2, kind: input, shape index: {}]   ;;  %s11828_s3 = inlined_call_operand.vmem [shape: f32[1,384], index: 3, kind: input, shape index: {}]   ;;  %s11829_s4 = inlined_call_operand.vmem [shape: f32[1,128], index: 4, kind: input, shape index: {}]   ;;  %s11830_s5 = inlined_call_operand.vmem [shape: f32[128,128], index: 5, kind: input, shape index: {}]   ;;  %s11831_s6 = inlined_call_operand.vmem [shape: f32[1,128], index: 6, kind: input, shape index: {}]   ;;  %s11832_s7 = inlined_call_operand.hbm [shape: f32[32,128], index: 7, kind: output, shape index: {}]  }
   0x1   :  { %13 = vsyncpa [#allocation4], 0 }
   0x2   :  { %15 = vsyncpa [#allocation4 + $0x1], 0  ;;  %s9140_s24 = smov 0   ;;  %s9142_s25 = smov 0  }
   0x3   :  { %s9144_s26 = smov 0   ;;  %s9146_s27 = smov 0  }
   0x4 LB: > { %s9161_s28 = sadd.s32 4294967295, %s9091_s27   ;;  %s6545_s29 = sadd.s32 4294967294, %s9091_s27   ;;  %s9091_s27 = sphi %s9146_s27, %s12310_s27   ;;  %s9087_s26 = sphi %s9144_s26, %s12309_s26   ;;  %s9083_s25 = sphi %s9142_s25, %s12308_s25   ;;  %s9079_s24 = sphi %s9140_s24, %s12307_s24  }
   0x5   : > { %s9165_s30 = sadd.s32 1, %s9091_s27   ;;  %s180_s8 = sadd.s32 1, %s9087_s26 }
   0x6   : > { %s177_s9 = ssub.s32 %s9091_s27, %s9165_s30  ;;  %p190_p0 = scmp.ne.s32.totalorder %s9087_s26, %s9083_s25 }
   0x7   : > { %p178_p1 = scmp.eq.s32.totalorder %s177_s9, 0  ;;  %p191_p2 = scmp.eq.s32.totalorder %s9161_s28, 1 }
   0x8   : > { %p196_p3 = scmp.ne.s32.totalorder %s9083_s25, %s9079_s24  ;;  %p197_p4 = scmp.eq.s32.totalorder %s6545_s29, 1 }
   0x9   : > { %s9176_s10 = scalar_select %p178_p1, %s9087_s26, %s180_s8  }
   0xa   : > { %p9178_p5 = por %p191_p2, %p190_p0  ;;  %p9182_p6 = por %p197_p4, %p196_p3 }
   0xb   : > { %p6546_p7 = scmp.ge.s32.totalorder %s9091_s27, 1  ;;  %p204_p8 = scmp.lt.s32.totalorder %s9091_s27, 3 }
   0xc   : > { %s11958_s12 = scalar_select %p9182_p6, 1, 0 }
   0xd   : > { %p7387_p9 = scmp.eq.s32.totalorder %s9161_s28, 0  ;;  %p9189_p10 = pnand %p6546_p7, %p204_p8 }
   0xe   : > { %s9093_s14 = smov [#allocation2]  }
   0xf   : > { %s219_s15 = sshll.u32 %s9093_s14, 4  ;;  %p7379_p11 = pneg %p9189_p10  ;;  %s220_s15 = int_to_ptr.vmem [resolvable:$true] %s219_s15 }
  0x10   : > { %s9012_s16 = scalar_lea.vmem %s220_s15, 6144  ;;  %p9020_p3 = scmp.lt.s32.totalorder %s220_s15, %s220_s15 }
  0x11   : > { %p7380_p12 = pnand %p7387_p9, %p7379_p11  ;;  %p9013_p0 = scmp.ne.s32.totalorder %s220_s15, %s9012_s16 }
  0x12   : > { %p9021_p4 = scmp.lt.s32.totalorder %s9012_s16, %s9012_s16 }
  0x13   : > { %p9003_p13 = pneg %p7380_p12 }
  0x14   : > { %p9022_p6 = por %p9021_p4, %p9020_p3 }
  0x15   : > { %p9015_p1 = pnand %p9013_p0, %p9003_p13 }
  0x17   : > { %p9016_p2 = pneg %p9015_p1 }
  0x19   : > { %p9023_p7 = pnand %p9022_p6, %p9016_p2 }
  0x1b   : > { %9026 = shalt.err (!%p9023_p7)
}
  0x1c   : > { %s9094_s17 = smov 384   ;;  %s9095_s18 = smov 24  }
  0x1d   : > { %7382 = dma.hbm_to_vmem [thread:$0]  (!%p7380_p12), %s11827_s2, 6144, %s220_s15, [#allocation3], %s9094_s17, %s9094_s17, %s9095_s18  }
  0x1e   : > { %256 = sbr.rel (%p9189_p10) target bundleno = 2632 (0xa48), region = 48 }
  0x23   : > { %9070 = dma.done.wait (%p7387_p9), [#allocation3], 6144  }
  0x24   : > { %9072 = vsyncadd (%p7387_p9), [#allocation3], 4294961152  ;;  %s6552_s21 = sshll.u32 %s9161_s28, 4  ;;  %v11833_v0 = vmov 0.0   ;;  %vm437_vm0 = vcmask 1043456   ;;  %vm388_vm1 = vcmask 31744  }
  0x25   : > { %p289_p8 = scmp.lt.s32.totalorder %s6552_s21, 31  ;;  %508 = vmatprep.mubr.f32.mxu0 %v11833_v0  ;;  %v296_v1 = vld [vmem:[%s11826_s1 + $0x8] sm:$0xf]  ;;  %v295_v3 = vld [vmem:[%s11826_s1] sm:$0xff]  ;;  %v9223_v6 = vld [vmem:[#allocation2 + $0x170] sm:$0xff]  ;;  %vm1337_vm2 = vcmask 1041409  }
  0x26   : > { %7032 = vmatprep.subr.msk.mxu1 %vm437_vm0, %v296_v1  ;;  %v387_v4 = vcombine.high %v295_v3, %v295_v3  ;;  %v9226_v7 = vld [vmem:[#allocation2 + $0x168] sm:$0xff]  ;;  %v9230_v8 = vld [vmem:[#allocation2 + $0x158] sm:$0xff]  ;;  %v9235_v10 = vld [vmem:[#allocation2 + $0x150] sm:$0xff]  ;;  %vm1340_vm3 = vcmask 1042434   ;;  %vm1343_vm4 = vcmask 1043459   ;;  %vm1346_vm5 = vcmask 1044484  }
  0x27   : > { %s12312_s21 = smov (!%p289_p8, %s6552_s21), 31  ;;  %7033 = vmatpush3.msk.msra.mxu1 %vm437_vm0, %v296_v1  ;;  %v9240_v12 = vld [vmem:[#allocation2 + $0x140] sm:$0xff]  ;;  %v9244_v13 = vld [vmem:[#allocation2 + $0x138] sm:$0xff]  ;;  %v9248_v14 = vld [vmem:[#allocation2 + $0x128] sm:$0xff]  ;;  %vm1349_vm6 = vcmask 1045509   ;;  %vm1352_vm7 = vcmask 1046534  }
  0x28   : > { %s6553_s22 = sshll.u32 %s12312_s21, 3  ;;  %6555 = vmatprep.subr.msk.mxu0 %vm437_vm0, %v387_v4  ;;  %750 = vmatprep.subr.mxu1 %v9223_v6  ;;  %v9253_v16 = vld [vmem:[#allocation2 + $0x120] sm:$0xff]  ;;  %v9258_v18 = vld [vmem:[#allocation2 + $0x110] sm:$0xff]  ;;  %v9262_v19 = vld [vmem:[#allocation2 + $0x108] sm:$0xff]  ;;  %vm1355_vm8 = vcmask 1047559   ;;  %s6852_s14 = sshll.u32 %s9161_s28, 8 }
  0x29   : > { %s9211_s8 = scalar_lea.vmem %s11825_s0, %s6553_s22  ;;  %6556 = vmatpush1.msk.msra.mxu0 %vm437_vm0, %v295_v3  ;;  %v9266_v20 = vld [vmem:[#allocation2 + $0xf8] sm:$0xff]  ;;  %v9273_v22 = vld [vmem:[#allocation2 + $0xf0] sm:$0xff]  ;;  %v9280_v24 = vld [vmem:[#allocation2 + $0xe0] sm:$0xff]  ;;  %s285_s22 = sand.u32 1, %s9083_s25  }
  0x2a   : > { %v353_v2 = vld [vmem:[%s9211_s8] sm:$0xff]  ;;  %v354_v5 = vld [vmem:[%s9211_s8 + $0x8] sm:$0xff]  ;;  %v355_v9 = vld [vmem:[%s9211_s8 + $0x10] sm:$0xff]  ;;  %s6551_s23 = sshll.u32 %s285_s22, 4  ;;  %s11783_s17 = scalar_lea.hbm %s11832_s7, %s6852_s14 }
  0x2b   : > { %7034 = vmatprep.mubr.msk.f32.mxu1 %vm388_vm1, %v353_v2  ;;  %6557 = vmatmul.mubr.msk.f32.vlgmr.msra.gmra.mxu0 %vm388_vm1, %v353_v2  ;;  %v356_v11 = vld [vmem:[%s9211_s8 + $0x18] sm:$0xff]  ;;  %v357_v15 = vld [vmem:[%s9211_s8 + $0x20] sm:$0xff]  ;;  %v358_v17 = vld [vmem:[%s9211_s8 + $0x28] sm:$0xff]  ;;  %s287_s9 = scalar_lea.vmem [#allocation5], %s6551_s23  ;;  %s11785_s18 = scalar_lea.sflag [#allocation4], %s285_s22 }
  0x2c   : > { %7035 = vmatmul.mubr.msk.f32.vlgmr.msra.gmra.mxu1 %vm388_vm1, %v354_v5  ;;  %514 = vmatprep.mubr.f32.mxu0 %v11833_v0  ;;  %v9269_v21 = vld [vmem:[%s9211_s8 + $0x30] sm:$0xff]  ;;  %v9278_v23 = vld [vmem:[%s9211_s8 + $0x38] sm:$0xff]  ;;  %v9289_v26 = vld [vmem:[#allocation2 + $0xc8] sm:$0xff]  ;;  %s6471_s13 = sshll.u32 %s287_s9, 4  ;;  %s9097_s28 = smov [#allocation5]   ;;  %s11778_s13 = int_to_ptr.vmem [resolvable:$true] %s6471_s13 }
  0x2d   : > { %751 = vmatpush1.msra.mxu1 %v9226_v7  ;;  %7037 = vmatprep.mubr.msk.f32.mxu1 %vm388_vm1, %v355_v9  ;;  %v9285_v25 = vld [vmem:[#allocation2 + $0xd8] sm:$0xff]  ;;  %v9292_v27 = vld [vmem:[%s9211_s8 + $0x40] sm:$0xff]  ;;  %v9302_v29 = vld [vmem:[%s9211_s8 + $0x48] sm:$0xff]  ;;  %s9027_s19 = scalar_lea.vmem %s11778_s13, 256  ;;  %s9031_s20 = sshll.u32 %s9097_s28, 4  ;;  %s9032_s20 = int_to_ptr.vmem [resolvable:$false] %s9031_s20 }
  0x2e   : > { %752 = vmatprep.subr.mxu1 %v9230_v8  ;;  %v9297_v28 = vld [vmem:[#allocation2 + $0xc0] sm:$0xff]  ;;  %v9304_v30 = vld [vmem:[#allocation2 + $0xb0] sm:$0xff]  ;;  %v9309_v31 = vld [vmem:[#allocation2 + $0xa8] sm:$0xff]  ;;  %p9028_p6 = scmp.ne.s32.totalorder %s11778_s13, %s9027_s19  ;;  %s9033_s21 = scalar_lea.vmem %s9032_s20, 512 }
  0x2f   : > { %753 = vmatpush1.msra.mxu1 %v9235_v10  ;;  %6558 = vmatmul.mubr.msk.f32.gmra.mxu0 %vm388_vm1, %v354_v5  ;;  %v9311_v32 = vld [vmem:[#allocation2 + $0x178] sm:$0xff]  ;;  %v9321_v34 = vld [vmem:[%s9211_s8 + $0x50] sm:$0xff]  ;;  %v9332_v37 = vld [vmem:[#allocation2 + $0x80] sm:$0xff]  ;;  %p9034_p11 = scmp.lt.s32.totalorder %s11778_s13, %s9032_s20  ;;  %p9035_p12 = scmp.lt.s32.totalorder %s9033_s21, %s9027_s19 }
  0x30   : > { %7038 = vmatmul.mubr.msk.f32.gmra.mxu1 %vm388_vm1, %v356_v11  ;;  %754 = vmatprep.subr.mxu1 %v9240_v12  ;;  %v9315_v33 = vld [vmem:[#allocation2 + $0x98] sm:$0xff]  ;;  %v9325_v35 = vld [vmem:[#allocation2 + $0x90] sm:$0xff]  ;;  %v9339_v39 = vld [vmem:[#allocation2 + $0x160] sm:$0xff]  ;;  %p9029_p9 = pnand %p9028_p6, %p9178_p5 }
  0x31   : > { %755 = vmatpush1.msra.mxu1 %v9244_v13  ;;  %7040 = vmatprep.mubr.msk.f32.mxu1 %vm388_vm1, %v357_v15  ;;  %v9330_v36 = vld [vmem:[%s9211_s8 + $0x58] sm:$0xff]  ;;  %v9343_v40 = vld [vmem:[#allocation2 + $0x68] sm:$0xff]  ;;  %v9349_v41 = vld [vmem:[%s9211_s8 + $0x60] sm:$0xff]  ;;  %p9036_p13 = por %p9035_p12, %p9034_p11 }
  0x32   : > { %756 = vmatprep.subr.mxu1 %v9248_v14  ;;  %520 = vmatprep.mubr.f32.mxu0 %v11833_v0  ;;  %v9337_v38 = vld [vmem:[#allocation2 + $0x78] sm:$0xff]  ;;  %v9353_v42 = vld [vmem:[#allocation2 + $0x60] sm:$0xff]  ;;  %v9358_v43 = vld [vmem:[%s9211_s8 + $0x68] sm:$0xff]  ;;  %p9030_p10 = pneg %p9029_p9 }
  0x33   : > { %757 = vmatpush1.msra.mxu1 %v9253_v16  ;;  %6559 = vmatmul.mubr.msk.f32.gmra.mxu0 %vm388_vm1, %v355_v9  ;;  %v9360_v44 = vld [vmem:[#allocation2 + $0x50] sm:$0xff]  ;;  %v9365_v45 = vld [vmem:[#allocation2 + $0x48] sm:$0xff]  ;;  %v9371_v47 = vld [vmem:[#allocation2 + $0x38] sm:$0xff] }
  0x34   : > { %7041 = vmatmul.mubr.msk.f32.gmra.mxu1 %vm388_vm1, %v358_v17  ;;  %758 = vmatprep.subr.mxu1 %v9258_v18  ;;  %v9367_v46 = vld [vmem:[#allocation2 + $0x148] sm:$0xff]  ;;  %v9377_v48 = vld [vmem:[%s9211_s8 + $0x70] sm:$0xff]  ;;  %v9387_v50 = vld [vmem:[%s9211_s8 + $0x78] sm:$0xff]  ;;  %p9037_p0 = pnand %p9036_p13, %p9030_p10 }
  0x35   : > { %759 = vmatpush1.msra.mxu1 %v9262_v19  ;;  %7043 = vmatprep.mubr.msk.f32.mxu1 %vm388_vm1, %v9269_v21  ;;  %v9381_v49 = vld [vmem:[#allocation2 + $0x30] sm:$0xff]  ;;  %v9389_v51 = vld [vmem:[#allocation2 + $0x20] sm:$0xff]  ;;  %v9394_v52 = vld [vmem:[#allocation2 + $0x18] sm:$0xff] }
  0x36   : > { %760 = vmatprep.subr.mxu1 %v9266_v20  ;;  %526 = vmatprep.mubr.f32.mxu0 %v11833_v0  ;;  %v9396_v53 = vld [vmem:[#allocation2 + $0x130] sm:$0xff]  ;;  %v9400_v54 = vld [vmem:[#allocation2 + $0x8] sm:$0xff]  ;;  %v9405_v55 = vld [vmem:[#allocation2] sm:$0xff] }
  0x37   : > { %761 = vmatpush1.msra.mxu1 %v9273_v22  ;;  %6560 = vmatmul.mubr.msk.f32.gmra.mxu0 %vm388_vm1, %v356_v11  ;;  %v9412_v56 = vld [vmem:[#allocation2 + $0x118] sm:$0xff]  ;;  %v9420_v57 = vld [vmem:[#allocation2 + $0x100] sm:$0xff]  ;;  %v9427_v58 = vld [vmem:[#allocation2 + $0xe8] sm:$0xff] }
  0x38   : > { %7044 = vmatmul.mubr.msk.f32.gmra.mxu1 %vm388_vm1, %v9278_v23  ;;  %762 = vmatprep.subr.mxu1 %v9280_v24  ;;  %v9433_v59 = vld [vmem:[#allocation2 + $0xd0] sm:$0xff]  ;;  %v9440_v60 = vld [vmem:[#allocation2 + $0xb8] sm:$0xff]  ;;  %v9445_v61 = vld [vmem:[#allocation2 + $0xa0] sm:$0xff] }
  0x39   : > { %763 = vmatpush1.msra.mxu1 %v9285_v25  ;;  %7046 = vmatprep.mubr.msk.f32.mxu1 %vm388_vm1, %v9292_v27  ;;  %v9453_v62 = vld [vmem:[#allocation2 + $0x88] sm:$0xff]  ;;  %v9458_v63 = vld [vmem:[#allocation2 + $0x70] sm:$0xff]  ;;  %v9466_v1 = vld [vmem:[#allocation2 + $0x58] sm:$0xff] }
  0x3a   : > { %764 = vmatprep.subr.mxu1 %v9289_v26  ;;  %532 = vmatprep.mubr.f32.mxu0 %v11833_v0  ;;  %v9471_v2 = vld [vmem:[#allocation2 + $0x40] sm:$0xff]  ;;  %v9479_v3 = vld [vmem:[#allocation2 + $0x28] sm:$0xff]  ;;  %v9484_v4 = vld [vmem:[#allocation2 + $0x10] sm:$0xff] }
  0x3b   : > { %765 = vmatpush1.msra.mxu1 %v9297_v28  ;;  %7058 = vmatprep.subr.mxu0 %v9311_v32 }
  0x3c   : > { %7047 = vmatmul.mubr.msk.f32.gmra.mxu1 %vm388_vm1, %v9302_v29  ;;  %766 = vmatprep.subr.mxu1 %v9304_v30 }
  0x3d   : > { %767 = vmatpush1.msra.mxu1 %v9309_v31  ;;  %6561 = vmatmul.mubr.msk.f32.gmra.mxu0 %vm388_vm1, %v357_v15 }
  0x3e   : > { %768 = vmatprep.subr.mxu1 %v9315_v33  ;;  %7059 = vmatpush3.msra.mxu0 %v9311_v32 }
  0x3f   : > { %7049 = vmatprep.mubr.msk.f32.mxu1 %vm388_vm1, %v9321_v34  ;;  %769 = vmatpush1.msra.mxu1 %v9325_v35 }
  0x40   : > { %538 = vmatprep.mubr.f32.mxu0 %v11833_v0  ;;  %7050 = vmatmul.mubr.msk.f32.gmra.mxu1 %vm388_vm1, %v9330_v36 }
  0x41   : > { %770 = vmatprep.subr.mxu1 %v9332_v37  ;;  %7060 = vmatprep.subr.mxu0 %v9339_v39 }
  0x42   : > { %771 = vmatpush1.msra.mxu1 %v9337_v38  ;;  %6562 = vmatmul.mubr.msk.f32.gmra.mxu0 %vm388_vm1, %v358_v17 }
  0x43   : > { %772 = vmatprep.subr.mxu1 %v9343_v40  ;;  %7061 = vmatpush3.msra.mxu0 %v9339_v39 }
  0x44   : > { %7052 = vmatprep.mubr.msk.f32.mxu1 %vm388_vm1, %v9349_v41  ;;  %773 = vmatpush1.msra.mxu1 %v9353_v42 }
  0x45   : > { %544 = vmatprep.mubr.f32.mxu0 %v11833_v0  ;;  %7053 = vmatmul.mubr.msk.f32.gmra.mxu1 %vm388_vm1, %v9358_v43 }
  0x46   : > { %774 = vmatprep.subr.mxu1 %v9360_v44  ;;  %7062 = vmatprep.subr.mxu0 %v9367_v46 }
  0x47   : > { %775 = vmatpush1.msra.mxu1 %v9365_v45  ;;  %6563 = vmatmul.mubr.msk.f32.gmra.mxu0 %vm388_vm1, %v9269_v21 }
  0x48   : > { %776 = vmatprep.subr.mxu1 %v9371_v47  ;;  %7063 = vmatpush3.msra.mxu0 %v9367_v46 }
  0x49   : > { %7055 = vmatprep.mubr.msk.f32.mxu1 %vm388_vm1, %v9377_v48  ;;  %777 = vmatpush1.msra.mxu1 %v9381_v49 }
  0x4a   : > { %550 = vmatprep.mubr.f32.mxu0 %v11833_v0  ;;  %7056 = vmatmul.mubr.msk.f32.gmra.mxu1 %vm388_vm1, %v9387_v50 }
  0x4b   : > { %778 = vmatprep.subr.mxu1 %v9389_v51  ;;  %7064 = vmatprep.subr.mxu0 %v9396_v53 }
  0x4c   : > { %779 = vmatpush1.msra.mxu1 %v9394_v52  ;;  %6564 = vmatmul.mubr.msk.f32.gmra.mxu0 %vm388_vm1, %v9278_v23 }
  0x4d   : > { %780 = vmatprep.subr.mxu1 %v9400_v54  ;;  %7065 = vmatpush3.msra.mxu0 %v9396_v53 }
  0x4e   : > { %781 = vmatpush1.msra.mxu1 %v9405_v55  ;;  %814 = vmatprep.mubr.f32.mxu1 %v11833_v0 }
  0x4f   : > { %556 = vmatprep.mubr.f32.mxu0 %v11833_v0  ;;  %815 = vmatmul.mubr.f32.vlgmr.msra.gmra.mxu1 %v11833_v0 }
  0x50   : > { %7066 = vmatprep.subr.mxu0 %v9412_v56  ;;  %6565 = vmatmul.mubr.msk.f32.gmra.mxu0 %vm388_vm1, %v9292_v27 }
  0x51   : > { %820 = vmatprep.mubr.f32.mxu1 %v11833_v0  ;;  %7067 = vmatpush3.msra.mxu0 %v9412_v56 }
  0x52   : > { %562 = vmatprep.mubr.f32.mxu0 %v11833_v0  ;;  %7068 = vmatprep.subr.mxu0 %v9420_v57 }
  0x53   : > { %1373 = vmatprep.subr.mxu1 %v9223_v6  ;;  %821 = vmatmul.mubr.f32.gmra.mxu1 %v11833_v0 }
  0x54   : > { %7069 = vmatpush3.msra.mxu0 %v9420_v57  ;;  %1374 = vmatpush1.msra.mxu1 %v9226_v7 }
  0x55   : > { %6566 = vmatmul.mubr.msk.f32.gmra.mxu0 %vm388_vm1, %v9302_v29  ;;  %7070 = vmatprep.subr.mxu0 %v9427_v58 }
  0x56   : > { %568 = vmatprep.mubr.f32.mxu0 %v11833_v0  ;;  %7071 = vmatpush3.msra.mxu0 %v9427_v58 }
  0x57   : > { %7072 = vmatprep.subr.mxu0 %v9433_v59  ;;  %1375 = vmatprep.subr.mxu1 %v9230_v8 }
  0x58   : > { %7073 = vmatpush3.msra.mxu0 %v9433_v59  ;;  %1376 = vmatpush1.msra.mxu1 %v9235_v10 }
  0x59   : > { %6567 = vmatmul.mubr.msk.f32.gmra.mxu0 %vm388_vm1, %v9321_v34  ;;  %7074 = vmatprep.subr.mxu0 %v9440_v60 }
  0x5a   : > { %574 = vmatprep.mubr.f32.mxu0 %v11833_v0  ;;  %7075 = vmatpush3.msra.mxu0 %v9440_v60 }
  0x5b   : > { %7076 = vmatprep.subr.mxu0 %v9445_v61  ;;  %1377 = vmatprep.subr.mxu1 %v9240_v12 }
  0x5c   : > { %7077 = vmatpush3.msra.mxu0 %v9445_v61  ;;  %1378 = vmatpush1.msra.mxu1 %v9244_v13 }
  0x5d   : > { %6568 = vmatmul.mubr.msk.f32.gmra.mxu0 %vm388_vm1, %v9330_v36  ;;  %7078 = vmatprep.subr.mxu0 %v9453_v62 }
  0x5e   : > { %580 = vmatprep.mubr.f32.mxu0 %v11833_v0  ;;  %7079 = vmatpush3.msra.mxu0 %v9453_v62 }
  0x5f   : > { %7080 = vmatprep.subr.mxu0 %v9458_v63  ;;  %1379 = vmatprep.subr.mxu1 %v9248_v14 }
  0x60   : > { %7081 = vmatpush3.msra.mxu0 %v9458_v63  ;;  %1380 = vmatpush1.msra.mxu1 %v9253_v16 }
  0x61   : > { %6569 = vmatmul.mubr.msk.f32.gmra.mxu0 %vm388_vm1, %v9349_v41  ;;  %7082 = vmatprep.subr.mxu0 %v9466_v1 }
  0x62   : > { %586 = vmatprep.mubr.f32.mxu0 %v11833_v0  ;;  %7083 = vmatpush3.msra.mxu0 %v9466_v1 }
  0x63   : > { %7084 = vmatprep.subr.mxu0 %v9471_v2  ;;  %1381 = vmatprep.subr.mxu1 %v9258_v18 }
  0x64   : > { %7085 = vmatpush3.msra.mxu0 %v9471_v2  ;;  %1382 = vmatpush1.msra.mxu1 %v9262_v19 }
  0x65   : > { %6570 = vmatmul.mubr.msk.f32.gmra.mxu0 %vm388_vm1, %v9358_v43  ;;  %7086 = vmatprep.subr.mxu0 %v9479_v3 }
  0x66   : > { %592 = vmatprep.mubr.f32.mxu0 %v11833_v0  ;;  %7087 = vmatpush3.msra.mxu0 %v9479_v3 }
  0x67   : > { %7088 = vmatprep.subr.mxu0 %v9484_v4  ;;  %1383 = vmatprep.subr.mxu1 %v9266_v20 }
  0x68   : > { %7089 = vmatpush3.msra.mxu0 %v9484_v4  ;;  %1384 = vmatpush1.msra.mxu1 %v9273_v22  ;;  %v370_v22 = vlaneseq }
  0x69   : > { %6571 = vmatmul.mubr.msk.f32.gmra.mxu0 %vm388_vm1, %v9377_v48  ;;  %1385 = vmatprep.subr.mxu1 %v9280_v24 }
  0x6a   : > { %598 = vmatprep.mubr.f32.mxu0 %v11833_v0  ;;  %1386 = vmatpush1.msra.mxu1 %v9285_v25 }
  0x6b   : > { %7093 = vmatprep.subr.mxu0 %v9311_v32  ;;  %1387 = vmatprep.subr.mxu1 %v9289_v26  ;;  %v9579_v26 = vshrl.u32 %v370_v22, 7 }
  0x6c   : > { %1437 = vmatprep.mubr.f32.mxu1 %v11833_v0  ;;  %1388 = vmatpush1.msra.mxu1 %v9297_v28 }
  0x6d   : > { %6572 = vmatmul.mubr.msk.f32.gmra.mxu0 %vm388_vm1, %v9387_v50  ;;  %1389 = vmatprep.subr.mxu1 %v9304_v30  ;;  %v372_v30 = vsub.s32 0, %v9579_v26 }
  0x6e   : > { %7090 = vmatprep.mubr.f32.mxu0 %v11833_v0  ;;  %1390 = vmatpush1.msra.mxu1 %v9309_v31  ;;  %v376_v31 = vsub.s32 1, %v9579_v26 }
  0x6f   : > { %1391 = vmatprep.subr.mxu1 %v9315_v33  ;;  %v9590_v33 = vld [vmem:[%s11828_s3] sm:$0x7] }
  0x70   : > { %1392 = vmatpush1.msra.mxu1 %v9325_v35 }
  0x71   : > { %7091 = vmatmul.mubr.f32.vlgmr.msra.gmra.mxu0 %v11833_v0  ;;  %1393 = vmatprep.subr.mxu1 %v9332_v37  ;;  %v9597_v37 = vrot.slane %v9590_v33, %v372_v30 }
  0x72   : > { %7094 = vmatpush3.msra.mxu0 %v9311_v32  ;;  %1394 = vmatpush1.msra.mxu1 %v9337_v38  ;;  %v9600_v38 = vrot.slane %v9590_v33, %v376_v31 }
  0x73   : > { %7095 = vmatprep.subr.mxu0 %v9339_v39  ;;  %1395 = vmatprep.subr.mxu1 %v9343_v40 }
  0x74   : > { %7096 = vmatpush3.msra.mxu0 %v9339_v39  ;;  %1396 = vmatpush1.msra.mxu1 %v9353_v42 }
  0x75   : > { %7097 = vmatprep.subr.mxu0 %v9367_v46  ;;  %1397 = vmatprep.subr.mxu1 %v9360_v44 }
  0x76   : > { %7098 = vmatpush3.msra.mxu0 %v9367_v46  ;;  %1398 = vmatpush1.msra.mxu1 %v9365_v45 }
  0x77   : > { %7099 = vmatprep.subr.mxu0 %v9396_v53  ;;  %1399 = vmatprep.subr.mxu1 %v9371_v47 }
  0x78   : > { %7100 = vmatpush3.msra.mxu0 %v9396_v53  ;;  %1400 = vmatpush1.msra.mxu1 %v9381_v49 }
  0x79   : > { %7101 = vmatprep.subr.mxu0 %v9412_v56  ;;  %1401 = vmatprep.subr.mxu1 %v9389_v51 }
  0x7a   : > { %7102 = vmatpush3.msra.mxu0 %v9412_v56  ;;  %1402 = vmatpush1.msra.mxu1 %v9394_v52 }
  0x7b   : > { %7103 = vmatprep.subr.mxu0 %v9420_v57  ;;  %1403 = vmatprep.subr.mxu1 %v9400_v54 }
  0x7c   : > { %7104 = vmatpush3.msra.mxu0 %v9420_v57  ;;  %1404 = vmatpush1.msra.mxu1 %v9405_v55 }
  0x7d   : > { %7105 = vmatprep.subr.mxu0 %v9427_v58  ;;  %2085 = vmatprep.subr.mxu1 %v9223_v6 }
  0x7e   : > { %7106 = vmatpush3.msra.mxu0 %v9427_v58 }
  0x7f   : > { %7107 = vmatprep.subr.mxu0 %v9433_v59 }
  0x80   : > { %7108 = vmatpush3.msra.mxu0 %v9433_v59 }
  0x81   : > { %7109 = vmatprep.subr.mxu0 %v9440_v60 }
  0x82   : > { %7110 = vmatpush3.msra.mxu0 %v9440_v60 }
  0x83   : > { %7111 = vmatprep.subr.mxu0 %v9445_v61 }
  0x84   : > { %7112 = vmatpush3.msra.mxu0 %v9445_v61 }
  0x85   : > { %7113 = vmatprep.subr.mxu0 %v9453_v62 }
  0x86   : > { %7114 = vmatpush3.msra.mxu0 %v9453_v62 }
  0x87   : > { %7115 = vmatprep.subr.mxu0 %v9458_v63 }
  0x88   : > { %7116 = vmatpush3.msra.mxu0 %v9458_v63 }
  0x89   : > { %7117 = vmatprep.subr.mxu0 %v9466_v1 }
  0x8a   : > { %7118 = vmatpush3.msra.mxu0 %v9466_v1 }
  0x8b   : > { %7119 = vmatprep.subr.mxu0 %v9471_v2 }
  0x8c   : > { %7120 = vmatpush3.msra.mxu0 %v9471_v2 }
  0x8d   : > { %7121 = vmatprep.subr.mxu0 %v9479_v3 }
  0x8e   : > { %7122 = vmatpush3.msra.mxu0 %v9479_v3 }
  0x8f   : > { %7123 = vmatprep.subr.mxu0 %v9484_v4 }
  0x90   : > { %7124 = vmatpush3.msra.mxu0 %v9484_v4 }
  0x91   : > { %7128 = vmatprep.subr.mxu0 %v9311_v32 }
  0xeb   : > { %v510_v6 = vpop.f32.mrf.mxu0 }
  0xec   : > { %v9559_v5 = vpop.f32.mrf.mxu1  ;;  %v9605_v41 = vadd.f32 %v510_v6, %v9597_v37 }
  0xed   : > { %v512_v8 = vpop.f32.mrf.mxu0 }
  0xee   : > { %v9561_v7 = vpop.f32.mrf.mxu1  ;;  %11960 = vst [vmem:[#allocation8_spill] sm:$0xff] %v9605_v41  ;;  %v9608_v42 = vadd.f32 %v512_v8, %v9600_v38 }
  0xef   : > { %v516_v10 = vpop.f32.mrf.mxu0 }
  0xf0   : > { %v9563_v9 = vpop.f32.mrf.mxu1  ;;  %11961 = vst [vmem:[#allocation9_spill] sm:$0xff] %v9608_v42  ;;  %v9613_v45 = vadd.f32 %v516_v10, %v9597_v37 }
  0xf1   : > { %v518_v12 = vpop.f32.mrf.mxu0 }
  0xf2   : > { %v9565_v11 = vpop.f32.mrf.mxu1  ;;  %11962 = vst [vmem:[#allocation10_spill] sm:$0xff] %v9613_v45  ;;  %v9616_v46 = vadd.f32 %v518_v12, %v9600_v38 }
  0xf3   : > { %v522_v14 = vpop.f32.mrf.mxu0 }
  0xf4   : > { %v9567_v13 = vpop.f32.mrf.mxu1  ;;  %11963 = vst [vmem:[#allocation11_spill] sm:$0xff] %v9616_v46  ;;  %v9619_v47 = vadd.f32 %v522_v14, %v9597_v37 }
  0xf5   : > { %v524_v16 = vpop.f32.mrf.mxu0 }
  0xf6   : > { %v9569_v15 = vpop.f32.mrf.mxu1  ;;  %11964 = vst [vmem:[#allocation12_spill] sm:$0xff] %v9619_v47  ;;  %v9622_v48 = vadd.f32 %v524_v16, %v9600_v38 }
  0xf7   : > { %v528_v18 = vpop.f32.mrf.mxu0 }
  0xf8   : > { %v9571_v17 = vpop.f32.mrf.mxu1  ;;  %11965 = vst [vmem:[#allocation13_spill] sm:$0xff] %v9622_v48  ;;  %v9625_v49 = vadd.f32 %v528_v18, %v9597_v37 }
  0xf9   : > { %v530_v20 = vpop.f32.mrf.mxu0 }
  0xfa   : > { %v9573_v19 = vpop.f32.mrf.mxu1  ;;  %11966 = vst [vmem:[#allocation14_spill] sm:$0xff] %v9625_v49  ;;  %v9628_v50 = vadd.f32 %v530_v20, %v9600_v38 }
  0xfc   : > { %v9575_v21 = vpop.f32.mrf.mxu1  ;;  %11967 = vst [vmem:[#allocation15_spill] sm:$0xff] %v9628_v50 }
  0xfd   : > { %v534_v23 = vpop.f32.mrf.mxu0 }
  0xfe   : > { %v9577_v24 = vpop.f32.mrf.mxu1  ;;  %v9631_v51 = vadd.f32 %v534_v23, %v9597_v37 }
  0xff   : > { %v536_v25 = vpop.f32.mrf.mxu0 }
 0x100   : > { %v9581_v27 = vpop.f32.mrf.mxu1  ;;  %11968 = vst [vmem:[#allocation16_spill] sm:$0xff] %v9631_v51  ;;  %v9634_v52 = vadd.f32 %v536_v25, %v9600_v38 }
 0x102   : > { %v540_v28 = vpop.f32.mrf.mxu0  ;;  %v9583_v29 = vpop.f32.mrf.mxu1  ;;  %11969 = vst [vmem:[#allocation17_spill] sm:$0xff] %v9634_v52 }
 0x103   : > { %v9637_v54 = vadd.f32 %v540_v28, %v9597_v37 }
 0x104   : > { %v542_v32 = vpop.f32.mrf.mxu0 }
 0x105   : > { %v9592_v34 = vpop.f32.mrf.mxu1  ;;  %11970 = vst [vmem:[#allocation18_spill] sm:$0xff] %v9637_v54  ;;  %v9640_v55 = vadd.f32 %v542_v32, %v9600_v38 }
 0x107   : > { %v546_v35 = vpop.f32.mrf.mxu0  ;;  %v9594_v36 = vpop.f32.mrf.mxu1  ;;  %11971 = vst [vmem:[#allocation19_spill] sm:$0xff] %v9640_v55 }
 0x108   : > { %v9643_v56 = vadd.f32 %v546_v35, %v9597_v37 }
 0x109   : > { %v548_v39 = vpop.f32.mrf.mxu0 }
 0x10a   : > { %v9602_v40 = vpop.f32.mrf.mxu1  ;;  %11972 = vst [vmem:[#allocation20_spill] sm:$0xff] %v9643_v56  ;;  %v9661_v25 = vadd.f32 %v548_v39, %v9600_v38 }
 0x10c   : > { %v552_v43 = vpop.f32.mrf.mxu0  ;;  %v9610_v44 = vpop.f32.mrf.mxu1  ;;  %11974 = vst [vmem:[#allocation22_spill] sm:$0xff] %v9661_v25 }
 0x10d   : > { %v9646_v57 = vadd.f32 %v552_v43, %v9597_v37 }
 0x10e   : > { %v554_v53 = vpop.f32.mrf.mxu0 }
 0x10f   : > { %11973 = vst [vmem:[#allocation21_spill] sm:$0xff] %v9646_v57  ;;  %v816_v58 = vpop.f32.mrf.mxu1 }
 0x110   : > { %v904_v59 = vrot.slane %v816_v58, 1  ;;  %v905_v60 = vrot.slane %v816_v58, 2  ;;  %v906_v61 = vrot.slane %v816_v58, 3  ;;  %v907_v62 = vrot.slane %v816_v58, 4  ;;  %v9648_v63 = vpop.f32.mrf.mxu0 }
 0x111   : > { %v908_v1 = vrot.slane %v816_v58, 5  ;;  %v909_v2 = vrot.slane %v816_v58, 6  ;;  %v910_v3 = vrot.slane %v816_v58, 7  ;;  %v934_v4 = vadd.f32 %v816_v58, %v9605_v41  ;;  %v818_v23 = vpop.f32.mrf.mxu1 }
 0x112   : > { %v935_v6 = vadd.f32 %v904_v59, %v9613_v45  ;;  %v936_v8 = vadd.f32 %v905_v60, %v9619_v47  ;;  %v937_v10 = vadd.f32 %v906_v61, %v9625_v49  ;;  %v938_v12 = vadd.f32 %v907_v62, %v9631_v51  ;;  %v9655_v14 = vpop.f32.mrf.mxu0 }
 0x113   : > { %v939_v16 = vadd.f32 %v908_v1, %v9637_v54  ;;  %v940_v18 = vadd.f32 %v909_v2, %v9643_v56  ;;  %v941_v20 = vadd.f32 %v910_v3, %v9646_v57  ;;  %v6590_v22 = vmul.f32 -1.442695, %v934_v4 }
 0x114   : > { %v6591_v28 = vmul.f32 -1.442695, %v935_v6  ;;  %v6592_v30 = vmul.f32 -1.442695, %v936_v8  ;;  %v6593_v31 = vmul.f32 -1.442695, %v937_v10  ;;  %v1078_v6 = vadd.f32 %v818_v23, %v9608_v42 }
 0x115   : > { %v9663_v32 = vpop.f32.mrf.mxu0  ;;  %7429 = vpow2.f32 %v6590_v22  ;;  %v6594_v35 = vmul.f32 -1.442695, %v938_v12  ;;  %v6595_v43 = vmul.f32 -1.442695, %v939_v16  ;;  %v6596_v58 = vmul.f32 -1.442695, %v940_v18 }
 0x116   : > { %7431 = vpow2.f32 %v6591_v28  ;;  %v6597_v59 = vmul.f32 -1.442695, %v941_v20  ;;  %v1048_v60 = vrot.slane %v818_v23, 1  ;;  %v1049_v61 = vrot.slane %v818_v23, 2 }
 0x117   : > { %v9665_v62 = vpop.f32.mrf.mxu0  ;;  %7433 = vpow2.f32 %v6592_v30  ;;  %v1050_v1 = vrot.slane %v818_v23, 3  ;;  %v1051_v2 = vrot.slane %v818_v23, 4  ;;  %v1052_v39 = vrot.slane %v818_v23, 5 }
 0x118   : > { %7435 = vpow2.f32 %v6593_v31  ;;  %v1053_v3 = vrot.slane %v818_v23, 6  ;;  %v1054_v4 = vrot.slane %v818_v23, 7  ;;  %v1079_v10 = vadd.f32 %v1048_v60, %v9616_v46 }
 0x119   : > { %v9668_v8 = vpop.f32.mrf.mxu0  ;;  %7437 = vpow2.f32 %v6594_v35  ;;  %v1080_v12 = vadd.f32 %v1049_v61, %v9622_v48  ;;  %v1081_v16 = vadd.f32 %v1050_v1, %v9628_v50  ;;  %v9674_v18 = vadd.f32 %v554_v53, %v9600_v38 }
 0x11a   : > { %7439 = vpow2.f32 %v6595_v43  ;;  %v1082_v20 = vadd.f32 %v1051_v2, %v9634_v52  ;;  %v1083_v22 = vadd.f32 %v1052_v39, %v9640_v55  ;;  %v1084_v23 = vadd.f32 %v1053_v3, %v9661_v25 }
 0x11b   : > { %11975 = vst [vmem:[#allocation23_spill] sm:$0xff] %v9674_v18  ;;  %v9678_v28 = vpop.f32.mrf.mxu0  ;;  %7441 = vpow2.f32 %v6596_v58  ;;  %v6606_v30 = vmul.f32 -1.442695, %v1078_v6  ;;  %v6607_v31 = vmul.f32 -1.442695, %v1079_v10  ;;  %v1085_v35 = vadd.f32 %v1054_v4, %v9674_v18 }
 0x11c   : > { %7443 = vpow2.f32 %v6597_v59  ;;  %v6608_v60 = vmul.f32 -1.442695, %v1080_v12  ;;  %v6609_v61 = vmul.f32 -1.442695, %v1081_v16  ;;  %v6610_v53 = vmul.f32 -1.442695, %v1082_v20 }
 0x11d   : > { %v9682_v1 = vpop.f32.mrf.mxu0  ;;  %7445 = vpow2.f32 %v6606_v30  ;;  %v6611_v43 = vmul.f32 -1.442695, %v1083_v22  ;;  %v6612_v39 = vmul.f32 -1.442695, %v1084_v23  ;;  %v6613_v58 = vmul.f32 -1.442695, %v1085_v35  ;;  %v9695_v23 = vpop.f32.mrf.mxu1 }
 0x11e   : > { %7447 = vpow2.f32 %v6607_v31  ;;  %v380_v59 = vsub.s32 2, %v9579_v26  ;;  %v9693_v16 = vadd.f32 %v9648_v63, %v9597_v37 }
 0x11f   : > { %v9684_v2 = vpop.f32.mrf.mxu0  ;;  %7449 = vpow2.f32 %v6608_v60  ;;  %v9704_v60 = vadd.f32 %v9655_v14, %v9600_v38 }
 0x120   : > { %7451 = vpow2.f32 %v6609_v61  ;;  %11976 = vst [vmem:[#allocation24_spill] sm:$0xff] %v9693_v16  ;;  %v9700_v31 = vrot.slane %v9590_v33, %v380_v59  ;;  %v912_v59 = vrot.slane %v9695_v23, 2  ;;  %v942_v14 = vadd.f32 %v9695_v23, %v9693_v16 }
 0x121   : > { %v9686_v3 = vpop.f32.mrf.mxu0  ;;  %7453 = vpow2.f32 %v6610_v53  ;;  %11977 = vst [vmem:[#allocation25_spill] sm:$0xff] %v9704_v60  ;;  %v911_v53 = vrot.slane %v9695_v23, 1 }
 0x122   : > { %v7430_v4 = vpop.eup %7429  ;;  %7455 = vpow2.f32 %v6611_v43  ;;  %v9709_v43 = vadd.f32 %v9663_v32, %v9597_v37  ;;  %v6598_v55 = vmul.f32 -1.442695, %v942_v14 }
 0x123   : > { %v9689_v6 = vpop.f32.mrf.mxu0  ;;  %v7432_v10 = vpop.eup %7431  ;;  %v998_v12 = vadd.f32 1.0, %v7430_v4  ;;  %7457 = vpow2.f32 %v6612_v39 }
 0x124   : > { %v7434_v20 = vpop.eup %7433  ;;  %v999_v22 = vadd.f32 1.0, %v7432_v10  ;;  %7459 = vpow2.f32 %v6613_v58  ;;  %11978 = vst [vmem:[#allocation26_spill] sm:$0xff] %v9709_v43 }
 0x125   : > { %v9697_v30 = vpop.f32.mrf.mxu0  ;;  %v7436_v26 = vpop.eup %7435  ;;  %v1000_v35 = vadd.f32 1.0, %v7434_v20  ;;  %7461 = vrcp.f32 %v998_v12 }
 0x126   : > { %v7438_v63 = vpop.eup %7437  ;;  %v1001_v61 = vadd.f32 1.0, %v7436_v26  ;;  %7463 = vrcp.f32 %v999_v22  ;;  %v9718_v22 = vpop.f32.mrf.mxu1 }
 0x127   : > { %v9711_v39 = vpop.f32.mrf.mxu0  ;;  %v7440_v58 = vpop.eup %7439  ;;  %v1002_v33 = vadd.f32 1.0, %v7438_v63  ;;  %7465 = vrcp.f32 %v1000_v35  ;;  %v1055_v63 = vrot.slane %v9718_v22, 1 }
 0x128   : > { %v7442_v4 = vpop.eup %7441  ;;  %v1003_v10 = vadd.f32 1.0, %v7440_v58  ;;  %7467 = vrcp.f32 %v1001_v61  ;;  %v943_v61 = vadd.f32 %v911_v53, %v9709_v43  ;;  %v1056_v58 = vrot.slane %v9718_v22, 2 }
 0x129   : > { %v9720_v32 = vpop.f32.mrf.mxu0  ;;  %v7444_v26 = vpop.eup %7443  ;;  %v1004_v0 = vadd.f32 1.0, %v7442_v4  ;;  %7469 = vrcp.f32 %v1002_v33  ;;  %v9730_v33 = vadd.f32 %v9665_v62, %v9600_v38  ;;  %v9735_v53 = vadd.f32 %v9668_v8, %v9597_v37 }
 0x12a   : > { %v7446_v18 = vpop.eup %7445  ;;  %v1005_v16 = vadd.f32 1.0, %v7444_v26  ;;  %7471 = vrcp.f32 %v1003_v10  ;;  %v1057_v26 = vrot.slane %v9718_v22, 3 }
 0x12b   : > { %v9726_v12 = vpop.f32.mrf.mxu0  ;;  %v7448_v20 = vpop.eup %7447  ;;  %7473 = vrcp.f32 %v1004_v0  ;;  %v1142_v25 = vadd.f32 1.0, %v7446_v18  ;;  %11979 = vst [vmem:[#allocation27_spill] sm:$0xff] %v9730_v33  ;;  %11980 = vst [vmem:[#allocation28_spill] sm:$0xff] %v9735_v53  ;;  %v1058_v0 = vrot.slane %v9718_v22, 4  ;;  %v1086_v18 = vadd.f32 %v9718_v22, %v9704_v60 }
 0x12c   : > { %v7450_v4 = vpop.eup %7449  ;;  %7475 = vrcp.f32 %v1005_v16  ;;  %v1143_v35 = vadd.f32 1.0, %v7448_v20  ;;  %v6599_v16 = vmul.f32 -1.442695, %v943_v61  ;;  %v9742_v20 = vadd.f32 %v9678_v28, %v9600_v38 }
 0x12d   : > { %v600_v10 = vpop.f32.mrf.mxu0  ;;  %v7452_v43 = vpop.eup %7451  ;;  %v1144_v52 = vadd.f32 1.0, %v7450_v4  ;;  %7477 = vrcp.f32 %v1142_v25  ;;  %v1087_v25 = vadd.f32 %v1055_v63, %v9730_v33  ;;  %v9749_v4 = vadd.f32 %v9682_v1, %v9597_v37 }
 0x12e   : > { %v7454_v62 = vpop.eup %7453  ;;  %v1145_v14 = vadd.f32 1.0, %v7452_v43  ;;  %7479 = vrcp.f32 %v1143_v35  ;;  %11981 = vst [vmem:[#allocation29_spill] sm:$0xff] %v9742_v20  ;;  %v944_v43 = vadd.f32 %v912_v59, %v9735_v53  ;;  %v9754_v28 = vadd.f32 %v9684_v2, %v9600_v38  ;;  %v9770_v2 = vld [vmem:[%s11829_s4] ss:$0 sm:$0xff] }
 0x12f   : > { %v9744_v50 = vpop.f32.mrf.mxu0  ;;  %v7456_v8 = vpop.eup %7455  ;;  %v1146_v48 = vadd.f32 1.0, %v7454_v62  ;;  %7481 = vrcp.f32 %v1144_v52  ;;  %11982 = vst [vmem:[#allocation30_spill] sm:$0xff] %v9749_v4  ;;  %v6614_v52 = vmul.f32 -1.442695, %v1086_v18  ;;  %v9760_v63 = vadd.f32 %v9686_v3, %v9597_v37 }
 0x130   : > { %v7458_v60 = vpop.eup %7457  ;;  %v1147_v42 = vadd.f32 1.0, %v7456_v8  ;;  %7483 = vrcp.f32 %v1145_v14  ;;  %11983 = vst [vmem:[#allocation31_spill] sm:$0xff] %v9754_v28  ;;  %v1088_v14 = vadd.f32 %v1056_v58, %v9742_v20  ;;  %v9765_v59 = vadd.f32 %v9689_v6, %v9600_v38 }
 0x131   : > { %v9756_v35 = vpop.f32.mrf.mxu0  ;;  %v7460_v61 = vpop.eup %7459  ;;  %v1148_v62 = vadd.f32 1.0, %v7458_v60  ;;  %7485 = vrcp.f32 %v1146_v48  ;;  %11984 = vst [vmem:[#allocation32_spill] sm:$0xff] %v9760_v63  ;;  %v6615_v18 = vmul.f32 -1.442695, %v1087_v25  ;;  %v11986_v3 = vrot.slane %v9695_v23, 3 }
 0x132   : > { %v7462_v1 = vpop.eup %7461  ;;  %v1149_v33 = vadd.f32 1.0, %v7460_v61  ;;  %7487 = vrcp.f32 %v1147_v42  ;;  %11985 = vst [vmem:[#allocation33_spill] sm:$0xff] %v9765_v59  ;;  %v9777_v42 = vadd.f32 %v9697_v30, %v9597_v37  ;;  %v6600_v6 = vmul.f32 -1.442695, %v944_v43 }
 0x133   : > { %v893_v48 = vpop.f32.mrf.mxu0  ;;  %v7464_v60 = vpop.eup %7463  ;;  %7489 = vrcp.f32 %v1148_v62  ;;  %v945_v8 = vadd.f32 %v11986_v3, %v9749_v4  ;;  %v1089_v61 = vadd.f32 %v1057_v26, %v9754_v28  ;;  %v9782_v20 = vadd.f32 %v9720_v32, %v9597_v37 }
 0x134   : > { %11987 = vst [vmem:[#allocation34_spill] sm:$0xff] %v9777_v42  ;;  %v7466_v58 = vpop.eup %7465  ;;  %7491 = vrcp.f32 %v1149_v33  ;;  %v11989_v25 = vrot.slane %v9695_v23, 4  ;;  %v9790_v3 = vadd.f32 %v600_v10, %v9597_v37  ;;  %v9793_v30 = vadd.f32 %v9770_v2, %v893_v48 }
 0x135   : > { %11988 = vst [vmem:[#allocation35_spill] sm:$0xff] %v9782_v20  ;;  %v9784_v53 = vpop.eup %7467  ;;  %7493 = vpow2.f32 %v6598_v55  ;;  %v916_v26 = vrot.slane %v9695_v23, 6  ;;  %v6616_v32 = vmul.f32 -1.442695, %v1088_v14  ;;  %v1090_v43 = vadd.f32 %v1058_v0, %v9765_v59 }
 0x136   : > { %v946_v62 = vadd.f32 %v11989_v25, %v9760_v63  ;;  %11990 = vst [vmem:[#allocation36_spill] sm:$0xff] %v9790_v3  ;;  %v9795_v33 = vpop.eup %7469  ;;  %7495 = vpow2.f32 %v6599_v16  ;;  %v917_v55 = vrot.slane %v9695_v23, 7  ;;  %v6601_v25 = vmul.f32 -1.442695, %v945_v8 }
 0x137   : > { %v9799_v28 = vpop.eup %7471  ;;  %7497 = vpow2.f32 %v6614_v52  ;;  %v11991_v37 = vrot.slane %v9695_v23, 5  ;;  %v6617_v63 = vmul.f32 -1.442695, %v1089_v61  ;;  %v948_v4 = vadd.f32 %v916_v26, %v9782_v20 }
 0x138   : > { %v9805_v48 = vpop.eup %7473  ;;  %7499 = vpow2.f32 %v6615_v18  ;;  %v1194_v16 = vrot.slane %v9793_v30, 1  ;;  %v6602_v0 = vmul.f32 -1.442695, %v946_v62  ;;  %v949_v59 = vadd.f32 %v917_v55, %v9790_v3 }
 0x139   : > { %v947_v10 = vadd.f32 %v11991_v37, %v9777_v42  ;;  %v9809_v14 = vpop.eup %7475  ;;  %7501 = vpow2.f32 %v6600_v6  ;;  %v1195_v52 = vrot.slane %v9793_v30, 2  ;;  %v6618_v23 = vmul.f32 -1.442695, %v1090_v43 }
 0x13a   : > { %v9813_v8 = vpop.eup %7477  ;;  %7503 = vpow2.f32 %v6616_v32  ;;  %v1224_v37 = vmul.f32 %v7462_v1, %v9793_v30  ;;  %v1225_v26 = vmul.f32 %v7464_v60, %v1194_v16  ;;  %v9822_v6 = vadd.f32 %v9561_v7, %v9700_v31 }
 0x13b   : > { %v9816_v18 = vpop.eup %7479  ;;  %7505 = vpow2.f32 %v6601_v25  ;;  %v6603_v61 = vmul.f32 -1.442695, %v947_v10  ;;  %v6604_v62 = vmul.f32 -1.442695, %v948_v4  ;;  %v1226_v55 = vmul.f32 %v7466_v58, %v1195_v52 }
 0x13c   : > { %v9818_v20 = vpop.eup %7481  ;;  %7507 = vpow2.f32 %v6617_v63  ;;  %v9828_v32 = vadd.f32 %v9559_v5, %v9700_v31  ;;  %v6605_v1 = vmul.f32 -1.442695, %v949_v59  ;;  %v9834_v60 = vadd.f32 %v9565_v11, %v9700_v31 }
 0x13d   : > { %v9824_v3 = vpop.eup %7483  ;;  %7509 = vpow2.f32 %v6602_v0  ;;  %v1196_v7 = vrot.slane %v9793_v30, 3  ;;  %v1240_v4 = vadd.f32 %v1224_v37, %v9822_v6  ;;  %v9845_v59 = vadd.f32 %v9563_v9, %v9700_v31 }
 0x13e   : > { %v9830_v43 = vpop.eup %7485  ;;  %11992 = vst [vmem:[#allocation37_spill] sm:$0xff] %v9834_v60  ;;  %7511 = vpow2.f32 %v6618_v23  ;;  %v1241_v58 = vadd.f32 %v1225_v26, %v9828_v32  ;;  %v1197_v11 = vrot.slane %v9793_v30, 4  ;;  %v1242_v25 = vadd.f32 %v1226_v55, %v9834_v60 }
 0x13f   : > { %v9838_v63 = vpop.eup %7487  ;;  %7513 = vpow2.f32 %v6603_v61  ;;  %v9853_v16 = vadd.f32 %v9567_v13, %v9700_v31  ;;  %v9857_v0 = vadd.f32 %v9569_v15, %v9700_v31  ;;  %v9861_v52 = vadd.f32 %v9571_v17, %v9700_v31 }
 0x140   : > { %v9841_v5 = vpop.eup %7489  ;;  %7515 = vpow2.f32 %v6604_v62  ;;  %v9865_v23 = vadd.f32 %v9573_v19, %v9700_v31  ;;  %v1198_v37 = vrot.slane %v9793_v30, 5  ;;  %v1227_v61 = vmul.f32 %v9784_v53, %v1196_v7 }
 0x141   : > { %v9849_v10 = vpop.eup %7491  ;;  %11993 = vst [vmem:[#allocation38_spill] sm:$0xff] %v9853_v16  ;;  %11994 = vst [vmem:[#allocation39_spill] sm:$0xff] %v9861_v52  ;;  %7517 = vpow2.f32 %v6605_v1  ;;  %v9871_v15 = vadd.f32 %v9575_v21, %v9700_v31  ;;  %v9875_v17 = vadd.f32 %v9577_v24, %v9700_v31  ;;  %v9879_v19 = vadd.f32 %v9581_v27, %v9700_v31 }
 0x142   : > { %v7494_v9 = vpop.eup %7493  ;;  %11995 = vst [vmem:[#allocation40_spill] sm:$0xff] %v9865_v23  ;;  %7519 = vtanh.f32 %v1240_v4  ;;  %v1228_v53 = vmul.f32 %v9795_v33, %v1197_v11  ;;  %v1059_v21 = vrot.slane %v9718_v22, 5  ;;  %v1199_v4 = vrot.slane %v9793_v30, 6 }
 0x143   : > { %v7496_v13 = vpop.eup %7495  ;;  %v1006_v26 = vadd.f32 1.0, %v7494_v9  ;;  %7521 = vtanh.f32 %v1241_v58  ;;  %v1229_v58 = vmul.f32 %v9799_v28, %v1198_v37  ;;  %v1243_v60 = vadd.f32 %v1227_v61, %v9845_v59 }
 0x144   : > { %v7498_v62 = vpop.eup %7497  ;;  %v1007_v55 = vadd.f32 1.0, %v7496_v13  ;;  %7523 = vtanh.f32 %v1242_v25  ;;  %v9888_v33 = vadd.f32 %v9711_v39, %v9600_v38  ;;  %v1200_v11 = vrot.slane %v9793_v30, 7 }
 0x145   : > { %v7500_v1 = vpop.eup %7499  ;;  %7525 = vrcp.f32 %v1006_v26  ;;  %v1150_v7 = vadd.f32 1.0, %v7498_v62  ;;  %v9893_v26 = vadd.f32 %v9583_v29, %v9700_v31  ;;  %v9897_v62 = vadd.f32 %v9592_v34, %v9700_v31 }
 0x146   : > { %v7502_v24 = vpop.eup %7501  ;;  %7527 = vrcp.f32 %v1007_v55  ;;  %v1151_v9 = vadd.f32 1.0, %v7500_v1  ;;  %11996 = vst [vmem:[#allocation41_spill] sm:$0xff] %v9888_v33  ;;  %v1244_v28 = vadd.f32 %v1228_v53, %v9857_v0  ;;  %v1060_v61 = vrot.slane %v9718_v22, 6 }
 0x147   : > { %v7504_v27 = vpop.eup %7503  ;;  %7529 = vrcp.f32 %v1150_v7  ;;  %v1008_v13 = vadd.f32 1.0, %v7502_v24  ;;  %11997 = vst [vmem:[#allocation42_spill] sm:$0xff] %v9897_v62  ;;  %v9903_v30 = vadd.f32 %v9726_v12, %v9600_v38  ;;  %v9907_v29 = vadd.f32 %v9744_v50, %v9600_v38 }
 0x148   : > { %v7506_v25 = vpop.eup %7505  ;;  %7531 = vrcp.f32 %v1151_v9  ;;  %v1230_v34 = vmul.f32 %v9805_v48, %v1199_v4  ;;  %v1245_v1 = vadd.f32 %v1229_v58, %v9853_v16  ;;  %v1091_v24 = vadd.f32 %v1059_v21, %v9888_v33 }
 0x149   : > { %v7508_v37 = vpop.eup %7507  ;;  %7533 = vrcp.f32 %v1008_v13  ;;  %v1009_v39 = vadd.f32 1.0, %v7506_v25  ;;  %11998 = vst [vmem:[#allocation43_spill] sm:$0xff] %v9903_v30  ;;  %11999 = vst [vmem:[#allocation44_spill] sm:$0xff] %v9907_v29  ;;  %v1231_v9 = vmul.f32 %v9809_v14, %v1200_v11  ;;  %v9915_v12 = vadd.f32 %v9594_v36, %v9700_v31 }
 0x14a   : > { %v7510_v55 = vpop.eup %7509  ;;  %7535 = vtanh.f32 %v1243_v60  ;;  %v9919_v38 = vadd.f32 %v9602_v40, %v9700_v31  ;;  %v1061_v50 = vrot.slane %v9718_v22, 7  ;;  %v9924_v21 = vadd.f32 %v9756_v35, %v9770_v2 }
 0x14b   : > { %v7512_v53 = vpop.eup %7511  ;;  %7537 = vrcp.f32 %v1009_v39  ;;  %v1010_v7 = vadd.f32 1.0, %v7510_v55  ;;  %v1092_v14 = vadd.f32 %v1060_v61, %v9903_v30  ;;  %v1246_v36 = vadd.f32 %v1230_v34, %v9865_v23 }
 0x14c   : > { %v7514_v13 = vpop.eup %7513  ;;  %12000 = vst [vmem:[#allocation45_spill] sm:$0xff] %v9919_v38  ;;  %7539 = vtanh.f32 %v1244_v28  ;;  %v1093_v40 = vadd.f32 %v1061_v50, %v9907_v29  ;;  %v6619_v22 = vmul.f32 -1.442695, %v1091_v24  ;;  %v1247_v28 = vadd.f32 %v1231_v9, %v9861_v52 }
 0x14d   : > { %v7516_v48 = vpop.eup %7515  ;;  %7541 = vrcp.f32 %v1010_v7  ;;  %v1011_v60 = vadd.f32 1.0, %v7514_v13  ;;  %v1201_v35 = vrot.slane %v9924_v21, 1  ;;  %v1202_v2 = vrot.slane %v9924_v21, 2 }
 0x14e   : > { %v7518_v4 = vpop.eup %7517  ;;  %v1012_v58 = vadd.f32 1.0, %v7516_v48  ;;  %7543 = vtanh.f32 %v1245_v1  ;;  %v1203_v34 = vrot.slane %v9924_v21, 3  ;;  %v6620_v7 = vmul.f32 -1.442695, %v1092_v14 }
 0x14f   : > { %v7520_v11 = vpop.eup %7519  ;;  %7545 = vrcp.f32 %v1011_v60  ;;  %v1013_v25 = vadd.f32 1.0, %v7518_v4  ;;  %v6621_v50 = vmul.f32 -1.442695, %v1093_v40  ;;  %v1152_v9 = vadd.f32 1.0, %v7504_v27 }
 0x150   : > { %v7522_v39 = vpop.eup %7521  ;;  %7547 = vrcp.f32 %v1012_v58  ;;  %v1272_v61 = vsub.f32 0.0, %v7520_v11  ;;  %v1153_v58 = vadd.f32 1.0, %v7508_v37  ;;  %v1204_v40 = vrot.slane %v9924_v21, 4 }
 0x151   : > { %v7524_v55 = vpop.eup %7523  ;;  %7549 = vrcp.f32 %v1013_v25  ;;  %v1273_v1 = vsub.f32 0.0, %v7522_v39  ;;  %v1205_v37 = vrot.slane %v9924_v21, 5 }
 0x152   : > { %v7526_v13 = vpop.eup %7525  ;;  %7551 = vtanh.f32 %v1246_v36  ;;  %v1274_v24 = vsub.f32 0.0, %v7524_v55  ;;  %v1288_v23 = vmul.f32 %v9813_v8, %v1272_v61 }
 0x153   : > { %v7528_v48 = vpop.eup %7527  ;;  %v1232_v60 = vmul.f32 %v7526_v13, %v9924_v21  ;;  %7553 = vtanh.f32 %v1247_v28  ;;  %v1289_v4 = vmul.f32 %v9816_v18, %v1273_v1  ;;  %v1154_v28 = vadd.f32 1.0, %v7512_v53 }
 0x154   : > { %v9935_v52 = vpop.eup %7529  ;;  %v1233_v25 = vmul.f32 %v7528_v48, %v1201_v35  ;;  %v1290_v14 = vmul.f32 %v9818_v20, %v1274_v24  ;;  %7555 = vpow2.f32 %v6619_v22  ;;  %v1206_v53 = vrot.slane %v9924_v21, 6 }
 0x155   : > { %v9939_v36 = vpop.eup %7531  ;;  %v9942_v27 = vadd.f32 %v7522_v39, %v1289_v4  ;;  %7557 = vpow2.f32 %v6620_v7  ;;  %v1248_v8 = vadd.f32 %v1232_v60, %v9875_v17  ;;  %v9950_v7 = vadd.f32 %v7520_v11, %v1288_v23 }
 0x156   : > { %v7534_v13 = vpop.eup %7533  ;;  %v9944_v18 = vadd.f32 %v7524_v55, %v1290_v14  ;;  %7559 = vpow2.f32 %v6621_v50  ;;  %v1249_v39 = vadd.f32 %v1233_v25, %v9871_v15  ;;  %v1207_v11 = vrot.slane %v9924_v21, 7 }
 0x157   : > { %v7536_v35 = vpop.eup %7535  ;;  %v1234_v20 = vmul.f32 %v7534_v13, %v1202_v2  ;;  %v1336_v22 = vrot.slane %v9942_v27, 7  ;;  %7561 = vrcp.f32 %v1152_v9 }
 0x158   : > { %v7538_v61 = vpop.eup %7537  ;;  %v1275_v1 = vsub.f32 0.0, %v7536_v35  ;;  %7563 = vrcp.f32 %v1153_v58  ;;  %v1339_v24 = vrot.slane %v9944_v18, 6 }
 0x159   : > { %v7540_v55 = vpop.eup %7539  ;;  %7565 = vrcp.f32 %v1154_v28  ;;  %v1235_v50 = vmul.f32 %v7538_v61, %v1203_v34  ;;  %v1250_v2 = vadd.f32 %v1234_v20, %v9893_v26  ;;  %v1338_v4 = vsel %vm1337_vm2, %v1336_v22, %v9950_v7 }
 0x15a   : > { %v7542_v48 = vpop.eup %7541  ;;  %v1276_v60 = vsub.f32 0.0, %v7540_v55  ;;  %v1291_v9 = vmul.f32 %v9824_v3, %v1275_v1  ;;  %7567 = vtanh.f32 %v1248_v8  ;;  %v1341_v3 = vsel %vm1340_vm3, %v1339_v24, %v1338_v4 }
 0x15b   : > { %v7544_v23 = vpop.eup %7543  ;;  %v1236_v58 = vmul.f32 %v7542_v48, %v1204_v40  ;;  %v1251_v25 = vadd.f32 %v1235_v50, %v9879_v19  ;;  %7569 = vtanh.f32 %v1249_v39 }
 0x15c   : > { %v7546_v14 = vpop.eup %7545  ;;  %v1277_v28 = vsub.f32 0.0, %v7544_v23  ;;  %v1292_v34 = vmul.f32 %v9830_v43, %v1276_v60  ;;  %v9961_v13 = vadd.f32 %v7536_v35, %v1291_v9  ;;  %7571 = vtanh.f32 %v1250_v2 }
 0x15d   : > { %v7548_v20 = vpop.eup %7547  ;;  %v1237_v61 = vmul.f32 %v7546_v14, %v1205_v37  ;;  %v1252_v8 = vadd.f32 %v1236_v58, %v9915_v12  ;;  %7573 = vtanh.f32 %v1251_v25  ;;  %v9971_v43 = vadd.f32 %v9610_v44, %v9700_v31 }
 0x15e   : > { %v7550_v22 = vpop.eup %7549  ;;  %v1293_v21 = vmul.f32 %v9838_v63, %v1277_v28  ;;  %v9966_v40 = vadd.f32 %v7540_v55, %v1292_v34  ;;  %v1342_v39 = vrot.slane %v9961_v13, 5  ;;  %v1238_v1 = vmul.f32 %v7548_v20, %v1206_v53 }
 0x15f   : > { %v7552_v50 = vpop.eup %7551  ;;  %12001 = vst [vmem:[#allocation46_spill] sm:$0xff] %v9971_v43  ;;  %v1239_v35 = vmul.f32 %v7550_v22, %v1207_v11  ;;  %v1253_v24 = vadd.f32 %v1237_v61, %v9897_v62  ;;  %7575 = vtanh.f32 %v1252_v8 }
 0x160   : > { %v7554_v37 = vpop.eup %7553  ;;  %v1278_v2 = vsub.f32 0.0, %v7552_v50  ;;  %v9974_v48 = vadd.f32 %v7544_v23, %v1293_v21  ;;  %v1344_v63 = vsel %vm1343_vm4, %v1342_v39, %v1341_v3  ;;  %v1345_v55 = vrot.slane %v9966_v40, 4 }
 0x161   : > { %v7556_v60 = vpop.eup %7555  ;;  %v1279_v9 = vsub.f32 0.0, %v7554_v37  ;;  %v1254_v53 = vadd.f32 %v1238_v1, %v9971_v43  ;;  %7577 = vtanh.f32 %v1253_v24  ;;  %v1255_v58 = vadd.f32 %v1239_v35, %v9919_v38 }
 0x162   : > { %v7558_v44 = vpop.eup %7557  ;;  %v1294_v31 = vmul.f32 %v9841_v5, %v1278_v2  ;;  %v1347_v4 = vsel %vm1346_vm5, %v1345_v55, %v1344_v63  ;;  %v1155_v11 = vadd.f32 1.0, %v7556_v60  ;;  %v1348_v14 = vrot.slane %v9974_v48, 3 }
 0x163   : > { %v7560_v23 = vpop.eup %7559  ;;  %v1295_v25 = vmul.f32 %v9849_v10, %v1279_v9  ;;  %v1156_v28 = vadd.f32 1.0, %v7558_v44  ;;  %7579 = vtanh.f32 %v1254_v53  ;;  %v12002_v55 = vmov 0.0   ;;  %v8709_v53 = vld [vmem:[#allocation2 + $0x168] sm:$0xff] }
 0x164   : > { %v7562_v34 = vpop.eup %7561  ;;  %v9984_v20 = vadd.f32 %v7552_v50, %v1294_v31  ;;  %7581 = vrcp.f32 %v1155_v11  ;;  %v1350_v5 = vsel %vm1349_vm6, %v1348_v14, %v1347_v4  ;;  %v1157_v8 = vadd.f32 1.0, %v7560_v23  ;;  %v8710_v4 = vld [vmem:[#allocation2 + $0x158] sm:$0xff] }
 0x165   : > { %v7564_v3 = vpop.eup %7563  ;;  %v9986_v61 = vadd.f32 %v7554_v37, %v1295_v25  ;;  %7583 = vrcp.f32 %v1156_v28  ;;  %v8711_v25 = vld [vmem:[#allocation2 + $0x150] sm:$0xff]  ;;  %v8712_v28 = vld [vmem:[#allocation2 + $0x140] sm:$0xff] }
 0x166   : > { %v7566_v22 = vpop.eup %7565  ;;  %v1351_v21 = vrot.slane %v9984_v20, 2  ;;  %7585 = vtanh.f32 %v1255_v58 }
 0x167   : > { %v7568_v10 = vpop.eup %7567  ;;  %v1354_v39 = vrot.slane %v9986_v61, 1  ;;  %7587 = vrcp.f32 %v1157_v8 }
 0x168   : > { %v7570_v1 = vpop.eup %7569  ;;  %v1353_v50 = vsel %vm1352_vm7, %v1351_v21, %v1350_v5  ;;  %v1280_v11 = vsub.f32 0.0, %v7568_v10 }
 0x169   : > { %v7572_v35 = vpop.eup %7571  ;;  %v1356_v24 = vsel %vm1355_vm8, %v1354_v39, %v1353_v50  ;;  %v1281_v37 = vsub.f32 0.0, %v7570_v1  ;;  %v8713_v39 = vld [vmem:[#allocation2 + $0x138] sm:$0xff] }
 0x16a   : > { %v7574_v2 = vpop.eup %7573  ;;  %1438 = vmatmul.mubr.f32.vlgmr.msra.gmra.mxu1 %v1356_v24  ;;  %7125 = vmatprep.mubr.f32.mxu0 %v1356_v24  ;;  %v1282_v63 = vsub.f32 0.0, %v7572_v35 }
 0x16b   : > { %1443 = vmatprep.mubr.f32.mxu1 %v12002_v55  ;;  %v1283_v60 = vsub.f32 0.0, %v7574_v2  ;;  %v1297_v9 = vmul.f32 %v9939_v36, %v1281_v37  ;;  %2086 = vmatpush1.msra.mxu1 %v8709_v53 }
 0x16c   : > { %v7576_v44 = vpop.eup %7575  ;;  %v1298_v31 = vmul.f32 %v7562_v34, %v1282_v63  ;;  %2087 = vmatprep.subr.mxu1 %v8710_v4  ;;  %v8714_v34 = vld [vmem:[#allocation2 + $0x128] sm:$0xff] }
 0x16d   : > { %v1284_v58 = vsub.f32 0.0, %v7576_v44  ;;  %v1299_v23 = vmul.f32 %v7564_v3, %v1283_v60  ;;  %2088 = vmatpush1.msra.mxu1 %v8711_v25  ;;  %v9995_v21 = vadd.f32 %v7570_v1, %v1297_v9  ;;  %v1296_v3 = vmul.f32 %v9935_v52, %v1280_v11  ;;  %v8715_v60 = vld [vmem:[#allocation2 + $0x120] sm:$0xff]  ;;  %v8716_v1 = vld [vmem:[#allocation2 + $0x110] sm:$0xff] }
 0x16e   : > { %v7578_v14 = vpop.eup %7577  ;;  %2089 = vmatprep.subr.mxu1 %v8712_v28  ;;  %v9997_v50 = vadd.f32 %v7572_v35, %v1298_v31  ;;  %v8717_v31 = vld [vmem:[#allocation2 + $0x108] sm:$0xff] }
 0x16f   : > { %v1285_v5 = vsub.f32 0.0, %v7578_v14  ;;  %v1300_v8 = vmul.f32 %v7566_v22, %v1284_v58  ;;  %2090 = vmatpush1.msra.mxu1 %v8713_v39  ;;  %v10000_v63 = vadd.f32 %v7574_v2, %v1299_v23  ;;  %v1357_v35 = vrot.slane %v9995_v21, 7  ;;  %v8718_v2 = vld [vmem:[#allocation2 + $0xf8] sm:$0xff] }
 0x170   : > { %v7580_v36 = vpop.eup %7579  ;;  %2091 = vmatprep.subr.mxu1 %v8714_v34  ;;  %v1359_v52 = vrot.slane %v9997_v50, 6  ;;  %v10008_v23 = vadd.f32 %v7568_v10, %v1296_v3  ;;  %v8720_v34 = vld [vmem:[#allocation2 + $0xe0] sm:$0xff]  ;;  %v8722_v3 = vld [vmem:[#allocation2 + $0xc8] sm:$0xff] }
 0x171   : > { %v7582_v24 = vpop.eup %7581  ;;  %v1286_v37 = vsub.f32 0.0, %v7580_v36  ;;  %2092 = vmatpush1.msra.mxu1 %v8715_v60  ;;  %v10002_v22 = vadd.f32 %v7576_v44, %v1300_v8  ;;  %v1361_v44 = vrot.slane %v10000_v63, 5  ;;  %v8721_v60 = vld [vmem:[#allocation2 + $0xd8] sm:$0xff] }
 0x172   : > { %v7584_v53 = vpop.eup %7583  ;;  %v1301_v4 = vmul.f32 %v7582_v24, %v1285_v5  ;;  %2093 = vmatprep.subr.mxu1 %v8716_v1  ;;  %v8719_v5 = vld [vmem:[#allocation2 + $0xf0] sm:$0xff]  ;;  %v1358_v24 = vsel %vm1337_vm2, %v1357_v35, %v10008_v23  ;;  %v8723_v1 = vld [vmem:[#allocation2 + $0xc0] sm:$0xff] }
 0x173   : > { %v1302_v9 = vmul.f32 %v7584_v53, %v1286_v37  ;;  %2094 = vmatpush1.msra.mxu1 %v8717_v31  ;;  %v7586_v58 = vpop.eup %7585  ;;  %v1363_v39 = vrot.slane %v10002_v22, 4  ;;  %v1360_v10 = vsel %vm1340_vm3, %v1359_v52, %v1358_v24  ;;  %v8724_v31 = vld [vmem:[#allocation2 + $0xb0] sm:$0xff]  ;;  %v8732_v24 = vld [vmem:[#allocation2 + $0x68] sm:$0xff] }
 0x174   : > { %v10005_v25 = vadd.f32 %v7578_v14, %v1301_v4  ;;  %2095 = vmatprep.subr.mxu1 %v8718_v2  ;;  %v1287_v11 = vsub.f32 0.0, %v7586_v58  ;;  %v7588_v8 = vpop.eup %7587  ;;  %v1362_v4 = vsel %vm1343_vm4, %v1361_v44, %v1360_v10  ;;  %v8728_v44 = vld [vmem:[#allocation2 + $0x80] sm:$0xff]  ;;  %v8735_v10 = vld [vmem:[#allocation2 + $0x50] sm:$0xff] }
 0x175   : > { %v10010_v28 = vadd.f32 %v7580_v36, %v1302_v9  ;;  %2096 = vmatpush1.msra.mxu1 %v8719_v5  ;;  %v1364_v9 = vsel %vm1346_vm5, %v1363_v39, %v1362_v4  ;;  %v8726_v5 = vld [vmem:[#allocation2 + $0x98] sm:$0xff] }
 0x176   : > { %2097 = vmatprep.subr.mxu1 %v8720_v34  ;;  %v1303_v14 = vmul.f32 %v7588_v8, %v1287_v11  ;;  %v1365_v37 = vrot.slane %v10005_v25, 3  ;;  %v8725_v11 = vld [vmem:[#allocation2 + $0xa8] sm:$0xff]  ;;  %v8727_v8 = vld [vmem:[#allocation2 + $0x90] sm:$0xff]  ;;  %v10027_v39 = vld [vmem:[#allocation2 + $0x178] sm:$0xff] }
 0x177   : > { %12003 = vst [vmem:[#allocation47_spill] sm:$0xff] %v10010_v28  ;;  %2098 = vmatpush1.msra.mxu1 %v8721_v60  ;;  %v1367_v36 = vrot.slane %v10010_v28, 2  ;;  %12005 = vst [vmem:[#allocation49_spill] sm:$0xff] %v10027_v39  ;;  %v8730_v34 = vld [vmem:[#allocation2 + $0x78] sm:$0xff]  ;;  %v10034_v60 = vld [vmem:[#allocation2 + $0x148] sm:$0xff] }
 0x178   : > { %2099 = vmatprep.subr.mxu1 %v8722_v3  ;;  %v10019_v53 = vadd.f32 %v7586_v58, %v1303_v14  ;;  %v1366_v35 = vsel %vm1349_vm6, %v1365_v37, %v1364_v9  ;;  %v10030_v14 = vld [vmem:[#allocation2 + $0x160] sm:$0xff]  ;;  %12007 = vst [vmem:[#allocation51_spill] sm:$0xff] %v10034_v60  ;;  %v10038_v3 = vld [vmem:[#allocation2 + $0x130] sm:$0xff]  ;;  %v8738_v4 = vld [vmem:[#allocation2 + $0x38] sm:$0xff] }
 0x179   : > { %2100 = vmatpush1.msra.mxu1 %v8723_v1  ;;  %v1368_v52 = vsel %vm1352_vm7, %v1367_v36, %v1366_v35  ;;  %12006 = vst [vmem:[#allocation50_spill] sm:$0xff] %v10030_v14  ;;  %v8733_v37 = vld [vmem:[#allocation2 + $0x60] sm:$0xff]  ;;  %v8736_v36 = vld [vmem:[#allocation2 + $0x48] sm:$0xff]  ;;  %12008 = vst [vmem:[#allocation52_spill] sm:$0xff] %v10038_v3 }
 0x17a   : > { %12004 = vst [vmem:[#allocation48_spill] sm:$0xff] %v10019_v53  ;;  %2101 = vmatprep.subr.mxu1 %v8724_v31  ;;  %v1369_v2 = vrot.slane %v10019_v53, 1  ;;  %v8739_v1 = vld [vmem:[#allocation2 + $0x30] sm:$0xff]  ;;  %v10042_v9 = vld [vmem:[#allocation2 + $0x118] sm:$0xff]  ;;  %v8741_v31 = vld [vmem:[#allocation2 + $0x20] sm:$0xff] }
 0x17b   : > { %2102 = vmatpush1.msra.mxu1 %v8725_v11  ;;  %12009 = vst [vmem:[#allocation53_spill] sm:$0xff] %v10042_v9  ;;  %v8742_v35 = vld [vmem:[#allocation2 + $0x18] sm:$0xff]  ;;  %v8744_v11 = vld [vmem:[#allocation2 + $0x8] sm:$0xff] }
 0x17c   : > { %2103 = vmatprep.subr.mxu1 %v8726_v5  ;;  %v1370_v58 = vsel %vm1355_vm8, %v1369_v2, %v1368_v52  ;;  %v10046_v2 = vld [vmem:[#allocation2 + $0x100] sm:$0xff]  ;;  %v8746_v5 = vld [vmem:[#allocation2 + $0xe8] sm:$0xff] }
 0x17d   : > { %2104 = vmatpush1.msra.mxu1 %v8727_v8  ;;  %7126 = vmatmul.mubr.f32.vlgmr.msra.gmra.mxu0 %v1370_v58  ;;  %12010 = vst [vmem:[#allocation54_spill] sm:$0xff] %v10046_v2  ;;  %v8745_v52 = vld [vmem:[#allocation2] sm:$0xff]  ;;  %v8748_v8 = vld [vmem:[#allocation2 + $0xd0] sm:$0xff] }
 0x17e   : > { %1444 = vmatmul.mubr.f32.gmra.mxu1 %v1370_v58  ;;  %2105 = vmatprep.subr.mxu1 %v8728_v44  ;;  %v8747_v58 = vld [vmem:[#allocation2 + $0x170] sm:$0xff]  ;;  %v8749_v44 = vld [vmem:[#allocation2 + $0xb8] sm:$0xff] }
 0x17f   : > { %7129 = vmatpush3.msra.mxu0 %v10027_v39  ;;  %2106 = vmatpush1.msra.mxu1 %v8730_v34  ;;  %v8750_v34 = vld [vmem:[#allocation2 + $0xa0] sm:$0xff] }
 0x180   : > { %7130 = vmatprep.subr.mxu0 %v10030_v14  ;;  %2107 = vmatprep.subr.mxu1 %v8732_v24  ;;  %v8751_v24 = vld [vmem:[#allocation2 + $0x88] sm:$0xff] }
 0x181   : > { %7131 = vmatpush3.msra.mxu0 %v10030_v14  ;;  %2108 = vmatpush1.msra.mxu1 %v8733_v37  ;;  %v8752_v37 = vld [vmem:[#allocation2 + $0x70] sm:$0xff] }
 0x182   : > { %7132 = vmatprep.subr.mxu0 %v10034_v60  ;;  %2109 = vmatprep.subr.mxu1 %v8735_v10  ;;  %v8753_v10 = vld [vmem:[#allocation2 + $0x58] sm:$0xff] }
 0x183   : > { %7133 = vmatpush3.msra.mxu0 %v10034_v60  ;;  %2110 = vmatpush1.msra.mxu1 %v8736_v36  ;;  %v8754_v36 = vld [vmem:[#allocation2 + $0x40] sm:$0xff] }
 0x184   : > { %7134 = vmatprep.subr.mxu0 %v10038_v3  ;;  %2111 = vmatprep.subr.mxu1 %v8738_v4  ;;  %v8755_v4 = vld [vmem:[#allocation2 + $0x28] sm:$0xff] }
 0x185   : > { %7135 = vmatpush3.msra.mxu0 %v10038_v3  ;;  %2112 = vmatpush1.msra.mxu1 %v8739_v1  ;;  %v8756_v1 = vld [vmem:[#allocation2 + $0x10] sm:$0xff] }
 0x186   : > { %7136 = vmatprep.subr.mxu0 %v10042_v9  ;;  %2113 = vmatprep.subr.mxu1 %v8741_v31 }
 0x187   : > { %7137 = vmatpush3.msra.mxu0 %v10042_v9  ;;  %2114 = vmatpush1.msra.mxu1 %v8742_v35 }
 0x188   : > { %7138 = vmatprep.subr.mxu0 %v10046_v2  ;;  %2115 = vmatprep.subr.mxu1 %v8744_v11 }
 0x189   : > { %2149 = vmatprep.mubr.f32.mxu1 %v12002_v55  ;;  %2116 = vmatpush1.msra.mxu1 %v8745_v52 }
 0x18a   : > { %7139 = vmatpush3.msra.mxu0 %v10046_v2  ;;  %2797 = vmatprep.subr.mxu1 %v8747_v58 }
 0x18b   : > { %7140 = vmatprep.subr.mxu0 %v8746_v5 }
 0x18c   : > { %7141 = vmatpush3.msra.mxu0 %v8746_v5 }
 0x18d   : > { %7142 = vmatprep.subr.mxu0 %v8748_v8 }
 0x18e   : > { %7143 = vmatpush3.msra.mxu0 %v8748_v8 }
 0x18f   : > { %7144 = vmatprep.subr.mxu0 %v8749_v44 }
 0x190   : > { %7145 = vmatpush3.msra.mxu0 %v8749_v44 }
 0x191   : > { %7146 = vmatprep.subr.mxu0 %v8750_v34 }
 0x192   : > { %7147 = vmatpush3.msra.mxu0 %v8750_v34 }
 0x193   : > { %7148 = vmatprep.subr.mxu0 %v8751_v24 }
 0x194   : > { %7149 = vmatpush3.msra.mxu0 %v8751_v24 }
 0x195   : > { %7150 = vmatprep.subr.mxu0 %v8752_v37 }
 0x196   : > { %7151 = vmatpush3.msra.mxu0 %v8752_v37 }
 0x197   : > { %7152 = vmatprep.subr.mxu0 %v8753_v10 }
 0x198   : > { %7153 = vmatpush3.msra.mxu0 %v8753_v10 }
 0x199   : > { %7154 = vmatprep.subr.mxu0 %v8754_v36 }
 0x19a   : > { %7155 = vmatpush3.msra.mxu0 %v8754_v36 }
 0x19b   : > { %7156 = vmatprep.subr.mxu0 %v8755_v4 }
 0x19c   : > { %7157 = vmatpush3.msra.mxu0 %v8755_v4 }
 0x19d   : > { %7158 = vmatprep.subr.mxu0 %v8756_v1 }
 0x19e   : > { %7159 = vmatpush3.msra.mxu0 %v8756_v1 }
 0x19f   : > { %7163 = vmatprep.subr.mxu0 %v10027_v39 }
 0x22a   : > { %v1439_v31 = vpop.f32.mrf.mxu1 }
 0x22b   : > { %v1527_v35 = vrot.slane %v1439_v31, 7  ;;  %v1528_v11 = vrot.slane %v1439_v31, 1  ;;  %v1529_v52 = vrot.slane %v1439_v31, 2  ;;  %v1530_v5 = vrot.slane %v1439_v31, 3 }
 0x22c   : > { %v1531_v58 = vrot.slane %v1439_v31, 4  ;;  %v1532_v8 = vrot.slane %v1439_v31, 5  ;;  %v1533_v44 = vrot.slane %v1439_v31, 6  ;;  %v1558_v34 = vadd.f32 %v1439_v31, %v9613_v45  ;;  %v1441_v4 = vpop.f32.mrf.mxu1 }
 0x22d   : > { %v1557_v24 = vadd.f32 %v1527_v35, %v9605_v41  ;;  %v1559_v37 = vadd.f32 %v1528_v11, %v9619_v47  ;;  %v1560_v10 = vadd.f32 %v1529_v52, %v9625_v49  ;;  %v1561_v36 = vadd.f32 %v1530_v5, %v9631_v51 }
 0x22e   : > { %v1562_v1 = vadd.f32 %v1531_v58, %v9637_v54  ;;  %v1563_v2 = vadd.f32 %v1532_v8, %v9643_v56  ;;  %v6623_v9 = vmul.f32 -1.442695, %v1558_v34  ;;  %v1564_v3 = vadd.f32 %v1533_v44, %v9646_v57  ;;  %v12011_v44 = vld [vmem:[#allocation9_spill] sm:$0xff] }
 0x22f   : > { %v6622_v60 = vmul.f32 -1.442695, %v1557_v24  ;;  %v6624_v14 = vmul.f32 -1.442695, %v1559_v37  ;;  %v6625_v39 = vmul.f32 -1.442695, %v1560_v10  ;;  %v1702_v11 = vadd.f32 %v1441_v4, %v9616_v46 }
 0x230   : > { %7589 = vpow2.f32 %v6623_v9  ;;  %v6626_v31 = vmul.f32 -1.442695, %v1561_v36  ;;  %v6627_v35 = vmul.f32 -1.442695, %v1562_v1  ;;  %v6628_v52 = vmul.f32 -1.442695, %v1563_v2 }
 0x231   : > { %7591 = vpow2.f32 %v6622_v60  ;;  %v1671_v49 = vrot.slane %v1441_v4, 7  ;;  %v1672_v5 = vrot.slane %v1441_v4, 1  ;;  %v1673_v51 = vrot.slane %v1441_v4, 2  ;;  %v12012_v37 = vld [vmem:[#allocation13_spill] sm:$0xff]  ;;  %v12013_v10 = vld [vmem:[#allocation15_spill] sm:$0xff] }
 0x232   : > { %7593 = vpow2.f32 %v6624_v14  ;;  %v1674_v58 = vrot.slane %v1441_v4, 3  ;;  %v1675_v54 = vrot.slane %v1441_v4, 4  ;;  %v6629_v8 = vmul.f32 -1.442695, %v1564_v3  ;;  %v12014_v1 = vld [vmem:[#allocation17_spill] sm:$0xff]  ;;  %v12015_v2 = vld [vmem:[#allocation19_spill] sm:$0xff] }
 0x233   : > { %7595 = vpow2.f32 %v6625_v39  ;;  %v1676_v34 = vrot.slane %v1441_v4, 5  ;;  %v1701_v24 = vadd.f32 %v1671_v49, %v12011_v44  ;;  %v1703_v9 = vadd.f32 %v1672_v5, %v12012_v37  ;;  %v12016_v3 = vld [vmem:[#allocation22_spill] sm:$0xff]  ;;  %v12023_v37 = vld [vmem:[#allocation35_spill] sm:$0xff] }
 0x234   : > { %7597 = vpow2.f32 %v6626_v31  ;;  %v1704_v36 = vadd.f32 %v1673_v51, %v12013_v10  ;;  %v1705_v46 = vadd.f32 %v1674_v58, %v12014_v1  ;;  %v1677_v60 = vrot.slane %v1441_v4, 6  ;;  %v12017_v31 = vld [vmem:[#allocation23_spill] sm:$0xff] }
 0x235   : > { %7599 = vpow2.f32 %v6627_v35  ;;  %v1706_v57 = vadd.f32 %v1675_v54, %v12015_v2  ;;  %v6638_v14 = vmul.f32 -1.442695, %v1701_v24  ;;  %v6639_v56 = vmul.f32 -1.442695, %v1702_v11 }
 0x236   : > { %7601 = vpow2.f32 %v6628_v52  ;;  %v6640_v45 = vmul.f32 -1.442695, %v1703_v9  ;;  %v6641_v39 = vmul.f32 -1.442695, %v1704_v36  ;;  %v1707_v41 = vadd.f32 %v1676_v34, %v12016_v3 }
 0x237   : > { %7603 = vpow2.f32 %v6629_v8  ;;  %v6642_v49 = vmul.f32 -1.442695, %v1705_v46  ;;  %v1708_v5 = vadd.f32 %v1677_v60, %v12017_v31  ;;  %v6643_v51 = vmul.f32 -1.442695, %v1706_v57 }
 0x238   : > { %7605 = vpow2.f32 %v6638_v14  ;;  %v6644_v4 = vmul.f32 -1.442695, %v1707_v41 }
 0x239   : > { %7607 = vpow2.f32 %v6639_v56  ;;  %v6645_v54 = vmul.f32 -1.442695, %v1708_v5 }
 0x23a   : > { %7609 = vpow2.f32 %v6640_v45 }
 0x23b   : > { %7611 = vpow2.f32 %v6641_v39 }
 0x23c   : > { %7613 = vpow2.f32 %v6642_v49 }
 0x23d   : > { %v7590_v35 = vpop.eup %7589  ;;  %7615 = vpow2.f32 %v6643_v51 }
 0x23e   : > { %v7592_v52 = vpop.eup %7591  ;;  %v1622_v11 = vadd.f32 1.0, %v7590_v35  ;;  %7617 = vpow2.f32 %v6644_v4  ;;  %v1445_v36 = vpop.f32.mrf.mxu1 }
 0x23f   : > { %v7594_v58 = vpop.eup %7593  ;;  %v1621_v8 = vadd.f32 1.0, %v7592_v52  ;;  %7619 = vpow2.f32 %v6645_v54  ;;  %v1534_v39 = vrot.slane %v1445_v36, 7  ;;  %v1535_v35 = vrot.slane %v1445_v36, 1 }
 0x240   : > { %v7596_v24 = vpop.eup %7595  ;;  %v1623_v9 = vadd.f32 1.0, %v7594_v58  ;;  %7621 = vrcp.f32 %v1622_v11  ;;  %v1536_v58 = vrot.slane %v1445_v36, 2  ;;  %v1538_v31 = vrot.slane %v1445_v36, 4  ;;  %v10070_v3 = vpop.f32.mrf.mxu1 }
 0x241   : > { %v7598_v34 = vpop.eup %7597  ;;  %v1624_v46 = vadd.f32 1.0, %v7596_v24  ;;  %7623 = vrcp.f32 %v1621_v8  ;;  %v12018_v8 = vld [vmem:[#allocation24_spill] sm:$0xff] }
 0x242   : > { %v7600_v56 = vpop.eup %7599  ;;  %v1625_v57 = vadd.f32 1.0, %v7598_v34  ;;  %7625 = vrcp.f32 %v1623_v9  ;;  %v1537_v34 = vrot.slane %v1445_v36, 3  ;;  %v1570_v44 = vadd.f32 %v1538_v31, %v9777_v42 }
 0x243   : > { %v7602_v45 = vpop.eup %7601  ;;  %v1626_v60 = vadd.f32 1.0, %v7600_v56  ;;  %7627 = vrcp.f32 %v1624_v46  ;;  %v1565_v56 = vadd.f32 %v1534_v39, %v12018_v8  ;;  %v12022_v39 = vld [vmem:[#allocation32_spill] sm:$0xff]  ;;  %v1678_v8 = vrot.slane %v10070_v3, 7 }
 0x244   : > { %v7604_v41 = vpop.eup %7603  ;;  %v1627_v14 = vadd.f32 1.0, %v7602_v45  ;;  %7629 = vrcp.f32 %v1625_v57 }
 0x245   : > { %v7606_v49 = vpop.eup %7605  ;;  %v1628_v5 = vadd.f32 1.0, %v7604_v41  ;;  %7631 = vrcp.f32 %v1626_v60  ;;  %v12019_v41 = vld [vmem:[#allocation26_spill] sm:$0xff]  ;;  %v1539_v60 = vrot.slane %v1445_v36, 5 }
 0x246   : > { %v7608_v51 = vpop.eup %7607  ;;  %v1765_v4 = vadd.f32 1.0, %v7606_v49  ;;  %7633 = vrcp.f32 %v1627_v14  ;;  %v1566_v46 = vadd.f32 %v1445_v36, %v12019_v41  ;;  %v1540_v14 = vrot.slane %v1445_v36, 6 }
 0x247   : > { %v7610_v52 = vpop.eup %7609  ;;  %v1766_v54 = vadd.f32 1.0, %v7608_v51  ;;  %7635 = vrcp.f32 %v1628_v5  ;;  %v12020_v51 = vld [vmem:[#allocation28_spill] sm:$0xff]  ;;  %v1569_v5 = vadd.f32 %v1537_v34, %v12022_v39  ;;  %v1679_v36 = vrot.slane %v10070_v3, 1 }
 0x248   : > { %v7612_v24 = vpop.eup %7611  ;;  %v1767_v11 = vadd.f32 1.0, %v7610_v52  ;;  %7637 = vrcp.f32 %v1765_v4  ;;  %v1567_v2 = vadd.f32 %v1535_v35, %v12020_v51  ;;  %v12021_v52 = vld [vmem:[#allocation30_spill] sm:$0xff]  ;;  %v1571_v35 = vadd.f32 %v1539_v60, %v12023_v37  ;;  %v12026_v60 = vld [vmem:[#allocation27_spill] sm:$0xff] }
 0x249   : > { %v7614_v45 = vpop.eup %7613  ;;  %v1768_v9 = vadd.f32 1.0, %v7612_v24  ;;  %7639 = vrcp.f32 %v1766_v54  ;;  %v1568_v10 = vadd.f32 %v1536_v58, %v12021_v52  ;;  %v6630_v24 = vmul.f32 -1.442695, %v1565_v56  ;;  %v12024_v58 = vld [vmem:[#allocation36_spill] sm:$0xff] }
 0x24a   : > { %v7616_v57 = vpop.eup %7615  ;;  %v1769_v49 = vadd.f32 1.0, %v7614_v45  ;;  %7641 = vrcp.f32 %v1767_v11  ;;  %v6631_v45 = vmul.f32 -1.442695, %v1566_v46  ;;  %v1572_v11 = vadd.f32 %v1540_v14, %v12024_v58  ;;  %v12027_v14 = vld [vmem:[#allocation29_spill] sm:$0xff] }
 0x24b   : > { %v1770_v1 = vadd.f32 1.0, %v7616_v57  ;;  %v7618_v41 = vpop.eup %7617  ;;  %7643 = vrcp.f32 %v1768_v9  ;;  %v6632_v57 = vmul.f32 -1.442695, %v1567_v2  ;;  %v6633_v34 = vmul.f32 -1.442695, %v1568_v10  ;;  %v12025_v9 = vld [vmem:[#allocation25_spill] sm:$0xff] }
 0x24c   : > { %v7620_v4 = vpop.eup %7619  ;;  %7645 = vrcp.f32 %v1769_v49  ;;  %v1680_v56 = vrot.slane %v10070_v3, 2  ;;  %v6634_v31 = vmul.f32 -1.442695, %v1569_v5  ;;  %v1709_v46 = vadd.f32 %v1678_v8, %v12025_v9 }
 0x24d   : > { %v10079_v54 = vpop.eup %7621  ;;  %7647 = vrcp.f32 %v1770_v1  ;;  %v6635_v2 = vmul.f32 -1.442695, %v1570_v44  ;;  %v1710_v37 = vadd.f32 %v10070_v3, %v12026_v60  ;;  %v6636_v1 = vmul.f32 -1.442695, %v1571_v35 }
 0x24e   : > { %v10083_v39 = vpop.eup %7623  ;;  %7649 = vpow2.f32 %v6630_v24  ;;  %v1681_v10 = vrot.slane %v10070_v3, 3  ;;  %v1711_v58 = vadd.f32 %v1679_v36, %v12027_v14  ;;  %v6637_v5 = vmul.f32 -1.442695, %v1572_v11  ;;  %v12028_v24 = vld [vmem:[#allocation31_spill] sm:$0xff]  ;;  %v12029_v36 = vld [vmem:[#allocation33_spill] sm:$0xff] }
 0x24f   : > { %v10086_v49 = vpop.eup %7625  ;;  %7651 = vpow2.f32 %v6631_v45  ;;  %v1682_v8 = vrot.slane %v10070_v3, 4  ;;  %v1712_v45 = vadd.f32 %v1680_v56, %v12028_v24  ;;  %v6646_v60 = vmul.f32 -1.442695, %v1709_v46 }
 0x250   : > { %v10090_v42 = vpop.eup %7627  ;;  %7653 = vpow2.f32 %v6632_v57  ;;  %v6647_v35 = vmul.f32 -1.442695, %v1710_v37  ;;  %v1713_v14 = vadd.f32 %v1681_v10, %v12029_v36  ;;  %v6648_v51 = vmul.f32 -1.442695, %v1711_v58  ;;  %v7127_v37 = vpop.f32.mrf.mxu0 }
 0x251   : > { %v10094_v52 = vpop.eup %7629  ;;  %7655 = vpow2.f32 %v6633_v34  ;;  %v1714_v11 = vadd.f32 %v1682_v8, %v9888_v33  ;;  %v6649_v56 = vmul.f32 -1.442695, %v1712_v45  ;;  %v1683_v8 = vrot.slane %v10070_v3, 5 }
 0x252   : > { %v10098_v44 = vpop.eup %7631  ;;  %7657 = vpow2.f32 %v6634_v31  ;;  %v1771_v31 = vadd.f32 1.0, %v7618_v41 }
 0x253   : > { %v10100_v9 = vpop.eup %7633  ;;  %7659 = vpow2.f32 %v6635_v2  ;;  %v1772_v2 = vadd.f32 1.0, %v7620_v4  ;;  %v6651_v10 = vmul.f32 -1.442695, %v1714_v11  ;;  %v1516_v4 = vpop.f32.mrf.mxu0  ;;  %v1715_v11 = vadd.f32 %v1683_v8, %v9903_v30 }
 0x254   : > { %v10102_v57 = vpop.eup %7635  ;;  %7661 = vpow2.f32 %v6636_v1  ;;  %v6650_v1 = vmul.f32 -1.442695, %v1713_v14 }
 0x255   : > { %v10105_v34 = vpop.eup %7637  ;;  %7663 = vpow2.f32 %v6637_v5  ;;  %v6652_v8 = vmul.f32 -1.442695, %v1715_v11 }
 0x256   : > { %v10108_v24 = vpop.eup %7639  ;;  %7665 = vpow2.f32 %v6646_v60  ;;  %v1684_v60 = vrot.slane %v10070_v3, 6 }
 0x257   : > { %v10110_v46 = vpop.eup %7641  ;;  %7667 = vpow2.f32 %v6647_v35 }
 0x258   : > { %v10112_v47 = vpop.eup %7643  ;;  %7669 = vpow2.f32 %v6648_v51  ;;  %v1716_v3 = vadd.f32 %v1684_v60, %v9907_v29 }
 0x259   : > { %v10114_v58 = vpop.eup %7645  ;;  %7671 = vpow2.f32 %v6649_v56  ;;  %v8757_v56 = vld [vmem:[%s11829_s4] ss:$0 sm:$0xff] }
 0x25a   : > { %v10116_v5 = vpop.eup %7647  ;;  %7673 = vrcp.f32 %v1771_v31  ;;  %v1813_v31 = vadd.f32 %v8757_v56, %v1516_v4  ;;  %v10125_v4 = vadd.f32 %v8757_v56, %v7127_v37 }
 0x25b   : > { %v7650_v41 = vpop.eup %7649  ;;  %7675 = vrcp.f32 %v1772_v2 }
 0x25c   : > { %v7652_v45 = vpop.eup %7651  ;;  %v1629_v35 = vadd.f32 1.0, %v7650_v41  ;;  %7677 = vpow2.f32 %v6650_v1  ;;  %v1817_v30 = vrot.slane %v1813_v31, 7  ;;  %v1818_v29 = vrot.slane %v1813_v31, 1 }
 0x25d   : > { %v7654_v33 = vpop.eup %7653  ;;  %v1630_v51 = vadd.f32 1.0, %v7652_v45  ;;  %7679 = vpow2.f32 %v6651_v10 }
 0x25e   : > { %v7656_v14 = vpop.eup %7655  ;;  %v1631_v36 = vadd.f32 1.0, %v7654_v33  ;;  %7681 = vrcp.f32 %v1629_v35  ;;  %v1849_v37 = vmul.f32 %v10086_v49, %v1818_v29  ;;  %v1823_v29 = vrot.slane %v1813_v31, 6 }
 0x25f   : > { %v7658_v2 = vpop.eup %7657  ;;  %v1632_v55 = vadd.f32 1.0, %v7656_v14  ;;  %7683 = vrcp.f32 %v1630_v51  ;;  %v6653_v14 = vmul.f32 -1.442695, %v1716_v3 }
 0x260   : > { %v7660_v41 = vpop.eup %7659  ;;  %v1633_v1 = vadd.f32 1.0, %v7658_v2  ;;  %7685 = vrcp.f32 %v1631_v36  ;;  %v1847_v36 = vmul.f32 %v10083_v39, %v1817_v30 }
 0x261   : > { %v7662_v45 = vpop.eup %7661  ;;  %v1634_v10 = vadd.f32 1.0, %v7660_v41  ;;  %7687 = vrcp.f32 %v1632_v55  ;;  %v1819_v41 = vrot.slane %v1813_v31, 2 }
 0x262   : > { %v7664_v33 = vpop.eup %7663  ;;  %v1635_v35 = vadd.f32 1.0, %v7662_v45  ;;  %7689 = vrcp.f32 %v1633_v1  ;;  %v1848_v1 = vmul.f32 %v10079_v54, %v1813_v31  ;;  %v1863_v54 = vadd.f32 %v1847_v36, %v9822_v6 }
 0x263   : > { %v7666_v53 = vpop.eup %7665  ;;  %v1636_v28 = vadd.f32 1.0, %v7664_v33  ;;  %7691 = vrcp.f32 %v1634_v10  ;;  %v1820_v33 = vrot.slane %v1813_v31, 3  ;;  %v1850_v10 = vmul.f32 %v10090_v42, %v1819_v41 }
 0x264   : > { %v7668_v51 = vpop.eup %7667  ;;  %7693 = vrcp.f32 %v1635_v35  ;;  %v1773_v60 = vadd.f32 1.0, %v7666_v53  ;;  %v1821_v53 = vrot.slane %v1813_v31, 4 }
 0x265   : > { %v7670_v2 = vpop.eup %7669  ;;  %7695 = vrcp.f32 %v1636_v28  ;;  %v1774_v55 = vadd.f32 1.0, %v7668_v51  ;;  %v1822_v28 = vrot.slane %v1813_v31, 5  ;;  %v1851_v39 = vmul.f32 %v10094_v52, %v1820_v33  ;;  %v12030_v51 = vld [vmem:[#allocation37_spill] sm:$0xff]  ;;  %v12031_v33 = vld [vmem:[#allocation40_spill] sm:$0xff] }
 0x266   : > { %v7672_v11 = vpop.eup %7671  ;;  %7697 = vpow2.f32 %v6652_v8  ;;  %v1775_v45 = vadd.f32 1.0, %v7670_v2  ;;  %v1864_v8 = vadd.f32 %v1848_v1, %v9828_v32  ;;  %v1852_v49 = vmul.f32 %v10098_v44, %v1821_v53 }
 0x267   : > { %v10130_v56 = vpop.eup %7673  ;;  %7699 = vpow2.f32 %v6653_v14  ;;  %v1776_v3 = vadd.f32 1.0, %v7672_v11  ;;  %v1865_v2 = vadd.f32 %v1849_v37, %v12030_v51  ;;  %v1853_v42 = vmul.f32 %v10100_v9, %v1822_v28 }
 0x268   : > { %v10133_v30 = vpop.eup %7675  ;;  %7701 = vrcp.f32 %v1773_v60  ;;  %v1854_v60 = vmul.f32 %v10102_v57, %v1823_v29  ;;  %v1866_v52 = vadd.f32 %v1850_v10, %v9845_v59  ;;  %v1867_v31 = vadd.f32 %v1851_v39, %v9857_v0  ;;  %v12032_v10 = vld [vmem:[#allocation39_spill] sm:$0xff] }
 0x269   : > { %v7678_v35 = vpop.eup %7677  ;;  %7703 = vrcp.f32 %v1774_v55  ;;  %v1824_v55 = vrot.slane %v10125_v4, 7  ;;  %v1868_v44 = vadd.f32 %v1852_v49, %v9853_v16  ;;  %v1869_v37 = vadd.f32 %v1853_v42, %v12031_v33 }
 0x26a   : > { %v7680_v14 = vpop.eup %7679  ;;  %7705 = vrcp.f32 %v1775_v45  ;;  %v1825_v45 = vrot.slane %v10125_v4, 1  ;;  %v1870_v28 = vadd.f32 %v1854_v60, %v12032_v10  ;;  %v1777_v29 = vadd.f32 1.0, %v7678_v35 }
 0x26b   : > { %v7682_v41 = vpop.eup %7681  ;;  %7707 = vrcp.f32 %v1776_v3  ;;  %v1826_v3 = vrot.slane %v10125_v4, 2  ;;  %v1778_v16 = vadd.f32 1.0, %v7680_v14  ;;  %v1830_v10 = vrot.slane %v10125_v4, 6 }
 0x26c   : > { %v7684_v36 = vpop.eup %7683  ;;  %7709 = vtanh.f32 %v1863_v54  ;;  %v1855_v9 = vmul.f32 %v7682_v41, %v1824_v55  ;;  %v1827_v54 = vrot.slane %v10125_v4, 3  ;;  %v1829_v55 = vrot.slane %v10125_v4, 5 }
 0x26d   : > { %v7686_v1 = vpop.eup %7685  ;;  %7711 = vtanh.f32 %v1864_v8  ;;  %v1856_v53 = vmul.f32 %v7684_v36, %v10125_v4 }
 0x26e   : > { %v7688_v11 = vpop.eup %7687  ;;  %7713 = vtanh.f32 %v1865_v2  ;;  %v1857_v8 = vmul.f32 %v7686_v1, %v1825_v45  ;;  %v1828_v2 = vrot.slane %v10125_v4, 4  ;;  %v1871_v60 = vadd.f32 %v1855_v9, %v9875_v17 }
 0x26f   : > { %v7690_v57 = vpop.eup %7689  ;;  %7715 = vtanh.f32 %v1866_v52  ;;  %v1858_v42 = vmul.f32 %v7688_v11, %v1826_v3  ;;  %v1872_v35 = vadd.f32 %v1856_v53, %v9871_v15 }
 0x270   : > { %v7692_v39 = vpop.eup %7691  ;;  %7717 = vtanh.f32 %v1867_v31  ;;  %v1859_v36 = vmul.f32 %v7690_v57, %v1827_v54 }
 0x271   : > { %v7694_v49 = vpop.eup %7693  ;;  %7719 = vtanh.f32 %v1868_v44  ;;  %v1860_v1 = vmul.f32 %v7692_v39, %v1828_v2  ;;  %v1873_v44 = vadd.f32 %v1857_v8, %v9893_v26 }
 0x272   : > { %v7696_v41 = vpop.eup %7695  ;;  %7721 = vtanh.f32 %v1869_v37  ;;  %v1861_v14 = vmul.f32 %v7694_v49, %v1829_v55  ;;  %v1874_v37 = vadd.f32 %v1858_v42, %v9879_v19  ;;  %v1875_v9 = vadd.f32 %v1859_v36, %v9915_v12 }
 0x273   : > { %v7698_v52 = vpop.eup %7697  ;;  %7723 = vtanh.f32 %v1870_v28  ;;  %v1862_v45 = vmul.f32 %v7696_v41, %v1830_v10  ;;  %v1876_v3 = vadd.f32 %v1860_v1, %v9897_v62 }
 0x274   : > { %v7700_v31 = vpop.eup %7699  ;;  %7725 = vrcp.f32 %v1777_v29  ;;  %v1877_v28 = vadd.f32 %v1861_v14, %v9971_v43  ;;  %v1779_v54 = vadd.f32 1.0, %v7698_v52 }
 0x275   : > { %v10158_v11 = vpop.eup %7701  ;;  %7727 = vrcp.f32 %v1778_v16  ;;  %v1878_v16 = vadd.f32 %v1862_v45, %v9919_v38  ;;  %v1780_v2 = vadd.f32 1.0, %v7700_v31 }
 0x276   : > { %v10161_v57 = vpop.eup %7703  ;;  %7729 = vtanh.f32 %v1871_v60 }
 0x277   : > { %v10164_v4 = vpop.eup %7705  ;;  %7731 = vtanh.f32 %v1872_v35 }
 0x278   : > { %v10167_v53 = vpop.eup %7707  ;;  %7733 = vtanh.f32 %v1873_v44 }
 0x279   : > { %v7710_v39 = vpop.eup %7709  ;;  %7735 = vtanh.f32 %v1874_v37 }
 0x27a   : > { %v7712_v10 = vpop.eup %7711  ;;  %v1911_v8 = vrot.slane %v7710_v39, 1  ;;  %7737 = vtanh.f32 %v1875_v9 }
 0x27b   : > { %v7714_v29 = vpop.eup %7713  ;;  %v1912_v49 = vrot.slane %v7712_v10, 1  ;;  %7739 = vtanh.f32 %v1876_v3 }
 0x27c   : > { %v7716_v42 = vpop.eup %7715  ;;  %v1913_v41 = vrot.slane %v7714_v29, 1  ;;  %v1943_v55 = vsub.f32 %v9950_v7, %v1911_v8  ;;  %7741 = vtanh.f32 %v1877_v28 }
 0x27d   : > { %v7718_v36 = vpop.eup %7717  ;;  %v1914_v60 = vrot.slane %v7716_v42, 1  ;;  %v1944_v1 = vsub.f32 %v9942_v27, %v1912_v49  ;;  %7743 = vtanh.f32 %v1878_v16 }
 0x27e   : > { %v7720_v35 = vpop.eup %7719  ;;  %v1915_v14 = vrot.slane %v7718_v36, 1  ;;  %v1945_v52 = vsub.f32 %v9944_v18, %v1913_v41  ;;  %v1975_v44 = vrot.slane %v1943_v55, 7  ;;  %7745 = vrcp.f32 %v1779_v54 }
 0x27f   : > { %v7722_v45 = vpop.eup %7721  ;;  %v1916_v37 = vrot.slane %v7720_v35, 1  ;;  %v1946_v31 = vsub.f32 %v9961_v13, %v1914_v60  ;;  %v1976_v9 = vrot.slane %v1944_v1, 7  ;;  %7747 = vrcp.f32 %v1780_v2 }
 0x280   : > { %v7724_v3 = vpop.eup %7723  ;;  %v1917_v7 = vrot.slane %v7722_v45, 1  ;;  %v1947_v28 = vsub.f32 %v9966_v40, %v1915_v14  ;;  %v1977_v8 = vrot.slane %v1945_v52, 7  ;;  %v2007_v27 = vmul.f32 %v10105_v34, %v1975_v44 }
 0x281   : > { %v10177_v16 = vpop.eup %7725  ;;  %v1918_v49 = vrot.slane %v7724_v3, 1  ;;  %v1948_v18 = vsub.f32 %v9974_v48, %v1916_v37  ;;  %v1978_v41 = vrot.slane %v1946_v31, 7  ;;  %v2008_v54 = vmul.f32 %v10108_v24, %v1976_v9 }
 0x282   : > { %v10181_v55 = vpop.eup %7727  ;;  %v1949_v13 = vsub.f32 %v9984_v20, %v1917_v7  ;;  %v1979_v2 = vrot.slane %v1947_v28, 7  ;;  %v2009_v60 = vmul.f32 %v10110_v46, %v1977_v8  ;;  %v10185_v1 = vadd.f32 %v7710_v39, %v2007_v27 }
 0x283   : > { %v10187_v40 = vpop.eup %7729  ;;  %v1950_v34 = vsub.f32 %v9986_v61, %v1918_v49  ;;  %v1980_v14 = vrot.slane %v1948_v18, 7  ;;  %v2010_v52 = vmul.f32 %v10112_v47, %v1978_v41  ;;  %v10191_v48 = vadd.f32 %v7712_v10, %v2008_v54 }
 0x284   : > { %v10193_v44 = vpop.eup %7731  ;;  %v1981_v24 = vrot.slane %v1949_v13, 7  ;;  %v2011_v37 = vmul.f32 %v10114_v58, %v1979_v2  ;;  %v10196_v20 = vadd.f32 %v7714_v29, %v2009_v60  ;;  %v2055_v46 = vrot.slane %v10185_v1, 1 }
 0x285   : > { %v10199_v39 = vpop.eup %7733  ;;  %v1982_v31 = vrot.slane %v1950_v34, 7  ;;  %v2012_v9 = vmul.f32 %v10116_v5, %v1980_v14  ;;  %v10202_v61 = vadd.f32 %v7716_v42, %v2010_v52  ;;  %v1919_v47 = vrot.slane %v10187_v40, 1 }
 0x286   : > { %v10205_v10 = vpop.eup %7735  ;;  %v2013_v7 = vmul.f32 %v10130_v56, %v1981_v24  ;;  %v10208_v28 = vadd.f32 %v7718_v36, %v2011_v37  ;;  %v2056_v58 = vsel %vm1337_vm2, %v10191_v48, %v2055_v46  ;;  %v2057_v29 = vrot.slane %v10196_v20, 7 }
 0x287   : > { %v10213_v8 = vpop.eup %7737  ;;  %v2014_v27 = vmul.f32 %v10133_v30, %v1982_v31  ;;  %v10216_v5 = vadd.f32 %v7720_v35, %v2012_v9  ;;  %v2059_v42 = vrot.slane %v10202_v61, 6  ;;  %v1920_v49 = vrot.slane %v10193_v44, 1 }
 0x288   : > { %v10220_v18 = vpop.eup %7739  ;;  %v10222_v56 = vadd.f32 %v7722_v45, %v2013_v7  ;;  %v2058_v36 = vsel %vm1340_vm3, %v2057_v29, %v2056_v58  ;;  %v2061_v41 = vrot.slane %v10208_v28, 5  ;;  %v1921_v54 = vrot.slane %v10199_v39, 1 }
 0x289   : > { %v10227_v13 = vpop.eup %7741  ;;  %v10229_v2 = vadd.f32 %v7724_v3, %v2014_v27  ;;  %v2060_v30 = vsel %vm1343_vm4, %v2059_v42, %v2058_v36  ;;  %v2063_v35 = vrot.slane %v10216_v5, 4  ;;  %v1922_v60 = vrot.slane %v10205_v10, 1 }
 0x28a   : > { %12033 = vst [vmem:[#allocation37_spill] sm:$0xff] %v10222_v56  ;;  %v10234_v34 = vpop.eup %7743  ;;  %v2062_v45 = vsel %vm1346_vm5, %v2061_v41, %v2060_v30  ;;  %v2065_v14 = vrot.slane %v10222_v56, 3  ;;  %v1923_v52 = vrot.slane %v10213_v8, 1  ;;  %v1924_v24 = vrot.slane %v10220_v18, 1  ;;  %v12036_v56 = vld [vmem:[#allocation48_spill] sm:$0xff] }
 0x28b   : > { %12034 = vst [vmem:[#allocation40_spill] sm:$0xff] %v10229_v2  ;;  %v7746_v37 = vpop.eup %7745  ;;  %v2064_v3 = vsel %vm1349_vm6, %v2063_v35, %v2062_v45  ;;  %v2067_v46 = vrot.slane %v10229_v2, 2  ;;  %v1925_v31 = vrot.slane %v10227_v13, 1  ;;  %v1926_v9 = vrot.slane %v10234_v34, 1  ;;  %v12035_v45 = vld [vmem:[#allocation47_spill] sm:$0xff] }
 0x28c   : > { %v7748_v7 = vpop.eup %7747  ;;  %v2066_v58 = vsel %vm1352_vm7, %v2065_v14, %v2064_v3  ;;  %v1951_v29 = vsub.f32 %v10008_v23, %v1919_v47  ;;  %v1952_v27 = vsub.f32 %v9995_v21, %v1920_v49  ;;  %v1953_v42 = vsub.f32 %v9997_v50, %v1921_v54 }
 0x28d   : > { %v2068_v36 = vsel %vm1355_vm8, %v2067_v46, %v2066_v58  ;;  %v1954_v41 = vsub.f32 %v10000_v63, %v1922_v60  ;;  %v1955_v30 = vsub.f32 %v10002_v22, %v1923_v52  ;;  %v1956_v35 = vsub.f32 %v10005_v25, %v1924_v24  ;;  %v8758_v46 = vld [vmem:[#allocation2 + $0x168] sm:$0xff]  ;;  %v8759_v52 = vld [vmem:[#allocation2 + $0x158] sm:$0xff]  ;;  %v8760_v58 = vld [vmem:[#allocation2 + $0x150] sm:$0xff] }
 0x28e   : > { %2150 = vmatmul.mubr.f32.vlgmr.msra.gmra.mxu1 %v2068_v36  ;;  %7160 = vmatprep.mubr.f32.mxu0 %v2068_v36  ;;  %v1957_v2 = vsub.f32 %v12035_v45, %v1925_v31  ;;  %v1958_v14 = vsub.f32 %v12036_v56, %v1926_v9  ;;  %v1983_v3 = vrot.slane %v1951_v29, 7  ;;  %v1984_v23 = vrot.slane %v1952_v27, 7  ;;  %v8765_v36 = vld [vmem:[#allocation2 + $0x110] sm:$0xff] }
 0x28f   : > { %v12037_v47 = vmov 0.0   ;;  %v1985_v21 = vrot.slane %v1953_v42, 7  ;;  %v1986_v50 = vrot.slane %v1954_v41, 7  ;;  %v1987_v49 = vrot.slane %v1955_v30, 7  ;;  %2798 = vmatpush1.msra.mxu1 %v8758_v46  ;;  %v8764_v42 = vld [vmem:[#allocation2 + $0x120] sm:$0xff]  ;;  %v8770_v46 = vld [vmem:[#allocation2 + $0xd8] sm:$0xff] }
 0x290   : > { %2155 = vmatprep.mubr.f32.mxu1 %v12037_v47  ;;  %v1988_v54 = vrot.slane %v1956_v35, 7  ;;  %v1989_v63 = vrot.slane %v1957_v2, 7  ;;  %v1990_v22 = vrot.slane %v1958_v14, 7  ;;  %v2015_v25 = vmul.f32 %v10158_v11, %v1983_v3  ;;  %2799 = vmatprep.subr.mxu1 %v8759_v52  ;;  %v8761_v11 = vld [vmem:[#allocation2 + $0x140] sm:$0xff]  ;;  %v8767_v14 = vld [vmem:[#allocation2 + $0xf8] sm:$0xff]  ;;  %v8773_v52 = vld [vmem:[#allocation2 + $0xb0] sm:$0xff] }
 0x291   : > { %v2016_v60 = vmul.f32 %v10161_v57, %v1984_v23  ;;  %v2017_v56 = vmul.f32 %v10164_v4, %v1985_v21  ;;  %v2018_v24 = vmul.f32 %v10167_v53, %v1986_v50  ;;  %v2019_v31 = vmul.f32 %v10177_v16, %v1987_v49  ;;  %2800 = vmatpush1.msra.mxu1 %v8760_v58  ;;  %v8762_v16 = vld [vmem:[#allocation2 + $0x138] sm:$0xff]  ;;  %v8768_v23 = vld [vmem:[#allocation2 + $0xf0] sm:$0xff]  ;;  %v8769_v49 = vld [vmem:[#allocation2 + $0xe0] sm:$0xff] }
 0x292   : > { %v2020_v9 = vmul.f32 %v10181_v55, %v1988_v54  ;;  %v2021_v29 = vmul.f32 %v7746_v37, %v1989_v63  ;;  %v2022_v27 = vmul.f32 %v7748_v7, %v1990_v22  ;;  %v10262_v2 = vadd.f32 %v10187_v40, %v2015_v25  ;;  %2801 = vmatprep.subr.mxu1 %v8761_v11  ;;  %v8763_v7 = vld [vmem:[#allocation2 + $0x128] sm:$0xff]  ;;  %v8772_v25 = vld [vmem:[#allocation2 + $0xc0] sm:$0xff]  ;;  %v12042_v58 = vld [vmem:[#allocation51_spill] sm:$0xff] }
 0x293   : > { %v10265_v57 = vadd.f32 %v10199_v39, %v2017_v56  ;;  %v10268_v4 = vadd.f32 %v10205_v10, %v2018_v24  ;;  %v10271_v53 = vadd.f32 %v10213_v8, %v2019_v31  ;;  %2802 = vmatpush1.msra.mxu1 %v8762_v16  ;;  %v10274_v55 = vadd.f32 %v10193_v44, %v2016_v60  ;;  %v8771_v22 = vld [vmem:[#allocation2 + $0xc8] sm:$0xff]  ;;  %v12041_v56 = vld [vmem:[#allocation50_spill] sm:$0xff]  ;;  %v8775_v31 = vld [vmem:[#allocation2 + $0x160] sm:$0xff] }
 0x294   : > { %v10277_v37 = vadd.f32 %v10220_v18, %v2020_v9  ;;  %v2069_v40 = vrot.slane %v10262_v2, 1  ;;  %2803 = vmatprep.subr.mxu1 %v8763_v7  ;;  %v10281_v39 = vadd.f32 %v10227_v13, %v2021_v29  ;;  %v10285_v8 = vadd.f32 %v10234_v34, %v2022_v27  ;;  %v8766_v13 = vld [vmem:[#allocation2 + $0x108] sm:$0xff]  ;;  %v8776_v9 = vld [vmem:[#allocation2 + $0x98] sm:$0xff]  ;;  %v8777_v29 = vld [vmem:[#allocation2 + $0x90] sm:$0xff] }
 0x295   : > { %v2071_v10 = vrot.slane %v10265_v57, 7  ;;  %2804 = vmatpush1.msra.mxu1 %v8764_v42  ;;  %v2073_v18 = vrot.slane %v10268_v4, 6  ;;  %v2075_v30 = vrot.slane %v10271_v53, 5  ;;  %v12040_v60 = vld [vmem:[#allocation49_spill] sm:$0xff]  ;;  %v8779_v11 = vld [vmem:[#allocation2 + $0x80] sm:$0xff]  ;;  %v8781_v7 = vld [vmem:[#allocation2 + $0x130] sm:$0xff] }
 0x296   : > { %12038 = vst [vmem:[#allocation47_spill] sm:$0xff] %v10281_v39  ;;  %12039 = vst [vmem:[#allocation48_spill] sm:$0xff] %v10285_v8  ;;  %v2070_v44 = vsel %vm1337_vm2, %v10274_v55, %v2069_v40  ;;  %2805 = vmatprep.subr.mxu1 %v8765_v36  ;;  %v2077_v45 = vrot.slane %v10277_v37, 4  ;;  %v2079_v3 = vrot.slane %v10281_v39, 3  ;;  %v2081_v50 = vrot.slane %v10285_v8, 2  ;;  %v8774_v24 = vld [vmem:[#allocation2 + $0xa8] sm:$0xff] }
 0x297   : > { %v2072_v41 = vsel %vm1340_vm3, %v2071_v10, %v2070_v44  ;;  %2806 = vmatpush1.msra.mxu1 %v8766_v13  ;;  %v8778_v27 = vld [vmem:[#allocation2 + $0x148] sm:$0xff]  ;;  %v12043_v16 = vld [vmem:[#allocation52_spill] sm:$0xff]  ;;  %v8780_v40 = vld [vmem:[#allocation2 + $0x78] sm:$0xff] }
 0x298   : > { %v2074_v35 = vsel %vm1343_vm4, %v2073_v18, %v2072_v41  ;;  %2807 = vmatprep.subr.mxu1 %v8767_v14  ;;  %v8782_v10 = vld [vmem:[#allocation2 + $0x68] sm:$0xff]  ;;  %v8783_v44 = vld [vmem:[#allocation2 + $0x60] sm:$0xff]  ;;  %v8784_v18 = vld [vmem:[#allocation2 + $0x118] sm:$0xff] }
 0x299   : > { %v2076_v34 = vsel %vm1346_vm5, %v2075_v30, %v2074_v35  ;;  %2808 = vmatpush1.msra.mxu1 %v8768_v23  ;;  %v12044_v42 = vld [vmem:[#allocation53_spill] sm:$0xff]  ;;  %v8785_v36 = vld [vmem:[#allocation2 + $0x50] sm:$0xff]  ;;  %v8787_v13 = vld [vmem:[#allocation2 + $0x38] sm:$0xff] }
 0x29a   : > { %v2078_v21 = vsel %vm1349_vm6, %v2077_v45, %v2076_v34  ;;  %2809 = vmatprep.subr.mxu1 %v8769_v49  ;;  %v12045_v41 = vld [vmem:[#allocation54_spill] sm:$0xff]  ;;  %v8786_v30 = vld [vmem:[#allocation2 + $0x48] sm:$0xff]  ;;  %v8788_v35 = vld [vmem:[#allocation2 + $0x100] sm:$0xff] }
 0x29b   : > { %v2080_v54 = vsel %vm1352_vm7, %v2079_v3, %v2078_v21  ;;  %2810 = vmatpush1.msra.mxu1 %v8770_v46  ;;  %v8789_v45 = vld [vmem:[#allocation2 + $0x30] sm:$0xff]  ;;  %v8790_v14 = vld [vmem:[#allocation2 + $0xe8] sm:$0xff]  ;;  %v8791_v34 = vld [vmem:[#allocation2 + $0x20] sm:$0xff] }
 0x29c   : > { %v2082_v63 = vsel %vm1355_vm8, %v2081_v50, %v2080_v54  ;;  %2811 = vmatprep.subr.mxu1 %v8771_v22  ;;  %v8792_v3 = vld [vmem:[#allocation2 + $0x18] sm:$0xff]  ;;  %v8793_v23 = vld [vmem:[#allocation2 + $0xd0] sm:$0xff]  ;;  %v8794_v21 = vld [vmem:[#allocation2 + $0x8] sm:$0xff] }
 0x29d   : > { %2156 = vmatmul.mubr.f32.gmra.mxu1 %v2082_v63  ;;  %7161 = vmatmul.mubr.f32.vlgmr.msra.gmra.mxu0 %v2082_v63  ;;  %v8795_v50 = vld [vmem:[#allocation2] sm:$0xff]  ;;  %v8796_v49 = vld [vmem:[#allocation2 + $0xb8] sm:$0xff]  ;;  %v8797_v54 = vld [vmem:[#allocation2 + $0x170] sm:$0xff] }
 0x29e   : > { %2812 = vmatpush1.msra.mxu1 %v8772_v25  ;;  %7164 = vmatpush3.msra.mxu0 %v12040_v60  ;;  %v8798_v46 = vld [vmem:[#allocation2 + $0xa0] sm:$0xff]  ;;  %v8799_v63 = vld [vmem:[#allocation2 + $0x88] sm:$0xff]  ;;  %v8800_v22 = vld [vmem:[#allocation2 + $0x70] sm:$0xff] }
 0x29f   : > { %2813 = vmatprep.subr.mxu1 %v8773_v52  ;;  %7165 = vmatprep.subr.mxu0 %v12041_v56  ;;  %v8801_v25 = vld [vmem:[#allocation2 + $0x58] sm:$0xff]  ;;  %v8802_v60 = vld [vmem:[#allocation2 + $0x40] sm:$0xff]  ;;  %v8803_v52 = vld [vmem:[#allocation2 + $0x28] sm:$0xff] }
 0x2a0   : > { %2814 = vmatpush1.msra.mxu1 %v8774_v24  ;;  %7166 = vmatpush3.msra.mxu0 %v8775_v31  ;;  %v8804_v56 = vld [vmem:[#allocation2 + $0x10] sm:$0xff]  ;;  %v10307_v24 = vld [vmem:[#allocation2 + $0x178] sm:$0xff] }
 0x2a1   : > { %2815 = vmatprep.subr.mxu1 %v8776_v9  ;;  %7167 = vmatprep.subr.mxu0 %v12042_v58  ;;  %12046 = vst [vmem:[#allocation49_spill] sm:$0xff] %v10307_v24 }
 0x2a2   : > { %2816 = vmatpush1.msra.mxu1 %v8777_v29  ;;  %7168 = vmatpush3.msra.mxu0 %v8778_v27 }
 0x2a3   : > { %2817 = vmatprep.subr.mxu1 %v8779_v11  ;;  %7169 = vmatprep.subr.mxu0 %v12043_v16 }
 0x2a4   : > { %2818 = vmatpush1.msra.mxu1 %v8780_v40  ;;  %7170 = vmatpush3.msra.mxu0 %v8781_v7  ;;  %v12047_v7 = vld [vmem:[#allocation12_spill] sm:$0xff] }
 0x2a5   : > { %2819 = vmatprep.subr.mxu1 %v8782_v10  ;;  %7171 = vmatprep.subr.mxu0 %v12044_v42  ;;  %v12048_v42 = vld [vmem:[#allocation8_spill] sm:$0xff] }
 0x2a6   : > { %2820 = vmatpush1.msra.mxu1 %v8783_v44  ;;  %7172 = vmatpush3.msra.mxu0 %v8784_v18  ;;  %v12049_v18 = vld [vmem:[#allocation10_spill] sm:$0xff] }
 0x2a7   : > { %2821 = vmatprep.subr.mxu1 %v8785_v36  ;;  %7173 = vmatprep.subr.mxu0 %v12045_v41  ;;  %v12050_v41 = vld [vmem:[#allocation14_spill] sm:$0xff] }
 0x2a8   : > { %2822 = vmatpush1.msra.mxu1 %v8786_v30  ;;  %2861 = vmatprep.mubr.f32.mxu1 %v12037_v47 }
 0x2a9   : > { %2823 = vmatprep.subr.mxu1 %v8787_v13  ;;  %7174 = vmatpush3.msra.mxu0 %v8788_v35  ;;  %v12051_v13 = vld [vmem:[#allocation16_spill] sm:$0xff] }
 0x2aa   : > { %2824 = vmatpush1.msra.mxu1 %v8789_v45  ;;  %7175 = vmatprep.subr.mxu0 %v8790_v14 }
 0x2ab   : > { %2825 = vmatprep.subr.mxu1 %v8791_v34  ;;  %7176 = vmatpush3.msra.mxu0 %v8790_v14  ;;  %v12052_v14 = vld [vmem:[#allocation18_spill] sm:$0xff] }
 0x2ac   : > { %2826 = vmatpush1.msra.mxu1 %v8792_v3  ;;  %7177 = vmatprep.subr.mxu0 %v8793_v23  ;;  %v12053_v3 = vld [vmem:[#allocation20_spill] sm:$0xff] }
 0x2ad   : > { %2827 = vmatprep.subr.mxu1 %v8794_v21  ;;  %7178 = vmatpush3.msra.mxu0 %v8793_v23 }
 0x2ae   : > { %2828 = vmatpush1.msra.mxu1 %v8795_v50  ;;  %7179 = vmatprep.subr.mxu0 %v8796_v49  ;;  %v12054_v50 = vld [vmem:[#allocation21_spill] sm:$0xff] }
 0x2af   : > { %7180 = vmatpush3.msra.mxu0 %v8796_v49  ;;  %3509 = vmatprep.subr.mxu1 %v8797_v54 }
 0x2b0   : > { %7181 = vmatprep.subr.mxu0 %v8798_v46 }
 0x2b1   : > { %7182 = vmatpush3.msra.mxu0 %v8798_v46 }
 0x2b2   : > { %7183 = vmatprep.subr.mxu0 %v8799_v63 }
 0x2b3   : > { %7184 = vmatpush3.msra.mxu0 %v8799_v63 }
 0x2b4   : > { %7185 = vmatprep.subr.mxu0 %v8800_v22 }
 0x2b5   : > { %7186 = vmatpush3.msra.mxu0 %v8800_v22 }
 0x2b6   : > { %7187 = vmatprep.subr.mxu0 %v8801_v25 }
 0x2b7   : > { %7188 = vmatpush3.msra.mxu0 %v8801_v25 }
 0x2b8   : > { %7189 = vmatprep.subr.mxu0 %v8802_v60 }
 0x2b9   : > { %7190 = vmatpush3.msra.mxu0 %v8802_v60  ;;  %v12055_v60 = vld [vmem:[#allocation13_spill] sm:$0xff] }
 0x2ba   : > { %7191 = vmatprep.subr.mxu0 %v8803_v52 }
 0x2bb   : > { %7192 = vmatpush3.msra.mxu0 %v8803_v52 }
 0x2bc   : > { %7193 = vmatprep.subr.mxu0 %v8804_v56 }
 0x2bd   : > { %7194 = vmatpush3.msra.mxu0 %v8804_v56 }
 0x2be   : > { %7198 = vmatprep.subr.mxu0 %v10307_v24 }
 0x34e   : > { %v2151_v31 = vpop.f32.mrf.mxu1 }
 0x34f   : > { %v2239_v9 = vrot.slane %v2151_v31, 6  ;;  %v2240_v58 = vrot.slane %v2151_v31, 7  ;;  %v2241_v29 = vrot.slane %v2151_v31, 1  ;;  %v2242_v27 = vrot.slane %v2151_v31, 2 }
 0x350   : > { %v2243_v11 = vrot.slane %v2151_v31, 3  ;;  %v2244_v16 = vrot.slane %v2151_v31, 4  ;;  %v2245_v40 = vrot.slane %v2151_v31, 5  ;;  %v2271_v10 = vadd.f32 %v2151_v31, %v12047_v7  ;;  %v2153_v45 = vpop.f32.mrf.mxu1 }
 0x351   : > { %v2269_v44 = vadd.f32 %v2239_v9, %v12048_v42  ;;  %v2270_v36 = vadd.f32 %v2240_v58, %v12049_v18  ;;  %v2272_v30 = vadd.f32 %v2241_v29, %v12050_v41  ;;  %v2273_v35 = vadd.f32 %v2242_v27, %v12051_v13 }
 0x352   : > { %v2274_v34 = vadd.f32 %v2243_v11, %v12052_v14  ;;  %v2275_v23 = vadd.f32 %v2244_v16, %v12053_v3  ;;  %v6656_v21 = vmul.f32 -1.442695, %v2271_v10  ;;  %v2276_v49 = vadd.f32 %v2245_v40, %v12054_v50  ;;  %v12056_v40 = vld [vmem:[#allocation9_spill] sm:$0xff] }
 0x353   : > { %v6654_v54 = vmul.f32 -1.442695, %v2269_v44  ;;  %v6655_v46 = vmul.f32 -1.442695, %v2270_v36  ;;  %v6657_v63 = vmul.f32 -1.442695, %v2272_v30  ;;  %v2415_v52 = vadd.f32 %v2153_v45, %v12055_v60 }
 0x354   : > { %7749 = vpow2.f32 %v6656_v21  ;;  %v6658_v22 = vmul.f32 -1.442695, %v2273_v35  ;;  %v6659_v25 = vmul.f32 -1.442695, %v2274_v34  ;;  %v6660_v56 = vmul.f32 -1.442695, %v2275_v23 }
 0x355   : > { %7751 = vpow2.f32 %v6654_v54  ;;  %v2383_v31 = vrot.slane %v2153_v45, 6  ;;  %v2384_v9 = vrot.slane %v2153_v45, 7  ;;  %v2385_v58 = vrot.slane %v2153_v45, 1  ;;  %v12057_v44 = vld [vmem:[#allocation11_spill] sm:$0xff]  ;;  %v12059_v34 = vld [vmem:[#allocation17_spill] sm:$0xff] }
 0x356   : > { %7753 = vpow2.f32 %v6655_v46  ;;  %v2386_v29 = vrot.slane %v2153_v45, 2  ;;  %v2387_v27 = vrot.slane %v2153_v45, 3  ;;  %v6661_v11 = vmul.f32 -1.442695, %v2276_v49  ;;  %v12058_v30 = vld [vmem:[#allocation15_spill] sm:$0xff] }
 0x357   : > { %7755 = vpow2.f32 %v6657_v63  ;;  %v2388_v16 = vrot.slane %v2153_v45, 4  ;;  %v2413_v10 = vadd.f32 %v2383_v31, %v12056_v40  ;;  %v2414_v36 = vadd.f32 %v2384_v9, %v12057_v44  ;;  %v12060_v54 = vld [vmem:[#allocation19_spill] sm:$0xff]  ;;  %v12061_v63 = vld [vmem:[#allocation22_spill] sm:$0xff] }
 0x358   : > { %7757 = vpow2.f32 %v6658_v22  ;;  %v2416_v35 = vadd.f32 %v2385_v58, %v12058_v30  ;;  %v2417_v21 = vadd.f32 %v2386_v29, %v12059_v34  ;;  %v2389_v23 = vrot.slane %v2153_v45, 5  ;;  %v12062_v31 = vld [vmem:[#allocation23_spill] sm:$0xff] }
 0x359   : > { %7759 = vpow2.f32 %v6659_v25  ;;  %v2418_v60 = vadd.f32 %v2387_v27, %v12060_v54  ;;  %v6670_v46 = vmul.f32 -1.442695, %v2413_v10  ;;  %v6671_v50 = vmul.f32 -1.442695, %v2414_v36 }
 0x35a   : > { %7761 = vpow2.f32 %v6660_v56  ;;  %v6672_v3 = vmul.f32 -1.442695, %v2415_v52  ;;  %v6673_v49 = vmul.f32 -1.442695, %v2416_v35  ;;  %v2419_v14 = vadd.f32 %v2388_v16, %v12061_v63 }
 0x35b   : > { %7763 = vpow2.f32 %v6661_v11  ;;  %v6674_v22 = vmul.f32 -1.442695, %v2417_v21  ;;  %v2420_v9 = vadd.f32 %v2389_v23, %v12062_v31  ;;  %v6675_v58 = vmul.f32 -1.442695, %v2418_v60 }
 0x35c   : > { %7765 = vpow2.f32 %v6670_v46  ;;  %v6676_v45 = vmul.f32 -1.442695, %v2419_v14 }
 0x35d   : > { %7767 = vpow2.f32 %v6671_v50  ;;  %v6677_v56 = vmul.f32 -1.442695, %v2420_v9  ;;  %v2157_v21 = vpop.f32.mrf.mxu1 }
 0x35e   : > { %7769 = vpow2.f32 %v6672_v3  ;;  %v2250_v31 = vrot.slane %v2157_v21, 3 }
 0x35f   : > { %7771 = vpow2.f32 %v6673_v49  ;;  %v2246_v49 = vrot.slane %v2157_v21, 6  ;;  %v10328_v63 = vpop.f32.mrf.mxu1 }
 0x360   : > { %7773 = vpow2.f32 %v6674_v22 }
 0x361   : > { %v7750_v25 = vpop.eup %7749  ;;  %7775 = vpow2.f32 %v6675_v58  ;;  %v2247_v58 = vrot.slane %v2157_v21, 7 }
 0x362   : > { %v7752_v29 = vpop.eup %7751  ;;  %v2335_v27 = vadd.f32 1.0, %v7750_v25  ;;  %7777 = vpow2.f32 %v6676_v45 }
 0x363   : > { %v7754_v52 = vpop.eup %7753  ;;  %v2333_v11 = vadd.f32 1.0, %v7752_v29  ;;  %7779 = vpow2.f32 %v6677_v56 }
 0x364   : > { %v7756_v10 = vpop.eup %7755  ;;  %v2334_v36 = vadd.f32 1.0, %v7754_v52  ;;  %7781 = vrcp.f32 %v2335_v27  ;;  %v2248_v52 = vrot.slane %v2157_v21, 1 }
 0x365   : > { %v7758_v16 = vpop.eup %7757  ;;  %v2336_v35 = vadd.f32 1.0, %v7756_v10  ;;  %7783 = vrcp.f32 %v2333_v11  ;;  %v12063_v11 = vld [vmem:[#allocation24_spill] sm:$0xff] }
 0x366   : > { %v7760_v50 = vpop.eup %7759  ;;  %v2337_v60 = vadd.f32 1.0, %v7758_v16  ;;  %7785 = vrcp.f32 %v2334_v36  ;;  %v2249_v16 = vrot.slane %v2157_v21, 2 }
 0x367   : > { %v7762_v3 = vpop.eup %7761  ;;  %v2338_v23 = vadd.f32 1.0, %v7760_v50  ;;  %7787 = vrcp.f32 %v2336_v35  ;;  %v2277_v50 = vadd.f32 %v2246_v49, %v12063_v11  ;;  %v12067_v49 = vld [vmem:[#allocation32_spill] sm:$0xff]  ;;  %v2390_v11 = vrot.slane %v10328_v63, 6 }
 0x368   : > { %v7764_v14 = vpop.eup %7763  ;;  %v2339_v46 = vadd.f32 1.0, %v7762_v3  ;;  %7789 = vrcp.f32 %v2337_v60 }
 0x369   : > { %v7766_v22 = vpop.eup %7765  ;;  %v2340_v9 = vadd.f32 1.0, %v7764_v14  ;;  %7791 = vrcp.f32 %v2338_v23  ;;  %v12064_v14 = vld [vmem:[#allocation26_spill] sm:$0xff]  ;;  %v2251_v23 = vrot.slane %v2157_v21, 4 }
 0x36a   : > { %v7768_v25 = vpop.eup %7767  ;;  %v2477_v45 = vadd.f32 1.0, %v7766_v22  ;;  %7793 = vrcp.f32 %v2339_v46  ;;  %v2278_v35 = vadd.f32 %v2247_v58, %v12064_v14  ;;  %v2252_v46 = vrot.slane %v2157_v21, 5  ;;  %v12068_v14 = vld [vmem:[#allocation34_spill] sm:$0xff] }
 0x36b   : > { %v7770_v29 = vpop.eup %7769  ;;  %v2478_v56 = vadd.f32 1.0, %v7768_v25  ;;  %7795 = vrcp.f32 %v2340_v9  ;;  %v12065_v25 = vld [vmem:[#allocation28_spill] sm:$0xff]  ;;  %v2281_v9 = vadd.f32 %v2249_v16, %v12067_v49  ;;  %v2282_v40 = vadd.f32 %v2250_v31, %v12068_v14 }
 0x36c   : > { %v7772_v10 = vpop.eup %7771  ;;  %v2479_v27 = vadd.f32 1.0, %v7770_v29  ;;  %7797 = vrcp.f32 %v2477_v45  ;;  %v2279_v54 = vadd.f32 %v2157_v21, %v12065_v25  ;;  %v12066_v29 = vld [vmem:[#allocation30_spill] sm:$0xff]  ;;  %v2391_v45 = vrot.slane %v10328_v63, 7 }
 0x36d   : > { %v7774_v3 = vpop.eup %7773  ;;  %v2480_v36 = vadd.f32 1.0, %v7772_v10  ;;  %7799 = vrcp.f32 %v2478_v56  ;;  %v2280_v44 = vadd.f32 %v2248_v52, %v12066_v29  ;;  %v6662_v10 = vmul.f32 -1.442695, %v2277_v50  ;;  %v12070_v52 = vld [vmem:[#allocation36_spill] sm:$0xff] }
 0x36e   : > { %v7776_v60 = vpop.eup %7775  ;;  %v2481_v22 = vadd.f32 1.0, %v7774_v3  ;;  %7801 = vrcp.f32 %v2479_v27  ;;  %v6663_v3 = vmul.f32 -1.442695, %v2278_v35  ;;  %v6664_v21 = vmul.f32 -1.442695, %v2279_v54 }
 0x36f   : > { %v2482_v34 = vadd.f32 1.0, %v7776_v60  ;;  %v7778_v58 = vpop.eup %7777  ;;  %7803 = vrcp.f32 %v2480_v36  ;;  %v12069_v60 = vld [vmem:[#allocation35_spill] sm:$0xff]  ;;  %v2284_v27 = vadd.f32 %v2252_v46, %v12070_v52  ;;  %v6665_v16 = vmul.f32 -1.442695, %v2280_v44  ;;  %v12071_v36 = vld [vmem:[#allocation25_spill] sm:$0xff] }
 0x370   : > { %v7780_v30 = vpop.eup %7779  ;;  %7805 = vrcp.f32 %v2481_v22  ;;  %v2283_v56 = vadd.f32 %v2251_v23, %v12069_v60  ;;  %v2392_v50 = vrot.slane %v10328_v63, 1  ;;  %v6666_v31 = vmul.f32 -1.442695, %v2281_v9  ;;  %v12072_v23 = vld [vmem:[#allocation27_spill] sm:$0xff]  ;;  %v12073_v46 = vld [vmem:[#allocation29_spill] sm:$0xff] }
 0x371   : > { %v10337_v25 = vpop.eup %7781  ;;  %7807 = vrcp.f32 %v2482_v34  ;;  %v2421_v35 = vadd.f32 %v2390_v11, %v12071_v36  ;;  %v6667_v22 = vmul.f32 -1.442695, %v2282_v40  ;;  %v2422_v54 = vadd.f32 %v2391_v45, %v12072_v23 }
 0x372   : > { %v10341_v49 = vpop.eup %7783  ;;  %7809 = vpow2.f32 %v6662_v10  ;;  %v6668_v34 = vmul.f32 -1.442695, %v2283_v56  ;;  %v2393_v44 = vrot.slane %v10328_v63, 2  ;;  %v2423_v52 = vadd.f32 %v10328_v63, %v12073_v46  ;;  %v12074_v10 = vld [vmem:[#allocation31_spill] sm:$0xff]  ;;  %v12075_v46 = vld [vmem:[#allocation33_spill] sm:$0xff] }
 0x373   : > { %v10344_v14 = vpop.eup %7785  ;;  %7811 = vpow2.f32 %v6663_v3  ;;  %v6669_v9 = vmul.f32 -1.442695, %v2284_v27  ;;  %v2394_v11 = vrot.slane %v10328_v63, 3  ;;  %v2424_v3 = vadd.f32 %v2392_v50, %v12074_v10  ;;  %v12076_v27 = vld [vmem:[#allocation41_spill] sm:$0xff] }
 0x374   : > { %v10347_v60 = vpop.eup %7787  ;;  %7813 = vpow2.f32 %v6664_v21  ;;  %v6678_v45 = vmul.f32 -1.442695, %v2421_v35  ;;  %v6679_v56 = vmul.f32 -1.442695, %v2422_v54  ;;  %v2425_v36 = vadd.f32 %v2393_v44, %v12075_v46  ;;  %v7162_v54 = vpop.f32.mrf.mxu0 }
 0x375   : > { %v10352_v29 = vpop.eup %7789  ;;  %7815 = vpow2.f32 %v6665_v16  ;;  %v6680_v13 = vmul.f32 -1.442695, %v2423_v52  ;;  %v2426_v7 = vadd.f32 %v2394_v11, %v12076_v27  ;;  %v6681_v50 = vmul.f32 -1.442695, %v2424_v3 }
 0x376   : > { %v10356_v40 = vpop.eup %7791  ;;  %7817 = vpow2.f32 %v6666_v31  ;;  %v2483_v31 = vadd.f32 1.0, %v7778_v58  ;;  %v2395_v11 = vrot.slane %v10328_v63, 4  ;;  %v2396_v3 = vrot.slane %v10328_v63, 5  ;;  %v12078_v63 = vld [vmem:[#allocation44_spill] sm:$0xff] }
 0x377   : > { %v10358_v23 = vpop.eup %7793  ;;  %7819 = vpow2.f32 %v6667_v22  ;;  %v2484_v22 = vadd.f32 1.0, %v7780_v30  ;;  %v6683_v44 = vmul.f32 -1.442695, %v2426_v7  ;;  %v2228_v30 = vpop.f32.mrf.mxu0  ;;  %v12077_v7 = vld [vmem:[#allocation43_spill] sm:$0xff] }
 0x378   : > { %v10360_v21 = vpop.eup %7795  ;;  %7821 = vpow2.f32 %v6668_v34  ;;  %v6682_v34 = vmul.f32 -1.442695, %v2425_v36  ;;  %v2428_v24 = vadd.f32 %v2396_v3, %v12078_v63 }
 0x379   : > { %v10363_v16 = vpop.eup %7797  ;;  %7823 = vpow2.f32 %v6669_v9 }
 0x37a   : > { %v10366_v10 = vpop.eup %7799  ;;  %7825 = vpow2.f32 %v6678_v45 }
 0x37b   : > { %v10368_v35 = vpop.eup %7801  ;;  %7827 = vpow2.f32 %v6679_v56 }
 0x37c   : > { %v10370_v18 = vpop.eup %7803  ;;  %7829 = vpow2.f32 %v6680_v13 }
 0x37d   : > { %v10372_v52 = vpop.eup %7805  ;;  %7831 = vpow2.f32 %v6681_v50  ;;  %v2427_v50 = vadd.f32 %v2395_v11, %v12077_v7 }
 0x37e   : > { %v10374_v9 = vpop.eup %7807  ;;  %7833 = vrcp.f32 %v2483_v31  ;;  %v8806_v31 = vld [vmem:[%s11829_s4] ss:$0 sm:$0xff] }
 0x37f   : > { %v7810_v58 = vpop.eup %7809  ;;  %7835 = vrcp.f32 %v2484_v22  ;;  %v2525_v42 = vadd.f32 %v8806_v31, %v2228_v30  ;;  %v6684_v11 = vmul.f32 -1.442695, %v2427_v50  ;;  %v6685_v30 = vmul.f32 -1.442695, %v2428_v24 }
 0x380   : > { %v7812_v45 = vpop.eup %7811  ;;  %v2341_v56 = vadd.f32 1.0, %v7810_v58  ;;  %7837 = vpow2.f32 %v6682_v34 }
 0x381   : > { %v7814_v27 = vpop.eup %7813  ;;  %v2342_v13 = vadd.f32 1.0, %v7812_v45  ;;  %7839 = vpow2.f32 %v6683_v44  ;;  %v2529_v7 = vrot.slane %v2525_v42, 6  ;;  %v2530_v39 = vrot.slane %v2525_v42, 7 }
 0x382   : > { %v7816_v36 = vpop.eup %7815  ;;  %v2343_v46 = vadd.f32 1.0, %v7814_v27  ;;  %7841 = vrcp.f32 %v2341_v56  ;;  %v2561_v24 = vmul.f32 %v10337_v25, %v2525_v42  ;;  %v2535_v25 = vrot.slane %v2525_v42, 5 }
 0x383   : > { %v7818_v22 = vpop.eup %7817  ;;  %v2344_v41 = vadd.f32 1.0, %v7816_v36  ;;  %7843 = vrcp.f32 %v2342_v13  ;;  %v10383_v13 = vadd.f32 %v8806_v31, %v7162_v54  ;;  %v2533_v31 = vrot.slane %v2525_v42, 3 }
 0x384   : > { %v7820_v58 = vpop.eup %7819  ;;  %v2345_v34 = vadd.f32 1.0, %v7818_v22  ;;  %7845 = vrcp.f32 %v2343_v46  ;;  %v2559_v46 = vmul.f32 %v10341_v49, %v2529_v7 }
 0x385   : > { %v7822_v45 = vpop.eup %7821  ;;  %v2346_v44 = vadd.f32 1.0, %v7820_v58  ;;  %7847 = vrcp.f32 %v2344_v41  ;;  %v2531_v58 = vrot.slane %v2525_v42, 1 }
 0x386   : > { %v7824_v27 = vpop.eup %7823  ;;  %v2347_v56 = vadd.f32 1.0, %v7822_v45  ;;  %7849 = vrcp.f32 %v2345_v34  ;;  %v2560_v34 = vmul.f32 %v10344_v14, %v2530_v39  ;;  %v2575_v39 = vadd.f32 %v2559_v46, %v9822_v6 }
 0x387   : > { %v7826_v47 = vpop.eup %7825  ;;  %v2348_v8 = vadd.f32 1.0, %v7824_v27  ;;  %7851 = vrcp.f32 %v2346_v44  ;;  %v2532_v27 = vrot.slane %v2525_v42, 2 }
 0x388   : > { %v7828_v36 = vpop.eup %7827  ;;  %7853 = vrcp.f32 %v2347_v56  ;;  %v2485_v3 = vadd.f32 1.0, %v7826_v47  ;;  %v2562_v47 = vmul.f32 %v10347_v60, %v2531_v58  ;;  %v2576_v56 = vadd.f32 %v2560_v34, %v9828_v32  ;;  %v12079_v34 = vld [vmem:[#allocation38_spill] sm:$0xff] }
 0x389   : > { %v7830_v22 = vpop.eup %7829  ;;  %7855 = vrcp.f32 %v2348_v8  ;;  %v2486_v41 = vadd.f32 1.0, %v7828_v36  ;;  %v2534_v8 = vrot.slane %v2525_v42, 4  ;;  %v2563_v7 = vmul.f32 %v10352_v29, %v2532_v27 }
 0x38a   : > { %v7832_v50 = vpop.eup %7831  ;;  %7857 = vpow2.f32 %v6684_v11  ;;  %v2487_v45 = vadd.f32 1.0, %v7830_v22  ;;  %v2564_v11 = vmul.f32 %v10356_v40, %v2533_v31  ;;  %v2577_v36 = vadd.f32 %v2561_v24, %v12030_v51  ;;  %v12080_v31 = vld [vmem:[#allocation39_spill] sm:$0xff] }
 0x38b   : > { %v10388_v44 = vpop.eup %7833  ;;  %7859 = vpow2.f32 %v6685_v30  ;;  %v2488_v54 = vadd.f32 1.0, %v7832_v50  ;;  %v2565_v60 = vmul.f32 %v10358_v23, %v2534_v8  ;;  %v2578_v29 = vadd.f32 %v2562_v47, %v9845_v59 }
 0x38c   : > { %v10391_v49 = vpop.eup %7835  ;;  %7861 = vrcp.f32 %v2485_v3  ;;  %v2566_v3 = vmul.f32 %v10360_v21, %v2535_v25  ;;  %v2579_v42 = vadd.f32 %v2563_v7, %v9857_v0  ;;  %v2537_v40 = vrot.slane %v10383_v13, 7 }
 0x38d   : > { %v7838_v14 = vpop.eup %7837  ;;  %7863 = vrcp.f32 %v2486_v41  ;;  %v2536_v41 = vrot.slane %v10383_v13, 6  ;;  %v2580_v50 = vadd.f32 %v2564_v11, %v12079_v34  ;;  %v2581_v27 = vadd.f32 %v2565_v60, %v12031_v33 }
 0x38e   : > { %v7840_v30 = vpop.eup %7839  ;;  %7865 = vrcp.f32 %v2487_v45  ;;  %v2538_v24 = vrot.slane %v10383_v13, 1  ;;  %v2582_v47 = vadd.f32 %v2566_v3, %v12080_v31  ;;  %v2539_v7 = vrot.slane %v10383_v13, 2 }
 0x38f   : > { %v7842_v22 = vpop.eup %7841  ;;  %7867 = vrcp.f32 %v2488_v54  ;;  %v2490_v11 = vadd.f32 1.0, %v7840_v30 }
 0x390   : > { %v7844_v46 = vpop.eup %7843  ;;  %7869 = vtanh.f32 %v2575_v39  ;;  %v2567_v23 = vmul.f32 %v7842_v22, %v2536_v41 }
 0x391   : > { %v7846_v58 = vpop.eup %7845  ;;  %7871 = vtanh.f32 %v2576_v56  ;;  %v2568_v54 = vmul.f32 %v7844_v46, %v2537_v40  ;;  %v2489_v56 = vadd.f32 1.0, %v7838_v14  ;;  %v2541_v46 = vrot.slane %v10383_v13, 4 }
 0x392   : > { %v7848_v45 = vpop.eup %7847  ;;  %7873 = vtanh.f32 %v2577_v36  ;;  %v2569_v39 = vmul.f32 %v7846_v58, %v10383_v13  ;;  %v2540_v36 = vrot.slane %v10383_v13, 3  ;;  %v2583_v3 = vadd.f32 %v2567_v23, %v9875_v17 }
 0x393   : > { %v7850_v21 = vpop.eup %7849  ;;  %7875 = vtanh.f32 %v2578_v29  ;;  %v2570_v60 = vmul.f32 %v7848_v45, %v2538_v24  ;;  %v2542_v40 = vrot.slane %v10383_v13, 5  ;;  %v2584_v14 = vadd.f32 %v2568_v54, %v9871_v15 }
 0x394   : > { %v7852_v8 = vpop.eup %7851  ;;  %7877 = vtanh.f32 %v2579_v42  ;;  %v2571_v41 = vmul.f32 %v7850_v21, %v2539_v7 }
 0x395   : > { %v7854_v25 = vpop.eup %7853  ;;  %7879 = vtanh.f32 %v2580_v50  ;;  %v2572_v58 = vmul.f32 %v7852_v8, %v2540_v36  ;;  %v2585_v50 = vadd.f32 %v2569_v39, %v9893_v26  ;;  %v2586_v21 = vadd.f32 %v2570_v60, %v9879_v19 }
 0x396   : > { %v7856_v22 = vpop.eup %7855  ;;  %7881 = vtanh.f32 %v2581_v27  ;;  %v2573_v30 = vmul.f32 %v7854_v25, %v2541_v46  ;;  %v2587_v23 = vadd.f32 %v2571_v41, %v9915_v12 }
 0x397   : > { %v7858_v29 = vpop.eup %7857  ;;  %7883 = vtanh.f32 %v2582_v47  ;;  %v2574_v27 = vmul.f32 %v7856_v22, %v2542_v40  ;;  %v2588_v54 = vadd.f32 %v2572_v58, %v9897_v62 }
 0x398   : > { %v7860_v42 = vpop.eup %7859  ;;  %7885 = vrcp.f32 %v2489_v56  ;;  %v2589_v8 = vadd.f32 %v2573_v30, %v9971_v43  ;;  %v2491_v25 = vadd.f32 1.0, %v7858_v29 }
 0x399   : > { %v10416_v45 = vpop.eup %7861  ;;  %7887 = vrcp.f32 %v2490_v11  ;;  %v2590_v39 = vadd.f32 %v2574_v27, %v9919_v38  ;;  %v2492_v22 = vadd.f32 1.0, %v7860_v42 }
 0x39a   : > { %v10419_v24 = vpop.eup %7863  ;;  %7889 = vtanh.f32 %v2583_v3 }
 0x39b   : > { %v10422_v13 = vpop.eup %7865  ;;  %7891 = vtanh.f32 %v2584_v14 }
 0x39c   : > { %v10425_v47 = vpop.eup %7867  ;;  %7893 = vtanh.f32 %v2585_v50 }
 0x39d   : > { %v7870_v7 = vpop.eup %7869  ;;  %7895 = vtanh.f32 %v2586_v21 }
 0x39e   : > { %v7872_v56 = vpop.eup %7871  ;;  %v2623_v11 = vrot.slane %v7870_v7, 1  ;;  %7897 = vtanh.f32 %v2587_v23 }
 0x39f   : > { %v7874_v36 = vpop.eup %7873  ;;  %v2624_v60 = vrot.slane %v7872_v56, 1  ;;  %7899 = vtanh.f32 %v2588_v54 }
 0x3a0   : > { %v7876_v46 = vpop.eup %7875  ;;  %v2625_v41 = vrot.slane %v7874_v36, 1  ;;  %v2655_v3 = vsub.f32 %v10185_v1, %v2623_v11  ;;  %7901 = vtanh.f32 %v2589_v8 }
 0x3a1   : > { %v7878_v40 = vpop.eup %7877  ;;  %v2626_v58 = vrot.slane %v7876_v46, 1  ;;  %v2656_v14 = vsub.f32 %v10191_v48, %v2624_v60  ;;  %7903 = vtanh.f32 %v2590_v39 }
 0x3a2   : > { %v7880_v30 = vpop.eup %7879  ;;  %v2627_v50 = vrot.slane %v7878_v40, 1  ;;  %v2657_v29 = vsub.f32 %v10196_v20, %v2625_v41  ;;  %v2687_v27 = vrot.slane %v2655_v3, 7  ;;  %7905 = vrcp.f32 %v2491_v25 }
 0x3a3   : > { %v7882_v21 = vpop.eup %7881  ;;  %v2628_v23 = vrot.slane %v7880_v30, 1  ;;  %v2658_v42 = vsub.f32 %v10202_v61, %v2626_v58  ;;  %v2688_v54 = vrot.slane %v2656_v14, 7  ;;  %7907 = vrcp.f32 %v2492_v22  ;;  %v12081_v61 = vld [vmem:[#allocation37_spill] sm:$0xff] }
 0x3a4   : > { %v7884_v38 = vpop.eup %7883  ;;  %v2629_v1 = vrot.slane %v7882_v21, 1  ;;  %v2659_v8 = vsub.f32 %v10208_v28, %v2627_v50  ;;  %v2689_v11 = vrot.slane %v2657_v29, 7  ;;  %v2719_v48 = vmul.f32 %v10363_v16, %v2687_v27  ;;  %v12082_v16 = vld [vmem:[#allocation40_spill] sm:$0xff] }
 0x3a5   : > { %v10435_v39 = vpop.eup %7885  ;;  %v2630_v60 = vrot.slane %v7884_v38, 1  ;;  %v2660_v20 = vsub.f32 %v10216_v5, %v2628_v23  ;;  %v2690_v41 = vrot.slane %v2658_v42, 7  ;;  %v2720_v25 = vmul.f32 %v10366_v10, %v2688_v54 }
 0x3a6   : > { %v10439_v3 = vpop.eup %7887  ;;  %v2661_v58 = vsub.f32 %v12081_v61, %v2629_v1  ;;  %v2691_v22 = vrot.slane %v2659_v8, 7  ;;  %v2721_v14 = vmul.f32 %v10368_v35, %v2689_v11  ;;  %v10443_v43 = vadd.f32 %v7870_v7, %v2719_v48 }
 0x3a7   : > { %v10445_v28 = vpop.eup %7889  ;;  %v2662_v50 = vsub.f32 %v12082_v16, %v2630_v60  ;;  %v2692_v29 = vrot.slane %v2660_v20, 7  ;;  %v2722_v27 = vmul.f32 %v10370_v18, %v2690_v41  ;;  %v10449_v5 = vadd.f32 %v7872_v56, %v2720_v25 }
 0x3a8   : > { %v10451_v23 = vpop.eup %7891  ;;  %v2693_v10 = vrot.slane %v2661_v58, 7  ;;  %v2723_v42 = vmul.f32 %v10372_v52, %v2691_v22  ;;  %v10454_v54 = vadd.f32 %v7874_v36, %v2721_v14  ;;  %v2767_v35 = vrot.slane %v10443_v43, 2 }
 0x3a9   : > { %v10457_v7 = vpop.eup %7893  ;;  %v2694_v1 = vrot.slane %v2662_v50, 7  ;;  %v2724_v8 = vmul.f32 %v10374_v9, %v2692_v29  ;;  %v10460_v11 = vadd.f32 %v7876_v46, %v2722_v27  ;;  %v2768_v18 = vrot.slane %v10449_v5, 1 }
 0x3aa   : > { %v10463_v56 = vpop.eup %7895  ;;  %v2725_v48 = vmul.f32 %v10388_v44, %v2693_v10  ;;  %v10466_v60 = vadd.f32 %v7878_v40, %v2723_v42  ;;  %v2631_v52 = vrot.slane %v10445_v28, 1  ;;  %v2632_v36 = vrot.slane %v10451_v23, 1 }
 0x3ab   : > { %v10470_v20 = vpop.eup %7897  ;;  %v2726_v41 = vmul.f32 %v10391_v49, %v2694_v1  ;;  %v10473_v25 = vadd.f32 %v7880_v30, %v2724_v8  ;;  %v2769_v9 = vsel %vm1337_vm2, %v2768_v18, %v2767_v35  ;;  %v2771_v46 = vrot.slane %v10460_v11, 7 }
 0x3ac   : > { %v10477_v61 = vpop.eup %7899  ;;  %v10479_v58 = vadd.f32 %v7882_v21, %v2725_v48  ;;  %v2770_v44 = vsel %vm1340_vm3, %v10454_v54, %v2769_v9  ;;  %v2773_v40 = vrot.slane %v10466_v60, 6  ;;  %v2633_v22 = vrot.slane %v10457_v7, 1 }
 0x3ad   : > { %12083 = vst [vmem:[#allocation50_spill] sm:$0xff] %v10473_v25  ;;  %v10485_v14 = vpop.eup %7901  ;;  %v10487_v49 = vadd.f32 %v7884_v38, %v2726_v41  ;;  %v2772_v30 = vsel %vm1343_vm4, %v2771_v46, %v2770_v44  ;;  %v2775_v16 = vrot.slane %v10473_v25, 5  ;;  %v2634_v50 = vrot.slane %v10463_v56, 1  ;;  %v12087_v25 = vld [vmem:[#allocation48_spill] sm:$0xff] }
 0x3ae   : > { %12084 = vst [vmem:[#allocation51_spill] sm:$0xff] %v10479_v58  ;;  %v10492_v29 = vpop.eup %7903  ;;  %v2774_v21 = vsel %vm1346_vm5, %v2773_v40, %v2772_v30  ;;  %v2777_v27 = vrot.slane %v10479_v58, 4  ;;  %v2635_v10 = vrot.slane %v10470_v20, 1  ;;  %v2636_v42 = vrot.slane %v10477_v61, 1 }
 0x3af   : > { %12085 = vst [vmem:[#allocation52_spill] sm:$0xff] %v10487_v49  ;;  %v7906_v35 = vpop.eup %7905  ;;  %v2776_v38 = vsel %vm1349_vm6, %v2775_v16, %v2774_v21  ;;  %v2779_v1 = vrot.slane %v10487_v49, 3  ;;  %v2637_v8 = vrot.slane %v10485_v14, 1  ;;  %v2638_v18 = vrot.slane %v10492_v29, 1  ;;  %v12086_v49 = vld [vmem:[#allocation47_spill] sm:$0xff] }
 0x3b0   : > { %v7908_v48 = vpop.eup %7907  ;;  %v2778_v41 = vsel %vm1352_vm7, %v2777_v27, %v2776_v38  ;;  %v2663_v9 = vsub.f32 %v10262_v2, %v2631_v52  ;;  %v2664_v46 = vsub.f32 %v10274_v55, %v2632_v36  ;;  %v2665_v44 = vsub.f32 %v10265_v57, %v2633_v22 }
 0x3b1   : > { %v2780_v40 = vsel %vm1355_vm8, %v2779_v1, %v2778_v41  ;;  %v2666_v30 = vsub.f32 %v10268_v4, %v2634_v50  ;;  %v2667_v16 = vsub.f32 %v10271_v53, %v2635_v10  ;;  %v2668_v21 = vsub.f32 %v10277_v37, %v2636_v42  ;;  %v8807_v1 = vld [vmem:[#allocation2 + $0x168] sm:$0xff]  ;;  %v8808_v10 = vld [vmem:[#allocation2 + $0x158] sm:$0xff] }
 0x3b2   : > { %2862 = vmatmul.mubr.f32.vlgmr.msra.gmra.mxu1 %v2780_v40  ;;  %7195 = vmatprep.mubr.f32.mxu0 %v2780_v40  ;;  %v2669_v58 = vsub.f32 %v12086_v49, %v2637_v8  ;;  %v2670_v27 = vsub.f32 %v12087_v25, %v2638_v18  ;;  %v2695_v38 = vrot.slane %v2663_v9, 7  ;;  %v2696_v2 = vrot.slane %v2664_v46, 7  ;;  %v8809_v18 = vld [vmem:[#allocation2 + $0x150] sm:$0xff]  ;;  %v8813_v46 = vld [vmem:[#allocation2 + $0x120] sm:$0xff] }
 0x3b3   : > { %v12088_v52 = vmov 0.0   ;;  %v2697_v55 = vrot.slane %v2665_v44, 7  ;;  %v2698_v57 = vrot.slane %v2666_v30, 7  ;;  %v2699_v36 = vrot.slane %v2667_v16, 7  ;;  %3510 = vmatpush1.msra.mxu1 %v8807_v1  ;;  %v8814_v40 = vld [vmem:[#allocation2 + $0x110] sm:$0xff]  ;;  %v8815_v16 = vld [vmem:[#allocation2 + $0x108] sm:$0xff] }
 0x3b4   : > { %2867 = vmatprep.mubr.f32.mxu1 %v12088_v52  ;;  %v2700_v22 = vrot.slane %v2668_v21, 7  ;;  %v2701_v4 = vrot.slane %v2669_v58, 7  ;;  %v2702_v53 = vrot.slane %v2670_v27, 7  ;;  %v2727_v37 = vmul.f32 %v10416_v45, %v2695_v38  ;;  %3511 = vmatprep.subr.mxu1 %v8808_v10  ;;  %v8816_v27 = vld [vmem:[#allocation2 + $0xf8] sm:$0xff]  ;;  %v8822_v10 = vld [vmem:[#allocation2 + $0xb0] sm:$0xff] }
 0x3b5   : > { %v2728_v50 = vmul.f32 %v10419_v24, %v2696_v2  ;;  %v2729_v25 = vmul.f32 %v10422_v13, %v2697_v55  ;;  %v2730_v49 = vmul.f32 %v10425_v47, %v2698_v57  ;;  %v2731_v42 = vmul.f32 %v10435_v39, %v2699_v36  ;;  %3512 = vmatpush1.msra.mxu1 %v8809_v18  ;;  %v8810_v24 = vld [vmem:[#allocation2 + $0x140] sm:$0xff]  ;;  %v8811_v39 = vld [vmem:[#allocation2 + $0x138] sm:$0xff]  ;;  %v8817_v2 = vld [vmem:[#allocation2 + $0xf0] sm:$0xff] }
 0x3b6   : > { %v2732_v8 = vmul.f32 %v10439_v3, %v2700_v22  ;;  %v2733_v41 = vmul.f32 %v7906_v35, %v2701_v4  ;;  %v2734_v9 = vmul.f32 %v7908_v48, %v2702_v53  ;;  %v10520_v58 = vadd.f32 %v10445_v28, %v2727_v37  ;;  %3513 = vmatprep.subr.mxu1 %v8810_v24  ;;  %v8812_v48 = vld [vmem:[#allocation2 + $0x128] sm:$0xff]  ;;  %v8818_v36 = vld [vmem:[#allocation2 + $0xe0] sm:$0xff]  ;;  %v8819_v1 = vld [vmem:[#allocation2 + $0xd8] sm:$0xff] }
 0x3b7   : > { %v10523_v45 = vadd.f32 %v10451_v23, %v2728_v50  ;;  %v10526_v13 = vadd.f32 %v10463_v56, %v2730_v49  ;;  %v10529_v47 = vadd.f32 %v10470_v20, %v2731_v42  ;;  %3514 = vmatpush1.msra.mxu1 %v8811_v39  ;;  %v10537_v23 = vadd.f32 %v10457_v7, %v2729_v25  ;;  %v8820_v53 = vld [vmem:[#allocation2 + $0xc8] sm:$0xff]  ;;  %v8821_v37 = vld [vmem:[#allocation2 + $0xc0] sm:$0xff]  ;;  %v8825_v42 = vld [vmem:[#allocation2 + $0x98] sm:$0xff] }
 0x3b8   : > { %v10532_v3 = vadd.f32 %v10477_v61, %v2732_v8  ;;  %v2781_v35 = vrot.slane %v10520_v58, 2  ;;  %3515 = vmatprep.subr.mxu1 %v8812_v48  ;;  %v10540_v56 = vadd.f32 %v10485_v14, %v2733_v41  ;;  %v10543_v20 = vadd.f32 %v10492_v29, %v2734_v9  ;;  %v12090_v50 = vld [vmem:[#allocation49_spill] sm:$0xff]  ;;  %v8823_v25 = vld [vmem:[#allocation2 + $0x160] sm:$0xff]  ;;  %v8827_v18 = vld [vmem:[#allocation2 + $0x90] sm:$0xff] }
 0x3b9   : > { %v2782_v28 = vrot.slane %v10523_v45, 1  ;;  %3516 = vmatpush1.msra.mxu1 %v8813_v46  ;;  %v2785_v44 = vrot.slane %v10526_v13, 7  ;;  %v2787_v7 = vrot.slane %v10529_v47, 6  ;;  %v8824_v49 = vld [vmem:[#allocation2 + $0xa8] sm:$0xff]  ;;  %v8828_v41 = vld [vmem:[#allocation2 + $0x80] sm:$0xff]  ;;  %v8829_v9 = vld [vmem:[#allocation2 + $0x130] sm:$0xff] }
 0x3ba   : > { %12089 = vst [vmem:[#allocation53_spill] sm:$0xff] %v10543_v20  ;;  %3517 = vmatprep.subr.mxu1 %v8814_v40  ;;  %v2789_v21 = vrot.slane %v10532_v3, 5  ;;  %v2791_v38 = vrot.slane %v10540_v56, 4  ;;  %v2793_v57 = vrot.slane %v10543_v20, 3  ;;  %v8826_v8 = vld [vmem:[#allocation2 + $0x148] sm:$0xff]  ;;  %v8830_v24 = vld [vmem:[#allocation2 + $0x78] sm:$0xff] }
 0x3bb   : > { %v2783_v61 = vsel %vm1337_vm2, %v2782_v28, %v2781_v35  ;;  %3518 = vmatpush1.msra.mxu1 %v8815_v16  ;;  %v8831_v39 = vld [vmem:[#allocation2 + $0x68] sm:$0xff]  ;;  %v8832_v35 = vld [vmem:[#allocation2 + $0x118] sm:$0xff]  ;;  %v8833_v28 = vld [vmem:[#allocation2 + $0x60] sm:$0xff] }
 0x3bc   : > { %v2784_v30 = vsel %vm1340_vm3, %v10537_v23, %v2783_v61  ;;  %3519 = vmatprep.subr.mxu1 %v8816_v27  ;;  %v8834_v48 = vld [vmem:[#allocation2 + $0x50] sm:$0xff]  ;;  %v8835_v46 = vld [vmem:[#allocation2 + $0x100] sm:$0xff]  ;;  %v8836_v61 = vld [vmem:[#allocation2 + $0x48] sm:$0xff] }
 0x3bd   : > { %v2786_v14 = vsel %vm1343_vm4, %v2785_v44, %v2784_v30  ;;  %3520 = vmatpush1.msra.mxu1 %v8817_v2  ;;  %v8837_v44 = vld [vmem:[#allocation2 + $0x38] sm:$0xff]  ;;  %v8838_v40 = vld [vmem:[#allocation2 + $0x30] sm:$0xff]  ;;  %v8839_v30 = vld [vmem:[#allocation2 + $0xe8] sm:$0xff] }
 0x3be   : > { %v2788_v29 = vsel %vm1346_vm5, %v2787_v7, %v2786_v14  ;;  %3521 = vmatprep.subr.mxu1 %v8818_v36  ;;  %v8840_v7 = vld [vmem:[#allocation2 + $0x20] sm:$0xff]  ;;  %v8841_v16 = vld [vmem:[#allocation2 + $0x18] sm:$0xff]  ;;  %v8842_v14 = vld [vmem:[#allocation2 + $0xd0] sm:$0xff] }
 0x3bf   : > { %v2790_v55 = vsel %vm1349_vm6, %v2789_v21, %v2788_v29  ;;  %3522 = vmatpush1.msra.mxu1 %v8819_v1  ;;  %v8843_v21 = vld [vmem:[#allocation2 + $0x8] sm:$0xff]  ;;  %v8844_v27 = vld [vmem:[#allocation2] sm:$0xff]  ;;  %v8845_v29 = vld [vmem:[#allocation2 + $0xb8] sm:$0xff] }
 0x3c0   : > { %v2792_v22 = vsel %vm1352_vm7, %v2791_v38, %v2790_v55  ;;  %3523 = vmatprep.subr.mxu1 %v8820_v53  ;;  %v8846_v38 = vld [vmem:[#allocation2 + $0x170] sm:$0xff]  ;;  %v8847_v2 = vld [vmem:[#allocation2 + $0xa0] sm:$0xff]  ;;  %v8848_v55 = vld [vmem:[#allocation2 + $0x88] sm:$0xff] }
 0x3c1   : > { %v2794_v4 = vsel %vm1355_vm8, %v2793_v57, %v2792_v22  ;;  %3524 = vmatpush1.msra.mxu1 %v8821_v37  ;;  %v8849_v57 = vld [vmem:[#allocation2 + $0x70] sm:$0xff]  ;;  %v8850_v36 = vld [vmem:[#allocation2 + $0x58] sm:$0xff]  ;;  %v8851_v22 = vld [vmem:[#allocation2 + $0x40] sm:$0xff] }
 0x3c2   : > { %2868 = vmatmul.mubr.f32.gmra.mxu1 %v2794_v4  ;;  %7196 = vmatmul.mubr.f32.vlgmr.msra.gmra.mxu0 %v2794_v4  ;;  %v8852_v1 = vld [vmem:[#allocation2 + $0x28] sm:$0xff]  ;;  %v8853_v4 = vld [vmem:[#allocation2 + $0x10] sm:$0xff]  ;;  %v10560_v53 = vld [vmem:[#allocation2 + $0x178] sm:$0xff] }
 0x3c3   : > { %7199 = vmatpush3.msra.mxu0 %v12090_v50  ;;  %3525 = vmatprep.subr.mxu1 %v8822_v10  ;;  %12091 = vst [vmem:[#allocation54_spill] sm:$0xff] %v10560_v53 }
 0x3c4   : > { %7200 = vmatprep.subr.mxu0 %v8823_v25  ;;  %3526 = vmatpush1.msra.mxu1 %v8824_v49 }
 0x3c5   : > { %7201 = vmatpush3.msra.mxu0 %v8823_v25  ;;  %3527 = vmatprep.subr.mxu1 %v8825_v42 }
 0x3c6   : > { %7202 = vmatprep.subr.mxu0 %v8826_v8  ;;  %3528 = vmatpush1.msra.mxu1 %v8827_v18 }
 0x3c7   : > { %7203 = vmatpush3.msra.mxu0 %v8826_v8  ;;  %3529 = vmatprep.subr.mxu1 %v8828_v41  ;;  %v12092_v41 = vld [vmem:[#allocation14_spill] sm:$0xff] }
 0x3c8   : > { %7204 = vmatprep.subr.mxu0 %v8829_v9  ;;  %3530 = vmatpush1.msra.mxu1 %v8830_v24  ;;  %v12093_v24 = vld [vmem:[#allocation8_spill] sm:$0xff] }
 0x3c9   : > { %7205 = vmatpush3.msra.mxu0 %v8829_v9  ;;  %3531 = vmatprep.subr.mxu1 %v8831_v39 }
 0x3ca   : > { %7206 = vmatprep.subr.mxu0 %v8832_v35  ;;  %3532 = vmatpush1.msra.mxu1 %v8833_v28 }
 0x3cb   : > { %7207 = vmatpush3.msra.mxu0 %v8832_v35  ;;  %3533 = vmatprep.subr.mxu1 %v8834_v48  ;;  %v12094_v35 = vld [vmem:[#allocation10_spill] sm:$0xff]  ;;  %v12095_v48 = vld [vmem:[#allocation12_spill] sm:$0xff] }
 0x3cc   : > { %7208 = vmatprep.subr.mxu0 %v8835_v46  ;;  %3534 = vmatpush1.msra.mxu1 %v8836_v61  ;;  %v12096_v61 = vld [vmem:[#allocation16_spill] sm:$0xff] }
 0x3cd   : > { %3573 = vmatprep.mubr.f32.mxu1 %v12088_v52  ;;  %3535 = vmatprep.subr.mxu1 %v8837_v44 }
 0x3ce   : > { %7209 = vmatpush3.msra.mxu0 %v8835_v46  ;;  %3536 = vmatpush1.msra.mxu1 %v8838_v40 }
 0x3cf   : > { %7210 = vmatprep.subr.mxu0 %v8839_v30  ;;  %3537 = vmatprep.subr.mxu1 %v8840_v7 }
 0x3d0   : > { %7211 = vmatpush3.msra.mxu0 %v8839_v30  ;;  %3538 = vmatpush1.msra.mxu1 %v8841_v16  ;;  %v12097_v30 = vld [vmem:[#allocation18_spill] sm:$0xff]  ;;  %v12098_v16 = vld [vmem:[#allocation20_spill] sm:$0xff] }
 0x3d1   : > { %7212 = vmatprep.subr.mxu0 %v8842_v14  ;;  %3539 = vmatprep.subr.mxu1 %v8843_v21 }
 0x3d2   : > { %7213 = vmatpush3.msra.mxu0 %v8842_v14  ;;  %3540 = vmatpush1.msra.mxu1 %v8844_v27  ;;  %v12099_v27 = vld [vmem:[#allocation21_spill] sm:$0xff] }
 0x3d3   : > { %7214 = vmatprep.subr.mxu0 %v8845_v29  ;;  %4221 = vmatprep.subr.mxu1 %v8846_v38 }
 0x3d4   : > { %7215 = vmatpush3.msra.mxu0 %v8845_v29 }
 0x3d5   : > { %7216 = vmatprep.subr.mxu0 %v8847_v2 }
 0x3d6   : > { %7217 = vmatpush3.msra.mxu0 %v8847_v2 }
 0x3d7   : > { %7218 = vmatprep.subr.mxu0 %v8848_v55 }
 0x3d8   : > { %7219 = vmatpush3.msra.mxu0 %v8848_v55 }
 0x3d9   : > { %7220 = vmatprep.subr.mxu0 %v8849_v57 }
 0x3da   : > { %7221 = vmatpush3.msra.mxu0 %v8849_v57 }
 0x3db   : > { %7222 = vmatprep.subr.mxu0 %v8850_v36 }
 0x3dc   : > { %7223 = vmatpush3.msra.mxu0 %v8850_v36 }
 0x3dd   : > { %7224 = vmatprep.subr.mxu0 %v8851_v22 }
 0x3de   : > { %7225 = vmatpush3.msra.mxu0 %v8851_v22  ;;  %v12100_v22 = vld [vmem:[#allocation15_spill] sm:$0xff] }
 0x3df   : > { %7226 = vmatprep.subr.mxu0 %v8852_v1 }
 0x3e0   : > { %7227 = vmatpush3.msra.mxu0 %v8852_v1 }
 0x3e1   : > { %7228 = vmatprep.subr.mxu0 %v8853_v4 }
 0x3e2   : > { %7229 = vmatpush3.msra.mxu0 %v8853_v4 }
 0x3e3   : > { %7233 = vmatprep.subr.mxu0 %v10560_v53 }
 0x472   : > { %v2863_v37 = vpop.f32.mrf.mxu1 }
 0x473   : > { %v2951_v50 = vrot.slane %v2863_v37, 5  ;;  %v2952_v10 = vrot.slane %v2863_v37, 6  ;;  %v2953_v25 = vrot.slane %v2863_v37, 7  ;;  %v2954_v49 = vrot.slane %v2863_v37, 1 }
 0x474   : > { %v2955_v42 = vrot.slane %v2863_v37, 2  ;;  %v2956_v8 = vrot.slane %v2863_v37, 3  ;;  %v2957_v18 = vrot.slane %v2863_v37, 4  ;;  %v2984_v9 = vadd.f32 %v2863_v37, %v12092_v41  ;;  %v2865_v40 = vpop.f32.mrf.mxu1 }
 0x475   : > { %v2981_v39 = vadd.f32 %v2951_v50, %v12093_v24  ;;  %v2982_v28 = vadd.f32 %v2952_v10, %v12094_v35  ;;  %v2983_v46 = vadd.f32 %v2953_v25, %v12095_v48  ;;  %v2985_v44 = vadd.f32 %v2954_v49, %v12096_v61 }
 0x476   : > { %v2986_v7 = vadd.f32 %v2955_v42, %v12097_v30  ;;  %v2987_v14 = vadd.f32 %v2956_v8, %v12098_v16  ;;  %v6689_v21 = vmul.f32 -1.442695, %v2984_v9  ;;  %v2988_v29 = vadd.f32 %v2957_v18, %v12099_v27  ;;  %v12101_v18 = vld [vmem:[#allocation9_spill] sm:$0xff] }
 0x477   : > { %v6686_v38 = vmul.f32 -1.442695, %v2981_v39  ;;  %v6687_v2 = vmul.f32 -1.442695, %v2982_v28  ;;  %v6688_v55 = vmul.f32 -1.442695, %v2983_v46  ;;  %v3128_v1 = vadd.f32 %v2865_v40, %v12100_v22 }
 0x478   : > { %7909 = vpow2.f32 %v6689_v21  ;;  %v6690_v57 = vmul.f32 -1.442695, %v2985_v44  ;;  %v6691_v36 = vmul.f32 -1.442695, %v2986_v7  ;;  %v6692_v4 = vmul.f32 -1.442695, %v2987_v14 }
 0x479   : > { %7911 = vpow2.f32 %v6686_v38  ;;  %v3095_v37 = vrot.slane %v2865_v40, 5  ;;  %v3096_v50 = vrot.slane %v2865_v40, 6  ;;  %v3097_v10 = vrot.slane %v2865_v40, 7  ;;  %v12102_v39 = vld [vmem:[#allocation11_spill] sm:$0xff]  ;;  %v12103_v46 = vld [vmem:[#allocation13_spill] sm:$0xff] }
 0x47a   : > { %7913 = vpow2.f32 %v6687_v2  ;;  %v3098_v25 = vrot.slane %v2865_v40, 1  ;;  %v3099_v49 = vrot.slane %v2865_v40, 2  ;;  %v6693_v42 = vmul.f32 -1.442695, %v2988_v29  ;;  %v12104_v7 = vld [vmem:[#allocation17_spill] sm:$0xff]  ;;  %v12105_v38 = vld [vmem:[#allocation19_spill] sm:$0xff] }
 0x47b   : > { %7915 = vpow2.f32 %v6688_v55  ;;  %v3100_v8 = vrot.slane %v2865_v40, 3  ;;  %v3125_v9 = vadd.f32 %v3095_v37, %v12101_v18  ;;  %v3126_v28 = vadd.f32 %v3096_v50, %v12102_v39  ;;  %v12106_v55 = vld [vmem:[#allocation22_spill] sm:$0xff]  ;;  %v12107_v37 = vld [vmem:[#allocation23_spill] sm:$0xff] }
 0x47c   : > { %7917 = vpow2.f32 %v6690_v57  ;;  %v3127_v44 = vadd.f32 %v3097_v10, %v12103_v46  ;;  %v3129_v21 = vadd.f32 %v3098_v25, %v12104_v7  ;;  %v3101_v14 = vrot.slane %v2865_v40, 4 }
 0x47d   : > { %7919 = vpow2.f32 %v6691_v36  ;;  %v3130_v22 = vadd.f32 %v3099_v49, %v12105_v38  ;;  %v6702_v2 = vmul.f32 -1.442695, %v3125_v9  ;;  %v6703_v27 = vmul.f32 -1.442695, %v3126_v28 }
 0x47e   : > { %7921 = vpow2.f32 %v6692_v4  ;;  %v6704_v16 = vmul.f32 -1.442695, %v3127_v44  ;;  %v6705_v29 = vmul.f32 -1.442695, %v3128_v1  ;;  %v3131_v30 = vadd.f32 %v3100_v8, %v12106_v55 }
 0x47f   : > { %7923 = vpow2.f32 %v6693_v42  ;;  %v6706_v57 = vmul.f32 -1.442695, %v3129_v21  ;;  %v3132_v50 = vadd.f32 %v3101_v14, %v12107_v37  ;;  %v6707_v10 = vmul.f32 -1.442695, %v3130_v22 }
 0x480   : > { %7925 = vpow2.f32 %v6702_v2  ;;  %v6708_v40 = vmul.f32 -1.442695, %v3131_v30 }
 0x481   : > { %7927 = vpow2.f32 %v6703_v27  ;;  %v6709_v4 = vmul.f32 -1.442695, %v3132_v50 }
 0x482   : > { %7929 = vpow2.f32 %v6704_v16  ;;  %v2869_v21 = vpop.f32.mrf.mxu1 }
 0x483   : > { %7931 = vpow2.f32 %v6705_v29  ;;  %v2958_v29 = vrot.slane %v2869_v21, 5  ;;  %v2962_v37 = vrot.slane %v2869_v21, 2  ;;  %v2963_v38 = vrot.slane %v2869_v21, 3 }
 0x484   : > { %7933 = vpow2.f32 %v6706_v57  ;;  %v10581_v55 = vpop.f32.mrf.mxu1 }
 0x485   : > { %v7910_v36 = vpop.eup %7909  ;;  %7935 = vpow2.f32 %v6707_v10  ;;  %v2959_v10 = vrot.slane %v2869_v21, 6 }
 0x486   : > { %v7912_v25 = vpop.eup %7911  ;;  %v3048_v49 = vadd.f32 1.0, %v7910_v36  ;;  %7937 = vpow2.f32 %v6708_v40 }
 0x487   : > { %v7914_v9 = vpop.eup %7913  ;;  %v3045_v42 = vadd.f32 1.0, %v7912_v25  ;;  %7939 = vpow2.f32 %v6709_v4  ;;  %v2960_v25 = vrot.slane %v2869_v21, 7 }
 0x488   : > { %v7916_v1 = vpop.eup %7915  ;;  %v3046_v28 = vadd.f32 1.0, %v7914_v9  ;;  %7941 = vrcp.f32 %v3048_v49 }
 0x489   : > { %v7918_v8 = vpop.eup %7917  ;;  %v3047_v44 = vadd.f32 1.0, %v7916_v1  ;;  %7943 = vrcp.f32 %v3045_v42  ;;  %v12108_v42 = vld [vmem:[#allocation24_spill] sm:$0xff] }
 0x48a   : > { %v7920_v27 = vpop.eup %7919  ;;  %v3049_v22 = vadd.f32 1.0, %v7918_v8  ;;  %7945 = vrcp.f32 %v3046_v28  ;;  %v2961_v8 = vrot.slane %v2869_v21, 1 }
 0x48b   : > { %v7922_v16 = vpop.eup %7921  ;;  %v3050_v14 = vadd.f32 1.0, %v7920_v27  ;;  %7947 = vrcp.f32 %v3047_v44  ;;  %v2989_v27 = vadd.f32 %v2958_v29, %v12108_v42  ;;  %v12112_v29 = vld [vmem:[#allocation32_spill] sm:$0xff]  ;;  %v3102_v42 = vrot.slane %v10581_v55, 5 }
 0x48c   : > { %v7924_v30 = vpop.eup %7923  ;;  %v3051_v2 = vadd.f32 1.0, %v7922_v16  ;;  %7949 = vrcp.f32 %v3049_v22 }
 0x48d   : > { %v7926_v57 = vpop.eup %7925  ;;  %v3052_v50 = vadd.f32 1.0, %v7924_v30  ;;  %7951 = vrcp.f32 %v3050_v14  ;;  %v12109_v30 = vld [vmem:[#allocation26_spill] sm:$0xff]  ;;  %v12110_v14 = vld [vmem:[#allocation28_spill] sm:$0xff] }
 0x48e   : > { %v7928_v36 = vpop.eup %7927  ;;  %v3189_v40 = vadd.f32 1.0, %v7926_v57  ;;  %7953 = vrcp.f32 %v3051_v2  ;;  %v2990_v44 = vadd.f32 %v2959_v10, %v12109_v30  ;;  %v2964_v2 = vrot.slane %v2869_v21, 4  ;;  %v12113_v30 = vld [vmem:[#allocation34_spill] sm:$0xff] }
 0x48f   : > { %v7930_v4 = vpop.eup %7929  ;;  %v3190_v9 = vadd.f32 1.0, %v7928_v36  ;;  %7955 = vrcp.f32 %v3052_v50  ;;  %v2991_v36 = vadd.f32 %v2960_v25, %v12110_v14  ;;  %v2993_v50 = vadd.f32 %v2961_v8, %v12112_v29  ;;  %v12114_v25 = vld [vmem:[#allocation35_spill] sm:$0xff]  ;;  %v12115_v8 = vld [vmem:[#allocation36_spill] sm:$0xff] }
 0x490   : > { %v7932_v1 = vpop.eup %7931  ;;  %v3191_v49 = vadd.f32 1.0, %v7930_v4  ;;  %7957 = vrcp.f32 %v3189_v40  ;;  %v12111_v4 = vld [vmem:[#allocation30_spill] sm:$0xff]  ;;  %v2994_v18 = vadd.f32 %v2962_v37, %v12113_v30  ;;  %v3103_v40 = vrot.slane %v10581_v55, 6 }
 0x491   : > { %v7934_v16 = vpop.eup %7933  ;;  %v3192_v28 = vadd.f32 1.0, %v7932_v1  ;;  %7959 = vrcp.f32 %v3190_v9  ;;  %v2992_v39 = vadd.f32 %v2869_v21, %v12111_v4  ;;  %v6694_v1 = vmul.f32 -1.442695, %v2989_v27 }
 0x492   : > { %v7936_v22 = vpop.eup %7935  ;;  %v3193_v57 = vadd.f32 1.0, %v7934_v16  ;;  %7961 = vrcp.f32 %v3191_v49  ;;  %v6695_v16 = vmul.f32 -1.442695, %v2990_v44  ;;  %v2995_v9 = vadd.f32 %v2963_v38, %v12114_v25  ;;  %v12117_v38 = vld [vmem:[#allocation27_spill] sm:$0xff] }
 0x493   : > { %v3194_v46 = vadd.f32 1.0, %v7936_v22  ;;  %v7938_v10 = vpop.eup %7937  ;;  %7963 = vrcp.f32 %v3192_v28  ;;  %v6696_v22 = vmul.f32 -1.442695, %v2991_v36  ;;  %v3104_v21 = vrot.slane %v10581_v55, 7  ;;  %v12116_v28 = vld [vmem:[#allocation25_spill] sm:$0xff] }
 0x494   : > { %v7940_v7 = vpop.eup %7939  ;;  %7965 = vrcp.f32 %v3193_v57  ;;  %v2996_v27 = vadd.f32 %v2964_v2, %v12115_v8  ;;  %v6697_v29 = vmul.f32 -1.442695, %v2992_v39  ;;  %v6698_v37 = vmul.f32 -1.442695, %v2993_v50  ;;  %v12118_v2 = vld [vmem:[#allocation29_spill] sm:$0xff] }
 0x495   : > { %v10591_v49 = vpop.eup %7941  ;;  %7967 = vrcp.f32 %v3194_v46  ;;  %v3133_v44 = vadd.f32 %v3102_v42, %v12116_v28  ;;  %v6699_v57 = vmul.f32 -1.442695, %v2994_v18  ;;  %v3134_v36 = vadd.f32 %v3103_v40, %v12117_v38  ;;  %v12121_v28 = vld [vmem:[#allocation41_spill] sm:$0xff] }
 0x496   : > { %v10594_v4 = vpop.eup %7943  ;;  %7969 = vpow2.f32 %v6694_v1  ;;  %v6700_v14 = vmul.f32 -1.442695, %v2995_v9  ;;  %v3105_v46 = vrot.slane %v10581_v55, 1  ;;  %v3135_v39 = vadd.f32 %v3104_v21, %v12118_v2  ;;  %v12119_v1 = vld [vmem:[#allocation31_spill] sm:$0xff]  ;;  %v12120_v21 = vld [vmem:[#allocation33_spill] sm:$0xff] }
 0x497   : > { %v10597_v30 = vpop.eup %7945  ;;  %7971 = vpow2.f32 %v6695_v16  ;;  %v6701_v50 = vmul.f32 -1.442695, %v2996_v27  ;;  %v3106_v42 = vrot.slane %v10581_v55, 2  ;;  %v3136_v16 = vadd.f32 %v10581_v55, %v12119_v1 }
 0x498   : > { %v10600_v25 = vpop.eup %7947  ;;  %7973 = vpow2.f32 %v6696_v22  ;;  %v6710_v40 = vmul.f32 -1.442695, %v3133_v44  ;;  %v6711_v9 = vmul.f32 -1.442695, %v3134_v36  ;;  %v3137_v2 = vadd.f32 %v3105_v46, %v12120_v21  ;;  %v7197_v36 = vpop.f32.mrf.mxu0 }
 0x499   : > { %v10604_v8 = vpop.eup %7949  ;;  %7975 = vpow2.f32 %v6697_v29  ;;  %v6712_v29 = vmul.f32 -1.442695, %v3135_v39  ;;  %v3138_v41 = vadd.f32 %v3106_v42, %v12121_v28  ;;  %v6713_v1 = vmul.f32 -1.442695, %v3136_v16 }
 0x49a   : > { %v10609_v18 = vpop.eup %7951  ;;  %7977 = vpow2.f32 %v6698_v37  ;;  %v3195_v37 = vadd.f32 1.0, %v7938_v10  ;;  %v3107_v42 = vrot.slane %v10581_v55, 3  ;;  %v3108_v16 = vrot.slane %v10581_v55, 4 }
 0x49b   : > { %v10611_v38 = vpop.eup %7953  ;;  %7979 = vpow2.f32 %v6699_v57  ;;  %v3196_v57 = vadd.f32 1.0, %v7940_v7  ;;  %v6715_v39 = vmul.f32 -1.442695, %v3138_v41  ;;  %v2940_v7 = vpop.f32.mrf.mxu0  ;;  %v12122_v41 = vld [vmem:[#allocation43_spill] sm:$0xff] }
 0x49c   : > { %v10613_v22 = vpop.eup %7955  ;;  %7981 = vpow2.f32 %v6700_v14  ;;  %v6714_v14 = vmul.f32 -1.442695, %v3137_v2  ;;  %v3140_v55 = vadd.f32 %v3108_v16, %v12078_v63 }
 0x49d   : > { %v10616_v27 = vpop.eup %7957  ;;  %7983 = vpow2.f32 %v6701_v50 }
 0x49e   : > { %v10619_v48 = vpop.eup %7959  ;;  %7985 = vpow2.f32 %v6710_v40 }
 0x49f   : > { %v10621_v44 = vpop.eup %7961  ;;  %7987 = vpow2.f32 %v6711_v9 }
 0x4a0   : > { %v10623_v35 = vpop.eup %7963  ;;  %7989 = vpow2.f32 %v6712_v29 }
 0x4a1   : > { %v10625_v46 = vpop.eup %7965  ;;  %7991 = vpow2.f32 %v6713_v1  ;;  %v3139_v1 = vadd.f32 %v3107_v42, %v12122_v41 }
 0x4a2   : > { %v10627_v50 = vpop.eup %7967  ;;  %7993 = vrcp.f32 %v3195_v37  ;;  %v8855_v37 = vld [vmem:[%s11829_s4] ss:$0 sm:$0xff] }
 0x4a3   : > { %v7970_v10 = vpop.eup %7969  ;;  %7995 = vrcp.f32 %v3196_v57  ;;  %v3237_v24 = vadd.f32 %v8855_v37, %v2940_v7  ;;  %v6716_v42 = vmul.f32 -1.442695, %v3139_v1  ;;  %v6717_v7 = vmul.f32 -1.442695, %v3140_v55 }
 0x4a4   : > { %v7972_v40 = vpop.eup %7971  ;;  %v3053_v9 = vadd.f32 1.0, %v7970_v10  ;;  %7997 = vpow2.f32 %v6714_v14 }
 0x4a5   : > { %v7974_v28 = vpop.eup %7973  ;;  %v3054_v29 = vadd.f32 1.0, %v7972_v40  ;;  %7999 = vpow2.f32 %v6715_v39  ;;  %v3241_v41 = vrot.slane %v3237_v24, 5  ;;  %v3242_v20 = vrot.slane %v3237_v24, 6 }
 0x4a6   : > { %v7976_v2 = vpop.eup %7975  ;;  %v3055_v21 = vadd.f32 1.0, %v7974_v28  ;;  %8001 = vrcp.f32 %v3053_v9  ;;  %v3243_v16 = vrot.slane %v3237_v24, 7 }
 0x4a7   : > { %v7978_v57 = vpop.eup %7977  ;;  %v3056_v61 = vadd.f32 1.0, %v7976_v2  ;;  %8003 = vrcp.f32 %v3054_v29 }
 0x4a8   : > { %v7980_v10 = vpop.eup %7979  ;;  %v3057_v14 = vadd.f32 1.0, %v7978_v57  ;;  %8005 = vrcp.f32 %v3055_v21  ;;  %v3271_v57 = vmul.f32 %v10594_v4, %v3241_v41  ;;  %v3273_v55 = vmul.f32 %v10600_v25, %v3243_v16 }
 0x4a9   : > { %v7982_v40 = vpop.eup %7981  ;;  %v3058_v39 = vadd.f32 1.0, %v7980_v10  ;;  %8007 = vrcp.f32 %v3056_v61  ;;  %v10637_v10 = vadd.f32 %v8855_v37, %v7197_v36  ;;  %v3274_v4 = vmul.f32 %v10591_v49, %v3237_v24 }
 0x4aa   : > { %v7984_v28 = vpop.eup %7983  ;;  %v3059_v9 = vadd.f32 1.0, %v7982_v40  ;;  %8009 = vrcp.f32 %v3057_v14  ;;  %v3272_v14 = vmul.f32 %v10597_v30, %v3242_v20  ;;  %v3287_v20 = vadd.f32 %v3271_v57, %v9822_v6 }
 0x4ab   : > { %v7986_v53 = vpop.eup %7985  ;;  %v3060_v52 = vadd.f32 1.0, %v7984_v28  ;;  %8011 = vrcp.f32 %v3058_v39  ;;  %v3244_v28 = vrot.slane %v3237_v24, 1  ;;  %v3247_v25 = vrot.slane %v3237_v24, 4 }
 0x4ac   : > { %v7988_v2 = vpop.eup %7987  ;;  %8013 = vrcp.f32 %v3059_v9  ;;  %v3197_v29 = vadd.f32 1.0, %v7986_v53  ;;  %v3245_v9 = vrot.slane %v3237_v24, 2  ;;  %v3288_v37 = vadd.f32 %v3272_v14, %v9828_v32 }
 0x4ad   : > { %v7990_v21 = vpop.eup %7989  ;;  %8015 = vrcp.f32 %v3060_v52  ;;  %v3198_v61 = vadd.f32 1.0, %v7988_v2  ;;  %v3246_v52 = vrot.slane %v3237_v24, 3  ;;  %v3275_v36 = vmul.f32 %v10604_v8, %v3244_v28 }
 0x4ae   : > { %v7992_v1 = vpop.eup %7991  ;;  %8017 = vpow2.f32 %v6716_v42  ;;  %v3199_v40 = vadd.f32 1.0, %v7990_v21  ;;  %v3276_v42 = vmul.f32 %v10609_v18, %v3245_v9  ;;  %v3289_v2 = vadd.f32 %v3273_v55, %v12030_v51 }
 0x4af   : > { %v10641_v39 = vpop.eup %7993  ;;  %8019 = vpow2.f32 %v6717_v7  ;;  %v3200_v53 = vadd.f32 1.0, %v7992_v1  ;;  %v3277_v49 = vmul.f32 %v10611_v38, %v3246_v52  ;;  %v3290_v8 = vadd.f32 %v3274_v4, %v9845_v59 }
 0x4b0   : > { %v10644_v41 = vpop.eup %7995  ;;  %8021 = vrcp.f32 %v3197_v29  ;;  %v3278_v29 = vmul.f32 %v10613_v22, %v3247_v25  ;;  %v3248_v21 = vrot.slane %v10637_v10, 5  ;;  %v3291_v24 = vadd.f32 %v3275_v36, %v9857_v0 }
 0x4b1   : > { %v7998_v30 = vpop.eup %7997  ;;  %8023 = vrcp.f32 %v3198_v61  ;;  %v3249_v18 = vrot.slane %v10637_v10, 6  ;;  %v3292_v14 = vadd.f32 %v3276_v42, %v12079_v34  ;;  %v3250_v38 = vrot.slane %v10637_v10, 7 }
 0x4b2   : > { %v8000_v7 = vpop.eup %7999  ;;  %8025 = vrcp.f32 %v3199_v40  ;;  %v3293_v22 = vadd.f32 %v3277_v49, %v12031_v33  ;;  %v3251_v4 = vrot.slane %v10637_v10, 1  ;;  %v3201_v36 = vadd.f32 1.0, %v7998_v30 }
 0x4b3   : > { %v8002_v16 = vpop.eup %8001  ;;  %8027 = vrcp.f32 %v3200_v53  ;;  %v3294_v53 = vadd.f32 %v3278_v29, %v12080_v31  ;;  %v3252_v25 = vrot.slane %v10637_v10, 2  ;;  %v3253_v49 = vrot.slane %v10637_v10, 3 }
 0x4b4   : > { %v8004_v57 = vpop.eup %8003  ;;  %8029 = vtanh.f32 %v3287_v20  ;;  %v3279_v40 = vmul.f32 %v8002_v16, %v3248_v21 }
 0x4b5   : > { %v8006_v61 = vpop.eup %8005  ;;  %8031 = vtanh.f32 %v3288_v37  ;;  %v3280_v55 = vmul.f32 %v8004_v57, %v3249_v18  ;;  %v3202_v37 = vadd.f32 1.0, %v8000_v7  ;;  %v3254_v57 = vrot.slane %v10637_v10, 4 }
 0x4b6   : > { %v8008_v1 = vpop.eup %8007  ;;  %8033 = vtanh.f32 %v3289_v2  ;;  %v3281_v52 = vmul.f32 %v8006_v61, %v3250_v38  ;;  %v3295_v29 = vadd.f32 %v3279_v40, %v9875_v17 }
 0x4b7   : > { %v8010_v28 = vpop.eup %8009  ;;  %8035 = vtanh.f32 %v3290_v8  ;;  %v3282_v42 = vmul.f32 %v8008_v1, %v10637_v10  ;;  %v3296_v21 = vadd.f32 %v3280_v55, %v9871_v15  ;;  %v12123_v55 = vld [vmem:[#allocation46_spill] sm:$0xff] }
 0x4b8   : > { %v8012_v9 = vpop.eup %8011  ;;  %8037 = vtanh.f32 %v3291_v24  ;;  %v3283_v16 = vmul.f32 %v8010_v28, %v3251_v4  ;;  %v3297_v61 = vadd.f32 %v3281_v52, %v9893_v26  ;;  %v12124_v4 = vld [vmem:[#allocation45_spill] sm:$0xff] }
 0x4b9   : > { %v8014_v20 = vpop.eup %8013  ;;  %8039 = vtanh.f32 %v3292_v14  ;;  %v3284_v30 = vmul.f32 %v8012_v9, %v3252_v25  ;;  %v3298_v1 = vadd.f32 %v3282_v42, %v9879_v19 }
 0x4ba   : > { %v8016_v2 = vpop.eup %8015  ;;  %8041 = vtanh.f32 %v3293_v22  ;;  %v3285_v24 = vmul.f32 %v8014_v20, %v3253_v49  ;;  %v3299_v40 = vadd.f32 %v3283_v16, %v9915_v12 }
 0x4bb   : > { %v8018_v8 = vpop.eup %8017  ;;  %8043 = vtanh.f32 %v3294_v53  ;;  %v3286_v14 = vmul.f32 %v8016_v2, %v3254_v57  ;;  %v3300_v22 = vadd.f32 %v3284_v30, %v9897_v62 }
 0x4bc   : > { %v8020_v7 = vpop.eup %8019  ;;  %8045 = vrcp.f32 %v3201_v36  ;;  %v3301_v53 = vadd.f32 %v3285_v24, %v12123_v55  ;;  %v3203_v20 = vadd.f32 1.0, %v8018_v8  ;;  %v12125_v55 = vld [vmem:[#allocation50_spill] sm:$0xff] }
 0x4bd   : > { %v10669_v18 = vpop.eup %8021  ;;  %8047 = vrcp.f32 %v3202_v37  ;;  %v3302_v52 = vadd.f32 %v3286_v14, %v12124_v4  ;;  %v3204_v2 = vadd.f32 1.0, %v8020_v7 }
 0x4be   : > { %v10672_v38 = vpop.eup %8023  ;;  %8049 = vtanh.f32 %v3295_v29 }
 0x4bf   : > { %v10675_v10 = vpop.eup %8025  ;;  %8051 = vtanh.f32 %v3296_v21 }
 0x4c0   : > { %v10678_v28 = vpop.eup %8027  ;;  %8053 = vtanh.f32 %v3297_v61 }
 0x4c1   : > { %v8030_v9 = vpop.eup %8029  ;;  %8055 = vtanh.f32 %v3298_v1 }
 0x4c2   : > { %v8032_v36 = vpop.eup %8031  ;;  %v3335_v37 = vrot.slane %v8030_v9, 1  ;;  %8057 = vtanh.f32 %v3299_v40 }
 0x4c3   : > { %v8034_v25 = vpop.eup %8033  ;;  %v3336_v42 = vrot.slane %v8032_v36, 1  ;;  %8059 = vtanh.f32 %v3300_v22 }
 0x4c4   : > { %v8036_v49 = vpop.eup %8035  ;;  %v3337_v16 = vrot.slane %v8034_v25, 1  ;;  %v3367_v29 = vsub.f32 %v10443_v43, %v3335_v37  ;;  %8061 = vtanh.f32 %v3301_v53 }
 0x4c5   : > { %v8038_v57 = vpop.eup %8037  ;;  %v3338_v30 = vrot.slane %v8036_v49, 1  ;;  %v3368_v21 = vsub.f32 %v10449_v5, %v3336_v42  ;;  %8063 = vtanh.f32 %v3302_v52 }
 0x4c6   : > { %v8040_v24 = vpop.eup %8039  ;;  %v3339_v61 = vrot.slane %v8038_v57, 1  ;;  %v3369_v8 = vsub.f32 %v10454_v54, %v3337_v16  ;;  %v3399_v14 = vrot.slane %v3367_v29, 7  ;;  %8065 = vrcp.f32 %v3203_v20 }
 0x4c7   : > { %v8042_v1 = vpop.eup %8041  ;;  %v3340_v40 = vrot.slane %v8040_v24, 1  ;;  %v3370_v7 = vsub.f32 %v10460_v11, %v3338_v30  ;;  %v3400_v22 = vrot.slane %v3368_v21, 7  ;;  %8067 = vrcp.f32 %v3204_v2  ;;  %v12126_v11 = vld [vmem:[#allocation51_spill] sm:$0xff] }
 0x4c8   : > { %v8044_v4 = vpop.eup %8043  ;;  %v3341_v43 = vrot.slane %v8042_v1, 1  ;;  %v3371_v53 = vsub.f32 %v10466_v60, %v3339_v61  ;;  %v3401_v37 = vrot.slane %v3369_v8, 7  ;;  %v3431_v5 = vmul.f32 %v10616_v27, %v3399_v14  ;;  %v12127_v27 = vld [vmem:[#allocation52_spill] sm:$0xff] }
 0x4c9   : > { %v10688_v52 = vpop.eup %8045  ;;  %v3342_v42 = vrot.slane %v8044_v4, 1  ;;  %v3372_v54 = vsub.f32 %v12125_v55, %v3340_v40  ;;  %v3402_v16 = vrot.slane %v3370_v7, 7  ;;  %v3432_v20 = vmul.f32 %v10619_v48, %v3400_v22 }
 0x4ca   : > { %v10692_v29 = vpop.eup %8047  ;;  %v3373_v30 = vsub.f32 %v12126_v11, %v3341_v43  ;;  %v3403_v2 = vrot.slane %v3371_v53, 7  ;;  %v3433_v21 = vmul.f32 %v10621_v44, %v3401_v37  ;;  %v10696_v62 = vadd.f32 %v8030_v9, %v3431_v5 }
 0x4cb   : > { %v10698_v60 = vpop.eup %8049  ;;  %v3374_v61 = vsub.f32 %v12127_v27, %v3342_v42  ;;  %v3404_v8 = vrot.slane %v3372_v54, 7  ;;  %v3434_v14 = vmul.f32 %v10623_v35, %v3402_v16  ;;  %v10702_v55 = vadd.f32 %v8032_v36, %v3432_v20 }
 0x4cc   : > { %v10704_v40 = vpop.eup %8051  ;;  %v3405_v48 = vrot.slane %v3373_v30, 7  ;;  %v3435_v7 = vmul.f32 %v10625_v46, %v3403_v2  ;;  %v10707_v22 = vadd.f32 %v8034_v25, %v3433_v21  ;;  %v3479_v44 = vrot.slane %v10696_v62, 3 }
 0x4cd   : > { %v10710_v9 = vpop.eup %8053  ;;  %v3406_v43 = vrot.slane %v3374_v61, 7  ;;  %v3436_v53 = vmul.f32 %v10627_v50, %v3404_v8  ;;  %v10713_v37 = vadd.f32 %v8036_v49, %v3434_v14  ;;  %v3480_v35 = vrot.slane %v10702_v55, 2 }
 0x4ce   : > { %v10716_v36 = vpop.eup %8055  ;;  %v3437_v5 = vmul.f32 %v10641_v39, %v3405_v48  ;;  %v10719_v42 = vadd.f32 %v8038_v57, %v3435_v7  ;;  %v3482_v46 = vrot.slane %v10707_v22, 1  ;;  %v3343_v25 = vrot.slane %v10698_v60, 1 }
 0x4cf   : > { %v10723_v54 = vpop.eup %8057  ;;  %v3438_v16 = vmul.f32 %v10644_v41, %v3406_v43  ;;  %v10726_v20 = vadd.f32 %v8040_v24, %v3436_v53  ;;  %v3481_v50 = vsel %vm1337_vm2, %v3480_v35, %v3479_v44  ;;  %v3344_v49 = vrot.slane %v10704_v40, 1 }
 0x4d0   : > { %v10730_v11 = vpop.eup %8059  ;;  %v10732_v30 = vadd.f32 %v8042_v1, %v3437_v5  ;;  %v3483_v39 = vsel %vm1340_vm3, %v3482_v46, %v3481_v50  ;;  %v3485_v57 = vrot.slane %v10719_v42, 7  ;;  %v3345_v2 = vrot.slane %v10710_v9, 1 }
 0x4d1   : > { %v10737_v21 = vpop.eup %8061  ;;  %v10739_v27 = vadd.f32 %v8044_v4, %v3438_v16  ;;  %v3484_v41 = vsel %vm1343_vm4, %v10713_v37, %v3483_v39  ;;  %v3487_v24 = vrot.slane %v10726_v20, 6  ;;  %v3346_v61 = vrot.slane %v10716_v36, 1 }
 0x4d2   : > { %12128 = vst [vmem:[#allocation39_spill] sm:$0xff] %v10732_v30  ;;  %v10745_v8 = vpop.eup %8063  ;;  %v3486_v1 = vsel %vm1346_vm5, %v3485_v57, %v3484_v41  ;;  %v3489_v14 = vrot.slane %v10732_v30, 5  ;;  %v3347_v48 = vrot.slane %v10723_v54, 1  ;;  %v3348_v7 = vrot.slane %v10730_v11, 1  ;;  %v12130_v30 = vld [vmem:[#allocation53_spill] sm:$0xff] }
 0x4d3   : > { %12129 = vst [vmem:[#allocation37_spill] sm:$0xff] %v10739_v27  ;;  %v8066_v44 = vpop.eup %8065  ;;  %v3488_v4 = vsel %vm1349_vm6, %v3487_v24, %v3486_v1  ;;  %v3491_v43 = vrot.slane %v10739_v27, 4  ;;  %v3349_v53 = vrot.slane %v10737_v21, 1  ;;  %v3350_v35 = vrot.slane %v10745_v8, 1 }
 0x4d4   : > { %v8068_v5 = vpop.eup %8067  ;;  %v3490_v46 = vsel %vm1352_vm7, %v3489_v14, %v3488_v4  ;;  %v3375_v16 = vsub.f32 %v10520_v58, %v3343_v25  ;;  %v3376_v50 = vsub.f32 %v10523_v45, %v3344_v49  ;;  %v3377_v39 = vsub.f32 %v10537_v23, %v3345_v2 }
 0x4d5   : > { %v3492_v57 = vsel %vm1355_vm8, %v3491_v43, %v3490_v46  ;;  %v3378_v41 = vsub.f32 %v10526_v13, %v3346_v61  ;;  %v3379_v24 = vsub.f32 %v10529_v47, %v3347_v48  ;;  %v3380_v1 = vsub.f32 %v10532_v3, %v3348_v7  ;;  %v8856_v43 = vld [vmem:[#allocation2 + $0x168] sm:$0xff]  ;;  %v8857_v48 = vld [vmem:[#allocation2 + $0x158] sm:$0xff] }
 0x4d6   : > { %3574 = vmatmul.mubr.f32.vlgmr.msra.gmra.mxu1 %v3492_v57  ;;  %7230 = vmatprep.mubr.f32.mxu0 %v3492_v57  ;;  %v3381_v27 = vsub.f32 %v10540_v56, %v3349_v53  ;;  %v3382_v14 = vsub.f32 %v12130_v30, %v3350_v35  ;;  %v3407_v4 = vrot.slane %v3375_v16, 7  ;;  %v3408_v58 = vrot.slane %v3376_v50, 7  ;;  %v8858_v35 = vld [vmem:[#allocation2 + $0x150] sm:$0xff]  ;;  %v8862_v50 = vld [vmem:[#allocation2 + $0x120] sm:$0xff] }
 0x4d7   : > { %v12131_v25 = vmov 0.0   ;;  %v3409_v45 = vrot.slane %v3377_v39, 7  ;;  %v3410_v23 = vrot.slane %v3378_v41, 7  ;;  %v3411_v49 = vrot.slane %v3379_v24, 7  ;;  %4222 = vmatpush1.msra.mxu1 %v8856_v43  ;;  %v8863_v57 = vld [vmem:[#allocation2 + $0x110] sm:$0xff]  ;;  %v8868_v43 = vld [vmem:[#allocation2 + $0xd8] sm:$0xff] }
 0x4d8   : > { %3579 = vmatprep.mubr.f32.mxu1 %v12131_v25  ;;  %v3412_v2 = vrot.slane %v3380_v1, 7  ;;  %v3413_v13 = vrot.slane %v3381_v27, 7  ;;  %v3414_v47 = vrot.slane %v3382_v14, 7  ;;  %v3439_v3 = vmul.f32 %v10669_v18, %v3407_v4  ;;  %4223 = vmatprep.subr.mxu1 %v8857_v48  ;;  %v8871_v48 = vld [vmem:[#allocation2 + $0xb0] sm:$0xff] }
 0x4d9   : > { %v3440_v61 = vmul.f32 %v10672_v38, %v3408_v58  ;;  %v3441_v56 = vmul.f32 %v10675_v10, %v3409_v45  ;;  %v3442_v30 = vmul.f32 %v10678_v28, %v3410_v23  ;;  %v3443_v7 = vmul.f32 %v10688_v52, %v3411_v49  ;;  %4224 = vmatpush1.msra.mxu1 %v8858_v35  ;;  %v8859_v38 = vld [vmem:[#allocation2 + $0x140] sm:$0xff]  ;;  %v8860_v52 = vld [vmem:[#allocation2 + $0x138] sm:$0xff]  ;;  %v8866_v58 = vld [vmem:[#allocation2 + $0xf0] sm:$0xff] }
 0x4da   : > { %v3444_v53 = vmul.f32 %v10692_v29, %v3412_v2  ;;  %v3445_v46 = vmul.f32 %v8066_v44, %v3413_v13  ;;  %v3446_v16 = vmul.f32 %v8068_v5, %v3414_v47  ;;  %v10773_v27 = vadd.f32 %v10698_v60, %v3439_v3  ;;  %4225 = vmatprep.subr.mxu1 %v8859_v38  ;;  %v8861_v5 = vld [vmem:[#allocation2 + $0x128] sm:$0xff]  ;;  %v8867_v49 = vld [vmem:[#allocation2 + $0xe0] sm:$0xff]  ;;  %v8876_v35 = vld [vmem:[#allocation2 + $0x90] sm:$0xff] }
 0x4db   : > { %v10776_v18 = vadd.f32 %v10704_v40, %v3440_v61  ;;  %v10779_v10 = vadd.f32 %v10710_v9, %v3441_v56  ;;  %v10782_v28 = vadd.f32 %v10723_v54, %v3443_v7  ;;  %4226 = vmatpush1.msra.mxu1 %v8860_v52  ;;  %v10794_v54 = vadd.f32 %v10716_v36, %v3442_v30  ;;  %v8865_v36 = vld [vmem:[#allocation2 + $0xf8] sm:$0xff]  ;;  %v8869_v47 = vld [vmem:[#allocation2 + $0xc8] sm:$0xff]  ;;  %v8870_v3 = vld [vmem:[#allocation2 + $0xc0] sm:$0xff] }
 0x4dc   : > { %v10785_v29 = vadd.f32 %v10730_v11, %v3444_v53  ;;  %v3493_v44 = vrot.slane %v10773_v27, 3  ;;  %4227 = vmatprep.subr.mxu1 %v8861_v5  ;;  %v10790_v40 = vadd.f32 %v10737_v21, %v3445_v46  ;;  %v10797_v39 = vadd.f32 %v10745_v8, %v3446_v16  ;;  %v8864_v21 = vld [vmem:[#allocation2 + $0x108] sm:$0xff]  ;;  %v12133_v61 = vld [vmem:[#allocation54_spill] sm:$0xff]  ;;  %v8872_v56 = vld [vmem:[#allocation2 + $0x160] sm:$0xff] }
 0x4dd   : > { %v3494_v60 = vrot.slane %v10776_v18, 2  ;;  %v3496_v9 = vrot.slane %v10779_v10, 1  ;;  %4228 = vmatpush1.msra.mxu1 %v8862_v50  ;;  %v3499_v24 = vrot.slane %v10782_v28, 7  ;;  %v8873_v30 = vld [vmem:[#allocation2 + $0xa8] sm:$0xff]  ;;  %v8874_v7 = vld [vmem:[#allocation2 + $0x98] sm:$0xff]  ;;  %v8877_v46 = vld [vmem:[#allocation2 + $0x80] sm:$0xff] }
 0x4de   : > { %12132 = vst [vmem:[#allocation40_spill] sm:$0xff] %v10797_v39  ;;  %4229 = vmatprep.subr.mxu1 %v8863_v57  ;;  %v3501_v14 = vrot.slane %v10785_v29, 6  ;;  %v3503_v4 = vrot.slane %v10790_v40, 5  ;;  %v3505_v23 = vrot.slane %v10797_v39, 4  ;;  %v8875_v53 = vld [vmem:[#allocation2 + $0x148] sm:$0xff]  ;;  %v8878_v16 = vld [vmem:[#allocation2 + $0x130] sm:$0xff] }
 0x4df   : > { %v3495_v11 = vsel %vm1337_vm2, %v3494_v60, %v3493_v44  ;;  %4230 = vmatpush1.msra.mxu1 %v8864_v21  ;;  %v8879_v38 = vld [vmem:[#allocation2 + $0x78] sm:$0xff]  ;;  %v8880_v52 = vld [vmem:[#allocation2 + $0x68] sm:$0xff]  ;;  %v8882_v60 = vld [vmem:[#allocation2 + $0x60] sm:$0xff] }
 0x4e0   : > { %v3497_v41 = vsel %vm1340_vm3, %v3496_v9, %v3495_v11  ;;  %4231 = vmatprep.subr.mxu1 %v8865_v36  ;;  %v8881_v44 = vld [vmem:[#allocation2 + $0x118] sm:$0xff]  ;;  %v8883_v5 = vld [vmem:[#allocation2 + $0x50] sm:$0xff]  ;;  %v8884_v9 = vld [vmem:[#allocation2 + $0x100] sm:$0xff] }
 0x4e1   : > { %v3498_v1 = vsel %vm1343_vm4, %v10794_v54, %v3497_v41  ;;  %4232 = vmatpush1.msra.mxu1 %v8866_v58  ;;  %v8885_v50 = vld [vmem:[#allocation2 + $0x48] sm:$0xff]  ;;  %v8886_v11 = vld [vmem:[#allocation2 + $0x38] sm:$0xff]  ;;  %v8887_v57 = vld [vmem:[#allocation2 + $0x30] sm:$0xff] }
 0x4e2   : > { %v3500_v8 = vsel %vm1346_vm5, %v3499_v24, %v3498_v1  ;;  %4233 = vmatprep.subr.mxu1 %v8867_v49  ;;  %v8888_v41 = vld [vmem:[#allocation2 + $0xe8] sm:$0xff]  ;;  %v8889_v24 = vld [vmem:[#allocation2 + $0x20] sm:$0xff]  ;;  %v8890_v21 = vld [vmem:[#allocation2 + $0x18] sm:$0xff] }
 0x4e3   : > { %v3502_v45 = vsel %vm1349_vm6, %v3501_v14, %v3500_v8  ;;  %4234 = vmatpush1.msra.mxu1 %v8868_v43  ;;  %v8891_v1 = vld [vmem:[#allocation2 + $0xd0] sm:$0xff]  ;;  %v8892_v14 = vld [vmem:[#allocation2 + $0x8] sm:$0xff]  ;;  %v8893_v36 = vld [vmem:[#allocation2] sm:$0xff] }
 0x4e4   : > { %v3504_v2 = vsel %vm1352_vm7, %v3503_v4, %v3502_v45  ;;  %4235 = vmatprep.subr.mxu1 %v8869_v47  ;;  %v8894_v8 = vld [vmem:[#allocation2 + $0xb8] sm:$0xff]  ;;  %v8895_v4 = vld [vmem:[#allocation2 + $0x170] sm:$0xff]  ;;  %v8896_v58 = vld [vmem:[#allocation2 + $0xa0] sm:$0xff] }
 0x4e5   : > { %v3506_v13 = vsel %vm1355_vm8, %v3505_v23, %v3504_v2  ;;  %4236 = vmatpush1.msra.mxu1 %v8870_v3  ;;  %v8897_v45 = vld [vmem:[#allocation2 + $0x88] sm:$0xff]  ;;  %v8898_v23 = vld [vmem:[#allocation2 + $0x70] sm:$0xff]  ;;  %v8899_v49 = vld [vmem:[#allocation2 + $0x58] sm:$0xff] }
 0x4e6   : > { %3580 = vmatmul.mubr.f32.gmra.mxu1 %v3506_v13  ;;  %7231 = vmatmul.mubr.f32.vlgmr.msra.gmra.mxu0 %v3506_v13  ;;  %v8900_v2 = vld [vmem:[#allocation2 + $0x40] sm:$0xff]  ;;  %v8901_v43 = vld [vmem:[#allocation2 + $0x28] sm:$0xff]  ;;  %v8902_v13 = vld [vmem:[#allocation2 + $0x10] sm:$0xff] }
 0x4e7   : > { %7234 = vmatpush3.msra.mxu0 %v12133_v61  ;;  %4237 = vmatprep.subr.mxu1 %v8871_v48  ;;  %v10813_v47 = vld [vmem:[#allocation2 + $0x178] sm:$0xff] }
 0x4e8   : > { %7235 = vmatprep.subr.mxu0 %v8872_v56  ;;  %4238 = vmatpush1.msra.mxu1 %v8873_v30  ;;  %12134 = vst [vmem:[#allocation47_spill] sm:$0xff] %v10813_v47 }
 0x4e9   : > { %7236 = vmatpush3.msra.mxu0 %v8872_v56  ;;  %4239 = vmatprep.subr.mxu1 %v8874_v7 }
 0x4ea   : > { %7237 = vmatprep.subr.mxu0 %v8875_v53  ;;  %4240 = vmatpush1.msra.mxu1 %v8876_v35 }
 0x4eb   : > { %7238 = vmatpush3.msra.mxu0 %v8875_v53  ;;  %4241 = vmatprep.subr.mxu1 %v8877_v46  ;;  %v12135_v46 = vld [vmem:[#allocation16_spill] sm:$0xff] }
 0x4ec   : > { %7239 = vmatprep.subr.mxu0 %v8878_v16  ;;  %4242 = vmatpush1.msra.mxu1 %v8879_v38  ;;  %v12136_v38 = vld [vmem:[#allocation8_spill] sm:$0xff] }
 0x4ed   : > { %7240 = vmatpush3.msra.mxu0 %v8878_v16  ;;  %4243 = vmatprep.subr.mxu1 %v8880_v52 }
 0x4ee   : > { %7241 = vmatprep.subr.mxu0 %v8881_v44  ;;  %4244 = vmatpush1.msra.mxu1 %v8882_v60 }
 0x4ef   : > { %7242 = vmatpush3.msra.mxu0 %v8881_v44  ;;  %4245 = vmatprep.subr.mxu1 %v8883_v5  ;;  %v12137_v44 = vld [vmem:[#allocation10_spill] sm:$0xff]  ;;  %v12138_v5 = vld [vmem:[#allocation12_spill] sm:$0xff] }
 0x4f0   : > { %7243 = vmatprep.subr.mxu0 %v8884_v9  ;;  %4246 = vmatpush1.msra.mxu1 %v8885_v50  ;;  %v12139_v50 = vld [vmem:[#allocation14_spill] sm:$0xff] }
 0x4f1   : > { %4285 = vmatprep.mubr.f32.mxu1 %v12131_v25  ;;  %4247 = vmatprep.subr.mxu1 %v8886_v11 }
 0x4f2   : > { %7244 = vmatpush3.msra.mxu0 %v8884_v9  ;;  %4248 = vmatpush1.msra.mxu1 %v8887_v57 }
 0x4f3   : > { %7245 = vmatprep.subr.mxu0 %v8888_v41  ;;  %4249 = vmatprep.subr.mxu1 %v8889_v24 }
 0x4f4   : > { %7246 = vmatpush3.msra.mxu0 %v8888_v41  ;;  %4250 = vmatpush1.msra.mxu1 %v8890_v21  ;;  %v12140_v41 = vld [vmem:[#allocation18_spill] sm:$0xff]  ;;  %v12141_v21 = vld [vmem:[#allocation20_spill] sm:$0xff] }
 0x4f5   : > { %7247 = vmatprep.subr.mxu0 %v8891_v1  ;;  %4251 = vmatprep.subr.mxu1 %v8892_v14 }
 0x4f6   : > { %7248 = vmatpush3.msra.mxu0 %v8891_v1  ;;  %4252 = vmatpush1.msra.mxu1 %v8893_v36  ;;  %v12142_v36 = vld [vmem:[#allocation21_spill] sm:$0xff] }
 0x4f7   : > { %7249 = vmatprep.subr.mxu0 %v8894_v8  ;;  %4933 = vmatprep.subr.mxu1 %v8895_v4 }
 0x4f8   : > { %7250 = vmatpush3.msra.mxu0 %v8894_v8 }
 0x4f9   : > { %7251 = vmatprep.subr.mxu0 %v8896_v58 }
 0x4fa   : > { %7252 = vmatpush3.msra.mxu0 %v8896_v58 }
 0x4fb   : > { %7253 = vmatprep.subr.mxu0 %v8897_v45 }
 0x4fc   : > { %7254 = vmatpush3.msra.mxu0 %v8897_v45 }
 0x4fd   : > { %7255 = vmatprep.subr.mxu0 %v8898_v23 }
 0x4fe   : > { %7256 = vmatpush3.msra.mxu0 %v8898_v23 }
 0x4ff   : > { %7257 = vmatprep.subr.mxu0 %v8899_v49 }
 0x500   : > { %7258 = vmatpush3.msra.mxu0 %v8899_v49 }
 0x501   : > { %7259 = vmatprep.subr.mxu0 %v8900_v2 }
 0x502   : > { %7260 = vmatpush3.msra.mxu0 %v8900_v2  ;;  %v12143_v2 = vld [vmem:[#allocation17_spill] sm:$0xff] }
 0x503   : > { %7261 = vmatprep.subr.mxu0 %v8901_v43 }
 0x504   : > { %7262 = vmatpush3.msra.mxu0 %v8901_v43 }
 0x505   : > { %7263 = vmatprep.subr.mxu0 %v8902_v13 }
 0x506   : > { %7264 = vmatpush3.msra.mxu0 %v8902_v13 }
 0x507   : > { %7268 = vmatprep.subr.mxu0 %v10813_v47 }
 0x596   : > { %v3575_v3 = vpop.f32.mrf.mxu1 }
 0x597   : > { %v3663_v61 = vrot.slane %v3575_v3, 4  ;;  %v3664_v48 = vrot.slane %v3575_v3, 5  ;;  %v3665_v56 = vrot.slane %v3575_v3, 6  ;;  %v3666_v30 = vrot.slane %v3575_v3, 7 }
 0x598   : > { %v3667_v7 = vrot.slane %v3575_v3, 1  ;;  %v3668_v53 = vrot.slane %v3575_v3, 2  ;;  %v3669_v35 = vrot.slane %v3575_v3, 3  ;;  %v3697_v16 = vadd.f32 %v3575_v3, %v12135_v46  ;;  %v3577_v57 = vpop.f32.mrf.mxu1 }
 0x599   : > { %v3693_v52 = vadd.f32 %v3663_v61, %v12136_v38  ;;  %v3694_v60 = vadd.f32 %v3664_v48, %v12137_v44  ;;  %v3695_v9 = vadd.f32 %v3665_v56, %v12138_v5  ;;  %v3696_v11 = vadd.f32 %v3666_v30, %v12139_v50 }
 0x59a   : > { %v3698_v24 = vadd.f32 %v3667_v7, %v12140_v41  ;;  %v3699_v1 = vadd.f32 %v3668_v53, %v12141_v21  ;;  %v6722_v14 = vmul.f32 -1.442695, %v3697_v16  ;;  %v3700_v8 = vadd.f32 %v3669_v35, %v12142_v36  ;;  %v12144_v35 = vld [vmem:[#allocation9_spill] sm:$0xff] }
 0x59b   : > { %v6718_v4 = vmul.f32 -1.442695, %v3693_v52  ;;  %v6719_v58 = vmul.f32 -1.442695, %v3694_v60  ;;  %v6720_v45 = vmul.f32 -1.442695, %v3695_v9  ;;  %v3841_v43 = vadd.f32 %v3577_v57, %v12143_v2 }
 0x59c   : > { %v6721_v23 = vmul.f32 -1.442695, %v3696_v11  ;;  %8069 = vpow2.f32 %v6722_v14  ;;  %v6723_v49 = vmul.f32 -1.442695, %v3698_v24  ;;  %v6724_v13 = vmul.f32 -1.442695, %v3699_v1 }
 0x59d   : > { %8071 = vpow2.f32 %v6718_v4  ;;  %v3807_v3 = vrot.slane %v3577_v57, 4  ;;  %v3808_v61 = vrot.slane %v3577_v57, 5  ;;  %v3809_v48 = vrot.slane %v3577_v57, 6  ;;  %v12145_v52 = vld [vmem:[#allocation11_spill] sm:$0xff]  ;;  %v12146_v9 = vld [vmem:[#allocation13_spill] sm:$0xff] }
 0x59e   : > { %8073 = vpow2.f32 %v6719_v58  ;;  %v3810_v56 = vrot.slane %v3577_v57, 7  ;;  %v3811_v30 = vrot.slane %v3577_v57, 1  ;;  %v6725_v7 = vmul.f32 -1.442695, %v3700_v8  ;;  %v12147_v24 = vld [vmem:[#allocation15_spill] sm:$0xff] }
 0x59f   : > { %8075 = vpow2.f32 %v6720_v45  ;;  %v3812_v53 = vrot.slane %v3577_v57, 2  ;;  %v3837_v16 = vadd.f32 %v3807_v3, %v12144_v35  ;;  %v3838_v60 = vadd.f32 %v3808_v61, %v12145_v52  ;;  %v12148_v4 = vld [vmem:[#allocation19_spill] sm:$0xff]  ;;  %v12149_v45 = vld [vmem:[#allocation22_spill] sm:$0xff] }
 0x5a0   : > { %8077 = vpow2.f32 %v6721_v23  ;;  %v3839_v11 = vadd.f32 %v3809_v48, %v12146_v9  ;;  %v3840_v14 = vadd.f32 %v3810_v56, %v12147_v24  ;;  %v3813_v1 = vrot.slane %v3577_v57, 3  ;;  %v12150_v3 = vld [vmem:[#allocation23_spill] sm:$0xff] }
 0x5a1   : > { %8079 = vpow2.f32 %v6723_v49  ;;  %v3842_v2 = vadd.f32 %v3811_v30, %v12148_v4  ;;  %v6734_v58 = vmul.f32 -1.442695, %v3837_v16  ;;  %v6735_v36 = vmul.f32 -1.442695, %v3838_v60 }
 0x5a2   : > { %8081 = vpow2.f32 %v6724_v13  ;;  %v6736_v21 = vmul.f32 -1.442695, %v3839_v11  ;;  %v6737_v8 = vmul.f32 -1.442695, %v3840_v14  ;;  %v3843_v46 = vadd.f32 %v3812_v53, %v12149_v45 }
 0x5a3   : > { %8083 = vpow2.f32 %v6725_v7  ;;  %v6738_v23 = vmul.f32 -1.442695, %v3841_v43  ;;  %v3844_v61 = vadd.f32 %v3813_v1, %v12150_v3  ;;  %v6739_v48 = vmul.f32 -1.442695, %v3842_v2 }
 0x5a4   : > { %8085 = vpow2.f32 %v6734_v58  ;;  %v6740_v57 = vmul.f32 -1.442695, %v3843_v46 }
 0x5a5   : > { %8087 = vpow2.f32 %v6735_v36  ;;  %v6741_v13 = vmul.f32 -1.442695, %v3844_v61 }
 0x5a6   : > { %8089 = vpow2.f32 %v6736_v21  ;;  %v3581_v14 = vpop.f32.mrf.mxu1 }
 0x5a7   : > { %8091 = vpow2.f32 %v6737_v8  ;;  %v3670_v8 = vrot.slane %v3581_v14, 4  ;;  %v3674_v3 = vrot.slane %v3581_v14, 1  ;;  %v3675_v4 = vrot.slane %v3581_v14, 2 }
 0x5a8   : > { %8093 = vpow2.f32 %v6738_v23  ;;  %v10834_v45 = vpop.f32.mrf.mxu1 }
 0x5a9   : > { %v8070_v49 = vpop.eup %8069  ;;  %8095 = vpow2.f32 %v6739_v48  ;;  %v3671_v48 = vrot.slane %v3581_v14, 5 }
 0x5aa   : > { %v8072_v56 = vpop.eup %8071  ;;  %v3761_v30 = vadd.f32 1.0, %v8070_v49  ;;  %8097 = vpow2.f32 %v6740_v57 }
 0x5ab   : > { %v8074_v16 = vpop.eup %8073  ;;  %v3757_v7 = vadd.f32 1.0, %v8072_v56  ;;  %8099 = vpow2.f32 %v6741_v13  ;;  %v3672_v56 = vrot.slane %v3581_v14, 6 }
 0x5ac   : > { %v8076_v60 = vpop.eup %8075  ;;  %v3758_v11 = vadd.f32 1.0, %v8074_v16  ;;  %8101 = vrcp.f32 %v3761_v30 }
 0x5ad   : > { %v8078_v53 = vpop.eup %8077  ;;  %v3759_v43 = vadd.f32 1.0, %v8076_v60  ;;  %8103 = vrcp.f32 %v3757_v7  ;;  %v3673_v60 = vrot.slane %v3581_v14, 7  ;;  %v12151_v7 = vld [vmem:[#allocation24_spill] sm:$0xff] }
 0x5ae   : > { %v8080_v36 = vpop.eup %8079  ;;  %v3760_v2 = vadd.f32 1.0, %v8078_v53  ;;  %8105 = vrcp.f32 %v3758_v11 }
 0x5af   : > { %v8082_v21 = vpop.eup %8081  ;;  %v3762_v1 = vadd.f32 1.0, %v8080_v36  ;;  %8107 = vrcp.f32 %v3759_v43  ;;  %v3701_v36 = vadd.f32 %v3670_v8, %v12151_v7  ;;  %v12155_v8 = vld [vmem:[#allocation32_spill] sm:$0xff]  ;;  %v3814_v7 = vrot.slane %v10834_v45, 4 }
 0x5b0   : > { %v8084_v46 = vpop.eup %8083  ;;  %v3763_v58 = vadd.f32 1.0, %v8082_v21  ;;  %8109 = vrcp.f32 %v3760_v2 }
 0x5b1   : > { %v8086_v23 = vpop.eup %8085  ;;  %v3764_v61 = vadd.f32 1.0, %v8084_v46  ;;  %8111 = vrcp.f32 %v3762_v1  ;;  %v12152_v46 = vld [vmem:[#allocation26_spill] sm:$0xff]  ;;  %v12153_v1 = vld [vmem:[#allocation28_spill] sm:$0xff] }
 0x5b2   : > { %v8088_v49 = vpop.eup %8087  ;;  %v3901_v57 = vadd.f32 1.0, %v8086_v23  ;;  %8113 = vrcp.f32 %v3763_v58  ;;  %v3702_v43 = vadd.f32 %v3671_v48, %v12152_v46  ;;  %v3676_v58 = vrot.slane %v3581_v14, 3  ;;  %v12156_v46 = vld [vmem:[#allocation34_spill] sm:$0xff] }
 0x5b3   : > { %v8090_v13 = vpop.eup %8089  ;;  %v3902_v16 = vadd.f32 1.0, %v8088_v49  ;;  %8115 = vrcp.f32 %v3764_v61  ;;  %v3703_v49 = vadd.f32 %v3672_v56, %v12153_v1  ;;  %v3705_v61 = vadd.f32 %v3581_v14, %v12155_v8  ;;  %v12157_v56 = vld [vmem:[#allocation35_spill] sm:$0xff]  ;;  %v12158_v14 = vld [vmem:[#allocation36_spill] sm:$0xff] }
 0x5b4   : > { %v8092_v30 = vpop.eup %8091  ;;  %v3903_v53 = vadd.f32 1.0, %v8090_v13  ;;  %8117 = vrcp.f32 %v3901_v57  ;;  %v12154_v13 = vld [vmem:[#allocation30_spill] sm:$0xff]  ;;  %v3706_v52 = vadd.f32 %v3674_v3, %v12156_v46  ;;  %v3815_v57 = vrot.slane %v10834_v45, 5 }
 0x5b5   : > { %v8094_v21 = vpop.eup %8093  ;;  %v3904_v11 = vadd.f32 1.0, %v8092_v30  ;;  %8119 = vrcp.f32 %v3902_v16  ;;  %v3704_v9 = vadd.f32 %v3673_v60, %v12154_v13  ;;  %v6726_v30 = vmul.f32 -1.442695, %v3701_v36 }
 0x5b6   : > { %v8096_v2 = vpop.eup %8095  ;;  %v3905_v23 = vadd.f32 1.0, %v8094_v21  ;;  %8121 = vrcp.f32 %v3903_v53  ;;  %v6727_v21 = vmul.f32 -1.442695, %v3702_v43  ;;  %v3707_v16 = vadd.f32 %v3675_v4, %v12157_v56  ;;  %v12159_v43 = vld [vmem:[#allocation25_spill] sm:$0xff] }
 0x5b7   : > { %v3906_v24 = vadd.f32 1.0, %v8096_v2  ;;  %v8098_v48 = vpop.eup %8097  ;;  %8123 = vrcp.f32 %v3904_v11  ;;  %v6728_v2 = vmul.f32 -1.442695, %v3703_v49  ;;  %v3816_v60 = vrot.slane %v10834_v45, 6  ;;  %v12160_v49 = vld [vmem:[#allocation27_spill] sm:$0xff] }
 0x5b8   : > { %v8100_v35 = vpop.eup %8099  ;;  %8125 = vrcp.f32 %v3905_v23  ;;  %v3708_v36 = vadd.f32 %v3676_v58, %v12158_v14  ;;  %v6729_v8 = vmul.f32 -1.442695, %v3704_v9  ;;  %v3817_v11 = vrot.slane %v10834_v45, 7  ;;  %v12161_v58 = vld [vmem:[#allocation29_spill] sm:$0xff] }
 0x5b9   : > { %v10844_v53 = vpop.eup %8101  ;;  %8127 = vrcp.f32 %v3906_v24  ;;  %v6730_v3 = vmul.f32 -1.442695, %v3705_v61  ;;  %v3845_v46 = vadd.f32 %v3814_v7, %v12159_v43  ;;  %v6731_v4 = vmul.f32 -1.442695, %v3706_v52 }
 0x5ba   : > { %v10848_v13 = vpop.eup %8103  ;;  %8129 = vpow2.f32 %v6726_v30  ;;  %v3846_v56 = vadd.f32 %v3815_v57, %v12160_v49  ;;  %v6732_v24 = vmul.f32 -1.442695, %v3707_v16  ;;  %v3847_v9 = vadd.f32 %v3816_v60, %v12161_v58  ;;  %v12162_v30 = vld [vmem:[#allocation31_spill] sm:$0xff]  ;;  %v12163_v16 = vld [vmem:[#allocation33_spill] sm:$0xff] }
 0x5bb   : > { %v10851_v23 = vpop.eup %8105  ;;  %8131 = vpow2.f32 %v6727_v21  ;;  %v6733_v50 = vmul.f32 -1.442695, %v3708_v36  ;;  %v3818_v61 = vrot.slane %v10834_v45, 1  ;;  %v3848_v7 = vadd.f32 %v3817_v11, %v12162_v30  ;;  %v12164_v58 = vld [vmem:[#allocation41_spill] sm:$0xff] }
 0x5bc   : > { %v10854_v1 = vpop.eup %8107  ;;  %8133 = vpow2.f32 %v6728_v2  ;;  %v6742_v52 = vmul.f32 -1.442695, %v3845_v46  ;;  %v6743_v57 = vmul.f32 -1.442695, %v3846_v56  ;;  %v3849_v60 = vadd.f32 %v10834_v45, %v12163_v16 }
 0x5bd   : > { %v10857_v14 = vpop.eup %8109  ;;  %8135 = vpow2.f32 %v6729_v8  ;;  %v6744_v8 = vmul.f32 -1.442695, %v3847_v9  ;;  %v3850_v11 = vadd.f32 %v3818_v61, %v12164_v58  ;;  %v6745_v30 = vmul.f32 -1.442695, %v3848_v7 }
 0x5be   : > { %v10861_v43 = vpop.eup %8111  ;;  %8137 = vpow2.f32 %v6730_v3  ;;  %v3907_v46 = vadd.f32 1.0, %v8098_v48  ;;  %v3908_v56 = vadd.f32 1.0, %v8100_v35  ;;  %v6746_v16 = vmul.f32 -1.442695, %v3849_v60 }
 0x5bf   : > { %v10863_v21 = vpop.eup %8113  ;;  %8139 = vpow2.f32 %v6731_v4  ;;  %v7232_v4 = vpop.f32.mrf.mxu0  ;;  %v3819_v61 = vrot.slane %v10834_v45, 2  ;;  %v3820_v7 = vrot.slane %v10834_v45, 3 }
 0x5c0   : > { %v10865_v2 = vpop.eup %8115  ;;  %8141 = vpow2.f32 %v6732_v24 }
 0x5c1   : > { %v10869_v36 = vpop.eup %8117  ;;  %8143 = vpow2.f32 %v6733_v50  ;;  %v6747_v50 = vmul.f32 -1.442695, %v3850_v11  ;;  %v3652_v35 = vpop.f32.mrf.mxu0  ;;  %v3852_v45 = vadd.f32 %v3820_v7, %v12078_v63 }
 0x5c2   : > { %v10872_v49 = vpop.eup %8119  ;;  %8145 = vpow2.f32 %v6742_v52 }
 0x5c3   : > { %v10874_v3 = vpop.eup %8121  ;;  %8147 = vpow2.f32 %v6743_v57 }
 0x5c4   : > { %v10876_v24 = vpop.eup %8123  ;;  %8149 = vpow2.f32 %v6744_v8 }
 0x5c5   : > { %v10878_v9 = vpop.eup %8125  ;;  %8151 = vpow2.f32 %v6745_v30  ;;  %v12165_v30 = vld [vmem:[#allocation43_spill] sm:$0xff] }
 0x5c6   : > { %v10880_v5 = vpop.eup %8127  ;;  %8153 = vrcp.f32 %v3907_v46  ;;  %v3851_v11 = vadd.f32 %v3819_v61, %v12165_v30  ;;  %v8904_v46 = vld [vmem:[%s11829_s4] ss:$0 sm:$0xff] }
 0x5c7   : > { %v8130_v48 = vpop.eup %8129  ;;  %8155 = vrcp.f32 %v3908_v56  ;;  %v3949_v38 = vadd.f32 %v8904_v46, %v3652_v35  ;;  %v6749_v35 = vmul.f32 -1.442695, %v3852_v45 }
 0x5c8   : > { %v8132_v52 = vpop.eup %8131  ;;  %v3765_v57 = vadd.f32 1.0, %v8130_v48  ;;  %8157 = vpow2.f32 %v6746_v16  ;;  %v6748_v61 = vmul.f32 -1.442695, %v3851_v11  ;;  %v10891_v11 = vadd.f32 %v8904_v46, %v7232_v4 }
 0x5c9   : > { %v8134_v58 = vpop.eup %8133  ;;  %v3766_v8 = vadd.f32 1.0, %v8132_v52  ;;  %8159 = vpow2.f32 %v6747_v50  ;;  %v3953_v30 = vrot.slane %v3949_v38, 4  ;;  %v3954_v39 = vrot.slane %v3949_v38, 5 }
 0x5ca   : > { %v8136_v60 = vpop.eup %8135  ;;  %v3767_v44 = vadd.f32 1.0, %v8134_v58  ;;  %8161 = vrcp.f32 %v3765_v57  ;;  %v3955_v7 = vrot.slane %v3949_v38, 6 }
 0x5cb   : > { %v8138_v56 = vpop.eup %8137  ;;  %v3768_v41 = vadd.f32 1.0, %v8136_v60  ;;  %8163 = vrcp.f32 %v3766_v8 }
 0x5cc   : > { %v8140_v48 = vpop.eup %8139  ;;  %v3769_v16 = vadd.f32 1.0, %v8138_v56  ;;  %8165 = vrcp.f32 %v3767_v44  ;;  %v3983_v56 = vmul.f32 %v10848_v13, %v3953_v30  ;;  %v3985_v45 = vmul.f32 %v10854_v1, %v3955_v7 }
 0x5cd   : > { %v8142_v52 = vpop.eup %8141  ;;  %v3770_v50 = vadd.f32 1.0, %v8140_v48  ;;  %8167 = vrcp.f32 %v3768_v41  ;;  %v3956_v41 = vrot.slane %v3949_v38, 7  ;;  %v3959_v1 = vrot.slane %v3949_v38, 3 }
 0x5ce   : > { %v8144_v58 = vpop.eup %8143  ;;  %v3771_v57 = vadd.f32 1.0, %v8142_v52  ;;  %8169 = vrcp.f32 %v3769_v16  ;;  %v3984_v52 = vmul.f32 %v10851_v23, %v3954_v39  ;;  %v3987_v39 = vmul.f32 %v10844_v53, %v3949_v38 }
 0x5cf   : > { %v8146_v47 = vpop.eup %8145  ;;  %v3772_v25 = vadd.f32 1.0, %v8144_v58  ;;  %8171 = vrcp.f32 %v3770_v50  ;;  %v3986_v13 = vmul.f32 %v10857_v14, %v3956_v41  ;;  %v3999_v23 = vadd.f32 %v3983_v56, %v9822_v6 }
 0x5d0   : > { %v8148_v60 = vpop.eup %8147  ;;  %8173 = vrcp.f32 %v3771_v57  ;;  %v3909_v8 = vadd.f32 1.0, %v8146_v47  ;;  %v3957_v57 = vrot.slane %v3949_v38, 1  ;;  %v4000_v46 = vadd.f32 %v3984_v52, %v9828_v32 }
 0x5d1   : > { %v8150_v44 = vpop.eup %8149  ;;  %8175 = vrcp.f32 %v3772_v25  ;;  %v3910_v48 = vadd.f32 1.0, %v8148_v60  ;;  %v3958_v25 = vrot.slane %v3949_v38, 2  ;;  %v4001_v60 = vadd.f32 %v3985_v45, %v12030_v51 }
 0x5d2   : > { %v8152_v16 = vpop.eup %8151  ;;  %8177 = vpow2.f32 %v6748_v61  ;;  %v3911_v58 = vadd.f32 1.0, %v8150_v44  ;;  %v3988_v61 = vmul.f32 %v10861_v43, %v3957_v57  ;;  %v4002_v53 = vadd.f32 %v3986_v13, %v9845_v59 }
 0x5d3   : > { %v10894_v50 = vpop.eup %8153  ;;  %8179 = vpow2.f32 %v6749_v35  ;;  %v3912_v47 = vadd.f32 1.0, %v8152_v16  ;;  %v3989_v14 = vmul.f32 %v10863_v21, %v3958_v25  ;;  %v3960_v44 = vrot.slane %v10891_v11, 4 }
 0x5d4   : > { %v10897_v30 = vpop.eup %8155  ;;  %8181 = vrcp.f32 %v3909_v8  ;;  %v3990_v8 = vmul.f32 %v10865_v2, %v3959_v1  ;;  %v4003_v38 = vadd.f32 %v3987_v39, %v9857_v0  ;;  %v3961_v43 = vrot.slane %v10891_v11, 5 }
 0x5d5   : > { %v8158_v4 = vpop.eup %8157  ;;  %8183 = vrcp.f32 %v3910_v48  ;;  %v4004_v41 = vadd.f32 %v3988_v61, %v12079_v34  ;;  %v3962_v21 = vrot.slane %v10891_v11, 6  ;;  %v4005_v2 = vadd.f32 %v3989_v14, %v12031_v33 }
 0x5d6   : > { %v8160_v35 = vpop.eup %8159  ;;  %8185 = vrcp.f32 %v3911_v58  ;;  %v3963_v45 = vrot.slane %v10891_v11, 7  ;;  %v4006_v57 = vadd.f32 %v3990_v8, %v12080_v31  ;;  %v3913_v39 = vadd.f32 1.0, %v8158_v4 }
 0x5d7   : > { %v8162_v7 = vpop.eup %8161  ;;  %8187 = vrcp.f32 %v3912_v47  ;;  %v3964_v1 = vrot.slane %v10891_v11, 1  ;;  %v3965_v14 = vrot.slane %v10891_v11, 2 }
 0x5d8   : > { %v8164_v56 = vpop.eup %8163  ;;  %8189 = vtanh.f32 %v3999_v23  ;;  %v3991_v16 = vmul.f32 %v8162_v7, %v3960_v44 }
 0x5d9   : > { %v8166_v48 = vpop.eup %8165  ;;  %8191 = vtanh.f32 %v4000_v46  ;;  %v3992_v47 = vmul.f32 %v8164_v56, %v3961_v43  ;;  %v3914_v46 = vadd.f32 1.0, %v8160_v35 }
 0x5da   : > { %v8168_v52 = vpop.eup %8167  ;;  %8193 = vtanh.f32 %v4001_v60  ;;  %v3993_v25 = vmul.f32 %v8166_v48, %v3962_v21  ;;  %v4007_v56 = vadd.f32 %v3991_v16, %v9875_v17 }
 0x5db   : > { %v8170_v58 = vpop.eup %8169  ;;  %8195 = vtanh.f32 %v4002_v53  ;;  %v3994_v61 = vmul.f32 %v8168_v52, %v3963_v45  ;;  %v3966_v53 = vrot.slane %v10891_v11, 3  ;;  %v4008_v44 = vadd.f32 %v3992_v47, %v9871_v15  ;;  %v12167_v47 = vld [vmem:[#allocation46_spill] sm:$0xff] }
 0x5dc   : > { %v8172_v13 = vpop.eup %8171  ;;  %8197 = vtanh.f32 %v4003_v38  ;;  %v3995_v7 = vmul.f32 %v8170_v58, %v10891_v11  ;;  %v4009_v48 = vadd.f32 %v3993_v25, %v9893_v26  ;;  %v12168_v25 = vld [vmem:[#allocation45_spill] sm:$0xff] }
 0x5dd   : > { %v8174_v23 = vpop.eup %8173  ;;  %8199 = vtanh.f32 %v4004_v41  ;;  %v3996_v4 = vmul.f32 %v8172_v13, %v3964_v1  ;;  %v4010_v52 = vadd.f32 %v3994_v61, %v9879_v19 }
 0x5de   : > { %v8176_v60 = vpop.eup %8175  ;;  %8201 = vtanh.f32 %v4005_v2  ;;  %v3997_v38 = vmul.f32 %v8174_v23, %v3965_v14  ;;  %v4011_v16 = vadd.f32 %v3995_v7, %v9915_v12  ;;  %v12166_v2 = vld [vmem:[#allocation42_spill] sm:$0xff] }
 0x5df   : > { %v8178_v8 = vpop.eup %8177  ;;  %8203 = vtanh.f32 %v4006_v57  ;;  %v3998_v41 = vmul.f32 %v8176_v60, %v3966_v53  ;;  %v4012_v58 = vadd.f32 %v3996_v4, %v12166_v2 }
 0x5e0   : > { %v8180_v35 = vpop.eup %8179  ;;  %8205 = vrcp.f32 %v3913_v39  ;;  %v4013_v57 = vadd.f32 %v3997_v38, %v12167_v47 }
 0x5e1   : > { %v10922_v43 = vpop.eup %8181  ;;  %8207 = vrcp.f32 %v3914_v46  ;;  %v4014_v39 = vadd.f32 %v3998_v41, %v12168_v25  ;;  %v3915_v46 = vadd.f32 1.0, %v8178_v8  ;;  %v3916_v14 = vadd.f32 1.0, %v8180_v35 }
 0x5e2   : > { %v10925_v21 = vpop.eup %8183  ;;  %8209 = vtanh.f32 %v4007_v56 }
 0x5e3   : > { %v10928_v11 = vpop.eup %8185  ;;  %8211 = vtanh.f32 %v4008_v44 }
 0x5e4   : > { %v10931_v45 = vpop.eup %8187  ;;  %8213 = vtanh.f32 %v4009_v48 }
 0x5e5   : > { %v8190_v13 = vpop.eup %8189  ;;  %8215 = vtanh.f32 %v4010_v52 }
 0x5e6   : > { %v8192_v23 = vpop.eup %8191  ;;  %v4047_v1 = vrot.slane %v8190_v13, 1  ;;  %8217 = vtanh.f32 %v4011_v16 }
 0x5e7   : > { %v8194_v61 = vpop.eup %8193  ;;  %v4048_v60 = vrot.slane %v8192_v23, 1  ;;  %8219 = vtanh.f32 %v4012_v58 }
 0x5e8   : > { %v8196_v7 = vpop.eup %8195  ;;  %v4049_v56 = vrot.slane %v8194_v61, 1  ;;  %v4079_v53 = vsub.f32 %v10696_v62, %v4047_v1  ;;  %8221 = vtanh.f32 %v4013_v57 }
 0x5e9   : > { %v8198_v4 = vpop.eup %8197  ;;  %v4050_v44 = vrot.slane %v8196_v7, 1  ;;  %v4080_v38 = vsub.f32 %v10702_v55, %v4048_v60  ;;  %8223 = vtanh.f32 %v4014_v39 }
 0x5ea   : > { %v8200_v48 = vpop.eup %8199  ;;  %v4051_v41 = vrot.slane %v8198_v4, 1  ;;  %v4081_v8 = vsub.f32 %v10707_v22, %v4049_v56  ;;  %v4111_v52 = vrot.slane %v4079_v53, 7  ;;  %8225 = vrcp.f32 %v3915_v46 }
 0x5eb   : > { %v8202_v16 = vpop.eup %8201  ;;  %v4052_v25 = vrot.slane %v8200_v48, 1  ;;  %v4082_v35 = vsub.f32 %v10713_v37, %v4050_v44  ;;  %v4112_v58 = vrot.slane %v4080_v38, 7  ;;  %8227 = vrcp.f32 %v3916_v14  ;;  %v12169_v37 = vld [vmem:[#allocation39_spill] sm:$0xff] }
 0x5ec   : > { %v8204_v47 = vpop.eup %8203  ;;  %v4053_v62 = vrot.slane %v8202_v16, 1  ;;  %v4083_v57 = vsub.f32 %v10719_v42, %v4051_v41  ;;  %v4113_v1 = vrot.slane %v4081_v8, 7  ;;  %v4143_v55 = vmul.f32 %v10869_v36, %v4111_v52  ;;  %v12170_v36 = vld [vmem:[#allocation37_spill] sm:$0xff] }
 0x5ed   : > { %v10941_v39 = vpop.eup %8205  ;;  %v4054_v60 = vrot.slane %v8204_v47, 1  ;;  %v4084_v22 = vsub.f32 %v10726_v20, %v4052_v25  ;;  %v4114_v56 = vrot.slane %v4082_v35, 7  ;;  %v4144_v46 = vmul.f32 %v10872_v49, %v4112_v58 }
 0x5ee   : > { %v10945_v53 = vpop.eup %8207  ;;  %v4085_v44 = vsub.f32 %v12169_v37, %v4053_v62  ;;  %v4115_v14 = vrot.slane %v4083_v57, 7  ;;  %v4145_v38 = vmul.f32 %v10874_v3, %v4113_v1  ;;  %v10949_v2 = vadd.f32 %v8190_v13, %v4143_v55 }
 0x5ef   : > { %v10951_v42 = vpop.eup %8209  ;;  %v4086_v41 = vsub.f32 %v12170_v36, %v4054_v60  ;;  %v4116_v8 = vrot.slane %v4084_v22, 7  ;;  %v4146_v52 = vmul.f32 %v10876_v24, %v4114_v56  ;;  %v10955_v20 = vadd.f32 %v8192_v23, %v4144_v46 }
 0x5f0   : > { %v10957_v25 = vpop.eup %8211  ;;  %v4117_v49 = vrot.slane %v4085_v44, 7  ;;  %v4147_v35 = vmul.f32 %v10878_v9, %v4115_v14  ;;  %v10960_v58 = vadd.f32 %v8194_v61, %v4145_v38  ;;  %v4191_v3 = vrot.slane %v10949_v2, 4 }
 0x5f1   : > { %v10963_v13 = vpop.eup %8213  ;;  %v4118_v62 = vrot.slane %v4086_v41, 7  ;;  %v4148_v57 = vmul.f32 %v10880_v5, %v4116_v8  ;;  %v10966_v1 = vadd.f32 %v8196_v7, %v4146_v52  ;;  %v4192_v24 = vrot.slane %v10955_v20, 3 }
 0x5f2   : > { %v10969_v23 = vpop.eup %8215  ;;  %v4149_v55 = vmul.f32 %v10894_v50, %v4117_v49  ;;  %v10972_v60 = vadd.f32 %v8198_v4, %v4147_v35  ;;  %v4194_v9 = vrot.slane %v10960_v58, 2  ;;  %v4055_v61 = vrot.slane %v10951_v42, 1 }
 0x5f3   : > { %v10976_v22 = vpop.eup %8217  ;;  %v4150_v56 = vmul.f32 %v10897_v30, %v4118_v62  ;;  %v10979_v46 = vadd.f32 %v8200_v48, %v4148_v57  ;;  %v4193_v5 = vsel %vm1337_vm2, %v4192_v24, %v4191_v3  ;;  %v4196_v7 = vrot.slane %v10966_v1, 1 }
 0x5f4   : > { %v10983_v37 = vpop.eup %8219  ;;  %v10985_v44 = vadd.f32 %v8202_v16, %v4149_v55  ;;  %v4195_v50 = vsel %vm1340_vm3, %v4194_v9, %v4193_v5  ;;  %v4056_v4 = vrot.slane %v10957_v25, 1  ;;  %v4057_v14 = vrot.slane %v10963_v13, 1 }
 0x5f5   : > { %v10990_v38 = vpop.eup %8221  ;;  %v10992_v36 = vadd.f32 %v8204_v47, %v4150_v56  ;;  %v4197_v30 = vsel %vm1343_vm4, %v4196_v7, %v4195_v50  ;;  %v4199_v48 = vrot.slane %v10979_v46, 7  ;;  %v4058_v41 = vrot.slane %v10969_v23, 1 }
 0x5f6   : > { %12171 = vst [vmem:[#allocation48_spill] sm:$0xff] %v10985_v44  ;;  %v10997_v8 = vpop.eup %8223  ;;  %v4198_v16 = vsel %vm1346_vm5, %v10972_v60, %v4197_v30  ;;  %v4201_v52 = vrot.slane %v10985_v44, 6  ;;  %v4059_v49 = vrot.slane %v10976_v22, 1  ;;  %v4060_v35 = vrot.slane %v10983_v37, 1  ;;  %v12173_v44 = vld [vmem:[#allocation40_spill] sm:$0xff] }
 0x5f7   : > { %12172 = vst [vmem:[#allocation49_spill] sm:$0xff] %v10992_v36  ;;  %v8226_v3 = vpop.eup %8225  ;;  %v4200_v47 = vsel %vm1349_vm6, %v4199_v48, %v4198_v16  ;;  %v4203_v62 = vrot.slane %v10992_v36, 5  ;;  %v4061_v57 = vrot.slane %v10990_v38, 1  ;;  %v4062_v24 = vrot.slane %v10997_v8, 1 }
 0x5f8   : > { %v8228_v55 = vpop.eup %8227  ;;  %v4202_v9 = vsel %vm1352_vm7, %v4201_v52, %v4200_v47  ;;  %v4087_v56 = vsub.f32 %v10773_v27, %v4055_v61  ;;  %v4088_v5 = vsub.f32 %v10776_v18, %v4056_v4  ;;  %v4089_v7 = vsub.f32 %v10779_v10, %v4057_v14 }
 0x5f9   : > { %v4204_v50 = vsel %vm1355_vm8, %v4203_v62, %v4202_v9  ;;  %v4090_v30 = vsub.f32 %v10794_v54, %v4058_v41  ;;  %v4091_v48 = vsub.f32 %v10782_v28, %v4059_v49  ;;  %v4092_v16 = vsub.f32 %v10785_v29, %v4060_v35  ;;  %v8905_v62 = vld [vmem:[#allocation2 + $0x168] sm:$0xff]  ;;  %v8906_v49 = vld [vmem:[#allocation2 + $0x158] sm:$0xff] }
 0x5fa   : > { %4286 = vmatmul.mubr.f32.vlgmr.msra.gmra.mxu1 %v4204_v50  ;;  %7265 = vmatprep.mubr.f32.mxu0 %v4204_v50  ;;  %v4093_v36 = vsub.f32 %v10790_v40, %v4061_v57  ;;  %v4094_v52 = vsub.f32 %v12173_v44, %v4062_v24  ;;  %v4119_v47 = vrot.slane %v4087_v56, 7  ;;  %v4120_v27 = vrot.slane %v4088_v5, 7  ;;  %v8907_v57 = vld [vmem:[#allocation2 + $0x150] sm:$0xff] }
 0x5fb   : > { %v12174_v61 = vmov 0.0   ;;  %v4121_v18 = vrot.slane %v4089_v7, 7  ;;  %v4122_v10 = vrot.slane %v4090_v30, 7  ;;  %v4123_v4 = vrot.slane %v4091_v48, 7  ;;  %4934 = vmatpush1.msra.mxu1 %v8905_v62  ;;  %v8912_v50 = vld [vmem:[#allocation2 + $0x110] sm:$0xff]  ;;  %v8917_v62 = vld [vmem:[#allocation2 + $0xd8] sm:$0xff] }
 0x5fc   : > { %4291 = vmatprep.mubr.f32.mxu1 %v12174_v61  ;;  %v4124_v14 = vrot.slane %v4092_v16, 7  ;;  %v4125_v54 = vrot.slane %v4093_v36, 7  ;;  %v4126_v28 = vrot.slane %v4094_v52, 7  ;;  %v4151_v29 = vmul.f32 %v10922_v43, %v4119_v47  ;;  %4935 = vmatprep.subr.mxu1 %v8906_v49  ;;  %v8908_v43 = vld [vmem:[#allocation2 + $0x140] sm:$0xff]  ;;  %v8914_v47 = vld [vmem:[#allocation2 + $0xf8] sm:$0xff]  ;;  %v8920_v49 = vld [vmem:[#allocation2 + $0xb0] sm:$0xff] }
 0x5fd   : > { %v4152_v41 = vmul.f32 %v10925_v21, %v4120_v27  ;;  %v4153_v40 = vmul.f32 %v10928_v11, %v4121_v18  ;;  %v4154_v44 = vmul.f32 %v10931_v45, %v4122_v10  ;;  %4936 = vmatpush1.msra.mxu1 %v8907_v57  ;;  %v4155_v21 = vmul.f32 %v10941_v39, %v4123_v4  ;;  %v8915_v18 = vld [vmem:[#allocation2 + $0xf0] sm:$0xff]  ;;  %v8916_v4 = vld [vmem:[#allocation2 + $0xe0] sm:$0xff]  ;;  %v8924_v57 = vld [vmem:[#allocation2 + $0x148] sm:$0xff] }
 0x5fe   : > { %v4156_v35 = vmul.f32 %v10945_v53, %v4124_v14  ;;  %v4157_v24 = vmul.f32 %v8226_v3, %v4125_v54  ;;  %v4158_v9 = vmul.f32 %v8228_v55, %v4126_v28  ;;  %v11025_v56 = vadd.f32 %v10951_v42, %v4151_v29  ;;  %4937 = vmatprep.subr.mxu1 %v8908_v43  ;;  %v8909_v53 = vld [vmem:[#allocation2 + $0x138] sm:$0xff]  ;;  %v8910_v55 = vld [vmem:[#allocation2 + $0x128] sm:$0xff]  ;;  %v8919_v29 = vld [vmem:[#allocation2 + $0xc0] sm:$0xff] }
 0x5ff   : > { %v11028_v36 = vadd.f32 %v10957_v25, %v4152_v41  ;;  %v11032_v11 = vadd.f32 %v10963_v13, %v4153_v40  ;;  %v11035_v45 = vadd.f32 %v10969_v23, %v4154_v44  ;;  %4938 = vmatpush1.msra.mxu1 %v8909_v53  ;;  %v8911_v13 = vld [vmem:[#allocation2 + $0x120] sm:$0xff]  ;;  %v11052_v30 = vadd.f32 %v10976_v22, %v4155_v21  ;;  %v8918_v28 = vld [vmem:[#allocation2 + $0xc8] sm:$0xff]  ;;  %v12176_v41 = vld [vmem:[#allocation47_spill] sm:$0xff] }
 0x600   : > { %v11038_v3 = vadd.f32 %v10983_v37, %v4156_v35  ;;  %v4205_v42 = vrot.slane %v11025_v56, 4  ;;  %4939 = vmatprep.subr.mxu1 %v8910_v55  ;;  %v11043_v5 = vadd.f32 %v10990_v38, %v4157_v24  ;;  %v11047_v23 = vadd.f32 %v10997_v8, %v4158_v9  ;;  %v8913_v38 = vld [vmem:[#allocation2 + $0x108] sm:$0xff]  ;;  %v8921_v40 = vld [vmem:[#allocation2 + $0x160] sm:$0xff]  ;;  %v8923_v35 = vld [vmem:[#allocation2 + $0x98] sm:$0xff] }
 0x601   : > { %v4206_v25 = vrot.slane %v11028_v36, 3  ;;  %v4208_v39 = vrot.slane %v11032_v11, 2  ;;  %4940 = vmatpush1.msra.mxu1 %v8911_v13  ;;  %v4210_v37 = vrot.slane %v11035_v45, 1  ;;  %v8922_v44 = vld [vmem:[#allocation2 + $0xa8] sm:$0xff]  ;;  %v8925_v24 = vld [vmem:[#allocation2 + $0x90] sm:$0xff]  ;;  %v8926_v9 = vld [vmem:[#allocation2 + $0x80] sm:$0xff] }
 0x602   : > { %12175 = vst [vmem:[#allocation50_spill] sm:$0xff] %v11047_v23  ;;  %4941 = vmatprep.subr.mxu1 %v8912_v50  ;;  %v4213_v52 = vrot.slane %v11038_v3, 7  ;;  %v4215_v27 = vrot.slane %v11043_v5, 6  ;;  %v4217_v10 = vrot.slane %v11047_v23, 5  ;;  %v8927_v43 = vld [vmem:[#allocation2 + $0x130] sm:$0xff]  ;;  %v8928_v21 = vld [vmem:[#allocation2 + $0x78] sm:$0xff] }
 0x603   : > { %v4207_v7 = vsel %vm1337_vm2, %v4206_v25, %v4205_v42  ;;  %4942 = vmatpush1.msra.mxu1 %v8913_v38  ;;  %v8929_v53 = vld [vmem:[#allocation2 + $0x68] sm:$0xff]  ;;  %v8930_v42 = vld [vmem:[#allocation2 + $0x118] sm:$0xff]  ;;  %v8931_v25 = vld [vmem:[#allocation2 + $0x60] sm:$0xff] }
 0x604   : > { %v4209_v48 = vsel %vm1340_vm3, %v4208_v39, %v4207_v7  ;;  %4943 = vmatprep.subr.mxu1 %v8914_v47  ;;  %v8932_v55 = vld [vmem:[#allocation2 + $0x50] sm:$0xff]  ;;  %v8933_v39 = vld [vmem:[#allocation2 + $0x100] sm:$0xff]  ;;  %v8934_v13 = vld [vmem:[#allocation2 + $0x48] sm:$0xff] }
 0x605   : > { %v4211_v16 = vsel %vm1343_vm4, %v4210_v37, %v4209_v48  ;;  %4944 = vmatpush1.msra.mxu1 %v8915_v18  ;;  %v8935_v7 = vld [vmem:[#allocation2 + $0x38] sm:$0xff]  ;;  %v8936_v37 = vld [vmem:[#allocation2 + $0x30] sm:$0xff]  ;;  %v8937_v50 = vld [vmem:[#allocation2 + $0xe8] sm:$0xff] }
 0x606   : > { %v4212_v8 = vsel %vm1346_vm5, %v11052_v30, %v4211_v16  ;;  %4945 = vmatprep.subr.mxu1 %v8916_v4  ;;  %v8938_v48 = vld [vmem:[#allocation2 + $0x20] sm:$0xff]  ;;  %v8939_v38 = vld [vmem:[#allocation2 + $0x18] sm:$0xff]  ;;  %v8940_v16 = vld [vmem:[#allocation2 + $0xd0] sm:$0xff] }
 0x607   : > { %v4214_v22 = vsel %vm1349_vm6, %v4213_v52, %v4212_v8  ;;  %4946 = vmatpush1.msra.mxu1 %v8917_v62  ;;  %v8941_v52 = vld [vmem:[#allocation2 + $0x8] sm:$0xff]  ;;  %v8942_v47 = vld [vmem:[#allocation2] sm:$0xff]  ;;  %v8943_v8 = vld [vmem:[#allocation2 + $0xb8] sm:$0xff] }
 0x608   : > { %v4216_v14 = vsel %vm1352_vm7, %v4215_v27, %v4214_v22  ;;  %4947 = vmatprep.subr.mxu1 %v8918_v28  ;;  %v8944_v27 = vld [vmem:[#allocation2 + $0x170] sm:$0xff]  ;;  %v8945_v18 = vld [vmem:[#allocation2 + $0xa0] sm:$0xff]  ;;  %v8946_v22 = vld [vmem:[#allocation2 + $0x88] sm:$0xff] }
 0x609   : > { %v4218_v54 = vsel %vm1355_vm8, %v4217_v10, %v4216_v14  ;;  %4948 = vmatpush1.msra.mxu1 %v8919_v29  ;;  %v8947_v10 = vld [vmem:[#allocation2 + $0x70] sm:$0xff]  ;;  %v8948_v4 = vld [vmem:[#allocation2 + $0x58] sm:$0xff]  ;;  %v8949_v14 = vld [vmem:[#allocation2 + $0x40] sm:$0xff] }
 0x60a   : > { %4292 = vmatmul.mubr.f32.gmra.mxu1 %v4218_v54  ;;  %7266 = vmatmul.mubr.f32.vlgmr.msra.gmra.mxu0 %v4218_v54  ;;  %v8950_v62 = vld [vmem:[#allocation2 + $0x28] sm:$0xff]  ;;  %v8951_v54 = vld [vmem:[#allocation2 + $0x10] sm:$0xff]  ;;  %v11066_v28 = vld [vmem:[#allocation2 + $0x178] sm:$0xff] }
 0x60b   : > { %7269 = vmatpush3.msra.mxu0 %v12176_v41  ;;  %4949 = vmatprep.subr.mxu1 %v8920_v49  ;;  %12177 = vst [vmem:[#allocation51_spill] sm:$0xff] %v11066_v28 }
 0x60c   : > { %7270 = vmatprep.subr.mxu0 %v8921_v40  ;;  %4950 = vmatpush1.msra.mxu1 %v8922_v44 }
 0x60d   : > { %7271 = vmatpush3.msra.mxu0 %v8921_v40  ;;  %4951 = vmatprep.subr.mxu1 %v8923_v35 }
 0x60e   : > { %7272 = vmatprep.subr.mxu0 %v8924_v57  ;;  %4952 = vmatpush1.msra.mxu1 %v8925_v24 }
 0x60f   : > { %7273 = vmatpush3.msra.mxu0 %v8924_v57  ;;  %4953 = vmatprep.subr.mxu1 %v8926_v9  ;;  %v12178_v9 = vld [vmem:[#allocation18_spill] sm:$0xff] }
 0x610   : > { %7274 = vmatprep.subr.mxu0 %v8927_v43  ;;  %4954 = vmatpush1.msra.mxu1 %v8928_v21  ;;  %v12179_v21 = vld [vmem:[#allocation8_spill] sm:$0xff] }
 0x611   : > { %7275 = vmatpush3.msra.mxu0 %v8927_v43  ;;  %4955 = vmatprep.subr.mxu1 %v8929_v53 }
 0x612   : > { %7276 = vmatprep.subr.mxu0 %v8930_v42  ;;  %4956 = vmatpush1.msra.mxu1 %v8931_v25 }
 0x613   : > { %7277 = vmatpush3.msra.mxu0 %v8930_v42  ;;  %4957 = vmatprep.subr.mxu1 %v8932_v55  ;;  %v12180_v42 = vld [vmem:[#allocation10_spill] sm:$0xff]  ;;  %v12181_v55 = vld [vmem:[#allocation12_spill] sm:$0xff] }
 0x614   : > { %7278 = vmatprep.subr.mxu0 %v8933_v39  ;;  %4958 = vmatpush1.msra.mxu1 %v8934_v13  ;;  %v12182_v13 = vld [vmem:[#allocation14_spill] sm:$0xff] }
 0x615   : > { %4997 = vmatprep.mubr.f32.mxu1 %v12174_v61  ;;  %4959 = vmatprep.subr.mxu1 %v8935_v7 }
 0x616   : > { %7279 = vmatpush3.msra.mxu0 %v8933_v39  ;;  %4960 = vmatpush1.msra.mxu1 %v8936_v37  ;;  %v12183_v37 = vld [vmem:[#allocation16_spill] sm:$0xff] }
 0x617   : > { %7280 = vmatprep.subr.mxu0 %v8937_v50  ;;  %4961 = vmatprep.subr.mxu1 %v8938_v48  ;;  %v12184_v48 = vld [vmem:[#allocation20_spill] sm:$0xff] }
 0x618   : > { %7281 = vmatpush3.msra.mxu0 %v8937_v50  ;;  %4962 = vmatpush1.msra.mxu1 %v8939_v38 }
 0x619   : > { %7282 = vmatprep.subr.mxu0 %v8940_v16  ;;  %4963 = vmatprep.subr.mxu1 %v8941_v52 }
 0x61a   : > { %7283 = vmatpush3.msra.mxu0 %v8940_v16  ;;  %4964 = vmatpush1.msra.mxu1 %v8942_v47  ;;  %v12185_v47 = vld [vmem:[#allocation21_spill] sm:$0xff] }
 0x61b   : > { %7284 = vmatprep.subr.mxu0 %v8943_v8  ;;  %5645 = vmatprep.subr.mxu1 %v8944_v27 }
 0x61c   : > { %7285 = vmatpush3.msra.mxu0 %v8943_v8 }
 0x61d   : > { %7286 = vmatprep.subr.mxu0 %v8945_v18 }
 0x61e   : > { %7287 = vmatpush3.msra.mxu0 %v8945_v18 }
 0x61f   : > { %7288 = vmatprep.subr.mxu0 %v8946_v22 }
 0x620   : > { %7289 = vmatpush3.msra.mxu0 %v8946_v22 }
 0x621   : > { %7290 = vmatprep.subr.mxu0 %v8947_v10 }
 0x622   : > { %7291 = vmatpush3.msra.mxu0 %v8947_v10 }
 0x623   : > { %7292 = vmatprep.subr.mxu0 %v8948_v4 }
 0x624   : > { %7293 = vmatpush3.msra.mxu0 %v8948_v4 }
 0x625   : > { %7294 = vmatprep.subr.mxu0 %v8949_v14 }
 0x626   : > { %7295 = vmatpush3.msra.mxu0 %v8949_v14 }
 0x627   : > { %7296 = vmatprep.subr.mxu0 %v8950_v62 }
 0x628   : > { %7297 = vmatpush3.msra.mxu0 %v8950_v62 }
 0x629   : > { %7298 = vmatprep.subr.mxu0 %v8951_v54 }
 0x62a   : > { %7299 = vmatpush3.msra.mxu0 %v8951_v54 }
 0x62b   : > { %7303 = vmatprep.subr.mxu0 %v11066_v28 }
 0x6ba   : > { %v4287_v29 = vpop.f32.mrf.mxu1 }
 0x6bb   : > { %v4375_v41 = vrot.slane %v4287_v29, 3  ;;  %v4376_v49 = vrot.slane %v4287_v29, 4  ;;  %v4377_v40 = vrot.slane %v4287_v29, 5  ;;  %v4378_v44 = vrot.slane %v4287_v29, 6 }
 0x6bc   : > { %v4379_v35 = vrot.slane %v4287_v29, 7  ;;  %v4380_v57 = vrot.slane %v4287_v29, 1  ;;  %v4381_v24 = vrot.slane %v4287_v29, 2  ;;  %v4410_v43 = vadd.f32 %v4287_v29, %v12178_v9  ;;  %v4289_v52 = vpop.f32.mrf.mxu1 }
 0x6bd   : > { %v4405_v53 = vadd.f32 %v4375_v41, %v12179_v21  ;;  %v4406_v25 = vadd.f32 %v4376_v49, %v12180_v42  ;;  %v4407_v39 = vadd.f32 %v4377_v40, %v12181_v55  ;;  %v4408_v7 = vadd.f32 %v4378_v44, %v12182_v13 }
 0x6be   : > { %v4409_v50 = vadd.f32 %v4379_v35, %v12183_v37  ;;  %v4411_v38 = vadd.f32 %v4380_v57, %v12184_v48  ;;  %v6755_v16 = vmul.f32 -1.442695, %v4410_v43  ;;  %v4412_v8 = vadd.f32 %v4381_v24, %v12185_v47  ;;  %v12186_v35 = vld [vmem:[#allocation9_spill] sm:$0xff]  ;;  %v12187_v24 = vld [vmem:[#allocation11_spill] sm:$0xff] }
 0x6bf   : > { %v6750_v27 = vmul.f32 -1.442695, %v4405_v53  ;;  %v6751_v18 = vmul.f32 -1.442695, %v4406_v25  ;;  %v6752_v22 = vmul.f32 -1.442695, %v4407_v39 }
 0x6c0   : > { %v6753_v10 = vmul.f32 -1.442695, %v4408_v7  ;;  %v6754_v4 = vmul.f32 -1.442695, %v4409_v50  ;;  %8229 = vpow2.f32 %v6755_v16  ;;  %v6756_v14 = vmul.f32 -1.442695, %v4411_v38 }
 0x6c1   : > { %8231 = vpow2.f32 %v6750_v27  ;;  %v4519_v62 = vrot.slane %v4289_v52, 3  ;;  %v4520_v54 = vrot.slane %v4289_v52, 4  ;;  %v4521_v29 = vrot.slane %v4289_v52, 5  ;;  %v12188_v53 = vld [vmem:[#allocation13_spill] sm:$0xff]  ;;  %v12189_v39 = vld [vmem:[#allocation15_spill] sm:$0xff] }
 0x6c2   : > { %8233 = vpow2.f32 %v6751_v18  ;;  %v4522_v41 = vrot.slane %v4289_v52, 6  ;;  %v4523_v49 = vrot.slane %v4289_v52, 7  ;;  %v6757_v40 = vmul.f32 -1.442695, %v4412_v8  ;;  %v12190_v38 = vld [vmem:[#allocation17_spill] sm:$0xff]  ;;  %v12191_v27 = vld [vmem:[#allocation19_spill] sm:$0xff] }
 0x6c3   : > { %8235 = vpow2.f32 %v6752_v22  ;;  %v4524_v44 = vrot.slane %v4289_v52, 1  ;;  %v4549_v57 = vadd.f32 %v4519_v62, %v12186_v35  ;;  %v4550_v43 = vadd.f32 %v4520_v54, %v12187_v24  ;;  %v12192_v62 = vld [vmem:[#allocation22_spill] sm:$0xff]  ;;  %v12193_v24 = vld [vmem:[#allocation23_spill] sm:$0xff] }
 0x6c4   : > { %8237 = vpow2.f32 %v6753_v10  ;;  %v4551_v25 = vadd.f32 %v4521_v29, %v12188_v53  ;;  %v4552_v7 = vadd.f32 %v4522_v41, %v12189_v39  ;;  %v4525_v50 = vrot.slane %v4289_v52, 2 }
 0x6c5   : > { %8239 = vpow2.f32 %v6754_v4  ;;  %v4553_v16 = vadd.f32 %v4523_v49, %v12190_v38  ;;  %v4554_v18 = vadd.f32 %v4289_v52, %v12191_v27  ;;  %v6766_v47 = vmul.f32 -1.442695, %v4549_v57 }
 0x6c6   : > { %8241 = vpow2.f32 %v6756_v14  ;;  %v6767_v22 = vmul.f32 -1.442695, %v4550_v43  ;;  %v6768_v8 = vmul.f32 -1.442695, %v4551_v25  ;;  %v6769_v9 = vmul.f32 -1.442695, %v4552_v7 }
 0x6c7   : > { %8243 = vpow2.f32 %v6757_v40  ;;  %v4555_v10 = vadd.f32 %v4524_v44, %v12192_v62  ;;  %v6770_v54 = vmul.f32 -1.442695, %v4553_v16  ;;  %v4556_v29 = vadd.f32 %v4525_v50, %v12193_v24  ;;  %v12194_v24 = vld [vmem:[#allocation24_spill] sm:$0xff] }
 0x6c8   : > { %8245 = vpow2.f32 %v6766_v47  ;;  %v6771_v41 = vmul.f32 -1.442695, %v4554_v18 }
 0x6c9   : > { %8247 = vpow2.f32 %v6767_v22  ;;  %v6772_v4 = vmul.f32 -1.442695, %v4555_v10  ;;  %v6773_v52 = vmul.f32 -1.442695, %v4556_v29 }
 0x6ca   : > { %8249 = vpow2.f32 %v6768_v8  ;;  %v4293_v50 = vpop.f32.mrf.mxu1 }
 0x6cb   : > { %8251 = vpow2.f32 %v6769_v9  ;;  %v4387_v38 = vrot.slane %v4293_v50, 1 }
 0x6cc   : > { %8253 = vpow2.f32 %v6770_v54  ;;  %v4382_v54 = vrot.slane %v4293_v50, 3  ;;  %v11087_v27 = vpop.f32.mrf.mxu1 }
 0x6cd   : > { %v8230_v49 = vpop.eup %8229  ;;  %8255 = vpow2.f32 %v6771_v41 }
 0x6ce   : > { %v8232_v14 = vpop.eup %8231  ;;  %v4474_v57 = vadd.f32 1.0, %v8230_v49  ;;  %8257 = vpow2.f32 %v6772_v4  ;;  %v4383_v49 = vrot.slane %v4293_v50, 4 }
 0x6cf   : > { %v8234_v43 = vpop.eup %8233  ;;  %v4469_v40 = vadd.f32 1.0, %v8232_v14  ;;  %8259 = vpow2.f32 %v6773_v52 }
 0x6d0   : > { %v8236_v25 = vpop.eup %8235  ;;  %v4470_v7 = vadd.f32 1.0, %v8234_v43  ;;  %8261 = vrcp.f32 %v4474_v57  ;;  %v4384_v43 = vrot.slane %v4293_v50, 5 }
 0x6d1   : > { %v8238_v47 = vpop.eup %8237  ;;  %v4471_v44 = vadd.f32 1.0, %v8236_v25  ;;  %8263 = vrcp.f32 %v4469_v40  ;;  %v4386_v40 = vrot.slane %v4293_v50, 7 }
 0x6d2   : > { %v8240_v16 = vpop.eup %8239  ;;  %v4472_v18 = vadd.f32 1.0, %v8238_v47  ;;  %8265 = vrcp.f32 %v4470_v7  ;;  %v4385_v47 = vrot.slane %v4293_v50, 6 }
 0x6d3   : > { %v8242_v9 = vpop.eup %8241  ;;  %v4473_v22 = vadd.f32 1.0, %v8240_v16  ;;  %8267 = vrcp.f32 %v4471_v44 }
 0x6d4   : > { %v8244_v8 = vpop.eup %8243  ;;  %v4475_v10 = vadd.f32 1.0, %v8242_v9  ;;  %8269 = vrcp.f32 %v4472_v18  ;;  %v4413_v9 = vadd.f32 %v4382_v54, %v12194_v24  ;;  %v12198_v54 = vld [vmem:[#allocation32_spill] sm:$0xff] }
 0x6d5   : > { %v8246_v29 = vpop.eup %8245  ;;  %v4476_v41 = vadd.f32 1.0, %v8244_v8  ;;  %8271 = vrcp.f32 %v4473_v22  ;;  %v12195_v8 = vld [vmem:[#allocation26_spill] sm:$0xff]  ;;  %v12196_v22 = vld [vmem:[#allocation28_spill] sm:$0xff]  ;;  %v4417_v24 = vadd.f32 %v4386_v40, %v12198_v54 }
 0x6d6   : > { %v8248_v14 = vpop.eup %8247  ;;  %v4613_v4 = vadd.f32 1.0, %v8246_v29  ;;  %8273 = vrcp.f32 %v4475_v10  ;;  %v4414_v44 = vadd.f32 %v4383_v49, %v12195_v8  ;;  %v4388_v10 = vrot.slane %v4293_v50, 2  ;;  %v12199_v8 = vld [vmem:[#allocation34_spill] sm:$0xff]  ;;  %v12201_v40 = vld [vmem:[#allocation36_spill] sm:$0xff] }
 0x6d7   : > { %v8250_v52 = vpop.eup %8249  ;;  %v4614_v25 = vadd.f32 1.0, %v8248_v14  ;;  %8275 = vrcp.f32 %v4476_v41  ;;  %v4415_v14 = vadd.f32 %v4384_v43, %v12196_v22  ;;  %v6758_v41 = vmul.f32 -1.442695, %v4413_v9  ;;  %v12200_v43 = vld [vmem:[#allocation35_spill] sm:$0xff] }
 0x6d8   : > { %v8252_v57 = vpop.eup %8251  ;;  %v4615_v16 = vadd.f32 1.0, %v8250_v52  ;;  %8277 = vrcp.f32 %v4613_v4  ;;  %v12197_v52 = vld [vmem:[#allocation30_spill] sm:$0xff]  ;;  %v4418_v35 = vadd.f32 %v4293_v50, %v12199_v8  ;;  %v4527_v4 = vrot.slane %v11087_v27, 4 }
 0x6d9   : > { %v8254_v7 = vpop.eup %8253  ;;  %v4616_v62 = vadd.f32 1.0, %v8252_v57  ;;  %8279 = vrcp.f32 %v4614_v25  ;;  %v4416_v53 = vadd.f32 %v4385_v47, %v12197_v52  ;;  %v4526_v57 = vrot.slane %v11087_v27, 3 }
 0x6da   : > { %v8256_v18 = vpop.eup %8255  ;;  %v4617_v29 = vadd.f32 1.0, %v8254_v7  ;;  %8281 = vrcp.f32 %v4615_v16  ;;  %v6759_v7 = vmul.f32 -1.442695, %v4414_v44  ;;  %v4419_v25 = vadd.f32 %v4387_v38, %v12200_v43  ;;  %v12202_v44 = vld [vmem:[#allocation25_spill] sm:$0xff] }
 0x6db   : > { %v4618_v39 = vadd.f32 1.0, %v8256_v18  ;;  %v8258_v49 = vpop.eup %8257  ;;  %8283 = vrcp.f32 %v4616_v62  ;;  %v6760_v18 = vmul.f32 -1.442695, %v4415_v14  ;;  %v4528_v47 = vrot.slane %v11087_v27, 5  ;;  %v12203_v14 = vld [vmem:[#allocation27_spill] sm:$0xff] }
 0x6dc   : > { %v8260_v37 = vpop.eup %8259  ;;  %8285 = vrcp.f32 %v4617_v29  ;;  %v4420_v9 = vadd.f32 %v4388_v10, %v12201_v40  ;;  %v6761_v54 = vmul.f32 -1.442695, %v4416_v53  ;;  %v4529_v62 = vrot.slane %v11087_v27, 6  ;;  %v12204_v10 = vld [vmem:[#allocation29_spill] sm:$0xff] }
 0x6dd   : > { %v11097_v16 = vpop.eup %8261  ;;  %8287 = vrcp.f32 %v4618_v39  ;;  %v6762_v50 = vmul.f32 -1.442695, %v4417_v24  ;;  %v4557_v8 = vadd.f32 %v4526_v57, %v12202_v44  ;;  %v6763_v38 = vmul.f32 -1.442695, %v4418_v35 }
 0x6de   : > { %v11101_v52 = vpop.eup %8263  ;;  %8289 = vpow2.f32 %v6758_v41  ;;  %v4558_v43 = vadd.f32 %v4527_v4, %v12203_v14  ;;  %v6764_v39 = vmul.f32 -1.442695, %v4419_v25  ;;  %v4530_v53 = vrot.slane %v11087_v27, 7  ;;  %v12205_v41 = vld [vmem:[#allocation31_spill] sm:$0xff]  ;;  %v12206_v25 = vld [vmem:[#allocation33_spill] sm:$0xff] }
 0x6df   : > { %v11104_v29 = vpop.eup %8265  ;;  %8291 = vpow2.f32 %v6759_v7  ;;  %v4559_v40 = vadd.f32 %v4528_v47, %v12204_v10  ;;  %v6765_v24 = vmul.f32 -1.442695, %v4420_v9  ;;  %v4560_v57 = vadd.f32 %v4529_v62, %v12205_v41 }
 0x6e0   : > { %v11107_v22 = vpop.eup %8267  ;;  %8293 = vpow2.f32 %v6760_v18  ;;  %v6774_v35 = vmul.f32 -1.442695, %v4557_v8  ;;  %v6775_v4 = vmul.f32 -1.442695, %v4558_v43  ;;  %v4561_v14 = vadd.f32 %v4530_v53, %v12206_v25 }
 0x6e1   : > { %v11111_v13 = vpop.eup %8269  ;;  %8295 = vpow2.f32 %v6761_v54  ;;  %v6776_v47 = vmul.f32 -1.442695, %v4559_v40  ;;  %v12207_v54 = vld [vmem:[#allocation41_spill] sm:$0xff]  ;;  %v6777_v62 = vmul.f32 -1.442695, %v4560_v57  ;;  %v4619_v8 = vadd.f32 1.0, %v8258_v49 }
 0x6e2   : > { %v11114_v44 = vpop.eup %8271  ;;  %8297 = vpow2.f32 %v6762_v50  ;;  %v4562_v9 = vadd.f32 %v11087_v27, %v12207_v54  ;;  %v4620_v43 = vadd.f32 1.0, %v8260_v37  ;;  %v6778_v40 = vmul.f32 -1.442695, %v4561_v14 }
 0x6e3   : > { %v11116_v7 = vpop.eup %8273  ;;  %8299 = vpow2.f32 %v6763_v38  ;;  %v11129_v38 = vpop.f32.mrf.mxu0  ;;  %v4531_v49 = vrot.slane %v11087_v27, 1  ;;  %v4532_v37 = vrot.slane %v11087_v27, 2 }
 0x6e4   : > { %v11118_v18 = vpop.eup %8275  ;;  %8301 = vpow2.f32 %v6764_v39 }
 0x6e5   : > { %v11121_v10 = vpop.eup %8277  ;;  %8303 = vpow2.f32 %v6765_v24  ;;  %v6779_v24 = vmul.f32 -1.442695, %v4562_v9  ;;  %v12208_v9 = vld [vmem:[#allocation43_spill] sm:$0xff]  ;;  %v4564_v27 = vadd.f32 %v4532_v37, %v12078_v63 }
 0x6e6   : > { %v11125_v41 = vpop.eup %8279  ;;  %8305 = vpow2.f32 %v6774_v35  ;;  %v4364_v35 = vpop.f32.mrf.mxu0 }
 0x6e7   : > { %v11127_v50 = vpop.eup %8281  ;;  %8307 = vpow2.f32 %v6775_v4 }
 0x6e8   : > { %v11131_v39 = vpop.eup %8283  ;;  %8309 = vpow2.f32 %v6776_v47 }
 0x6e9   : > { %v11133_v53 = vpop.eup %8285  ;;  %8311 = vpow2.f32 %v6777_v62  ;;  %v4563_v62 = vadd.f32 %v4531_v49, %v12208_v9 }
 0x6ea   : > { %v11135_v54 = vpop.eup %8287  ;;  %8313 = vrcp.f32 %v4619_v8  ;;  %v8953_v8 = vld [vmem:[%s11829_s4] ss:$0 sm:$0xff] }
 0x6eb   : > { %v8290_v57 = vpop.eup %8289  ;;  %8315 = vrcp.f32 %v4620_v43  ;;  %v4661_v21 = vadd.f32 %v8953_v8, %v4364_v35  ;;  %v6780_v49 = vmul.f32 -1.442695, %v4563_v62  ;;  %v6781_v35 = vmul.f32 -1.442695, %v4564_v27 }
 0x6ec   : > { %v8292_v25 = vpop.eup %8291  ;;  %v4477_v4 = vadd.f32 1.0, %v8290_v57  ;;  %8317 = vpow2.f32 %v6778_v40 }
 0x6ed   : > { %v8294_v55 = vpop.eup %8293  ;;  %v4478_v47 = vadd.f32 1.0, %v8292_v25  ;;  %8319 = vpow2.f32 %v6779_v24  ;;  %v4665_v9 = vrot.slane %v4661_v21, 3  ;;  %v4666_v23 = vrot.slane %v4661_v21, 4 }
 0x6ee   : > { %v8296_v14 = vpop.eup %8295  ;;  %v4479_v42 = vadd.f32 1.0, %v8294_v55  ;;  %8321 = vrcp.f32 %v4477_v4  ;;  %v4667_v37 = vrot.slane %v4661_v21, 5  ;;  %v4669_v63 = vrot.slane %v4661_v21, 7 }
 0x6ef   : > { %v8298_v43 = vpop.eup %8297  ;;  %v4480_v48 = vadd.f32 1.0, %v8296_v14  ;;  %8323 = vrcp.f32 %v4478_v47 }
 0x6f0   : > { %v8300_v57 = vpop.eup %8299  ;;  %v4481_v40 = vadd.f32 1.0, %v8298_v43  ;;  %8325 = vrcp.f32 %v4479_v42  ;;  %v4695_v43 = vmul.f32 %v11101_v52, %v4665_v9  ;;  %v4670_v9 = vrot.slane %v4661_v21, 1 }
 0x6f1   : > { %v8302_v25 = vpop.eup %8301  ;;  %v4482_v24 = vadd.f32 1.0, %v8300_v57  ;;  %8327 = vrcp.f32 %v4480_v48  ;;  %v4668_v48 = vrot.slane %v4661_v21, 6 }
 0x6f2   : > { %v8304_v55 = vpop.eup %8303  ;;  %v4483_v4 = vadd.f32 1.0, %v8302_v25  ;;  %8329 = vrcp.f32 %v4481_v40  ;;  %v4696_v25 = vmul.f32 %v11104_v29, %v4666_v23  ;;  %v4699_v23 = vmul.f32 %v11114_v44, %v4669_v63 }
 0x6f3   : > { %v8306_v28 = vpop.eup %8305  ;;  %v4484_v61 = vadd.f32 1.0, %v8304_v55  ;;  %8331 = vrcp.f32 %v4482_v24  ;;  %v4697_v24 = vmul.f32 %v11107_v22, %v4667_v37  ;;  %v11150_v55 = vadd.f32 %v8953_v8, %v11129_v38 }
 0x6f4   : > { %v8308_v14 = vpop.eup %8307  ;;  %8333 = vrcp.f32 %v4483_v4  ;;  %v4621_v47 = vadd.f32 1.0, %v8306_v28  ;;  %v4698_v52 = vmul.f32 %v11111_v13, %v4668_v48  ;;  %v4711_v29 = vadd.f32 %v4695_v43, %v9822_v6 }
 0x6f5   : > { %v8310_v42 = vpop.eup %8309  ;;  %8335 = vrcp.f32 %v4484_v61  ;;  %v4622_v57 = vadd.f32 1.0, %v8308_v14  ;;  %v4712_v22 = vadd.f32 %v4696_v25, %v9828_v32  ;;  %v4700_v38 = vmul.f32 %v11097_v16, %v4661_v21 }
 0x6f6   : > { %v8312_v40 = vpop.eup %8311  ;;  %8337 = vpow2.f32 %v6780_v49  ;;  %v4623_v62 = vadd.f32 1.0, %v8310_v42  ;;  %v4671_v49 = vrot.slane %v4661_v21, 2  ;;  %v4701_v13 = vmul.f32 %v11116_v7, %v4670_v9 }
 0x6f7   : > { %v11147_v27 = vpop.eup %8313  ;;  %8339 = vpow2.f32 %v6781_v35  ;;  %v4624_v28 = vadd.f32 1.0, %v8312_v40  ;;  %v4713_v35 = vadd.f32 %v4697_v24, %v12030_v51  ;;  %v4714_v63 = vadd.f32 %v4698_v52, %v9845_v59 }
 0x6f8   : > { %v11153_v61 = vpop.eup %8315  ;;  %8341 = vrcp.f32 %v4621_v47  ;;  %v4702_v47 = vmul.f32 %v11118_v18, %v4671_v49  ;;  %v4672_v37 = vrot.slane %v11150_v55, 3  ;;  %v4715_v43 = vadd.f32 %v4699_v23, %v9857_v0 }
 0x6f9   : > { %v8318_v4 = vpop.eup %8317  ;;  %8343 = vrcp.f32 %v4622_v57  ;;  %v4673_v21 = vrot.slane %v11150_v55, 4  ;;  %v4716_v16 = vadd.f32 %v4700_v38, %v12079_v34  ;;  %v4674_v7 = vrot.slane %v11150_v55, 5 }
 0x6fa   : > { %v8320_v8 = vpop.eup %8319  ;;  %8345 = vrcp.f32 %v4623_v62  ;;  %v4717_v18 = vadd.f32 %v4701_v13, %v12031_v33  ;;  %v4675_v40 = vrot.slane %v11150_v55, 6  ;;  %v4718_v24 = vadd.f32 %v4702_v47, %v12080_v31 }
 0x6fb   : > { %v8322_v14 = vpop.eup %8321  ;;  %8347 = vrcp.f32 %v4624_v28  ;;  %v4676_v52 = vrot.slane %v11150_v55, 7  ;;  %v4625_v23 = vadd.f32 1.0, %v8318_v4  ;;  %v4678_v47 = vrot.slane %v11150_v55, 2 }
 0x6fc   : > { %v8324_v44 = vpop.eup %8323  ;;  %8349 = vtanh.f32 %v4711_v29  ;;  %v4703_v48 = vmul.f32 %v8322_v14, %v4672_v37 }
 0x6fd   : > { %v8326_v42 = vpop.eup %8325  ;;  %8351 = vtanh.f32 %v4712_v22  ;;  %v4704_v62 = vmul.f32 %v8324_v44, %v4673_v21  ;;  %v4626_v22 = vadd.f32 1.0, %v8320_v8 }
 0x6fe   : > { %v8328_v57 = vpop.eup %8327  ;;  %8353 = vtanh.f32 %v4713_v35  ;;  %v4705_v9 = vmul.f32 %v8326_v42, %v4674_v7  ;;  %v4677_v35 = vrot.slane %v11150_v55, 1  ;;  %v4719_v14 = vadd.f32 %v4703_v48, %v9875_v17 }
 0x6ff   : > { %v8330_v25 = vpop.eup %8329  ;;  %8355 = vtanh.f32 %v4714_v63  ;;  %v4706_v49 = vmul.f32 %v8328_v57, %v4675_v40  ;;  %v4720_v4 = vadd.f32 %v4704_v62, %v9871_v15  ;;  %v12210_v40 = vld [vmem:[#allocation46_spill] sm:$0xff] }
 0x700   : > { %v8332_v28 = vpop.eup %8331  ;;  %8357 = vtanh.f32 %v4715_v43  ;;  %v4707_v13 = vmul.f32 %v8330_v25, %v4676_v52  ;;  %v4721_v43 = vadd.f32 %v4705_v9, %v9893_v26 }
 0x701   : > { %v8334_v29 = vpop.eup %8333  ;;  %8359 = vtanh.f32 %v4716_v16  ;;  %v4708_v63 = vmul.f32 %v8332_v28, %v11150_v55  ;;  %v4722_v16 = vadd.f32 %v4706_v49, %v9879_v19  ;;  %v12209_v55 = vld [vmem:[#allocation42_spill] sm:$0xff]  ;;  %v12211_v28 = vld [vmem:[#allocation45_spill] sm:$0xff] }
 0x702   : > { %v8336_v38 = vpop.eup %8335  ;;  %8361 = vtanh.f32 %v4717_v18  ;;  %v4709_v8 = vmul.f32 %v8334_v29, %v4677_v35  ;;  %v4723_v7 = vadd.f32 %v4707_v13, %v9915_v12 }
 0x703   : > { %v8338_v44 = vpop.eup %8337  ;;  %8363 = vtanh.f32 %v4718_v24  ;;  %v4710_v21 = vmul.f32 %v8336_v38, %v4678_v47  ;;  %v4724_v18 = vadd.f32 %v4708_v63, %v12209_v55 }
 0x704   : > { %v8340_v37 = vpop.eup %8339  ;;  %8365 = vrcp.f32 %v4625_v23  ;;  %v4725_v62 = vadd.f32 %v4709_v8, %v12210_v40  ;;  %v4627_v23 = vadd.f32 1.0, %v8338_v44 }
 0x705   : > { %v11178_v42 = vpop.eup %8341  ;;  %8367 = vrcp.f32 %v4626_v22  ;;  %v4726_v52 = vadd.f32 %v4710_v21, %v12211_v28  ;;  %v4628_v38 = vadd.f32 1.0, %v8340_v37 }
 0x706   : > { %v11181_v57 = vpop.eup %8343  ;;  %8369 = vtanh.f32 %v4719_v14 }
 0x707   : > { %v11184_v48 = vpop.eup %8345  ;;  %8371 = vtanh.f32 %v4720_v4 }
 0x708   : > { %v11187_v25 = vpop.eup %8347  ;;  %8373 = vtanh.f32 %v4721_v43 }
 0x709   : > { %v8350_v24 = vpop.eup %8349  ;;  %8375 = vtanh.f32 %v4722_v16 }
 0x70a   : > { %v8352_v9 = vpop.eup %8351  ;;  %v4759_v29 = vrot.slane %v8350_v24, 1  ;;  %8377 = vtanh.f32 %v4723_v7 }
 0x70b   : > { %v8354_v22 = vpop.eup %8353  ;;  %v4760_v49 = vrot.slane %v8352_v9, 1  ;;  %8379 = vtanh.f32 %v4724_v18 }
 0x70c   : > { %v8356_v35 = vpop.eup %8355  ;;  %v4761_v13 = vrot.slane %v8354_v22, 1  ;;  %v4791_v14 = vsub.f32 %v10949_v2, %v4759_v29  ;;  %8381 = vtanh.f32 %v4725_v62 }
 0x70d   : > { %v8358_v47 = vpop.eup %8357  ;;  %v4762_v63 = vrot.slane %v8356_v35, 1  ;;  %v4792_v4 = vsub.f32 %v10955_v20, %v4760_v49  ;;  %8383 = vtanh.f32 %v4726_v52 }
 0x70e   : > { %v8360_v8 = vpop.eup %8359  ;;  %v4763_v43 = vrot.slane %v8358_v47, 1  ;;  %v4793_v44 = vsub.f32 %v10960_v58, %v4761_v13  ;;  %v4823_v21 = vrot.slane %v4791_v14, 7  ;;  %8385 = vrcp.f32 %v4627_v23 }
 0x70f   : > { %v8362_v16 = vpop.eup %8361  ;;  %v4764_v7 = vrot.slane %v8360_v8, 1  ;;  %v4794_v37 = vsub.f32 %v10966_v1, %v4762_v63  ;;  %v4824_v18 = vrot.slane %v4792_v4, 7  ;;  %8387 = vrcp.f32 %v4628_v38  ;;  %v12212_v1 = vld [vmem:[#allocation48_spill] sm:$0xff] }
 0x710   : > { %v8364_v28 = vpop.eup %8363  ;;  %v4765_v2 = vrot.slane %v8362_v16, 1  ;;  %v4795_v62 = vsub.f32 %v10972_v60, %v4763_v43  ;;  %v4825_v29 = vrot.slane %v4793_v44, 7  ;;  %v4855_v20 = vmul.f32 %v11121_v10, %v4823_v21  ;;  %v12213_v10 = vld [vmem:[#allocation49_spill] sm:$0xff] }
 0x711   : > { %v11197_v52 = vpop.eup %8365  ;;  %v4766_v49 = vrot.slane %v8364_v28, 1  ;;  %v4796_v58 = vsub.f32 %v10979_v46, %v4764_v7  ;;  %v4826_v13 = vrot.slane %v4794_v37, 7  ;;  %v4856_v23 = vmul.f32 %v11125_v41, %v4824_v18 }
 0x712   : > { %v11201_v14 = vpop.eup %8367  ;;  %v4797_v63 = vsub.f32 %v12212_v1, %v4765_v2  ;;  %v4827_v38 = vrot.slane %v4795_v62, 7  ;;  %v4857_v4 = vmul.f32 %v11127_v50, %v4825_v29  ;;  %v11205_v40 = vadd.f32 %v8350_v24, %v4855_v20 }
 0x713   : > { %v11207_v60 = vpop.eup %8369  ;;  %v4798_v43 = vsub.f32 %v12213_v10, %v4766_v49  ;;  %v4828_v44 = vrot.slane %v4796_v58, 7  ;;  %v4858_v21 = vmul.f32 %v11131_v39, %v4826_v13  ;;  %v11211_v46 = vadd.f32 %v8352_v9, %v4856_v23 }
 0x714   : > { %v11213_v7 = vpop.eup %8371  ;;  %v4829_v41 = vrot.slane %v4797_v63, 7  ;;  %v4859_v37 = vmul.f32 %v11133_v53, %v4827_v38  ;;  %v11216_v18 = vadd.f32 %v8354_v22, %v4857_v4  ;;  %v4903_v50 = vrot.slane %v11205_v40, 5 }
 0x715   : > { %v11219_v24 = vpop.eup %8373  ;;  %v4830_v2 = vrot.slane %v4798_v43, 7  ;;  %v4860_v62 = vmul.f32 %v11135_v54, %v4828_v44  ;;  %v11222_v29 = vadd.f32 %v8356_v35, %v4858_v21  ;;  %v4904_v39 = vrot.slane %v11211_v46, 4 }
 0x716   : > { %v11225_v9 = vpop.eup %8375  ;;  %v4861_v20 = vmul.f32 %v11147_v27, %v4829_v41  ;;  %v11228_v49 = vadd.f32 %v8358_v47, %v4859_v37  ;;  %v4906_v53 = vrot.slane %v11216_v18, 3  ;;  %v4767_v22 = vrot.slane %v11207_v60, 1 }
 0x717   : > { %v11232_v58 = vpop.eup %8377  ;;  %v4862_v13 = vmul.f32 %v11153_v61, %v4830_v2  ;;  %v11235_v23 = vadd.f32 %v8360_v8, %v4860_v62  ;;  %v4905_v54 = vsel %vm1337_vm2, %v4904_v39, %v4903_v50  ;;  %v4908_v35 = vrot.slane %v11222_v29, 2 }
 0x718   : > { %v11239_v1 = vpop.eup %8379  ;;  %v11241_v63 = vadd.f32 %v8362_v16, %v4861_v20  ;;  %v4907_v27 = vsel %vm1340_vm3, %v4906_v53, %v4905_v54  ;;  %v4910_v47 = vrot.slane %v11228_v49, 1  ;;  %v4768_v38 = vrot.slane %v11213_v7, 1 }
 0x719   : > { %v11246_v4 = vpop.eup %8381  ;;  %v11248_v10 = vadd.f32 %v8364_v28, %v4862_v13  ;;  %v4909_v61 = vsel %vm1343_vm4, %v4908_v35, %v4907_v27  ;;  %v4769_v8 = vrot.slane %v11219_v24, 1  ;;  %v4770_v43 = vrot.slane %v11225_v9, 1 }
 0x71a   : > { %12214 = vst [vmem:[#allocation52_spill] sm:$0xff] %v11241_v63  ;;  %v11253_v44 = vpop.eup %8383  ;;  %v4911_v16 = vsel %vm1346_vm5, %v4910_v47, %v4909_v61  ;;  %v4913_v21 = vrot.slane %v11241_v63, 7  ;;  %v4771_v41 = vrot.slane %v11232_v58, 1  ;;  %v4772_v37 = vrot.slane %v11239_v1, 1  ;;  %v12216_v63 = vld [vmem:[#allocation50_spill] sm:$0xff] }
 0x71b   : > { %12215 = vst [vmem:[#allocation53_spill] sm:$0xff] %v11248_v10  ;;  %v8386_v50 = vpop.eup %8385  ;;  %v4912_v28 = vsel %vm1349_vm6, %v11235_v23, %v4911_v16  ;;  %v4915_v2 = vrot.slane %v11248_v10, 6  ;;  %v4773_v62 = vrot.slane %v11246_v4, 1  ;;  %v4774_v39 = vrot.slane %v11253_v44, 1 }
 0x71c   : > { %v8388_v20 = vpop.eup %8387  ;;  %v4914_v53 = vsel %vm1352_vm7, %v4913_v21, %v4912_v28  ;;  %v4799_v13 = vsub.f32 %v11025_v56, %v4767_v22  ;;  %v4800_v54 = vsub.f32 %v11028_v36, %v4768_v38  ;;  %v4801_v35 = vsub.f32 %v11032_v11, %v4769_v8 }
 0x71d   : > { %v4916_v27 = vsel %vm1355_vm8, %v4915_v2, %v4914_v53  ;;  %v4802_v47 = vsub.f32 %v11035_v45, %v4770_v43  ;;  %v4803_v61 = vsub.f32 %v11052_v30, %v4771_v41  ;;  %v4804_v16 = vsub.f32 %v11038_v3, %v4772_v37  ;;  %v8954_v2 = vld [vmem:[#allocation2 + $0x168] sm:$0xff]  ;;  %v8955_v41 = vld [vmem:[#allocation2 + $0x158] sm:$0xff] }
 0x71e   : > { %4998 = vmatmul.mubr.f32.vlgmr.msra.gmra.mxu1 %v4916_v27  ;;  %7300 = vmatprep.mubr.f32.mxu0 %v4916_v27  ;;  %v4805_v10 = vsub.f32 %v11043_v5, %v4773_v62  ;;  %v4806_v21 = vsub.f32 %v12216_v63, %v4774_v39  ;;  %v4831_v28 = vrot.slane %v4799_v13, 7  ;;  %v4832_v56 = vrot.slane %v4800_v54, 7  ;;  %v8956_v62 = vld [vmem:[#allocation2 + $0x150] sm:$0xff] }
 0x71f   : > { %v12217_v22 = vmov 0.0   ;;  %v4833_v36 = vrot.slane %v4801_v35, 7  ;;  %v4834_v11 = vrot.slane %v4802_v47, 7  ;;  %v4835_v38 = vrot.slane %v4803_v61, 7  ;;  %5646 = vmatpush1.msra.mxu1 %v8954_v2  ;;  %v8961_v27 = vld [vmem:[#allocation2 + $0x110] sm:$0xff]  ;;  %v8966_v2 = vld [vmem:[#allocation2 + $0xd8] sm:$0xff] }
 0x720   : > { %5003 = vmatprep.mubr.f32.mxu1 %v12217_v22  ;;  %v4836_v8 = vrot.slane %v4804_v16, 7  ;;  %v4837_v45 = vrot.slane %v4805_v10, 7  ;;  %v4838_v30 = vrot.slane %v4806_v21, 7  ;;  %v4863_v3 = vmul.f32 %v11178_v42, %v4831_v28  ;;  %5647 = vmatprep.subr.mxu1 %v8955_v41  ;;  %v8957_v42 = vld [vmem:[#allocation2 + $0x140] sm:$0xff]  ;;  %v8962_v16 = vld [vmem:[#allocation2 + $0x108] sm:$0xff]  ;;  %v8963_v28 = vld [vmem:[#allocation2 + $0xf8] sm:$0xff] }
 0x721   : > { %v4864_v43 = vmul.f32 %v11181_v57, %v4832_v56  ;;  %v4865_v5 = vmul.f32 %v11184_v48, %v4833_v36  ;;  %v4866_v63 = vmul.f32 %v11187_v25, %v4834_v11  ;;  %v4867_v37 = vmul.f32 %v11197_v52, %v4835_v38  ;;  %5648 = vmatpush1.msra.mxu1 %v8956_v62  ;;  %v8958_v52 = vld [vmem:[#allocation2 + $0x138] sm:$0xff]  ;;  %v8964_v36 = vld [vmem:[#allocation2 + $0xf0] sm:$0xff]  ;;  %v8973_v62 = vld [vmem:[#allocation2 + $0x148] sm:$0xff] }
 0x722   : > { %v4869_v39 = vmul.f32 %v8386_v50, %v4837_v45  ;;  %v4870_v53 = vmul.f32 %v8388_v20, %v4838_v30  ;;  %v11281_v13 = vadd.f32 %v11207_v60, %v4863_v3  ;;  %5649 = vmatprep.subr.mxu1 %v8957_v42  ;;  %v4868_v50 = vmul.f32 %v11201_v14, %v4836_v8  ;;  %v8959_v20 = vld [vmem:[#allocation2 + $0x128] sm:$0xff]  ;;  %v8965_v8 = vld [vmem:[#allocation2 + $0xe0] sm:$0xff]  ;;  %v8969_v41 = vld [vmem:[#allocation2 + $0xb0] sm:$0xff] }
 0x723   : > { %v11284_v10 = vadd.f32 %v11213_v7, %v4864_v43  ;;  %v11287_v57 = vadd.f32 %v11219_v24, %v4865_v5  ;;  %v11290_v48 = vadd.f32 %v11225_v9, %v4866_v63  ;;  %v11293_v25 = vadd.f32 %v11232_v58, %v4867_v37  ;;  %5650 = vmatpush1.msra.mxu1 %v8958_v52  ;;  %v8960_v9 = vld [vmem:[#allocation2 + $0x120] sm:$0xff]  ;;  %v8967_v30 = vld [vmem:[#allocation2 + $0xc8] sm:$0xff]  ;;  %v12220_v43 = vld [vmem:[#allocation51_spill] sm:$0xff] }
 0x724   : > { %v4917_v60 = vrot.slane %v11281_v13, 5  ;;  %5651 = vmatprep.subr.mxu1 %v8959_v20  ;;  %v11299_v54 = vadd.f32 %v11246_v4, %v4869_v39  ;;  %v11303_v58 = vadd.f32 %v11253_v44, %v4870_v53  ;;  %v11310_v4 = vadd.f32 %v11239_v1, %v4868_v50  ;;  %v8968_v3 = vld [vmem:[#allocation2 + $0xc0] sm:$0xff]  ;;  %v8971_v63 = vld [vmem:[#allocation2 + $0xa8] sm:$0xff]  ;;  %v8972_v37 = vld [vmem:[#allocation2 + $0x98] sm:$0xff] }
 0x725   : > { %v4918_v7 = vrot.slane %v11284_v10, 4  ;;  %v4920_v24 = vrot.slane %v11287_v57, 3  ;;  %5652 = vmatpush1.msra.mxu1 %v8960_v9  ;;  %v4922_v14 = vrot.slane %v11290_v48, 2  ;;  %v4924_v61 = vrot.slane %v11293_v25, 1  ;;  %v8970_v5 = vld [vmem:[#allocation2 + $0x160] sm:$0xff]  ;;  %v8974_v39 = vld [vmem:[#allocation2 + $0x90] sm:$0xff] }
 0x726   : > { %12218 = vst [vmem:[#allocation54_spill] sm:$0xff] %v11299_v54  ;;  %12219 = vst [vmem:[#allocation39_spill] sm:$0xff] %v11303_v58  ;;  %5653 = vmatprep.subr.mxu1 %v8961_v27  ;;  %v4927_v56 = vrot.slane %v11299_v54, 7  ;;  %v4929_v38 = vrot.slane %v11303_v58, 6  ;;  %v8975_v53 = vld [vmem:[#allocation2 + $0x80] sm:$0xff]  ;;  %v8976_v42 = vld [vmem:[#allocation2 + $0x130] sm:$0xff] }
 0x727   : > { %v4919_v35 = vsel %vm1337_vm2, %v4918_v7, %v4917_v60  ;;  %5654 = vmatpush1.msra.mxu1 %v8962_v16  ;;  %v8977_v52 = vld [vmem:[#allocation2 + $0x78] sm:$0xff]  ;;  %v8978_v50 = vld [vmem:[#allocation2 + $0x68] sm:$0xff]  ;;  %v8980_v7 = vld [vmem:[#allocation2 + $0x60] sm:$0xff] }
 0x728   : > { %v4921_v47 = vsel %vm1340_vm3, %v4920_v24, %v4919_v35  ;;  %5655 = vmatprep.subr.mxu1 %v8963_v28  ;;  %v8979_v60 = vld [vmem:[#allocation2 + $0x118] sm:$0xff]  ;;  %v8981_v20 = vld [vmem:[#allocation2 + $0x50] sm:$0xff]  ;;  %v8982_v24 = vld [vmem:[#allocation2 + $0x100] sm:$0xff] }
 0x729   : > { %v4923_v21 = vsel %vm1343_vm4, %v4922_v14, %v4921_v47  ;;  %5656 = vmatpush1.msra.mxu1 %v8964_v36  ;;  %v8983_v9 = vld [vmem:[#allocation2 + $0x48] sm:$0xff]  ;;  %v8984_v35 = vld [vmem:[#allocation2 + $0x38] sm:$0xff]  ;;  %v8985_v14 = vld [vmem:[#allocation2 + $0x30] sm:$0xff] }
 0x72a   : > { %v4925_v44 = vsel %vm1346_vm5, %v4924_v61, %v4923_v21  ;;  %5657 = vmatprep.subr.mxu1 %v8965_v8  ;;  %v8986_v27 = vld [vmem:[#allocation2 + $0xe8] sm:$0xff]  ;;  %v8987_v47 = vld [vmem:[#allocation2 + $0x20] sm:$0xff]  ;;  %v8988_v61 = vld [vmem:[#allocation2 + $0x18] sm:$0xff] }
 0x72b   : > { %v4926_v11 = vsel %vm1349_vm6, %v11310_v4, %v4925_v44  ;;  %5658 = vmatpush1.msra.mxu1 %v8966_v2  ;;  %v8989_v16 = vld [vmem:[#allocation2 + $0xd0] sm:$0xff]  ;;  %v8990_v21 = vld [vmem:[#allocation2 + $0x8] sm:$0xff]  ;;  %v8991_v28 = vld [vmem:[#allocation2] sm:$0xff] }
 0x72c   : > { %v4928_v1 = vsel %vm1352_vm7, %v4927_v56, %v4926_v11  ;;  %5659 = vmatprep.subr.mxu1 %v8967_v30  ;;  %v8992_v44 = vld [vmem:[#allocation2 + $0xb8] sm:$0xff]  ;;  %v8993_v56 = vld [vmem:[#allocation2 + $0xa0] sm:$0xff]  ;;  %v8994_v36 = vld [vmem:[#allocation2 + $0x88] sm:$0xff] }
 0x72d   : > { %v4930_v45 = vsel %vm1355_vm8, %v4929_v38, %v4928_v1  ;;  %5660 = vmatpush1.msra.mxu1 %v8968_v3  ;;  %v8995_v11 = vld [vmem:[#allocation2 + $0x70] sm:$0xff]  ;;  %v8996_v38 = vld [vmem:[#allocation2 + $0x58] sm:$0xff]  ;;  %v8997_v8 = vld [vmem:[#allocation2 + $0x40] sm:$0xff] }
 0x72e   : > { %5004 = vmatmul.mubr.f32.gmra.mxu1 %v4930_v45  ;;  %7301 = vmatmul.mubr.f32.vlgmr.msra.gmra.mxu0 %v4930_v45  ;;  %v8998_v1 = vld [vmem:[#allocation2 + $0x28] sm:$0xff]  ;;  %v8999_v2 = vld [vmem:[#allocation2 + $0x10] sm:$0xff] }
 0x72f   : > { %7304 = vmatpush3.msra.mxu0 %v12220_v43  ;;  %5661 = vmatprep.subr.mxu1 %v8969_v41 }
 0x730   : > { %7305 = vmatprep.subr.mxu0 %v8970_v5  ;;  %5662 = vmatpush1.msra.mxu1 %v8971_v63 }
 0x731   : > { %7306 = vmatpush3.msra.mxu0 %v8970_v5  ;;  %5663 = vmatprep.subr.mxu1 %v8972_v37 }
 0x732   : > { %7307 = vmatprep.subr.mxu0 %v8973_v62  ;;  %5664 = vmatpush1.msra.mxu1 %v8974_v39 }
 0x733   : > { %7308 = vmatpush3.msra.mxu0 %v8973_v62  ;;  %5665 = vmatprep.subr.mxu1 %v8975_v53  ;;  %v12221_v62 = vld [vmem:[#allocation20_spill] sm:$0xff] }
 0x734   : > { %7309 = vmatprep.subr.mxu0 %v8976_v42  ;;  %5666 = vmatpush1.msra.mxu1 %v8977_v52  ;;  %v12222_v53 = vld [vmem:[#allocation8_spill] sm:$0xff]  ;;  %v12223_v52 = vld [vmem:[#allocation10_spill] sm:$0xff] }
 0x735   : > { %7310 = vmatpush3.msra.mxu0 %v8976_v42  ;;  %5667 = vmatprep.subr.mxu1 %v8978_v50 }
 0x736   : > { %7311 = vmatprep.subr.mxu0 %v8979_v60  ;;  %5668 = vmatpush1.msra.mxu1 %v8980_v7 }
 0x737   : > { %7312 = vmatpush3.msra.mxu0 %v8979_v60  ;;  %5669 = vmatprep.subr.mxu1 %v8981_v20  ;;  %v12224_v60 = vld [vmem:[#allocation12_spill] sm:$0xff]  ;;  %v12225_v20 = vld [vmem:[#allocation14_spill] sm:$0xff] }
 0x738   : > { %7313 = vmatprep.subr.mxu0 %v8982_v24  ;;  %5670 = vmatpush1.msra.mxu1 %v8983_v9  ;;  %v12226_v9 = vld [vmem:[#allocation16_spill] sm:$0xff] }
 0x739   : > { %5709 = vmatprep.mubr.f32.mxu1 %v12217_v22  ;;  %5671 = vmatprep.subr.mxu1 %v8984_v35 }
 0x73a   : > { %7314 = vmatpush3.msra.mxu0 %v8982_v24  ;;  %5672 = vmatpush1.msra.mxu1 %v8985_v14  ;;  %v12227_v14 = vld [vmem:[#allocation18_spill] sm:$0xff] }
 0x73b   : > { %7315 = vmatprep.subr.mxu0 %v8986_v27  ;;  %5673 = vmatprep.subr.mxu1 %v8987_v47 }
 0x73c   : > { %7316 = vmatpush3.msra.mxu0 %v8986_v27  ;;  %5674 = vmatpush1.msra.mxu1 %v8988_v61 }
 0x73d   : > { %7317 = vmatprep.subr.mxu0 %v8989_v16  ;;  %5675 = vmatprep.subr.mxu1 %v8990_v21 }
 0x73e   : > { %7318 = vmatpush3.msra.mxu0 %v8989_v16  ;;  %5676 = vmatpush1.msra.mxu1 %v8991_v28  ;;  %v12228_v16 = vld [vmem:[#allocation21_spill] sm:$0xff] }
 0x73f   : > { %7319 = vmatprep.subr.mxu0 %v8992_v44 }
 0x740   : > { %7320 = vmatpush3.msra.mxu0 %v8992_v44 }
 0x741   : > { %7321 = vmatprep.subr.mxu0 %v8993_v56 }
 0x742   : > { %7322 = vmatpush3.msra.mxu0 %v8993_v56 }
 0x743   : > { %7323 = vmatprep.subr.mxu0 %v8994_v36 }
 0x744   : > { %7324 = vmatpush3.msra.mxu0 %v8994_v36 }
 0x745   : > { %7325 = vmatprep.subr.mxu0 %v8995_v11 }
 0x746   : > { %7326 = vmatpush3.msra.mxu0 %v8995_v11 }
 0x747   : > { %7327 = vmatprep.subr.mxu0 %v8996_v38 }
 0x748   : > { %7328 = vmatpush3.msra.mxu0 %v8996_v38 }
 0x749   : > { %7329 = vmatprep.subr.mxu0 %v8997_v8 }
 0x74a   : > { %7330 = vmatpush3.msra.mxu0 %v8997_v8 }
 0x74b   : > { %7331 = vmatprep.subr.mxu0 %v8998_v1 }
 0x74c   : > { %7332 = vmatpush3.msra.mxu0 %v8998_v1 }
 0x74d   : > { %7333 = vmatprep.subr.mxu0 %v8999_v2 }
 0x74e   : > { %7334 = vmatpush3.msra.mxu0 %v8999_v2 }
 0x7de   : > { %v4999_v45 = vpop.f32.mrf.mxu1 }
 0x7df   : > { %v5087_v30 = vrot.slane %v4999_v45, 2  ;;  %v5088_v3 = vrot.slane %v4999_v45, 3  ;;  %v5089_v43 = vrot.slane %v4999_v45, 4  ;;  %v5090_v41 = vrot.slane %v4999_v45, 5 }
 0x7e0   : > { %v5091_v5 = vrot.slane %v4999_v45, 6  ;;  %v5092_v63 = vrot.slane %v4999_v45, 7  ;;  %v5093_v37 = vrot.slane %v4999_v45, 1  ;;  %v5123_v39 = vadd.f32 %v4999_v45, %v12221_v62  ;;  %v5001_v61 = vpop.f32.mrf.mxu1 }
 0x7e1   : > { %v5117_v42 = vadd.f32 %v5087_v30, %v12222_v53  ;;  %v5118_v50 = vadd.f32 %v5088_v3, %v12223_v52  ;;  %v5119_v7 = vadd.f32 %v5089_v43, %v12224_v60  ;;  %v5120_v24 = vadd.f32 %v5090_v41, %v12225_v20  ;;  %v12229_v41 = vld [vmem:[#allocation9_spill] sm:$0xff]  ;;  %v12251_v60 = vld [vmem:[#allocation43_spill] sm:$0xff] }
 0x7e2   : > { %v5121_v35 = vadd.f32 %v5091_v5, %v12226_v9  ;;  %v5122_v27 = vadd.f32 %v5092_v63, %v12227_v14  ;;  %v6788_v47 = vmul.f32 -1.442695, %v5123_v39  ;;  %v5124_v21 = vadd.f32 %v5093_v37, %v12228_v16  ;;  %v12230_v63 = vld [vmem:[#allocation11_spill] sm:$0xff]  ;;  %v12231_v39 = vld [vmem:[#allocation13_spill] sm:$0xff] }
 0x7e3   : > { %v6782_v28 = vmul.f32 -1.442695, %v5117_v42  ;;  %v6783_v44 = vmul.f32 -1.442695, %v5118_v50  ;;  %v6784_v56 = vmul.f32 -1.442695, %v5119_v7 }
 0x7e4   : > { %v6785_v36 = vmul.f32 -1.442695, %v5120_v24  ;;  %v6786_v11 = vmul.f32 -1.442695, %v5121_v35  ;;  %8389 = vpow2.f32 %v6788_v47  ;;  %v6787_v38 = vmul.f32 -1.442695, %v5122_v27 }
 0x7e5   : > { %8391 = vpow2.f32 %v6782_v28  ;;  %v5231_v8 = vrot.slane %v5001_v61, 2  ;;  %v5232_v1 = vrot.slane %v5001_v61, 3  ;;  %v5233_v2 = vrot.slane %v5001_v61, 4  ;;  %v12232_v50 = vld [vmem:[#allocation15_spill] sm:$0xff]  ;;  %v12233_v35 = vld [vmem:[#allocation17_spill] sm:$0xff] }
 0x7e6   : > { %8393 = vpow2.f32 %v6783_v44  ;;  %v5234_v45 = vrot.slane %v5001_v61, 5  ;;  %v5235_v30 = vrot.slane %v5001_v61, 6  ;;  %v6789_v3 = vmul.f32 -1.442695, %v5124_v21  ;;  %v12234_v47 = vld [vmem:[#allocation19_spill] sm:$0xff] }
 0x7e7   : > { %8395 = vpow2.f32 %v6784_v56  ;;  %v5236_v43 = vrot.slane %v5001_v61, 7  ;;  %v5261_v5 = vadd.f32 %v5231_v8, %v12229_v41  ;;  %v5262_v37 = vadd.f32 %v5232_v1, %v12230_v63  ;;  %v12235_v8 = vld [vmem:[#allocation22_spill] sm:$0xff]  ;;  %v12236_v63 = vld [vmem:[#allocation23_spill] sm:$0xff] }
 0x7e8   : > { %8397 = vpow2.f32 %v6785_v36  ;;  %v5263_v42 = vadd.f32 %v5233_v2, %v12231_v39  ;;  %v5264_v7 = vadd.f32 %v5234_v45, %v12232_v50  ;;  %v5237_v24 = vrot.slane %v5001_v61, 1 }
 0x7e9   : > { %8399 = vpow2.f32 %v6786_v11  ;;  %v5265_v27 = vadd.f32 %v5235_v30, %v12233_v35  ;;  %v5266_v28 = vadd.f32 %v5236_v43, %v12234_v47  ;;  %v6798_v44 = vmul.f32 -1.442695, %v5261_v5 }
 0x7ea   : > { %8401 = vpow2.f32 %v6787_v38  ;;  %v6799_v56 = vmul.f32 -1.442695, %v5262_v37  ;;  %v6800_v21 = vmul.f32 -1.442695, %v5263_v42  ;;  %v6801_v62 = vmul.f32 -1.442695, %v5264_v7 }
 0x7eb   : > { %8403 = vpow2.f32 %v6789_v3  ;;  %v5267_v36 = vadd.f32 %v5001_v61, %v12235_v8  ;;  %v6802_v1 = vmul.f32 -1.442695, %v5265_v27  ;;  %v5268_v2 = vadd.f32 %v5237_v24, %v12236_v63  ;;  %v12237_v63 = vld [vmem:[#allocation24_spill] sm:$0xff] }
 0x7ec   : > { %8405 = vpow2.f32 %v6798_v44  ;;  %v6803_v45 = vmul.f32 -1.442695, %v5266_v28 }
 0x7ed   : > { %8407 = vpow2.f32 %v6799_v56  ;;  %v6804_v11 = vmul.f32 -1.442695, %v5267_v36  ;;  %v6805_v38 = vmul.f32 -1.442695, %v5268_v2 }
 0x7ee   : > { %8409 = vpow2.f32 %v6800_v21  ;;  %v5005_v24 = vpop.f32.mrf.mxu1 }
 0x7ef   : > { %8411 = vpow2.f32 %v6801_v62 }
 0x7f0   : > { %8413 = vpow2.f32 %v6802_v1  ;;  %v5094_v1 = vrot.slane %v5005_v24, 2  ;;  %v11340_v35 = vpop.f32.mrf.mxu1 }
 0x7f1   : > { %v8390_v30 = vpop.eup %8389  ;;  %8415 = vpow2.f32 %v6803_v45 }
 0x7f2   : > { %v8392_v43 = vpop.eup %8391  ;;  %v5187_v5 = vadd.f32 1.0, %v8390_v30  ;;  %8417 = vpow2.f32 %v6804_v11  ;;  %v5095_v30 = vrot.slane %v5005_v24, 3 }
 0x7f3   : > { %v8394_v37 = vpop.eup %8393  ;;  %v5181_v3 = vadd.f32 1.0, %v8392_v43  ;;  %8419 = vpow2.f32 %v6805_v38 }
 0x7f4   : > { %v8396_v42 = vpop.eup %8395  ;;  %v5182_v7 = vadd.f32 1.0, %v8394_v37  ;;  %8421 = vrcp.f32 %v5187_v5  ;;  %v5096_v37 = vrot.slane %v5005_v24, 4 }
 0x7f5   : > { %v8398_v61 = vpop.eup %8397  ;;  %v5183_v27 = vadd.f32 1.0, %v8396_v42  ;;  %8423 = vrcp.f32 %v5181_v3  ;;  %v5098_v3 = vrot.slane %v5005_v24, 6 }
 0x7f6   : > { %v8400_v44 = vpop.eup %8399  ;;  %v5184_v28 = vadd.f32 1.0, %v8398_v61  ;;  %8425 = vrcp.f32 %v5182_v7  ;;  %v5097_v61 = vrot.slane %v5005_v24, 5 }
 0x7f7   : > { %v8402_v62 = vpop.eup %8401  ;;  %v5185_v56 = vadd.f32 1.0, %v8400_v44  ;;  %8427 = vrcp.f32 %v5183_v27  ;;  %v12238_v27 = vld [vmem:[#allocation26_spill] sm:$0xff] }
 0x7f8   : > { %v8404_v21 = vpop.eup %8403  ;;  %v5186_v36 = vadd.f32 1.0, %v8402_v62  ;;  %8429 = vrcp.f32 %v5184_v28  ;;  %v5125_v62 = vadd.f32 %v5094_v1, %v12237_v63  ;;  %v5126_v47 = vadd.f32 %v5095_v30, %v12238_v27  ;;  %v12241_v1 = vld [vmem:[#allocation32_spill] sm:$0xff]  ;;  %v12242_v30 = vld [vmem:[#allocation34_spill] sm:$0xff] }
 0x7f9   : > { %v8406_v2 = vpop.eup %8405  ;;  %v5188_v45 = vadd.f32 1.0, %v8404_v21  ;;  %8431 = vrcp.f32 %v5185_v56  ;;  %v5099_v21 = vrot.slane %v5005_v24, 7  ;;  %v12239_v56 = vld [vmem:[#allocation28_spill] sm:$0xff]  ;;  %v5129_v63 = vadd.f32 %v5098_v3, %v12241_v1 }
 0x7fa   : > { %v8408_v43 = vpop.eup %8407  ;;  %v5325_v11 = vadd.f32 1.0, %v8406_v2  ;;  %8433 = vrcp.f32 %v5186_v36  ;;  %v5100_v36 = vrot.slane %v5005_v24, 1  ;;  %v6791_v14 = vmul.f32 -1.442695, %v5126_v47  ;;  %v12244_v3 = vld [vmem:[#allocation36_spill] sm:$0xff] }
 0x7fb   : > { %v8410_v38 = vpop.eup %8409  ;;  %v5326_v42 = vadd.f32 1.0, %v8408_v43  ;;  %8435 = vrcp.f32 %v5188_v45  ;;  %v5127_v43 = vadd.f32 %v5096_v37, %v12239_v56  ;;  %v6790_v45 = vmul.f32 -1.442695, %v5125_v62  ;;  %v12243_v37 = vld [vmem:[#allocation35_spill] sm:$0xff] }
 0x7fc   : > { %v8412_v5 = vpop.eup %8411  ;;  %v5327_v44 = vadd.f32 1.0, %v8410_v38  ;;  %8437 = vrcp.f32 %v5325_v11  ;;  %v12240_v38 = vld [vmem:[#allocation30_spill] sm:$0xff]  ;;  %v5130_v27 = vadd.f32 %v5099_v21, %v12242_v30  ;;  %v5239_v11 = vrot.slane %v11340_v35, 3  ;;  %v12245_v21 = vld [vmem:[#allocation25_spill] sm:$0xff] }
 0x7fd   : > { %v8414_v7 = vpop.eup %8413  ;;  %v5328_v8 = vadd.f32 1.0, %v8412_v5  ;;  %8439 = vrcp.f32 %v5326_v42  ;;  %v5128_v39 = vadd.f32 %v5097_v61, %v12240_v38  ;;  %v5238_v5 = vrot.slane %v11340_v35, 2 }
 0x7fe   : > { %v8416_v28 = vpop.eup %8415  ;;  %v5329_v2 = vadd.f32 1.0, %v8414_v7  ;;  %8441 = vrcp.f32 %v5327_v44  ;;  %v5131_v42 = vadd.f32 %v5005_v24, %v12243_v37  ;;  %v5240_v61 = vrot.slane %v11340_v35, 4 }
 0x7ff   : > { %v5330_v50 = vadd.f32 1.0, %v8416_v28  ;;  %v8418_v41 = vpop.eup %8417  ;;  %8443 = vrcp.f32 %v5328_v8  ;;  %v6792_v28 = vmul.f32 -1.442695, %v5127_v43  ;;  %v5132_v62 = vadd.f32 %v5100_v36, %v12244_v3  ;;  %v12246_v43 = vld [vmem:[#allocation27_spill] sm:$0xff]  ;;  %v12247_v36 = vld [vmem:[#allocation29_spill] sm:$0xff] }
 0x800   : > { %v8420_v7 = vpop.eup %8419  ;;  %8445 = vrcp.f32 %v5329_v2  ;;  %v6793_v1 = vmul.f32 -1.442695, %v5128_v39  ;;  %v5241_v8 = vrot.slane %v11340_v35, 5  ;;  %v6794_v47 = vmul.f32 -1.442695, %v5129_v63 }
 0x801   : > { %v11350_v44 = vpop.eup %8421  ;;  %8447 = vrcp.f32 %v5330_v50  ;;  %v5269_v30 = vadd.f32 %v5238_v5, %v12245_v21  ;;  %v6795_v24 = vmul.f32 -1.442695, %v5130_v27  ;;  %v5270_v37 = vadd.f32 %v5239_v11, %v12246_v43  ;;  %v12248_v5 = vld [vmem:[#allocation31_spill] sm:$0xff] }
 0x802   : > { %v11354_v38 = vpop.eup %8423  ;;  %8449 = vpow2.f32 %v6790_v45  ;;  %v6796_v50 = vmul.f32 -1.442695, %v5131_v42  ;;  %v5242_v39 = vrot.slane %v11340_v35, 6  ;;  %v5271_v3 = vadd.f32 %v5240_v61, %v12247_v36  ;;  %v12249_v61 = vld [vmem:[#allocation33_spill] sm:$0xff] }
 0x803   : > { %v11357_v2 = vpop.eup %8425  ;;  %8451 = vpow2.f32 %v6791_v14  ;;  %v6797_v63 = vmul.f32 -1.442695, %v5132_v62  ;;  %v5243_v45 = vrot.slane %v11340_v35, 7  ;;  %v5272_v21 = vadd.f32 %v5241_v8, %v12248_v5  ;;  %v12250_v62 = vld [vmem:[#allocation41_spill] sm:$0xff] }
 0x804   : > { %v11360_v56 = vpop.eup %8427  ;;  %8453 = vpow2.f32 %v6792_v28  ;;  %v6806_v27 = vmul.f32 -1.442695, %v5269_v30  ;;  %v6807_v42 = vmul.f32 -1.442695, %v5270_v37  ;;  %v5273_v36 = vadd.f32 %v5242_v39, %v12249_v61  ;;  %v11382_v37 = vpop.f32.mrf.mxu0 }
 0x805   : > { %v11364_v9 = vpop.eup %8429  ;;  %8455 = vpow2.f32 %v6793_v1  ;;  %v6808_v43 = vmul.f32 -1.442695, %v5271_v3  ;;  %v5274_v20 = vadd.f32 %v5243_v45, %v12250_v62  ;;  %v6809_v8 = vmul.f32 -1.442695, %v5272_v21 }
 0x806   : > { %v11368_v14 = vpop.eup %8431  ;;  %8457 = vpow2.f32 %v6794_v47  ;;  %v5331_v47 = vadd.f32 1.0, %v8418_v41  ;;  %v6810_v3 = vmul.f32 -1.442695, %v5273_v36  ;;  %v5244_v41 = vrot.slane %v11340_v35, 1 }
 0x807   : > { %v11370_v11 = vpop.eup %8433  ;;  %8459 = vpow2.f32 %v6795_v24  ;;  %v5332_v24 = vadd.f32 1.0, %v8420_v7 }
 0x808   : > { %v11372_v28 = vpop.eup %8435  ;;  %8461 = vpow2.f32 %v6796_v50 }
 0x809   : > { %v11375_v1 = vpop.eup %8437  ;;  %8463 = vpow2.f32 %v6797_v63  ;;  %v6811_v63 = vmul.f32 -1.442695, %v5274_v20  ;;  %v5275_v20 = vadd.f32 %v11340_v35, %v12251_v60 }
 0x80a   : > { %v11378_v5 = vpop.eup %8439  ;;  %8465 = vpow2.f32 %v6806_v27  ;;  %v5076_v27 = vpop.f32.mrf.mxu0 }
 0x80b   : > { %v11380_v30 = vpop.eup %8441  ;;  %8467 = vpow2.f32 %v6807_v42  ;;  %v6812_v60 = vmul.f32 -1.442695, %v5275_v20 }
 0x80c   : > { %v11384_v50 = vpop.eup %8443  ;;  %8469 = vpow2.f32 %v6808_v43 }
 0x80d   : > { %v11386_v39 = vpop.eup %8445  ;;  %8471 = vpow2.f32 %v6809_v8  ;;  %v11396_v8 = vld [vmem:[%s11829_s4] ss:$0 sm:$0xff] }
 0x80e   : > { %v11388_v45 = vpop.eup %8447  ;;  %8473 = vrcp.f32 %v5331_v47  ;;  %v5373_v47 = vadd.f32 %v11396_v8, %v5076_v27 }
 0x80f   : > { %v8450_v21 = vpop.eup %8449  ;;  %8475 = vrcp.f32 %v5332_v24 }
 0x810   : > { %v8452_v7 = vpop.eup %8451  ;;  %v5189_v62 = vadd.f32 1.0, %v8450_v21  ;;  %8477 = vpow2.f32 %v6810_v3  ;;  %v12252_v3 = vld [vmem:[#allocation44_spill] sm:$0xff]  ;;  %v5377_v16 = vrot.slane %v5373_v47, 2  ;;  %v5378_v54 = vrot.slane %v5373_v47, 3 }
 0x811   : > { %v8454_v42 = vpop.eup %8453  ;;  %v5190_v61 = vadd.f32 1.0, %v8452_v7  ;;  %8479 = vpow2.f32 %v6811_v63  ;;  %v5276_v21 = vadd.f32 %v5244_v41, %v12252_v3  ;;  %v5379_v41 = vrot.slane %v5373_v47, 4 }
 0x812   : > { %v8456_v43 = vpop.eup %8455  ;;  %v5191_v36 = vadd.f32 1.0, %v8454_v42  ;;  %8481 = vrcp.f32 %v5189_v62  ;;  %v5381_v3 = vrot.slane %v5373_v47, 6 }
 0x813   : > { %v8458_v24 = vpop.eup %8457  ;;  %v5192_v52 = vadd.f32 1.0, %v8456_v43  ;;  %8483 = vrcp.f32 %v5190_v61  ;;  %v6813_v27 = vmul.f32 -1.442695, %v5276_v21 }
 0x814   : > { %v8460_v7 = vpop.eup %8459  ;;  %v5193_v63 = vadd.f32 1.0, %v8458_v24  ;;  %8485 = vrcp.f32 %v5191_v36  ;;  %v5407_v24 = vmul.f32 %v11354_v38, %v5377_v16 }
 0x815   : > { %v8462_v42 = vpop.eup %8461  ;;  %v5194_v62 = vadd.f32 1.0, %v8460_v7  ;;  %8487 = vrcp.f32 %v5192_v52  ;;  %v5380_v52 = vrot.slane %v5373_v47, 5 }
 0x816   : > { %v8464_v53 = vpop.eup %8463  ;;  %v5195_v35 = vadd.f32 1.0, %v8462_v42  ;;  %8489 = vrcp.f32 %v5193_v63  ;;  %v5408_v42 = vmul.f32 %v11357_v2, %v5378_v54  ;;  %v5411_v54 = vmul.f32 %v11368_v14, %v5381_v3 }
 0x817   : > { %v8466_v22 = vpop.eup %8465  ;;  %v5196_v58 = vadd.f32 1.0, %v8464_v53  ;;  %8491 = vrcp.f32 %v5194_v62  ;;  %v5409_v53 = vmul.f32 %v11360_v56, %v5379_v41  ;;  %v5383_v2 = vrot.slane %v5373_v47, 1 }
 0x818   : > { %v8468_v43 = vpop.eup %8467  ;;  %8493 = vrcp.f32 %v5195_v35  ;;  %v5333_v61 = vadd.f32 1.0, %v8466_v22  ;;  %v5382_v22 = vrot.slane %v5373_v47, 7  ;;  %v5410_v35 = vmul.f32 %v11364_v9, %v5380_v52 }
 0x819   : > { %v8470_v36 = vpop.eup %8469  ;;  %8495 = vrcp.f32 %v5196_v58  ;;  %v5334_v7 = vadd.f32 1.0, %v8468_v43  ;;  %v5374_v58 = vadd.f32 %v11396_v8, %v11382_v37  ;;  %v5424_v56 = vadd.f32 %v5408_v42, %v9828_v32 }
 0x81a   : > { %v8472_v63 = vpop.eup %8471  ;;  %8497 = vpow2.f32 %v6812_v60  ;;  %v5335_v20 = vadd.f32 1.0, %v8470_v36  ;;  %v5423_v60 = vadd.f32 %v5407_v24, %v9822_v6  ;;  %v5425_v9 = vadd.f32 %v5409_v53, %v12030_v51 }
 0x81b   : > { %v11403_v21 = vpop.eup %8473  ;;  %8499 = vpow2.f32 %v6813_v27  ;;  %v5336_v62 = vadd.f32 1.0, %v8472_v63  ;;  %v5412_v27 = vmul.f32 %v11370_v11, %v5382_v22  ;;  %v5413_v41 = vmul.f32 %v11350_v44, %v5373_v47 }
 0x81c   : > { %v11406_v16 = vpop.eup %8475  ;;  %8501 = vrcp.f32 %v5333_v61  ;;  %v5414_v37 = vmul.f32 %v11372_v28, %v5383_v2  ;;  %v5426_v14 = vadd.f32 %v5410_v35, %v9845_v59  ;;  %v5384_v61 = vrot.slane %v5374_v58, 2 }
 0x81d   : > { %v8478_v38 = vpop.eup %8477  ;;  %8503 = vrcp.f32 %v5334_v7  ;;  %v5427_v24 = vadd.f32 %v5411_v54, %v9857_v0  ;;  %v5385_v52 = vrot.slane %v5374_v58, 3  ;;  %v5428_v11 = vadd.f32 %v5412_v27, %v12079_v34 }
 0x81e   : > { %v8480_v43 = vpop.eup %8479  ;;  %8505 = vrcp.f32 %v5335_v20  ;;  %v5386_v63 = vrot.slane %v5374_v58, 4  ;;  %v5429_v44 = vadd.f32 %v5413_v41, %v12031_v33  ;;  %v5387_v28 = vrot.slane %v5374_v58, 5 }
 0x81f   : > { %v8482_v36 = vpop.eup %8481  ;;  %8507 = vrcp.f32 %v5336_v62  ;;  %v5430_v62 = vadd.f32 %v5414_v37, %v12080_v31  ;;  %v5388_v35 = vrot.slane %v5374_v58, 6  ;;  %v5338_v2 = vadd.f32 1.0, %v8480_v43 }
 0x820   : > { %v8484_v3 = vpop.eup %8483  ;;  %8509 = vtanh.f32 %v5423_v60  ;;  %v5415_v20 = vmul.f32 %v8482_v36, %v5384_v61  ;;  %v5337_v60 = vadd.f32 1.0, %v8478_v38  ;;  %v5389_v27 = vrot.slane %v5374_v58, 7 }
 0x821   : > { %v8486_v7 = vpop.eup %8485  ;;  %8511 = vtanh.f32 %v5424_v56  ;;  %v5416_v53 = vmul.f32 %v8484_v3, %v5385_v52  ;;  %v5390_v3 = vrot.slane %v5374_v58, 1 }
 0x822   : > { %v8488_v42 = vpop.eup %8487  ;;  %8513 = vtanh.f32 %v5425_v9  ;;  %v5417_v54 = vmul.f32 %v8486_v7, %v5386_v63  ;;  %v5431_v41 = vadd.f32 %v5415_v20, %v9875_v17 }
 0x823   : > { %v8490_v47 = vpop.eup %8489  ;;  %8515 = vtanh.f32 %v5426_v14  ;;  %v5418_v34 = vmul.f32 %v8488_v42, %v5387_v28  ;;  %v5432_v14 = vadd.f32 %v5416_v53, %v9871_v15 }
 0x824   : > { %v8492_v22 = vpop.eup %8491  ;;  %8517 = vtanh.f32 %v5427_v24  ;;  %v5419_v9 = vmul.f32 %v8490_v47, %v5388_v35  ;;  %v5433_v24 = vadd.f32 %v5417_v54, %v9893_v26 }
 0x825   : > { %v8494_v56 = vpop.eup %8493  ;;  %8519 = vtanh.f32 %v5428_v11  ;;  %v5420_v37 = vmul.f32 %v8492_v22, %v5389_v27  ;;  %v5434_v11 = vadd.f32 %v5418_v34, %v9879_v19 }
 0x826   : > { %v8496_v36 = vpop.eup %8495  ;;  %8521 = vtanh.f32 %v5429_v44  ;;  %v5421_v38 = vmul.f32 %v8494_v56, %v5374_v58  ;;  %v5435_v63 = vadd.f32 %v5419_v9, %v9915_v12  ;;  %v12253_v58 = vld [vmem:[#allocation46_spill] sm:$0xff] }
 0x827   : > { %v8498_v61 = vpop.eup %8497  ;;  %8523 = vtanh.f32 %v5430_v62  ;;  %v5422_v7 = vmul.f32 %v8496_v36, %v5390_v3  ;;  %v5436_v44 = vadd.f32 %v5420_v37, %v12209_v55  ;;  %v12254_v62 = vld [vmem:[#allocation45_spill] sm:$0xff] }
 0x828   : > { %v8500_v52 = vpop.eup %8499  ;;  %8525 = vrcp.f32 %v5337_v60  ;;  %v5437_v28 = vadd.f32 %v5421_v38, %v12253_v58  ;;  %v5339_v35 = vadd.f32 1.0, %v8498_v61 }
 0x829   : > { %v11425_v43 = vpop.eup %8501  ;;  %8527 = vrcp.f32 %v5338_v2  ;;  %v5438_v22 = vadd.f32 %v5422_v7, %v12254_v62  ;;  %v5340_v2 = vadd.f32 1.0, %v8500_v52 }
 0x82a   : > { %v11428_v42 = vpop.eup %8503  ;;  %8529 = vtanh.f32 %v5431_v41 }
 0x82b   : > { %v11431_v20 = vpop.eup %8505  ;;  %8531 = vtanh.f32 %v5432_v14 }
 0x82c   : > { %v11434_v47 = vpop.eup %8507  ;;  %8533 = vtanh.f32 %v5433_v24 }
 0x82d   : > { %v8510_v53 = vpop.eup %8509  ;;  %8535 = vtanh.f32 %v5434_v11 }
 0x82e   : > { %v8512_v34 = vpop.eup %8511  ;;  %v5471_v54 = vrot.slane %v8510_v53, 1  ;;  %8537 = vtanh.f32 %v5435_v63 }
 0x82f   : > { %v8514_v60 = vpop.eup %8513  ;;  %v5472_v56 = vrot.slane %v8512_v34, 1  ;;  %8539 = vtanh.f32 %v5436_v44 }
 0x830   : > { %v8516_v27 = vpop.eup %8515  ;;  %v5473_v36 = vrot.slane %v8514_v60, 1  ;;  %v5503_v9 = vsub.f32 %v11205_v40, %v5471_v54  ;;  %8541 = vtanh.f32 %v5437_v28 }
 0x831   : > { %v8518_v41 = vpop.eup %8517  ;;  %v5474_v3 = vrot.slane %v8516_v27, 1  ;;  %v5504_v37 = vsub.f32 %v11211_v46, %v5472_v56  ;;  %8543 = vtanh.f32 %v5438_v22 }
 0x832   : > { %v8520_v14 = vpop.eup %8519  ;;  %v5475_v38 = vrot.slane %v8518_v41, 1  ;;  %v5505_v61 = vsub.f32 %v11216_v18, %v5473_v36  ;;  %v5535_v24 = vrot.slane %v5503_v9, 7  ;;  %8545 = vrcp.f32 %v5339_v35 }
 0x833   : > { %v8522_v7 = vpop.eup %8521  ;;  %v5476_v11 = vrot.slane %v8520_v14, 1  ;;  %v5506_v52 = vsub.f32 %v11222_v29, %v5474_v3  ;;  %v5536_v63 = vrot.slane %v5504_v37, 7  ;;  %8547 = vrcp.f32 %v5340_v2  ;;  %v12255_v29 = vld [vmem:[#allocation52_spill] sm:$0xff] }
 0x834   : > { %v8524_v44 = vpop.eup %8523  ;;  %v5477_v40 = vrot.slane %v8522_v7, 1  ;;  %v5507_v28 = vsub.f32 %v11228_v49, %v5475_v38  ;;  %v5537_v54 = vrot.slane %v5505_v61, 7  ;;  %v5567_v46 = vmul.f32 %v11375_v1, %v5535_v24  ;;  %v12256_v1 = vld [vmem:[#allocation53_spill] sm:$0xff] }
 0x835   : > { %v11444_v22 = vpop.eup %8525  ;;  %v5478_v56 = vrot.slane %v8524_v44, 1  ;;  %v5508_v18 = vsub.f32 %v11235_v23, %v5476_v11  ;;  %v5538_v36 = vrot.slane %v5506_v52, 7  ;;  %v5568_v35 = vmul.f32 %v11378_v5, %v5536_v63 }
 0x836   : > { %v11448_v9 = vpop.eup %8527  ;;  %v5509_v3 = vsub.f32 %v12255_v29, %v5477_v40  ;;  %v5539_v2 = vrot.slane %v5507_v28, 7  ;;  %v5569_v37 = vmul.f32 %v11380_v30, %v5537_v54  ;;  %v11452_v62 = vadd.f32 %v8510_v53, %v5567_v46 }
 0x837   : > { %v11454_v49 = vpop.eup %8529  ;;  %v5510_v38 = vsub.f32 %v12256_v1, %v5478_v56  ;;  %v5540_v61 = vrot.slane %v5508_v18, 7  ;;  %v5570_v24 = vmul.f32 %v11384_v50, %v5538_v36  ;;  %v11458_v23 = vadd.f32 %v8512_v34, %v5568_v35 }
 0x838   : > { %v11460_v11 = vpop.eup %8531  ;;  %v5541_v5 = vrot.slane %v5509_v3, 7  ;;  %v5571_v52 = vmul.f32 %v11386_v39, %v5539_v2  ;;  %v11463_v63 = vadd.f32 %v8514_v60, %v5569_v37  ;;  %v5615_v30 = vrot.slane %v11452_v62, 6 }
 0x839   : > { %v11466_v53 = vpop.eup %8533  ;;  %v5542_v40 = vrot.slane %v5510_v38, 7  ;;  %v5572_v28 = vmul.f32 %v11388_v45, %v5540_v61  ;;  %v11469_v54 = vadd.f32 %v8516_v27, %v5570_v24  ;;  %v5616_v50 = vrot.slane %v11458_v23, 5 }
 0x83a   : > { %v8536_v34 = vpop.eup %8535  ;;  %v5573_v46 = vmul.f32 %v11403_v21, %v5541_v5  ;;  %v11473_v56 = vadd.f32 %v8518_v41, %v5571_v52  ;;  %v5618_v39 = vrot.slane %v11463_v63, 4  ;;  %v5479_v60 = vrot.slane %v11454_v49, 1 }
 0x83b   : > { %v8538_v18 = vpop.eup %8537  ;;  %v5574_v36 = vmul.f32 %v11406_v16, %v5542_v40  ;;  %v11478_v35 = vadd.f32 %v8520_v14, %v5572_v28  ;;  %v5617_v45 = vsel %vm1337_vm2, %v5616_v50, %v5615_v30  ;;  %v5620_v27 = vrot.slane %v11469_v54, 3 }
 0x83c   : > { %v8540_v29 = vpop.eup %8539  ;;  %v11482_v3 = vadd.f32 %v8522_v7, %v5573_v46  ;;  %v5619_v21 = vsel %vm1340_vm3, %v5618_v39, %v5617_v45  ;;  %v5622_v41 = vrot.slane %v11473_v56, 2  ;;  %v5480_v2 = vrot.slane %v11460_v11, 1 }
 0x83d   : > { %12257 = vst [vmem:[#allocation37_spill] sm:$0xff] %v11478_v35  ;;  %v8542_v37 = vpop.eup %8541  ;;  %v11487_v1 = vadd.f32 %v8524_v44, %v5574_v36  ;;  %v5621_v16 = vsel %vm1343_vm4, %v5620_v27, %v5619_v21  ;;  %v5624_v14 = vrot.slane %v11478_v35, 1  ;;  %v5481_v38 = vrot.slane %v11466_v53, 1  ;;  %v12261_v35 = vld [vmem:[#allocation39_spill] sm:$0xff] }
 0x83e   : > { %12258 = vst [vmem:[#allocation40_spill] sm:$0xff] %v11482_v3  ;;  %v8544_v61 = vpop.eup %8543  ;;  %v5623_v24 = vsel %vm1346_vm5, %v5622_v41, %v5621_v16  ;;  %v5482_v7 = vrot.slane %v8536_v34, 1  ;;  %v5483_v5 = vrot.slane %v8538_v18, 1  ;;  %v5484_v52 = vrot.slane %v8540_v29, 1 }
 0x83f   : > { %12259 = vst [vmem:[#allocation47_spill] sm:$0xff] %v11487_v1  ;;  %v8546_v30 = vpop.eup %8545  ;;  %v5625_v40 = vsel %vm1349_vm6, %v5624_v14, %v5623_v24  ;;  %v5627_v28 = vrot.slane %v11487_v1, 7  ;;  %v5485_v50 = vrot.slane %v8542_v37, 1  ;;  %v5486_v44 = vrot.slane %v8544_v61, 1  ;;  %v12260_v24 = vld [vmem:[#allocation54_spill] sm:$0xff] }
 0x840   : > { %v8548_v46 = vpop.eup %8547  ;;  %v5626_v39 = vsel %vm1352_vm7, %v11482_v3, %v5625_v40  ;;  %v5511_v36 = vsub.f32 %v11281_v13, %v5479_v60  ;;  %v5512_v45 = vsub.f32 %v11284_v10, %v5480_v2  ;;  %v5513_v27 = vsub.f32 %v11287_v57, %v5481_v38 }
 0x841   : > { %v5628_v21 = vsel %vm1355_vm8, %v5627_v28, %v5626_v39  ;;  %v5514_v41 = vsub.f32 %v11290_v48, %v5482_v7  ;;  %v5515_v16 = vsub.f32 %v11293_v25, %v5483_v5  ;;  %v5516_v14 = vsub.f32 %v11310_v4, %v5484_v52 }
 0x842   : > { %5710 = vmatmul.mubr.f32.vlgmr.msra.gmra.mxu1 %v5628_v21  ;;  %7335 = vmatprep.mubr.f32.mxu0 %v5628_v21  ;;  %v5517_v1 = vsub.f32 %v12260_v24, %v5485_v50  ;;  %v5518_v40 = vsub.f32 %v12261_v35, %v5486_v44  ;;  %v5543_v3 = vrot.slane %v5511_v36, 7  ;;  %v5544_v13 = vrot.slane %v5512_v45, 7  ;;  %v6322_v24 = vld [vmem:[%s11830_s5 + $0x58] sm:$0xff] }
 0x843   : > { %v12262_v60 = vmov 0.0   ;;  %v5545_v10 = vrot.slane %v5513_v27, 7  ;;  %v5546_v57 = vrot.slane %v5514_v41, 7  ;;  %v5547_v2 = vrot.slane %v5515_v16, 7  ;;  %v6326_v41 = vld [vmem:[%s11830_s5 + $0x78] sm:$0xff]  ;;  %v6324_v16 = vld [vmem:[%s11830_s5 + $0x68] sm:$0xff] }
 0x844   : > { %5715 = vmatprep.mubr.f32.mxu1 %v12262_v60  ;;  %v5548_v38 = vrot.slane %v5516_v14, 7  ;;  %v5549_v28 = vrot.slane %v5517_v1, 7  ;;  %v5550_v48 = vrot.slane %v5518_v40, 7  ;;  %v5575_v25 = vmul.f32 %v11425_v43, %v5543_v3  ;;  %7338 = vmatprep.subr.mxu1 %v6326_v41  ;;  %v6323_v14 = vld [vmem:[%s11830_s5 + $0x60] sm:$0xff]  ;;  %v6321_v40 = vld [vmem:[%s11830_s5 + $0x50] sm:$0xff] }
 0x845   : > { %v5576_v4 = vmul.f32 %v11428_v42, %v5544_v13  ;;  %v5577_v7 = vmul.f32 %v11431_v20, %v5545_v10  ;;  %v5578_v5 = vmul.f32 %v11434_v47, %v5546_v57  ;;  %v5579_v35 = vmul.f32 %v11444_v22, %v5547_v2  ;;  %7339 = vmatpush3.msra.mxu1 %v6326_v41  ;;  %v6320_v13 = vld [vmem:[%s11830_s5 + $0x48] sm:$0xff]  ;;  %v6319_v60 = vld [vmem:[%s11830_s5 + $0x40] sm:$0xff]  ;;  %v6318_v10 = vld [vmem:[%s11830_s5 + $0x38] sm:$0xff] }
 0x846   : > { %v5580_v52 = vmul.f32 %v11448_v9, %v5548_v38  ;;  %v5582_v50 = vmul.f32 %v8548_v46, %v5550_v48  ;;  %v11514_v44 = vadd.f32 %v11454_v49, %v5575_v25  ;;  %v5581_v9 = vmul.f32 %v8546_v30, %v5549_v28  ;;  %v6317_v57 = vld [vmem:[%s11830_s5 + $0x30] sm:$0xff]  ;;  %v6316_v2 = vld [vmem:[%s11830_s5 + $0x28] sm:$0xff]  ;;  %v6315_v38 = vld [vmem:[%s11830_s5 + $0x20] sm:$0xff] }
 0x847   : > { %v11517_v39 = vadd.f32 %v11460_v11, %v5576_v4  ;;  %v11520_v1 = vadd.f32 %v11466_v53, %v5577_v7  ;;  %v11522_v43 = vadd.f32 %v8536_v34, %v5578_v5  ;;  %v11524_v42 = vadd.f32 %v8538_v18, %v5579_v35  ;;  %v6314_v28 = vld [vmem:[%s11830_s5 + $0x18] sm:$0xff]  ;;  %v6313_v48 = vld [vmem:[%s11830_s5 + $0x10] sm:$0xff]  ;;  %v6312_v25 = vld [vmem:[%s11830_s5 + $0x8] sm:$0xff] }
 0x848   : > { %v11526_v20 = vadd.f32 %v8540_v29, %v5580_v52  ;;  %v5629_v47 = vrot.slane %v11514_v44, 6  ;;  %v11531_v3 = vadd.f32 %v8544_v61, %v5582_v50  ;;  %v11539_v36 = vadd.f32 %v8542_v37, %v5581_v9  ;;  %v6325_v37 = vld [vmem:[%s11830_s5 + $0x70] sm:$0xff]  ;;  %v6311_v4 = vld [vmem:[%s11830_s5] sm:$0xff] }
 0x849   : > { %v5630_v22 = vrot.slane %v11517_v39, 5  ;;  %v5632_v49 = vrot.slane %v11520_v1, 4  ;;  %v5634_v53 = vrot.slane %v11522_v43, 3  ;;  %v5636_v18 = vrot.slane %v11524_v42, 2  ;;  %7340 = vmatprep.subr.mxu1 %v6325_v37  ;;  %v12272_v41 = vld [vmem:[#allocation18_spill] sm:$0xff] }
 0x84a   : > { %12263 = vst [vmem:[#allocation42_spill] sm:$0xff] %v11526_v20  ;;  %12264 = vst [vmem:[#allocation48_spill] sm:$0xff] %v11531_v3  ;;  %v5638_v46 = vrot.slane %v11526_v20, 1  ;;  %v5641_v61 = vrot.slane %v11531_v3, 7  ;;  %7341 = vmatpush3.msra.mxu1 %v6325_v37 }
 0x84b   : > { %v5631_v11 = vsel %vm1337_vm2, %v5630_v22, %v5629_v47  ;;  %12265 = vst [vmem:[#allocation49_spill] sm:$0xff] %v11539_v36  ;;  %7342 = vmatprep.subr.mxu1 %v6324_v16 }
 0x84c   : > { %v5633_v34 = vsel %vm1340_vm3, %v5632_v49, %v5631_v11  ;;  %7343 = vmatpush3.msra.mxu1 %v6324_v16  ;;  %v12266_v49 = vld [vmem:[#allocation21_spill] sm:$0xff] }
 0x84d   : > { %v5635_v29 = vsel %vm1343_vm4, %v5634_v53, %v5633_v34  ;;  %7344 = vmatprep.subr.mxu1 %v6323_v14  ;;  %v12267_v53 = vld [vmem:[#allocation8_spill] sm:$0xff] }
 0x84e   : > { %v5637_v30 = vsel %vm1346_vm5, %v5636_v18, %v5635_v29  ;;  %7345 = vmatpush3.msra.mxu1 %v6323_v14  ;;  %v12268_v18 = vld [vmem:[#allocation10_spill] sm:$0xff] }
 0x84f   : > { %v5639_v45 = vsel %vm1349_vm6, %v5638_v46, %v5637_v30  ;;  %7346 = vmatprep.subr.mxu1 %v6322_v24  ;;  %v12269_v46 = vld [vmem:[#allocation12_spill] sm:$0xff] }
 0x850   : > { %v5640_v27 = vsel %vm1352_vm7, %v11539_v36, %v5639_v45  ;;  %7347 = vmatpush3.msra.mxu1 %v6322_v24  ;;  %v12270_v45 = vld [vmem:[#allocation14_spill] sm:$0xff]  ;;  %v12273_v24 = vld [vmem:[#allocation20_spill] sm:$0xff] }
 0x851   : > { %v5642_v21 = vsel %vm1355_vm8, %v5641_v61, %v5640_v27  ;;  %7348 = vmatprep.subr.mxu1 %v6321_v40  ;;  %v12271_v27 = vld [vmem:[#allocation16_spill] sm:$0xff] }
 0x852   : > { %5716 = vmatmul.mubr.f32.gmra.mxu1 %v5642_v21  ;;  %7336 = vmatmul.mubr.f32.vlgmr.msra.gmra.mxu0 %v5642_v21 }
 0x853   : > { %7349 = vmatpush3.msra.mxu1 %v6321_v40 }
 0x854   : > { %7350 = vmatprep.subr.mxu1 %v6320_v13 }
 0x855   : > { %7351 = vmatpush3.msra.mxu1 %v6320_v13 }
 0x856   : > { %7352 = vmatprep.subr.mxu1 %v6319_v60 }
 0x857   : > { %7353 = vmatpush3.msra.mxu1 %v6319_v60 }
 0x858   : > { %7354 = vmatprep.subr.mxu1 %v6318_v10 }
 0x859   : > { %7355 = vmatpush3.msra.mxu1 %v6318_v10 }
 0x85a   : > { %7356 = vmatprep.subr.mxu1 %v6317_v57 }
 0x85b   : > { %7357 = vmatpush3.msra.mxu1 %v6317_v57 }
 0x85c   : > { %7358 = vmatprep.subr.mxu1 %v6316_v2 }
 0x85d   : > { %7359 = vmatpush3.msra.mxu1 %v6316_v2 }
 0x85e   : > { %7360 = vmatprep.subr.mxu1 %v6315_v38 }
 0x85f   : > { %7361 = vmatpush3.msra.mxu1 %v6315_v38 }
 0x860   : > { %7362 = vmatprep.subr.mxu1 %v6314_v28 }
 0x861   : > { %7363 = vmatpush3.msra.mxu1 %v6314_v28 }
 0x862   : > { %7364 = vmatprep.subr.mxu1 %v6313_v48 }
 0x863   : > { %7365 = vmatpush3.msra.mxu1 %v6313_v48 }
 0x864   : > { %7366 = vmatprep.subr.mxu1 %v6312_v25 }
 0x865   : > { %7367 = vmatpush3.msra.mxu1 %v6312_v25 }
 0x866   : > { %7368 = vmatprep.subr.mxu1 %v6311_v4 }
 0x867   : > { %7369 = vmatpush3.msra.mxu1 %v6311_v4 }
 0x902   : > { %v5711_v7 = vpop.f32.mrf.mxu1 }
 0x903   : > { %v5799_v5 = vrot.slane %v5711_v7, 1  ;;  %v5800_v35 = vrot.slane %v5711_v7, 2  ;;  %v5801_v52 = vrot.slane %v5711_v7, 3  ;;  %v5802_v50 = vrot.slane %v5711_v7, 4 }
 0x904   : > { %v5803_v47 = vrot.slane %v5711_v7, 5  ;;  %v5804_v22 = vrot.slane %v5711_v7, 6  ;;  %v5805_v9 = vrot.slane %v5711_v7, 7  ;;  %v5836_v11 = vadd.f32 %v5711_v7, %v12266_v49  ;;  %v5713_v14 = vpop.f32.mrf.mxu1  ;;  %v12276_v49 = vld [vmem:[#allocation13_spill] sm:$0xff] }
 0x905   : > { %v5829_v34 = vadd.f32 %v5799_v5, %v12267_v53  ;;  %v5830_v29 = vadd.f32 %v5800_v35, %v12268_v18  ;;  %v5831_v30 = vadd.f32 %v5801_v52, %v12269_v46  ;;  %v5832_v61 = vadd.f32 %v5802_v50, %v12270_v45  ;;  %v12274_v5 = vld [vmem:[#allocation9_spill] sm:$0xff]  ;;  %v12275_v50 = vld [vmem:[#allocation11_spill] sm:$0xff] }
 0x906   : > { %v5833_v21 = vadd.f32 %v5803_v47, %v12271_v27  ;;  %v5834_v37 = vadd.f32 %v5804_v22, %v12272_v41  ;;  %v6821_v16 = vmul.f32 -1.442695, %v5836_v11  ;;  %v5835_v40 = vadd.f32 %v5805_v9, %v12273_v24  ;;  %v12277_v18 = vld [vmem:[#allocation15_spill] sm:$0xff]  ;;  %v12278_v46 = vld [vmem:[#allocation17_spill] sm:$0xff]  ;;  %v12280_v27 = vld [vmem:[#allocation22_spill] sm:$0xff] }
 0x907   : > { %v6814_v13 = vmul.f32 -1.442695, %v5829_v34  ;;  %v6815_v60 = vmul.f32 -1.442695, %v5830_v29  ;;  %v6816_v10 = vmul.f32 -1.442695, %v5831_v30 }
 0x908   : > { %v6817_v57 = vmul.f32 -1.442695, %v5832_v61  ;;  %8549 = vpow2.f32 %v6821_v16  ;;  %v6818_v2 = vmul.f32 -1.442695, %v5833_v21  ;;  %v5943_v38 = vrot.slane %v5713_v14, 1  ;;  %v12279_v45 = vld [vmem:[#allocation19_spill] sm:$0xff] }
 0x909   : > { %8551 = vpow2.f32 %v6814_v13  ;;  %v5944_v28 = vrot.slane %v5713_v14, 2  ;;  %v6819_v48 = vmul.f32 -1.442695, %v5834_v37  ;;  %v5945_v25 = vrot.slane %v5713_v14, 3  ;;  %v12281_v37 = vld [vmem:[#allocation23_spill] sm:$0xff] }
 0x90a   : > { %8553 = vpow2.f32 %v6815_v60  ;;  %v6820_v4 = vmul.f32 -1.442695, %v5835_v40  ;;  %v5946_v7 = vrot.slane %v5713_v14, 4  ;;  %v5973_v35 = vadd.f32 %v5943_v38, %v12274_v5 }
 0x90b   : > { %8555 = vpow2.f32 %v6816_v10  ;;  %v5947_v52 = vrot.slane %v5713_v14, 5  ;;  %v5974_v47 = vadd.f32 %v5944_v28, %v12275_v50  ;;  %v5948_v22 = vrot.slane %v5713_v14, 6 }
 0x90c   : > { %8557 = vpow2.f32 %v6817_v57  ;;  %v5949_v9 = vrot.slane %v5713_v14, 7  ;;  %v5975_v11 = vadd.f32 %v5945_v25, %v12276_v49  ;;  %v6830_v53 = vmul.f32 -1.442695, %v5973_v35 }
 0x90d   : > { %8559 = vpow2.f32 %v6818_v2  ;;  %v6831_v34 = vmul.f32 -1.442695, %v5974_v47  ;;  %v5976_v29 = vadd.f32 %v5946_v7, %v12277_v18  ;;  %v5977_v30 = vadd.f32 %v5947_v52, %v12278_v46 }
 0x90e   : > { %8561 = vpow2.f32 %v6819_v48  ;;  %v5978_v61 = vadd.f32 %v5948_v22, %v12279_v45  ;;  %v5979_v21 = vadd.f32 %v5949_v9, %v12280_v27  ;;  %v6832_v41 = vmul.f32 -1.442695, %v5975_v11 }
 0x90f   : > { %8563 = vpow2.f32 %v6820_v4  ;;  %v5980_v16 = vadd.f32 %v5713_v14, %v12281_v37  ;;  %v6833_v24 = vmul.f32 -1.442695, %v5976_v29  ;;  %v6834_v40 = vmul.f32 -1.442695, %v5977_v30  ;;  %v12282_v30 = vld [vmem:[#allocation24_spill] sm:$0xff] }
 0x910   : > { %8565 = vpow2.f32 %v6830_v53  ;;  %v6835_v60 = vmul.f32 -1.442695, %v5978_v61  ;;  %v6836_v57 = vmul.f32 -1.442695, %v5979_v21  ;;  %v12283_v21 = vld [vmem:[#allocation26_spill] sm:$0xff] }
 0x911   : > { %8567 = vpow2.f32 %v6831_v34  ;;  %v6837_v38 = vmul.f32 -1.442695, %v5980_v16 }
 0x912   : > { %8569 = vpow2.f32 %v6832_v41  ;;  %v5717_v28 = vpop.f32.mrf.mxu1 }
 0x913   : > { %8571 = vpow2.f32 %v6833_v24  ;;  %v5806_v14 = vrot.slane %v5717_v28, 1  ;;  %v5807_v47 = vrot.slane %v5717_v28, 2  ;;  %v5808_v49 = vrot.slane %v5717_v28, 3 }
 0x914   : > { %8573 = vpow2.f32 %v6834_v40  ;;  %v5809_v34 = vrot.slane %v5717_v28, 4  ;;  %v5810_v46 = vrot.slane %v5717_v28, 5  ;;  %v5811_v27 = vrot.slane %v5717_v28, 6  ;;  %v11613_v37 = vpop.f32.mrf.mxu1  ;;  %v12284_v40 = vld [vmem:[#allocation28_spill] sm:$0xff] }
 0x915   : > { %v8550_v13 = vpop.eup %8549  ;;  %8575 = vpow2.f32 %v6835_v60  ;;  %v5837_v45 = vadd.f32 %v5806_v14, %v12282_v30  ;;  %v5838_v41 = vadd.f32 %v5807_v47, %v12283_v21  ;;  %v5812_v24 = vrot.slane %v5717_v28, 7 }
 0x916   : > { %v8552_v10 = vpop.eup %8551  ;;  %v5900_v25 = vadd.f32 1.0, %v8550_v13  ;;  %8577 = vpow2.f32 %v6836_v57  ;;  %v5839_v13 = vadd.f32 %v5808_v49, %v12284_v40  ;;  %v5951_v14 = vrot.slane %v11613_v37, 2 }
 0x917   : > { %v8554_v2 = vpop.eup %8553  ;;  %v5893_v7 = vadd.f32 1.0, %v8552_v10  ;;  %8579 = vpow2.f32 %v6837_v38  ;;  %v12285_v10 = vld [vmem:[#allocation30_spill] sm:$0xff]  ;;  %v5954_v30 = vrot.slane %v11613_v37, 5 }
 0x918   : > { %v8556_v48 = vpop.eup %8555  ;;  %v5894_v35 = vadd.f32 1.0, %v8554_v2  ;;  %8581 = vrcp.f32 %v5900_v25  ;;  %v5840_v57 = vadd.f32 %v5809_v34, %v12285_v10  ;;  %v12286_v2 = vld [vmem:[#allocation32_spill] sm:$0xff]  ;;  %v5950_v25 = vrot.slane %v11613_v37, 1 }
 0x919   : > { %v8558_v4 = vpop.eup %8557  ;;  %v5895_v50 = vadd.f32 1.0, %v8556_v48  ;;  %8583 = vrcp.f32 %v5893_v7  ;;  %v5841_v38 = vadd.f32 %v5810_v46, %v12286_v2  ;;  %v6822_v48 = vmul.f32 -1.442695, %v5837_v45  ;;  %v12287_v7 = vld [vmem:[#allocation34_spill] sm:$0xff]  ;;  %v12290_v45 = vld [vmem:[#allocation25_spill] sm:$0xff]  ;;  %v12293_v2 = vld [vmem:[#allocation31_spill] sm:$0xff] }
 0x91a   : > { %v8560_v5 = vpop.eup %8559  ;;  %v5896_v9 = vadd.f32 1.0, %v8558_v4  ;;  %8585 = vrcp.f32 %v5894_v35  ;;  %v6823_v35 = vmul.f32 -1.442695, %v5838_v41  ;;  %v6825_v34 = vmul.f32 -1.442695, %v5840_v57 }
 0x91b   : > { %v8562_v52 = vpop.eup %8561  ;;  %v5897_v53 = vadd.f32 1.0, %v8560_v5  ;;  %8587 = vrcp.f32 %v5895_v50  ;;  %v5842_v5 = vadd.f32 %v5811_v27, %v12287_v7  ;;  %v12288_v50 = vld [vmem:[#allocation35_spill] sm:$0xff]  ;;  %v6826_v46 = vmul.f32 -1.442695, %v5841_v38 }
 0x91c   : > { %v8564_v22 = vpop.eup %8563  ;;  %v5898_v29 = vadd.f32 1.0, %v8562_v52  ;;  %8589 = vrcp.f32 %v5896_v9  ;;  %v5843_v47 = vadd.f32 %v5812_v24, %v12288_v50  ;;  %v5952_v9 = vrot.slane %v11613_v37, 3 }
 0x91d   : > { %v8566_v11 = vpop.eup %8565  ;;  %v5899_v61 = vadd.f32 1.0, %v8564_v22  ;;  %8591 = vrcp.f32 %v5897_v53  ;;  %v6824_v22 = vmul.f32 -1.442695, %v5839_v13  ;;  %v6827_v21 = vmul.f32 -1.442695, %v5842_v5  ;;  %v12292_v13 = vld [vmem:[#allocation29_spill] sm:$0xff] }
 0x91e   : > { %v8568_v18 = vpop.eup %8567  ;;  %v6037_v16 = vadd.f32 1.0, %v8566_v11  ;;  %8593 = vrcp.f32 %v5898_v29  ;;  %v12289_v11 = vld [vmem:[#allocation36_spill] sm:$0xff]  ;;  %v5955_v41 = vrot.slane %v11613_v37, 6 }
 0x91f   : > { %v6038_v60 = vadd.f32 1.0, %v8568_v18  ;;  %v8570_v4 = vpop.eup %8569  ;;  %8595 = vrcp.f32 %v5899_v61  ;;  %v5844_v53 = vadd.f32 %v5717_v28, %v12289_v11  ;;  %v5953_v18 = vrot.slane %v11613_v37, 4 }
 0x920   : > { %v8572_v52 = vpop.eup %8571  ;;  %8597 = vrcp.f32 %v6037_v16  ;;  %v5981_v61 = vadd.f32 %v5950_v25, %v12290_v45  ;;  %v12291_v16 = vld [vmem:[#allocation27_spill] sm:$0xff]  ;;  %v6828_v28 = vmul.f32 -1.442695, %v5843_v47  ;;  %v12294_v25 = vld [vmem:[#allocation33_spill] sm:$0xff] }
 0x921   : > { %v8574_v49 = vpop.eup %8573  ;;  %8599 = vrcp.f32 %v6038_v60  ;;  %v5982_v24 = vadd.f32 %v5951_v14, %v12291_v16  ;;  %v5983_v60 = vadd.f32 %v5952_v9, %v12292_v13  ;;  %v6829_v57 = vmul.f32 -1.442695, %v5844_v53  ;;  %v12295_v14 = vld [vmem:[#allocation41_spill] sm:$0xff] }
 0x922   : > { %v8576_v29 = vpop.eup %8575  ;;  %8601 = vpow2.f32 %v6822_v48  ;;  %v5984_v38 = vadd.f32 %v5953_v18, %v12293_v2  ;;  %v5985_v7 = vadd.f32 %v5954_v30, %v12294_v25  ;;  %v6838_v5 = vmul.f32 -1.442695, %v5981_v61 }
 0x923   : > { %v11627_v27 = vpop.eup %8577  ;;  %8603 = vpow2.f32 %v6823_v35  ;;  %v5986_v50 = vadd.f32 %v5955_v41, %v12295_v14  ;;  %v6839_v47 = vmul.f32 -1.442695, %v5982_v24  ;;  %v6840_v9 = vmul.f32 -1.442695, %v5983_v60 }
 0x924   : > { %v11631_v40 = vpop.eup %8579  ;;  %8605 = vpow2.f32 %v6824_v22  ;;  %v6841_v53 = vmul.f32 -1.442695, %v5984_v38  ;;  %v5956_v18 = vrot.slane %v11613_v37, 7  ;;  %v6040_v16 = vadd.f32 1.0, %v8572_v52  ;;  %v7337_v52 = vpop.f32.mrf.mxu0 }
 0x925   : > { %v11634_v10 = vpop.eup %8581  ;;  %8607 = vpow2.f32 %v6825_v34  ;;  %v6843_v45 = vmul.f32 -1.442695, %v5986_v50  ;;  %v6041_v25 = vadd.f32 1.0, %v8574_v49 }
 0x926   : > { %v11637_v48 = vpop.eup %8583  ;;  %8609 = vpow2.f32 %v6826_v46  ;;  %v6842_v46 = vmul.f32 -1.442695, %v5985_v7  ;;  %v5788_v49 = vpop.f32.mrf.mxu0 }
 0x927   : > { %v11640_v35 = vpop.eup %8585  ;;  %8611 = vpow2.f32 %v6827_v21  ;;  %v6039_v21 = vadd.f32 1.0, %v8570_v4 }
 0x928   : > { %v11643_v22 = vpop.eup %8587  ;;  %8613 = vpow2.f32 %v6828_v28  ;;  %v12296_v28 = vld [vmem:[#allocation43_spill] sm:$0xff] }
 0x929   : > { %v11645_v11 = vpop.eup %8589  ;;  %8615 = vpow2.f32 %v6829_v57  ;;  %v5987_v13 = vadd.f32 %v5956_v18, %v12296_v28  ;;  %v12297_v57 = vld [vmem:[#allocation44_spill] sm:$0xff] }
 0x92a   : > { %v11647_v34 = vpop.eup %8591  ;;  %8617 = vpow2.f32 %v6838_v5  ;;  %v5988_v2 = vadd.f32 %v11613_v37, %v12297_v57  ;;  %v6042_v5 = vadd.f32 1.0, %v8576_v29 }
 0x92b   : > { %v11650_v30 = vpop.eup %8593  ;;  %8619 = vpow2.f32 %v6839_v47  ;;  %v6844_v47 = vmul.f32 -1.442695, %v5987_v13 }
 0x92c   : > { %v11652_v61 = vpop.eup %8595  ;;  %8621 = vpow2.f32 %v6840_v9 }
 0x92d   : > { %v11654_v41 = vpop.eup %8597  ;;  %8623 = vpow2.f32 %v6841_v53  ;;  %v6845_v53 = vmul.f32 -1.442695, %v5988_v2  ;;  %v6085_v2 = vadd.f32 %v11396_v8, %v5788_v49 }
 0x92e   : > { %v11656_v24 = vpop.eup %8599  ;;  %8625 = vpow2.f32 %v6842_v46 }
 0x92f   : > { %v8602_v60 = vpop.eup %8601  ;;  %8627 = vpow2.f32 %v6843_v45 }
 0x930   : > { %v8604_v38 = vpop.eup %8603  ;;  %8629 = vrcp.f32 %v6039_v21  ;;  %v5901_v7 = vadd.f32 1.0, %v8602_v60  ;;  %v11662_v60 = vadd.f32 %v11396_v8, %v7337_v52 }
 0x931   : > { %v8606_v4 = vpop.eup %8605  ;;  %8631 = vrcp.f32 %v6040_v16  ;;  %v5902_v14 = vadd.f32 1.0, %v8604_v38 }
 0x932   : > { %v8608_v50 = vpop.eup %8607  ;;  %8633 = vrcp.f32 %v5901_v7  ;;  %v5903_v46 = vadd.f32 1.0, %v8606_v4  ;;  %v6097_v52 = vrot.slane %v11662_v60, 2 }
 0x933   : > { %v8610_v9 = vpop.eup %8609  ;;  %8635 = vrcp.f32 %v5902_v14  ;;  %v5904_v45 = vadd.f32 1.0, %v8608_v50  ;;  %v6096_v14 = vrot.slane %v11662_v60, 1 }
 0x934   : > { %v8612_v18 = vpop.eup %8611  ;;  %8637 = vrcp.f32 %v6041_v25  ;;  %v5905_v28 = vadd.f32 1.0, %v8610_v9 }
 0x935   : > { %v8614_v37 = vpop.eup %8613  ;;  %8639 = vrcp.f32 %v6042_v5  ;;  %v5906_v16 = vadd.f32 1.0, %v8612_v18 }
 0x936   : > { %v8616_v21 = vpop.eup %8615  ;;  %8641 = vpow2.f32 %v6844_v47  ;;  %v5907_v57 = vadd.f32 1.0, %v8614_v37  ;;  %v6091_v37 = vrot.slane %v6085_v2, 3 }
 0x937   : > { %v8618_v29 = vpop.eup %8617  ;;  %8643 = vpow2.f32 %v6845_v53  ;;  %v5908_v25 = vadd.f32 1.0, %v8616_v21  ;;  %v6089_v53 = vrot.slane %v6085_v2, 1  ;;  %v6092_v21 = vrot.slane %v6085_v2, 4 }
 0x938   : > { %v8620_v13 = vpop.eup %8619  ;;  %8645 = vrcp.f32 %v5903_v46  ;;  %v6045_v4 = vadd.f32 1.0, %v8618_v29  ;;  %v6090_v46 = vrot.slane %v6085_v2, 2 }
 0x939   : > { %v8622_v38 = vpop.eup %8621  ;;  %8647 = vrcp.f32 %v5904_v45  ;;  %v6046_v50 = vadd.f32 1.0, %v8620_v13 }
 0x93a   : > { %v8624_v7 = vpop.eup %8623  ;;  %8649 = vrcp.f32 %v5905_v28  ;;  %v6047_v9 = vadd.f32 1.0, %v8622_v38  ;;  %v6119_v28 = vmul.f32 %v11637_v48, %v6089_v53  ;;  %v6120_v13 = vmul.f32 %v11640_v35, %v6090_v46  ;;  %v12298_v46 = vld [vmem:[#allocation38_spill] sm:$0xff] }
 0x93b   : > { %v8626_v5 = vpop.eup %8625  ;;  %8651 = vrcp.f32 %v5906_v16  ;;  %v6048_v8 = vadd.f32 1.0, %v8624_v7  ;;  %v6121_v7 = vmul.f32 %v11643_v22, %v6091_v37 }
 0x93c   : > { %v8628_v47 = vpop.eup %8627  ;;  %8653 = vrcp.f32 %v5907_v57  ;;  %v6049_v49 = vadd.f32 1.0, %v8626_v5  ;;  %v6093_v57 = vrot.slane %v6085_v2, 5  ;;  %v6122_v5 = vmul.f32 %v11645_v11, %v6092_v21 }
 0x93d   : > { %v11667_v18 = vpop.eup %8629  ;;  %8655 = vrcp.f32 %v5908_v25  ;;  %v6050_v16 = vadd.f32 1.0, %v8628_v47  ;;  %v6094_v25 = vrot.slane %v6085_v2, 6 }
 0x93e   : > { %v11669_v45 = vpop.eup %8631  ;;  %8657 = vrcp.f32 %v6045_v4  ;;  %v6095_v4 = vrot.slane %v6085_v2, 7  ;;  %v6123_v35 = vmul.f32 %v11647_v34, %v6093_v57 }
 0x93f   : > { %v8634_v29 = vpop.eup %8633  ;;  %8659 = vrcp.f32 %v6046_v50  ;;  %v6124_v22 = vmul.f32 %v11650_v30, %v6094_v25 }
 0x940   : > { %v8636_v38 = vpop.eup %8635  ;;  %v6127_v3 = vmul.f32 %v8634_v29, %v6096_v14  ;;  %8661 = vrcp.f32 %v6047_v9  ;;  %v6135_v14 = vadd.f32 %v6119_v28, %v9822_v6  ;;  %v6125_v11 = vmul.f32 %v11652_v61, %v6095_v4 }
 0x941   : > { %v11674_v36 = vpop.eup %8637  ;;  %v6128_v20 = vmul.f32 %v8636_v38, %v6097_v52  ;;  %8663 = vrcp.f32 %v6048_v8  ;;  %v6136_v52 = vadd.f32 %v6120_v13, %v9828_v32  ;;  %v6137_v8 = vadd.f32 %v6121_v7, %v12030_v51 }
 0x942   : > { %v11677_v48 = vpop.eup %8639  ;;  %v6143_v50 = vadd.f32 %v6127_v3, %v9875_v17  ;;  %8665 = vrcp.f32 %v6049_v49  ;;  %v6126_v3 = vmul.f32 %v11634_v10, %v6085_v2  ;;  %v6138_v6 = vadd.f32 %v6122_v5, %v9845_v59 }
 0x943   : > { %v8642_v47 = vpop.eup %8641  ;;  %v6144_v9 = vadd.f32 %v6128_v20, %v9871_v15  ;;  %8667 = vrcp.f32 %v6050_v16  ;;  %v6098_v15 = vrot.slane %v11662_v60, 3  ;;  %v6139_v20 = vadd.f32 %v6123_v35, %v9857_v0 }
 0x944   : > { %v8644_v53 = vpop.eup %8643  ;;  %8669 = vtanh.f32 %v6143_v50  ;;  %v6099_v32 = vrot.slane %v11662_v60, 4  ;;  %v6140_v37 = vadd.f32 %v6124_v22, %v12298_v46  ;;  %v6100_v51 = vrot.slane %v11662_v60, 5 }
 0x945   : > { %v8646_v17 = vpop.eup %8645  ;;  %8671 = vtanh.f32 %v6144_v9  ;;  %v6141_v10 = vadd.f32 %v6125_v11, %v12031_v33  ;;  %v6101_v2 = vrot.slane %v11662_v60, 6  ;;  %v6142_v0 = vadd.f32 %v6126_v3, %v12080_v31 }
 0x946   : > { %v8648_v34 = vpop.eup %8647  ;;  %8673 = vtanh.f32 %v6135_v14  ;;  %v6129_v49 = vmul.f32 %v8646_v17, %v6098_v15  ;;  %v6043_v29 = vadd.f32 1.0, %v11627_v27  ;;  %v6102_v16 = vrot.slane %v11662_v60, 7 }
 0x947   : > { %v8650_v30 = vpop.eup %8649  ;;  %8675 = vtanh.f32 %v6136_v52  ;;  %v6130_v21 = vmul.f32 %v8648_v34, %v6099_v32  ;;  %v6044_v38 = vadd.f32 1.0, %v11631_v40  ;;  %v6051_v11 = vadd.f32 1.0, %v8642_v47 }
 0x948   : > { %v8652_v61 = vpop.eup %8651  ;;  %8677 = vtanh.f32 %v6137_v8  ;;  %v6131_v13 = vmul.f32 %v8650_v30, %v6100_v51  ;;  %v6145_v4 = vadd.f32 %v6129_v49, %v9893_v26  ;;  %v6052_v17 = vadd.f32 1.0, %v8644_v53 }
 0x949   : > { %v8654_v59 = vpop.eup %8653  ;;  %8679 = vtanh.f32 %v6138_v6  ;;  %v6132_v33 = vmul.f32 %v8652_v61, %v6101_v2  ;;  %v6146_v27 = vadd.f32 %v6130_v21, %v9879_v19 }
 0x94a   : > { %v8656_v28 = vpop.eup %8655  ;;  %8681 = vtanh.f32 %v6139_v20  ;;  %v6133_v7 = vmul.f32 %v8654_v59, %v6102_v16  ;;  %v6147_v35 = vadd.f32 %v6131_v13, %v9915_v12 }
 0x94b   : > { %v8658_v57 = vpop.eup %8657  ;;  %8683 = vtanh.f32 %v6140_v37  ;;  %v6134_v31 = vmul.f32 %v8656_v28, %v11662_v60  ;;  %v6148_v14 = vadd.f32 %v6132_v33, %v12209_v55  ;;  %v12299_v60 = vld [vmem:[#allocation45_spill] sm:$0xff] }
 0x94c   : > { %v8660_v25 = vpop.eup %8659  ;;  %8685 = vtanh.f32 %v6141_v10  ;;  %v6149_v26 = vadd.f32 %v6133_v7, %v12253_v58 }
 0x94d   : > { %v11701_v5 = vpop.eup %8661  ;;  %8687 = vtanh.f32 %v6142_v0  ;;  %v6150_v52 = vadd.f32 %v6134_v31, %v12299_v60 }
 0x94e   : > { %v11705_v50 = vpop.eup %8663  ;;  %8689 = vrcp.f32 %v6043_v29 }
 0x94f   : > { %v11708_v40 = vpop.eup %8665  ;;  %8691 = vrcp.f32 %v6044_v38 }
 0x950   : > { %v11711_v9 = vpop.eup %8667  ;;  %8693 = vtanh.f32 %v6145_v4 }
 0x951   : > { %v11714_v22 = vpop.eup %8669  ;;  %8695 = vtanh.f32 %v6146_v27 }
 0x952   : > { %v11717_v19 = vpop.eup %8671  ;;  %8697 = vtanh.f32 %v6147_v35  ;;  %v6191_v12 = vrot.slane %v11714_v22, 1  ;;  %v12301_v35 = vld [vmem:[#allocation40_spill] sm:$0xff] }
 0x953   : > { %v8674_v8 = vpop.eup %8673  ;;  %8699 = vtanh.f32 %v6148_v14  ;;  %v6192_v55 = vrot.slane %v11717_v19, 1 }
 0x954   : > { %v8676_v3 = vpop.eup %8675  ;;  %v6183_v6 = vrot.slane %v8674_v8, 1  ;;  %8701 = vtanh.f32 %v6149_v26  ;;  %v6223_v58 = vsub.f32 %v11514_v44, %v6191_v12 }
 0x955   : > { %v8678_v34 = vpop.eup %8677  ;;  %v6184_v15 = vrot.slane %v8676_v3, 1  ;;  %8703 = vtanh.f32 %v6150_v52  ;;  %v6224_v20 = vsub.f32 %v11517_v39, %v6192_v55 }
 0x956   : > { %v8680_v30 = vpop.eup %8679  ;;  %8705 = vrcp.f32 %v6051_v11  ;;  %v6185_v47 = vrot.slane %v8678_v34, 1  ;;  %v6215_v32 = vsub.f32 %v11452_v62, %v6183_v6  ;;  %v6255_v46 = vrot.slane %v6223_v58, 7 }
 0x957   : > { %v8682_v53 = vpop.eup %8681  ;;  %8707 = vrcp.f32 %v6052_v17  ;;  %v6186_v37 = vrot.slane %v8680_v30, 1  ;;  %v6216_v61 = vsub.f32 %v11458_v23, %v6184_v15  ;;  %v6256_v51 = vrot.slane %v6224_v20, 7 }
 0x958   : > { %v8684_v49 = vpop.eup %8683  ;;  %v6187_v10 = vrot.slane %v8682_v53, 1  ;;  %v6217_v44 = vsub.f32 %v11463_v63, %v6185_v47  ;;  %v6247_v59 = vrot.slane %v6215_v32, 7  ;;  %v11726_v2 = vmul.f32 %v8658_v57, %v6255_v46  ;;  %v12300_v63 = vld [vmem:[#allocation37_spill] sm:$0xff] }
 0x959   : > { %v8686_v39 = vpop.eup %8685  ;;  %v6188_v21 = vrot.slane %v8684_v49, 1  ;;  %v6218_v0 = vsub.f32 %v11469_v54, %v6186_v37  ;;  %v6248_v28 = vrot.slane %v6216_v61, 7  ;;  %v11729_v62 = vmul.f32 %v8660_v25, %v6256_v51 }
 0x95a   : > { %v8688_v29 = vpop.eup %8687  ;;  %v6189_v16 = vrot.slane %v8686_v39, 1  ;;  %v6219_v13 = vsub.f32 %v11473_v56, %v6187_v10  ;;  %v6249_v23 = vrot.slane %v6217_v44, 7  ;;  %v6279_v38 = vmul.f32 %v11654_v41, %v6247_v59  ;;  %v12302_v56 = vld [vmem:[#allocation47_spill] sm:$0xff] }
 0x95b   : > { %v8690_v33 = vpop.eup %8689  ;;  %v6190_v7 = vrot.slane %v8688_v29, 1  ;;  %v6220_v4 = vsub.f32 %v12300_v63, %v6188_v21  ;;  %v6250_v57 = vrot.slane %v6218_v0, 7  ;;  %v6280_v31 = vmul.f32 %v11656_v24, %v6248_v28 }
 0x95c   : > { %v8692_v27 = vpop.eup %8691  ;;  %v6221_v54 = vsub.f32 %v12301_v35, %v6189_v16  ;;  %v6251_v14 = vrot.slane %v6219_v13, 7  ;;  %v6281_v25 = vmul.f32 %v11667_v18, %v6249_v23  ;;  %v6295_v26 = vadd.f32 %v8674_v8, %v6279_v38 }
 0x95d   : > { %v11737_v60 = vpop.eup %8693  ;;  %v6222_v52 = vsub.f32 %v12302_v56, %v6190_v7  ;;  %v6252_v11 = vrot.slane %v6220_v4, 7  ;;  %v6282_v41 = vmul.f32 %v11669_v45, %v6250_v57  ;;  %v6296_v12 = vadd.f32 %v8676_v3, %v6280_v31 }
 0x95e   : > { %v8696_v17 = vpop.eup %8695  ;;  %v6253_v55 = vrot.slane %v6221_v54, 7  ;;  %v6283_v6 = vmul.f32 %v11674_v36, %v6251_v14  ;;  %v6297_v24 = vadd.f32 %v8678_v34, %v6281_v25  ;;  %v6350_v58 = vrot.slane %v6295_v26, 7  ;;  %v12304_v54 = vld [vmem:[#allocation49_spill] sm:$0xff]  ;;  %v12305_v26 = vld [vmem:[#allocation48_spill] sm:$0xff] }
 0x95f   : > { %v8698_v15 = vpop.eup %8697  ;;  %v6254_v20 = vrot.slane %v6222_v52, 7  ;;  %v6284_v47 = vmul.f32 %v11677_v48, %v6252_v11  ;;  %v6298_v18 = vadd.f32 %v8680_v30, %v6282_v41  ;;  %v6351_v8 = vrot.slane %v6296_v12, 6 }
 0x960   : > { %v8700_v32 = vpop.eup %8699  ;;  %v6285_v46 = vmul.f32 %v8690_v33, %v6253_v55  ;;  %v6299_v37 = vadd.f32 %v8682_v53, %v6283_v6  ;;  %v6353_v61 = vrot.slane %v6297_v24, 5  ;;  %v6193_v51 = vrot.slane %v11737_v60, 1 }
 0x961   : > { %v8702_v45 = vpop.eup %8701  ;;  %v6286_v3 = vmul.f32 %v8692_v27, %v6254_v20  ;;  %v6300_v10 = vadd.f32 %v8684_v49, %v6284_v47  ;;  %v6352_v44 = vsel %vm1337_vm2, %v6351_v8, %v6350_v58  ;;  %v6355_v36 = vrot.slane %v6298_v18, 4  ;;  %v12303_v27 = vld [vmem:[#allocation42_spill] sm:$0xff] }
 0x962   : > { %v8704_v34 = vpop.eup %8703  ;;  %v6301_v59 = vadd.f32 %v8686_v39, %v6285_v46  ;;  %v6354_v21 = vsel %vm1340_vm3, %v6353_v61, %v6352_v44  ;;  %v6357_v0 = vrot.slane %v6299_v37, 3  ;;  %v6194_v48 = vrot.slane %v8696_v17, 1  ;;  %v6846_v44 = vld [vmem:[%s11831_s6] ss:$0 sm:$0xff] }
 0x963   : > { %v8706_v30 = vpop.eup %8705  ;;  %v6302_v28 = vadd.f32 %v8688_v29, %v6286_v3  ;;  %v6356_v16 = vsel %vm1343_vm4, %v6355_v36, %v6354_v21  ;;  %v6359_v53 = vrot.slane %v6300_v10, 2  ;;  %v6195_v13 = vrot.slane %v8698_v15, 1 }
 0x964   : > { %v8708_v23 = vpop.eup %8707  ;;  %v6358_v38 = vsel %vm1346_vm5, %v6357_v0, %v6356_v16  ;;  %v6361_v33 = vrot.slane %v6301_v59, 1  ;;  %v6196_v49 = vrot.slane %v8700_v32, 1  ;;  %v6197_v7 = vrot.slane %v8702_v45, 1 }
 0x965   : > { %v6360_v63 = vsel %vm1349_vm6, %v6359_v53, %v6358_v38  ;;  %v6198_v4 = vrot.slane %v8704_v34, 1  ;;  %v6225_v39 = vsub.f32 %v11520_v1, %v6193_v51  ;;  %v6226_v57 = vsub.f32 %v11522_v43, %v6194_v48 }
 0x966   : > { %v6362_v31 = vsel %vm1352_vm7, %v6361_v33, %v6360_v63  ;;  %v6227_v29 = vsub.f32 %v11524_v42, %v6195_v13  ;;  %v6228_v35 = vsub.f32 %v12303_v27, %v6196_v49  ;;  %v6229_v14 = vsub.f32 %v12304_v54, %v6197_v7 }
 0x967   : > { %v6363_v25 = vsel %vm1355_vm8, %v6302_v28, %v6362_v31  ;;  %v6230_v56 = vsub.f32 %v12305_v26, %v6198_v4  ;;  %v6257_v52 = vrot.slane %v6225_v39, 7  ;;  %v6258_v11 = vrot.slane %v6226_v57, 7 }
 0x968   : > { %7370 = vmatprep.mubr.f32.mxu1 %v6363_v25  ;;  %v6259_v41 = vrot.slane %v6227_v29, 7  ;;  %v6260_v12 = vrot.slane %v6228_v35, 7  ;;  %v6261_v1 = vrot.slane %v6229_v14, 7  ;;  %v6303_v43 = vadd.f32 %v11714_v22, %v11726_v2 }
 0x969   : > { %v6262_v55 = vrot.slane %v6230_v56, 7  ;;  %v6289_v42 = vmul.f32 %v11701_v5, %v6257_v52  ;;  %v6290_v6 = vmul.f32 %v11705_v50, %v6258_v11  ;;  %v6304_v24 = vadd.f32 %v11717_v19, %v11729_v62 }
 0x96a   : > { %v6291_v58 = vmul.f32 %v11708_v40, %v6259_v41  ;;  %v6292_v20 = vmul.f32 %v11711_v9, %v6260_v12  ;;  %v6293_v47 = vmul.f32 %v8706_v30, %v6261_v1  ;;  %v6364_v18 = vrot.slane %v6303_v43, 7 }
 0x96b   : > { %v6305_v8 = vadd.f32 %v11737_v60, %v6289_v42  ;;  %v6306_v46 = vadd.f32 %v8696_v17, %v6290_v6  ;;  %v6365_v37 = vrot.slane %v6304_v24, 6  ;;  %v6294_v51 = vmul.f32 %v8708_v23, %v6262_v55 }
 0x96c   : > { %v6307_v61 = vadd.f32 %v8698_v15, %v6291_v58  ;;  %v6308_v22 = vadd.f32 %v8700_v32, %v6292_v20  ;;  %v6309_v2 = vadd.f32 %v8702_v45, %v6293_v47 }
 0x96d   : > { %v6366_v5 = vsel %vm1337_vm2, %v6365_v37, %v6364_v18  ;;  %v6367_v50 = vrot.slane %v6305_v8, 5  ;;  %v6369_v3 = vrot.slane %v6306_v46, 4  ;;  %v6310_v10 = vadd.f32 %v8704_v34, %v6294_v51 }
 0x96e   : > { %v6371_v40 = vrot.slane %v6307_v61, 3  ;;  %v6373_v62 = vrot.slane %v6308_v22, 2  ;;  %v6375_v17 = vrot.slane %v6309_v2, 1 }
 0x96f   : > { %v6368_v19 = vsel %vm1340_vm3, %v6367_v50, %v6366_v5 }
 0x970   : > { %v6370_v9 = vsel %vm1343_vm4, %v6369_v3, %v6368_v19 }
 0x971   : > { %v6372_v60 = vsel %vm1346_vm5, %v6371_v40, %v6370_v9 }
 0x972   : > { %v6374_v15 = vsel %vm1349_vm6, %v6373_v62, %v6372_v60 }
 0x973   : > { %v6376_v32 = vsel %vm1352_vm7, %v6375_v17, %v6374_v15 }
 0x974   : > { %v6377_v45 = vsel %vm1355_vm8, %v6310_v10, %v6376_v32 }
 0x975   : > { %7371 = vmatmul.mubr.f32.vlgmr.msra.gmra.mxu1 %v6377_v45 }
 0xa35   : > { %v7372_v36 = vpop.f32.mrf.mxu1 }
 0xa36   : > { %v6452_v59 = vadd.f32 %v7372_v36, %v6846_v44 }
 0xa37   : > { %v6446_v34 = vpop.f32.mrf.mxu1 }
 0xa38   : > { %6456 = vst [vmem:[%s287_s9 + $0x8] sm:$0xff] %v6452_v59  ;;  %v6447_v21 = vadd.f32 %v6846_v44, %v6446_v34 }
 0xa3a   : > { %6455 = vst [vmem:[%s287_s9] sm:$0xff] %v6447_v21 }
 0xa3b   : > { %9040 = shalt.err (!%p9037_p0)
}
 0xa3c   : > { %s9041_s22 = scalar_lea.hbm %s11783_s17, 256  ;;  %s9045_s8 = scalar_lea.hbm %s11832_s7, 512 }
 0xa3d   : > { %p9042_p1 = scmp.ne.s32.totalorder %s11783_s17, %s9041_s22  ;;  %p9046_p4 = scmp.lt.s32.totalorder %s11783_s17, %s11832_s7 }
 0xa3e   : > { %p9047_p7 = scmp.lt.s32.totalorder %s9045_s8, %s9041_s22 }
 0xa3f   : > { %p9043_p2 = pnand %p9042_p1, %p9178_p5 }
 0xa40   : > { %p9048_p8 = por %p9047_p7, %p9046_p4 }
 0xa41   : > { %p9044_p3 = pneg %p9043_p2 }
 0xa43   : > { %p9049_p6 = pnand %p9048_p8, %p9044_p3 }
 0xa45   : > { %9052 = shalt.err (!%p9049_p6)
}
 0xa46   : > { %s9098_s15 = smov 128   ;;  %s9099_s16 = smov 8  }
 0xa47   : > { %7377 = dma.vmem_to_hbm [thread:$0]  (%p9178_p5), %s11778_s13, 256, %s11783_s17, %s11785_s18, %s9098_s15, %s9098_s15, %s9099_s16  }
 0xa48 PF: > { %p7389_p9 = scmp.ge.s32.totalorder %s9091_s27, 2  ;;  %s6486_s19 = sand.u32 1, %s9079_s24  }
 0xa49   : > { %p12306_p10 = scmp.ne.s32.totalorder %s11958_s12, 0  ;;  %s6487_s28 = scalar_lea.sflag [#allocation4], %s6486_s19 }
 0xa4b   : > { %p7384_p11 = pnand %p7389_p9, %p12306_p10 }
 0xa4d   : > { %p7385_p12 = pneg %p7384_p11 }
 0xa4f   : > { %9074 = dma.done.wait (%p7385_p12), %s6487_s28, 256  }
 0xa50   : > { %9076 = vsyncadd (%p7385_p12), %s6487_s28, 4294967040  ;;  %p18_p13 = scmp.ge.s32.totalorder %s9165_s30, 4   ;;  %s12307_s24 = smov %s9083_s25 }
 0xa51   : > { %s12308_s25 = smov %s9087_s26  ;;  %s12309_s26 = smov %s9176_s10 }
 0xa52   : > { %s12310_s27 = smov %s9165_s30  ;;  %20 = sbr.rel (!%p18_p13) target bundleno = 4 (0x4), region = 88 }
 0xa57   :  { %6492 = vsyncpa [#allocation3], 1 }
 0xa58   :  { %6494 = vsyncpa [#allocation3 + $0x1], 1 }
 0xa59   :  { %6495 = vsyncpa [#allocation4], 1 }
 0xa5a   :  { %6497 = vsyncpa [#allocation4 + $0x1], 1 }

</bundles_post_ra>
